<compile_context>
chip_gen: v7x
topology: tpu7x:2x2x1
jax: 0.10.0
libtpu: 0.0.40
codegen_flags: <defaults>
</compile_context>

<pallas_src>
import functools
import numpy as np

import jax
import jax.numpy as jnp
from jax import lax
from jax.experimental import pallas as pl
from jax.experimental.pallas import tpu as pltpu


# ----------------------------------------------------------------------------
# Fused Pallas kernel: conv+qkv matmul, per-head (content+relative) attention,
# attention projection, direct channel-major slab stores.
# ----------------------------------------------------------------------------
def fused_augmented_kernel(patches_ref, wcq_ref, emat_ref, mask_ref, brel_ref,
                           wattn_ref, o_ref, acc_ref,
                           *, Nh, dk, dkh, dvh, dv, conv_ch):
    f32 = jnp.float32
    bf16 = jnp.bfloat16

    # fused conv + qkv projection (biases + q-scale folded into the weight): (conv_ch+nqkv, HW)
    y = jnp.dot(wcq_ref[...], patches_ref[...], preferred_element_type=f32)

    # conv branch -> its sublane range of the channel-major output slab (lane-dense store)
    o_ref[:conv_ch, :] = y[:conv_ch, :].astype(o_ref.dtype)

    q = y[conv_ch:conv_ch + dk, :]               # (dk, HW), already scaled by dkh^-0.5
    k = y[conv_ch + dk:conv_ch + 2 * dk, :]      # (dk, HW)
    v = y[conv_ch + 2 * dk:, :]                  # (dv, HW)

    # one small transpose per batch; per-head q slices are then 8-lane slices of (HW, dk)
    qT = q.T                                     # (HW, dk)

    emat = emat_ref[...]                         # (dkh, Ca+dkh) bf16  [tiled eye | eye]
    mask = mask_ref[...]                         # (HW, Ca+dkh) f32    [rel one-hot | ones]
    brel = brel_ref[...]                         # (Ca, HW)     bf16   gathered relative keys

    # ones row for the folded attention-projection bias
    acc_ref[dv:dv + 1, :] = jnp.ones((1, acc_ref.shape[1]), f32)

    for h in range(Nh):                          # static unroll (Nh=4); see TODO for large HW
        qh = qT[:, h * dkh:(h + 1) * dkh].astype(bf16)   # (HW, dkh)
        kh = k[h * dkh:(h + 1) * dkh, :].astype(bf16)    # (dkh, HW)
        vh = v[h * dvh:(h + 1) * dvh, :]                 # (dvh, HW) f32

        # LHS = [q_aug | q_h]: one-hot expander matmul (bf16 MXU) + one VPU mask multiply
        lhs = (jnp.dot(qh, emat, preferred_element_type=f32) * mask).astype(bf16)  # (HW, Ca+dkh)
        # RHS = [brel ; k_h]: sublane concat at a 16-row-aligned offset (Ca is a multiple of 16)
        rhs = jnp.concatenate([brel, kh], axis=0)                                  # (Ca+dkh, HW)

        # merged content + relative logits in ONE bf16 MXU matmul, f32 accumulation
        logits = jnp.dot(lhs, rhs, preferred_element_type=f32)                     # (HW, HW)

        # softmax over keys; divide -> EUP approximate reciprocal + VPU multiply
        logits = logits - jnp.max(logits, axis=-1, keepdims=True)
        p = jnp.exp(logits)
        inv = pl.reciprocal(jnp.sum(p, axis=-1, keepdims=True), approx=True)
        probs = p * inv

        # weighted sum over keys, channel-major: (dvh, HW); write at the head's sublane offset
        out_h = lax.dot_general(vh, probs, (((1,), (1,)), ((), ())),
                                preferred_element_type=f32)
        acc_ref[h * dvh:(h + 1) * dvh, :] = out_h

    # attention 1x1 projection (bias folded via the ones row) -> rest of the output slab
    attn = jnp.dot(wattn_ref[...], acc_ref[...], preferred_element_type=f32)       # (dv, HW)
    o_ref[conv_ch:, :] = attn.astype(o_ref.dtype)


# ----------------------------------------------------------------------------
# Forward wrapper: layout-free prep (reshapes/slices + parameter-sized constant
# precompute) in XLA, all compute in the single Pallas call.
# ----------------------------------------------------------------------------
def augmented_layer_forward(x, params, *, kernel_size, padding, dk, dv, Nh):
    B, C, H, W = x.shape
    HW = H * W
    dkh = dk // Nh
    dvh = dv // Nh
    ksz, p = kernel_size, padding
    assert ksz == 2 * p + 1, "fused conv+qkv requires 'same' padding (kernel_size == 2*padding+1)"
    conv_ch = params["w_conv"].shape[0]
    nqkv = 2 * dk + dv
    out_ch = conv_ch + dv
    Kc = ksz * ksz * C
    Ca = (W + H) * dkh
    f32 = jnp.float32
    bf16 = jnp.bfloat16

    # ---- channel-major im2col straight from NCHW (no layout transpose) + ones bias row ----
    xp = jnp.pad(x, ((0, 0), (0, 0), (p, p), (p, p)))
    patches = jnp.concatenate(
        [xp[:, :, i:i + H, j:j + W].reshape(B, C, HW)
         for i in range(ksz) for j in range(ksz)], axis=1)                    # (B, Kc, HW)
    patches = jnp.concatenate([patches, jnp.ones((B, 1, HW), f32)], axis=1)   # (B, Kc+1, HW)

    # ---- fused conv + qkv weight (channel-major "W @ X" form), biases + q-scale folded ----
    w_conv_mat = params["w_conv"].transpose(0, 2, 3, 1).reshape(conv_ch, Kc)  # cols = (i*k+j)*C+c
    ct = p * ksz + p                                     # centre tap reproduces x exactly
    w_qkv_embed = jnp.zeros((nqkv, Kc), f32).at[:, ct * C:(ct + 1) * C].set(params["w_qkv"])
    w_cq = jnp.concatenate([w_conv_mat, w_qkv_embed], axis=0)
    b_cq = jnp.concatenate([params["b_conv"], params["b_qkv"]])[:, None]
    w_cq = jnp.concatenate([w_cq, b_cq], axis=1)                              # (conv_ch+nqkv, Kc+1)
    scale_col = jnp.ones((conv_ch + nqkv, 1), f32).at[conv_ch:conv_ch + dk].set(dkh ** (-0.5))
    w_cq = w_cq * scale_col

    # ---- attention projection weight with folded bias: (dv, dv + 1) ----
    w_attn_aug = jnp.concatenate([params["w_attn"], params["b_attn"][:, None]], axis=1)

    # ---- relative-position constants (tiny, parameter-sized; bf16 where they feed the MXU) ----
    # NOTE: px is the image row, py the column (names kept from the verified derivation).
    #   brel[t*dkh+d, j] = key_rel_w[py_j - t + W-1, d]   for t <  W
    #                      key_rel_h[px_j - (t-W) + H-1, d] for t >= W
    #   mask[i, t*dkh+d] = (py_i == t) / (px_i == t-W);  last dkh columns = 1 (content part)
    px = jnp.arange(HW) // W
    py = jnp.arange(HW) % W
    idx_w = py[None, :] - jnp.arange(W)[:, None] + (W - 1)                    # (W, HW)
    idx_h = px[None, :] - jnp.arange(H)[:, None] + (H - 1)                    # (H, HW)
    b_rel = jnp.concatenate([
        params["key_rel_w"][idx_w].transpose(0, 2, 1).reshape(W * dkh, HW),
        params["key_rel_h"][idx_h].transpose(0, 2, 1).reshape(H * dkh, HW),
    ], axis=0).astype(bf16)                                                   # (Ca, HW)
    mask_aug = jnp.concatenate([
        jnp.repeat((py[:, None] == jnp.arange(W)[None, :]).astype(f32), dkh, axis=1),
        jnp.repeat((px[:, None] == jnp.arange(H)[None, :]).astype(f32), dkh, axis=1),
        jnp.ones((HW, dkh), f32),                                             # content columns
    ], axis=1)                                                                # (HW, Ca+dkh)
    e_mat = jnp.concatenate([jnp.tile(jnp.eye(dkh, dtype=f32), (1, W + H)),
                             jnp.eye(dkh, dtype=f32)], axis=1).astype(bf16)   # (dkh, Ca+dkh)

    kern = functools.partial(fused_augmented_kernel, Nh=Nh, dk=dk, dkh=dkh,
                             dvh=dvh, dv=dv, conv_ch=conv_ch)

    out_slab = pl.pallas_call(
        kern,
        out_shape=jax.ShapeDtypeStruct((B, out_ch, HW), f32),
        grid=(B,),
        in_specs=[
            pl.BlockSpec((None, Kc + 1, HW), lambda b: (b, 0, 0)),     # im2col patches (+ones)
            # grid-invariant operands: constant (0,0) block -> not re-DMA'd across grid steps
            pl.BlockSpec((conv_ch + nqkv, Kc + 1), lambda b: (0, 0)),  # fused conv+qkv weight
            pl.BlockSpec((dkh, Ca + dkh), lambda b: (0, 0)),           # one-hot expander (bf16)
            pl.BlockSpec((HW, Ca + dkh), lambda b: (0, 0)),            # (py|px|ones) mask
            pl.BlockSpec((Ca, HW), lambda b: (0, 0)),                  # relative keys (bf16)
            pl.BlockSpec((dv, dv + 1), lambda b: (0, 0)),              # attn proj weight+bias
        ],
        out_specs=pl.BlockSpec((None, out_ch, HW), lambda b: (b, 0, 0)),
        scratch_shapes=[pltpu.VMEM((dv + 1, HW), f32)],                # head accumulator + ones row
        compiler_params=pltpu.CompilerParams(dimension_semantics=("parallel",)),
    )(patches, w_cq, e_mat, mask_aug, b_rel, w_attn_aug)

    # channel-major slab -> NCHW is a pure reshape (no transpose)
    return out_slab.reshape(B, out_ch, H, W)


# ----------------------------------------------------------------------------
# Pure-JAX reference mirroring the PyTorch module (for the correctness check)
# ----------------------------------------------------------------------------
def _rel_to_abs(x):
    b, N, l, _ = x.shape
    x = jnp.concatenate([x, jnp.zeros((b, N, l, 1), x.dtype)], axis=3)
    flat_x = x.reshape(b, N, l * 2 * l)
    flat_x = jnp.concatenate([flat_x, jnp.zeros((b, N, l - 1), x.dtype)], axis=2)
    final = flat_x.reshape(b, N, l + 1, 2 * l - 1)
    return final[:, :, :l, l - 1:]


def _relative_logits_1d(q, rel_k, permute_mask, Nh):
    b, nh, h, w, _ = q.shape
    rel_logits = jnp.einsum("bhxyd,md->bhxym", q, rel_k)
    rel_logits = rel_logits.reshape(-1, Nh * h, w, 2 * w - 1)
    rel_logits = _rel_to_abs(rel_logits)
    rel_logits = rel_logits.reshape(-1, Nh, h, w, w)
    rel_logits = jnp.expand_dims(rel_logits, axis=3)
    rel_logits = jnp.tile(rel_logits, (1, 1, 1, h, 1, 1))
    rel_logits = jnp.transpose(rel_logits, permute_mask)
    return rel_logits.reshape(-1, Nh, h * w, h * w)


def reference_forward(x, params, *, kernel_size, padding, dk, dv, Nh):
    B, C, H, W = x.shape
    dkh = dk // Nh
    conv_out = lax.conv_general_dilated(
        x,
        params["w_conv"],
        window_strides=(1, 1),
        padding=[(padding, padding), (padding, padding)],
        dimension_numbers=("NCHW", "OIHW", "NCHW"),
    ) + params["b_conv"][None, :, None, None]
    qkv = jnp.einsum("bchw,oc->bohw", x, params["w_qkv"]) + params["b_qkv"][
        None, :, None, None
    ]
    q, k, v = qkv[:, :dk], qkv[:, dk:2 * dk], qkv[:, 2 * dk:]
    q = q.reshape(B, Nh, dkh, H, W) * dkh ** (-0.5)
    k = k.reshape(B, Nh, dkh, H, W)
    v = v.reshape(B, Nh, dv // Nh, H, W)
    flat_q = q.reshape(B, Nh, dkh, H * W)
    flat_k = k.reshape(B, Nh, dkh, H * W)
    flat_v = v.reshape(B, Nh, dv // Nh, H * W)
    logits = jnp.einsum("bndi,bndj->bnij", flat_q, flat_k)
    q_perm = jnp.transpose(q, (0, 1, 3, 4, 2))
    rel_w = _relative_logits_1d(q_perm, params["key_rel_w"], (0, 1, 2, 4, 3, 5), Nh)
    rel_h = _relative_logits_1d(
        jnp.transpose(q_perm, (0, 1, 3, 2, 4)), params["key_rel_h"], (0, 1, 4, 2, 5, 3), Nh
    )
    logits = logits + rel_w + rel_h
    weights = jax.nn.softmax(logits, axis=-1)
    attn = jnp.einsum("bnij,bndj->bnid", weights, flat_v)
    attn = jnp.transpose(attn, (0, 1, 3, 2)).reshape(B, dv, H, W)
    attn = jnp.einsum("bchw,oc->bohw", attn, params["w_attn"]) + params["b_attn"][
        None, :, None, None
    ]
    return jnp.concatenate([conv_out, attn], axis=1)


# ----------------------------------------------------------------------------
if __name__ == "__main__":
    # Module config (small but TPU-reasonable; HW = 256, consistent with AugmentedLayer asserts)
    B, C_in, H, W = 2, 4, 16, 16
    out_channels, kernel_size, padding = 32, 3, 1
    dk, dv, Nh = 32, 16, 4
    fh, fw = H, W
    dkh = dk // Nh
    conv_ch = out_channels - dv

    key = jax.random.PRNGKey(0)
    ks = jax.random.split(key, 9)
    params = {
        "w_conv": 0.1 * jax.random.normal(ks[0], (conv_ch, C_in, kernel_size, kernel_size), jnp.float32),
        "b_conv": 0.1 * jax.random.normal(ks[1], (conv_ch,), jnp.float32),
        "w_qkv": 0.1 * jax.random.normal(ks[2], (2 * dk + dv, C_in), jnp.float32),
        "b_qkv": 0.1 * jax.random.normal(ks[3], (2 * dk + dv,), jnp.float32),
        "w_attn": 0.1 * jax.random.normal(ks[4], (dv, dv), jnp.float32),
        "b_attn": 0.1 * jax.random.normal(ks[5], (dv,), jnp.float32),
        "key_rel_w": jax.random.normal(ks[6], (2 * fw - 1, dkh), jnp.float32) + dk ** (-0.5),
        "key_rel_h": jax.random.normal(ks[7], (2 * fh - 1, dkh), jnp.float32) + dk ** (-0.5),
    }
    x = jax.random.normal(ks[8], (B, C_in, H, W), jnp.float32)

    cfg = dict(kernel_size=kernel_size, padding=padding, dk=dk, dv=dv, Nh=Nh)
    fwd = jax.jit(functools.partial(augmented_layer_forward, **cfg))
    out = jax.block_until_ready(fwd(x, params))
    assert out.shape == (B, out_channels, H, W), out.shape

    ref = jax.block_until_ready(reference_forward(x, params, **cfg))
    # Tolerance relaxed slightly vs exact f32: the merged content+relative logits matmul (and its
    # expander) deliberately use bf16 MXU operands with f32 accumulation (per the perf review),
    # and the softmax uses the EUP approximate reciprocal. Expected deviation is ~1e-3 or less.
    np.testing.assert_allclose(np.asarray(out), np.asarray(ref), rtol=3e-3, atol=3e-3)

    print("KERNEL_OK")
</pallas_src>

<mosaic_0001>
module attributes {stable_mosaic.version = 11 : i64} {
  func.func @fused_augmented_kernel(%arg0: i32, %arg1: memref<1x37x256xf32, #tpu.memory_space<vmem>>, %arg2: memref<96x37xf32, #tpu.memory_space<vmem>>, %arg3: memref<8x264xbf16, #tpu.memory_space<vmem>>, %arg4: memref<256x264xf32, #tpu.memory_space<vmem>>, %arg5: memref<256x256xbf16, #tpu.memory_space<vmem>>, %arg6: memref<16x17xf32, #tpu.memory_space<vmem>>, %arg7: memref<1x32x256xf32, #tpu.memory_space<vmem>>, %arg8: memref<17x256xf32, #tpu.memory_space<vmem>>) attributes {dimension_semantics = [#tpu.dimension_semantics<parallel>], iteration_bounds = array<i64: 2>, scalar_prefetch = 0 : i64, scratch_operands = 1 : i64, tpu.core_type = #tpu.core_type<tc>, window_params = [{transform_indices = @transform_0, window_bounds = array<i64: 1, 37, 256>}, {pipeline_mode = #tpu.pipeline_mode<synchronous>, transform_indices = @transform_1, window_bounds = array<i64: 96, 37>}, {pipeline_mode = #tpu.pipeline_mode<synchronous>, transform_indices = @transform_2, window_bounds = array<i64: 8, 264>}, {pipeline_mode = #tpu.pipeline_mode<synchronous>, transform_indices = @transform_3, window_bounds = array<i64: 256, 264>}, {pipeline_mode = #tpu.pipeline_mode<synchronous>, transform_indices = @transform_4, window_bounds = array<i64: 256, 256>}, {pipeline_mode = #tpu.pipeline_mode<synchronous>, transform_indices = @transform_5, window_bounds = array<i64: 16, 17>}, {transform_indices = @transform_6, window_bounds = array<i64: 1, 32, 256>}]} {
    %c0 = arith.constant 0 : index
    %c0_0 = arith.constant 0 : index
    %0 = vector.load %arg2[%c0, %c0_0] : memref<96x37xf32, #tpu.memory_space<vmem>>, vector<96x37xf32>
    %c0_1 = arith.constant 0 : index
    %c0_2 = arith.constant 0 : index
    %c0_3 = arith.constant 0 : index
    %1 = vector.load %arg1[%c0_1, %c0_2, %c0_3] : memref<1x37x256xf32, #tpu.memory_space<vmem>>, vector<1x37x256xf32>
    %2 = vector.shape_cast %1 : vector<1x37x256xf32> to vector<37x256xf32>
    %cst = arith.constant dense<0.000000e+00> : vector<96x256xf32>
    %3 = tpu.matmul %0, %2, %cst {dimension_numbers = #tpu.dot_dimension_numbers<[1], [0], [0], [1], [0, 0, 1, 1], [], []>} : vector<96x37xf32>, vector<37x256xf32>, vector<96x256xf32> -> vector<96x256xf32>
    %4 = vector.extract_strided_slice %3 {offsets = [0, 0], sizes = [16, 256], strides = [1, 1]} : vector<96x256xf32> to vector<16x256xf32>
    %c0_4 = arith.constant 0 : index
    %c0_5 = arith.constant 0 : index
    %c0_6 = arith.constant 0 : index
    %5 = vector.load %arg7[%c0_4, %c0_5, %c0_6] : memref<1x32x256xf32, #tpu.memory_space<vmem>>, vector<1x16x256xf32>
    %6 = vector.shape_cast %5 : vector<1x16x256xf32> to vector<16x256xf32>
    %7 = vector.shape_cast %4 : vector<16x256xf32> to vector<1x16x256xf32>
    tpu.vector_store %arg7[%c0_4, %c0_5, %c0_6], %7 {strides = array<i32>} : memref<1x32x256xf32, #tpu.memory_space<vmem>>, vector<1x16x256xf32>,
    %8 = vector.extract_strided_slice %3 {offsets = [16, 0], sizes = [32, 256], strides = [1, 1]} : vector<96x256xf32> to vector<32x256xf32>
    %9 = vector.extract_strided_slice %3 {offsets = [48, 0], sizes = [32, 256], strides = [1, 1]} : vector<96x256xf32> to vector<32x256xf32>
    %10 = vector.extract_strided_slice %3 {offsets = [80, 0], sizes = [16, 256], strides = [1, 1]} : vector<96x256xf32> to vector<16x256xf32>
    %11 = tpu.transpose %8, [1, 0] : vector<32x256xf32> -> vector<256x32xf32>
    %c0_7 = arith.constant 0 : index
    %c0_8 = arith.constant 0 : index
    %12 = vector.load %arg3[%c0_7, %c0_8] : memref<8x264xbf16, #tpu.memory_space<vmem>>, vector<8x264xbf16>
    %c0_9 = arith.constant 0 : index
    %c0_10 = arith.constant 0 : index
    %13 = vector.load %arg4[%c0_9, %c0_10] : memref<256x264xf32, #tpu.memory_space<vmem>>, vector<256x264xf32>
    %c0_11 = arith.constant 0 : index
    %c0_12 = arith.constant 0 : index
    %14 = vector.load %arg5[%c0_11, %c0_12] : memref<256x256xbf16, #tpu.memory_space<vmem>>, vector<256x256xbf16>
    %cst_13 = arith.constant 1.000000e+00 : f32
    %15 = vector.broadcast %cst_13 : f32 to vector<1x256xf32>
    %c16 = arith.constant 16 : index
    %c0_14 = arith.constant 0 : index
    %16 = vector.load %arg8[%c16, %c0_14] : memref<17x256xf32, #tpu.memory_space<vmem>>, vector<1x256xf32>
    tpu.vector_store %arg8[%c16, %c0_14], %15 {strides = array<i32>} : memref<17x256xf32, #tpu.memory_space<vmem>>, vector<1x256xf32>,
    %17 = vector.extract_strided_slice %11 {offsets = [0, 0], sizes = [256, 8], strides = [1, 1]} : vector<256x32xf32> to vector<256x8xf32>
    %18 = arith.truncf %17 : vector<256x8xf32> to vector<256x8xbf16>
    %19 = vector.extract_strided_slice %9 {offsets = [0, 0], sizes = [8, 256], strides = [1, 1]} : vector<32x256xf32> to vector<8x256xf32>
    %20 = arith.truncf %19 : vector<8x256xf32> to vector<8x256xbf16>
    %21 = vector.extract_strided_slice %10 {offsets = [0, 0], sizes = [4, 256], strides = [1, 1]} : vector<16x256xf32> to vector<4x256xf32>
    %cst_15 = arith.constant dense<0.000000e+00> : vector<256x264xf32>
    %22 = tpu.matmul %18, %12, %cst_15 {dimension_numbers = #tpu.dot_dimension_numbers<[1], [0], [0], [1], [0, 0, 1, 1], [], []>} : vector<256x8xbf16>, vector<8x264xbf16>, vector<256x264xf32> -> vector<256x264xf32>
    %23 = arith.mulf %22, %13 : vector<256x264xf32>
    %24 = arith.truncf %23 : vector<256x264xf32> to vector<256x264xbf16>
    %25 = tpu.concatenate %14, %20 in 0 : vector<256x256xbf16>, vector<8x256xbf16> -> vector<264x256xbf16>
    %cst_16 = arith.constant dense<0.000000e+00> : vector<256x256xf32>
    %26 = tpu.matmul %24, %25, %cst_16 {dimension_numbers = #tpu.dot_dimension_numbers<[1], [0], [0], [1], [0, 0, 1, 1], [], []>} : vector<256x264xbf16>, vector<264x256xbf16>, vector<256x256xf32> -> vector<256x256xf32>
    %cst_17 = arith.constant dense<0xFF800000> : vector<256xf32>
    %27 = vector.multi_reduction <maximumf>, %26, %cst_17 [1] : vector<256x256xf32> to vector<256xf32>
    %28 = vector.shape_cast %27 : vector<256xf32> to vector<256x1xf32>
    %29 = vector.broadcast %28 : vector<256x1xf32> to vector<256x256xf32>
    %30 = arith.subf %26, %29 : vector<256x256xf32>
    %31 = math.exp %30 : vector<256x256xf32>
    %cst_18 = arith.constant dense<0.000000e+00> : vector<256xf32>
    %32 = vector.multi_reduction <add>, %31, %cst_18 [1] : vector<256x256xf32> to vector<256xf32>
    %33 = vector.shape_cast %32 : vector<256xf32> to vector<256x1xf32>
    %34 = tpu.reciprocal %33 {approx = true} : vector<256x1xf32> -> vector<256x1xf32>
    %35 = vector.broadcast %34 : vector<256x1xf32> to vector<256x256xf32>
    %36 = arith.mulf %31, %35 : vector<256x256xf32>
    %cst_19 = arith.constant dense<0.000000e+00> : vector<4x256xf32>
    %37 = tpu.matmul %21, %36, %cst_19 {dimension_numbers = #tpu.dot_dimension_numbers<[1], [1], [0], [0], [0, 0, 1, 0], [], []>} : vector<4x256xf32>, vector<256x256xf32>, vector<4x256xf32> -> vector<4x256xf32>
    %c0_20 = arith.constant 0 : index
    %c0_21 = arith.constant 0 : index
    %38 = vector.load %arg8[%c0_20, %c0_21] : memref<17x256xf32, #tpu.memory_space<vmem>>, vector<4x256xf32>
    tpu.vector_store %arg8[%c0_20, %c0_21], %37 {strides = array<i32>} : memref<17x256xf32, #tpu.memory_space<vmem>>, vector<4x256xf32>,
    %39 = vector.extract_strided_slice %11 {offsets = [0, 8], sizes = [256, 8], strides = [1, 1]} : vector<256x32xf32> to vector<256x8xf32>
    %40 = arith.truncf %39 : vector<256x8xf32> to vector<256x8xbf16>
    %41 = vector.extract_strided_slice %9 {offsets = [8, 0], sizes = [8, 256], strides = [1, 1]} : vector<32x256xf32> to vector<8x256xf32>
    %42 = arith.truncf %41 : vector<8x256xf32> to vector<8x256xbf16>
    %43 = vector.extract_strided_slice %10 {offsets = [4, 0], sizes = [4, 256], strides = [1, 1]} : vector<16x256xf32> to vector<4x256xf32>
    %cst_22 = arith.constant dense<0.000000e+00> : vector<256x264xf32>
    %44 = tpu.matmul %40, %12, %cst_22 {dimension_numbers = #tpu.dot_dimension_numbers<[1], [0], [0], [1], [0, 0, 1, 1], [], []>} : vector<256x8xbf16>, vector<8x264xbf16>, vector<256x264xf32> -> vector<256x264xf32>
    %45 = arith.mulf %44, %13 : vector<256x264xf32>
    %46 = arith.truncf %45 : vector<256x264xf32> to vector<256x264xbf16>
    %47 = tpu.concatenate %14, %42 in 0 : vector<256x256xbf16>, vector<8x256xbf16> -> vector<264x256xbf16>
    %cst_23 = arith.constant dense<0.000000e+00> : vector<256x256xf32>
    %48 = tpu.matmul %46, %47, %cst_23 {dimension_numbers = #tpu.dot_dimension_numbers<[1], [0], [0], [1], [0, 0, 1, 1], [], []>} : vector<256x264xbf16>, vector<264x256xbf16>, vector<256x256xf32> -> vector<256x256xf32>
    %cst_24 = arith.constant dense<0xFF800000> : vector<256xf32>
    %49 = vector.multi_reduction <maximumf>, %48, %cst_24 [1] : vector<256x256xf32> to vector<256xf32>
    %50 = vector.shape_cast %49 : vector<256xf32> to vector<256x1xf32>
    %51 = vector.broadcast %50 : vector<256x1xf32> to vector<256x256xf32>
    %52 = arith.subf %48, %51 : vector<256x256xf32>
    %53 = math.exp %52 : vector<256x256xf32>
    %cst_25 = arith.constant dense<0.000000e+00> : vector<256xf32>
    %54 = vector.multi_reduction <add>, %53, %cst_25 [1] : vector<256x256xf32> to vector<256xf32>
    %55 = vector.shape_cast %54 : vector<256xf32> to vector<256x1xf32>
    %56 = tpu.reciprocal %55 {approx = true} : vector<256x1xf32> -> vector<256x1xf32>
    %57 = vector.broadcast %56 : vector<256x1xf32> to vector<256x256xf32>
    %58 = arith.mulf %53, %57 : vector<256x256xf32>
    %cst_26 = arith.constant dense<0.000000e+00> : vector<4x256xf32>
    %59 = tpu.matmul %43, %58, %cst_26 {dimension_numbers = #tpu.dot_dimension_numbers<[1], [1], [0], [0], [0, 0, 1, 0], [], []>} : vector<4x256xf32>, vector<256x256xf32>, vector<4x256xf32> -> vector<4x256xf32>
    %c4 = arith.constant 4 : index
    %c0_27 = arith.constant 0 : index
    %60 = vector.load %arg8[%c4, %c0_27] : memref<17x256xf32, #tpu.memory_space<vmem>>, vector<4x256xf32>
    tpu.vector_store %arg8[%c4, %c0_27], %59 {strides = array<i32>} : memref<17x256xf32, #tpu.memory_space<vmem>>, vector<4x256xf32>,
    %61 = vector.extract_strided_slice %11 {offsets = [0, 16], sizes = [256, 8], strides = [1, 1]} : vector<256x32xf32> to vector<256x8xf32>
    %62 = arith.truncf %61 : vector<256x8xf32> to vector<256x8xbf16>
    %63 = vector.extract_strided_slice %9 {offsets = [16, 0], sizes = [8, 256], strides = [1, 1]} : vector<32x256xf32> to vector<8x256xf32>
    %64 = arith.truncf %63 : vector<8x256xf32> to vector<8x256xbf16>
    %65 = vector.extract_strided_slice %10 {offsets = [8, 0], sizes = [4, 256], strides = [1, 1]} : vector<16x256xf32> to vector<4x256xf32>
    %cst_28 = arith.constant dense<0.000000e+00> : vector<256x264xf32>
    %66 = tpu.matmul %62, %12, %cst_28 {dimension_numbers = #tpu.dot_dimension_numbers<[1], [0], [0], [1], [0, 0, 1, 1], [], []>} : vector<256x8xbf16>, vector<8x264xbf16>, vector<256x264xf32> -> vector<256x264xf32>
    %67 = arith.mulf %66, %13 : vector<256x264xf32>
    %68 = arith.truncf %67 : vector<256x264xf32> to vector<256x264xbf16>
    %69 = tpu.concatenate %14, %64 in 0 : vector<256x256xbf16>, vector<8x256xbf16> -> vector<264x256xbf16>
    %cst_29 = arith.constant dense<0.000000e+00> : vector<256x256xf32>
    %70 = tpu.matmul %68, %69, %cst_29 {dimension_numbers = #tpu.dot_dimension_numbers<[1], [0], [0], [1], [0, 0, 1, 1], [], []>} : vector<256x264xbf16>, vector<264x256xbf16>, vector<256x256xf32> -> vector<256x256xf32>
    %cst_30 = arith.constant dense<0xFF800000> : vector<256xf32>
    %71 = vector.multi_reduction <maximumf>, %70, %cst_30 [1] : vector<256x256xf32> to vector<256xf32>
    %72 = vector.shape_cast %71 : vector<256xf32> to vector<256x1xf32>
    %73 = vector.broadcast %72 : vector<256x1xf32> to vector<256x256xf32>
    %74 = arith.subf %70, %73 : vector<256x256xf32>
    %75 = math.exp %74 : vector<256x256xf32>
    %cst_31 = arith.constant dense<0.000000e+00> : vector<256xf32>
    %76 = vector.multi_reduction <add>, %75, %cst_31 [1] : vector<256x256xf32> to vector<256xf32>
    %77 = vector.shape_cast %76 : vector<256xf32> to vector<256x1xf32>
    %78 = tpu.reciprocal %77 {approx = true} : vector<256x1xf32> -> vector<256x1xf32>
    %79 = vector.broadcast %78 : vector<256x1xf32> to vector<256x256xf32>
    %80 = arith.mulf %75, %79 : vector<256x256xf32>
    %cst_32 = arith.constant dense<0.000000e+00> : vector<4x256xf32>
    %81 = tpu.matmul %65, %80, %cst_32 {dimension_numbers = #tpu.dot_dimension_numbers<[1], [1], [0], [0], [0, 0, 1, 0], [], []>} : vector<4x256xf32>, vector<256x256xf32>, vector<4x256xf32> -> vector<4x256xf32>
    %c8 = arith.constant 8 : index
    %c0_33 = arith.constant 0 : index
    %82 = vector.load %arg8[%c8, %c0_33] : memref<17x256xf32, #tpu.memory_space<vmem>>, vector<4x256xf32>
    tpu.vector_store %arg8[%c8, %c0_33], %81 {strides = array<i32>} : memref<17x256xf32, #tpu.memory_space<vmem>>, vector<4x256xf32>,
    %83 = vector.extract_strided_slice %11 {offsets = [0, 24], sizes = [256, 8], strides = [1, 1]} : vector<256x32xf32> to vector<256x8xf32>
    %84 = arith.truncf %83 : vector<256x8xf32> to vector<256x8xbf16>
    %85 = vector.extract_strided_slice %9 {offsets = [24, 0], sizes = [8, 256], strides = [1, 1]} : vector<32x256xf32> to vector<8x256xf32>
    %86 = arith.truncf %85 : vector<8x256xf32> to vector<8x256xbf16>
    %87 = vector.extract_strided_slice %10 {offsets = [12, 0], sizes = [4, 256], strides = [1, 1]} : vector<16x256xf32> to vector<4x256xf32>
    %cst_34 = arith.constant dense<0.000000e+00> : vector<256x264xf32>
    %88 = tpu.matmul %84, %12, %cst_34 {dimension_numbers = #tpu.dot_dimension_numbers<[1], [0], [0], [1], [0, 0, 1, 1], [], []>} : vector<256x8xbf16>, vector<8x264xbf16>, vector<256x264xf32> -> vector<256x264xf32>
    %89 = arith.mulf %88, %13 : vector<256x264xf32>
    %90 = arith.truncf %89 : vector<256x264xf32> to vector<256x264xbf16>
    %91 = tpu.concatenate %14, %86 in 0 : vector<256x256xbf16>, vector<8x256xbf16> -> vector<264x256xbf16>
    %cst_35 = arith.constant dense<0.000000e+00> : vector<256x256xf32>
    %92 = tpu.matmul %90, %91, %cst_35 {dimension_numbers = #tpu.dot_dimension_numbers<[1], [0], [0], [1], [0, 0, 1, 1], [], []>} : vector<256x264xbf16>, vector<264x256xbf16>, vector<256x256xf32> -> vector<256x256xf32>
    %cst_36 = arith.constant dense<0xFF800000> : vector<256xf32>
    %93 = vector.multi_reduction <maximumf>, %92, %cst_36 [1] : vector<256x256xf32> to vector<256xf32>
    %94 = vector.shape_cast %93 : vector<256xf32> to vector<256x1xf32>
    %95 = vector.broadcast %94 : vector<256x1xf32> to vector<256x256xf32>
    %96 = arith.subf %92, %95 : vector<256x256xf32>
    %97 = math.exp %96 : vector<256x256xf32>
    %cst_37 = arith.constant dense<0.000000e+00> : vector<256xf32>
    %98 = vector.multi_reduction <add>, %97, %cst_37 [1] : vector<256x256xf32> to vector<256xf32>
    %99 = vector.shape_cast %98 : vector<256xf32> to vector<256x1xf32>
    %100 = tpu.reciprocal %99 {approx = true} : vector<256x1xf32> -> vector<256x1xf32>
    %101 = vector.broadcast %100 : vector<256x1xf32> to vector<256x256xf32>
    %102 = arith.mulf %97, %101 : vector<256x256xf32>
    %cst_38 = arith.constant dense<0.000000e+00> : vector<4x256xf32>
    %103 = tpu.matmul %87, %102, %cst_38 {dimension_numbers = #tpu.dot_dimension_numbers<[1], [1], [0], [0], [0, 0, 1, 0], [], []>} : vector<4x256xf32>, vector<256x256xf32>, vector<4x256xf32> -> vector<4x256xf32>
    %c12 = arith.constant 12 : index
    %c0_39 = arith.constant 0 : index
    %104 = vector.load %arg8[%c12, %c0_39] : memref<17x256xf32, #tpu.memory_space<vmem>>, vector<4x256xf32>
    tpu.vector_store %arg8[%c12, %c0_39], %103 {strides = array<i32>} : memref<17x256xf32, #tpu.memory_space<vmem>>, vector<4x256xf32>,
    %c0_40 = arith.constant 0 : index
    %c0_41 = arith.constant 0 : index
    %105 = vector.load %arg6[%c0_40, %c0_41] : memref<16x17xf32, #tpu.memory_space<vmem>>, vector<16x17xf32>
    %c0_42 = arith.constant 0 : index
    %c0_43 = arith.constant 0 : index
    %106 = vector.load %arg8[%c0_42, %c0_43] : memref<17x256xf32, #tpu.memory_space<vmem>>, vector<17x256xf32>
    %cst_44 = arith.constant dense<0.000000e+00> : vector<16x256xf32>
    %107 = tpu.matmul %105, %106, %cst_44 {dimension_numbers = #tpu.dot_dimension_numbers<[1], [0], [0], [1], [0, 0, 1, 1], [], []>} : vector<16x17xf32>, vector<17x256xf32>, vector<16x256xf32> -> vector<16x256xf32>
    %c0_45 = arith.constant 0 : index
    %c16_46 = arith.constant 16 : index
    %c0_47 = arith.constant 0 : index
    %108 = vector.load %arg7[%c0_45, %c16_46, %c0_47] : memref<1x32x256xf32, #tpu.memory_space<vmem>>, vector<1x16x256xf32>
    %109 = vector.shape_cast %108 : vector<1x16x256xf32> to vector<16x256xf32>
    %110 = vector.shape_cast %107 : vector<16x256xf32> to vector<1x16x256xf32>
    tpu.vector_store %arg7[%c0_45, %c16_46, %c0_47], %110 {strides = array<i32>} : memref<1x32x256xf32, #tpu.memory_space<vmem>>, vector<1x16x256xf32>,
    return
  }
  func.func @transform_0(%arg0: i32) -> (i32, i32, i32) {
    %c0_i32 = arith.constant 0 : i32
    %c0_i32_0 = arith.constant 0 : i32
    %c0_i32_1 = arith.constant 0 : i32
    return %arg0, %c0_i32, %c0_i32_0 : i32, i32, i32
  }
  func.func @transform_1(%arg0: i32) -> (i32, i32) {
    %c0_i32 = arith.constant 0 : i32
    %c0_i32_0 = arith.constant 0 : i32
    %c0_i32_1 = arith.constant 0 : i32
    return %c0_i32, %c0_i32_0 : i32, i32
  }
  func.func @transform_2(%arg0: i32) -> (i32, i32) {
    %c0_i32 = arith.constant 0 : i32
    %c0_i32_0 = arith.constant 0 : i32
    %c0_i32_1 = arith.constant 0 : i32
    return %c0_i32, %c0_i32_0 : i32, i32
  }
  func.func @transform_3(%arg0: i32) -> (i32, i32) {
    %c0_i32 = arith.constant 0 : i32
    %c0_i32_0 = arith.constant 0 : i32
    %c0_i32_1 = arith.constant 0 : i32
    return %c0_i32, %c0_i32_0 : i32, i32
  }
  func.func @transform_4(%arg0: i32) -> (i32, i32) {
    %c0_i32 = arith.constant 0 : i32
    %c0_i32_0 = arith.constant 0 : i32
    %c0_i32_1 = arith.constant 0 : i32
    return %c0_i32, %c0_i32_0 : i32, i32
  }
  func.func @transform_5(%arg0: i32) -> (i32, i32) {
    %c0_i32 = arith.constant 0 : i32
    %c0_i32_0 = arith.constant 0 : i32
    %c0_i32_1 = arith.constant 0 : i32
    return %c0_i32, %c0_i32_0 : i32, i32
  }
  func.func @transform_6(%arg0: i32) -> (i32, i32, i32) {
    %c0_i32 = arith.constant 0 : i32
    %c0_i32_0 = arith.constant 0 : i32
    %c0_i32_1 = arith.constant 0 : i32
    return %arg0, %c0_i32, %c0_i32_0 : i32, i32, i32
  }
}

</mosaic_0001>

<bundles_post_ra>
// kernel: tile.0
= control target key start
LH: loop header
LB: loop body
LE: loop exit
PB: predicated region body
PF: predicated region fallthrough
CT: control target
= control target key end

     0   :  { %vm566_vm0 = vcmask 1041409   ;;  %vm570_vm1 = vcmask 1042434   ;;  %vm574_vm2 = vcmask 1043459   ;;  %vm578_vm3 = vcmask 1044484   ;;  %s1848_s9 = smov 104   ;;  %s1849_s10 = smov 112   ;;  %s2159_s0 = inlined_call_operand.vmem [shape: bf16[8,32,8], index: 0, kind: input, shape index: {}]   ;;  %s2160_s1 = inlined_call_operand.vmem [shape: bf16[8,256], index: 1, kind: output, shape index: {}]  }
   0x1   :  { %v1875_v0 = vld [vmem:[%s2159_s0 + $0x78] sm:$0xff]   ;;  %v1743_v1 = vld [vmem:[%s2159_s0 + $0x70] sm:$0xff]   ;;  %v1744_v2 = vld [vmem:[%s2159_s0 + $0x68] sm:$0xff]   ;;  %vm582_vm4 = vcmask 1045509   ;;  %vm586_vm5 = vcmask 1046534   ;;  %vm590_vm6 = vcmask 1047559  }
   0x2   :  { %v1676_v3 = vunpack.c.h.bf16 %v1875_v0  ;;  %v1679_v4 = vunpack.c.l.bf16 %v1743_v1  ;;  %v1680_v5 = vunpack.c.h.bf16 %v1743_v1  ;;  %v1683_v6 = vunpack.c.l.bf16 %v1744_v2  ;;  %v1887_v7 = vld [vmem:[%s2159_s0 + $0x60] sm:$0xff]   ;;  %v1892_v8 = vld [vmem:[%s2159_s0 + $0x58] sm:$0xff]   ;;  %v1747_v9 = vld [vmem:[%s2159_s0 + $0x50] sm:$0xff]   ;;  %s1850_s11 = smov 96   ;;  %s1851_s12 = smov 88  }
   0x3   :  { %v1684_v10 = vunpack.c.h.bf16 %v1744_v2  ;;  %v1688_v11 = vunpack.c.h.bf16 %v1887_v7  ;;  %v1692_v12 = vunpack.c.h.bf16 %v1892_v8  ;;  %v1695_v13 = vunpack.c.l.bf16 %v1747_v9  ;;  %v1748_v14 = vld [vmem:[%s2159_s0 + $0x48] sm:$0xff]   ;;  %v1749_v15 = vld [vmem:[%s2159_s0 + $0x40] sm:$0xff]   ;;  %v1750_v16 = vld [vmem:[%s2159_s0 + $0x38] sm:$0xff]   ;;  %s1852_s13 = smov 80   ;;  %s1853_s14 = smov 72  }
   0x4   :  { %20 = vst [vmem:[#allocation1 + $0xf8] sm:$0xff] %v1676_v3  ;;  %52 = vst [vmem:[#allocation1 + $0xe8] sm:$0xff] %v1680_v5  ;;  %v1696_v17 = vunpack.c.h.bf16 %v1747_v9  ;;  %v1699_v18 = vunpack.c.l.bf16 %v1748_v14  ;;  %v1700_v19 = vunpack.c.h.bf16 %v1748_v14  ;;  %v1704_v20 = vunpack.c.h.bf16 %v1749_v15  ;;  %v1751_v21 = vld [vmem:[%s2159_s0 + $0x30] sm:$0xff]   ;;  %v1752_v22 = vld [vmem:[%s2159_s0 + $0x28] sm:$0xff]   ;;  %s1854_s15 = smov 64   ;;  %s1855_s16 = smov 56  }
   0x5   :  { %v1753_v23 = vld [vmem:[%s2159_s0 + $0x20] sm:$0xff]   ;;  %68 = vst [vmem:[#allocation1 + $0xe0] sm:$0xff] %v1679_v4  ;;  %100 = vst [vmem:[#allocation1 + $0xd0] sm:$0xff] %v1683_v6  ;;  %v1708_v24 = vunpack.c.h.bf16 %v1750_v16  ;;  %v1712_v25 = vunpack.c.h.bf16 %v1751_v21  ;;  %v1715_v26 = vunpack.c.l.bf16 %v1752_v22  ;;  %v1716_v27 = vunpack.c.h.bf16 %v1752_v22  ;;  %v1754_v28 = vld [vmem:[%s2159_s0 + $0x18] sm:$0xff]   ;;  %s1856_s17 = smov 48   ;;  %s1857_s18 = smov 40  }
   0x6   :  { %84 = vst [vmem:[#allocation1 + $0xd8] sm:$0xff] %v1684_v10  ;;  %116 = vst [vmem:[#allocation1 + $0xc8] sm:$0xff] %v1688_v11  ;;  %v1755_v29 = vld [vmem:[%s2159_s0 + $0x10] sm:$0xff]   ;;  %v1756_v30 = vld [vmem:[%s2159_s0 + $0x8] sm:$0xff]   ;;  %v1720_v31 = vunpack.c.h.bf16 %v1753_v23  ;;  %v1724_v32 = vunpack.c.h.bf16 %v1754_v28  ;;  %v1687_v39 = vunpack.c.l.bf16 %v1887_v7  ;;  %v1691_v40 = vunpack.c.l.bf16 %v1892_v8  ;;  %s1858_s19 = smov 32   ;;  %s1859_s20 = smov 24  }
   0x7   :  { %148 = vst [vmem:[#allocation1 + $0xb8] sm:$0xff] %v1692_v12  ;;  %196 = vst [vmem:[#allocation1 + $0xa0] sm:$0xff] %v1695_v13  ;;  %v1728_v33 = vunpack.c.h.bf16 %v1755_v29  ;;  %v1731_v34 = vunpack.c.l.bf16 %v1756_v30  ;;  %v1734_v35 = vld [vmem:[%s2159_s0] sm:$0xff]   ;;  %v1732_v36 = vunpack.c.h.bf16 %v1756_v30  ;;  %v1703_v41 = vunpack.c.l.bf16 %v1749_v15  ;;  %s1847_s0 = smov 120   ;;  %s513_s21 = smov 3 }
   0x8   :  { %180 = vst [vmem:[#allocation1 + $0xa8] sm:$0xff] %v1696_v17  ;;  %212 = vst [vmem:[#allocation1 + $0x98] sm:$0xff] %v1700_v19  ;;  %v1735_v37 = vunpack.c.l.bf16 %v1734_v35  ;;  %v1736_v38 = vunpack.c.h.bf16 %v1734_v35  ;;  %v1707_v42 = vunpack.c.l.bf16 %v1750_v16  ;;  %v1711_v43 = vunpack.c.l.bf16 %v1751_v21  ;;  %s515_s22 = smov 12  ;;  %s519_s23 = smov 48 }
   0x9   :  { %244 = vst [vmem:[#allocation1 + $0x88] sm:$0xff] %v1704_v20  ;;  %228 = vst [vmem:[#allocation1 + $0x90] sm:$0xff] %v1699_v18  ;;  %v1719_v44 = vunpack.c.l.bf16 %v1753_v23  ;;  %v1723_v45 = vunpack.c.l.bf16 %v1754_v28  ;;  %v1727_v46 = vunpack.c.l.bf16 %v1755_v29  ;;  %v1675_v47 = vunpack.c.l.bf16 %v1875_v0  ;;  %s1860_s24 = smov 16   ;;  %s523_s25 = smov 192 }
   0xa   :  { %276 = vst [vmem:[#allocation1 + $0x78] sm:$0xff] %v1708_v24  ;;  %308 = vst [vmem:[#allocation1 + $0x68] sm:$0xff] %v1712_v25  ;;  %vm517_vm7 = vcmask 1043458   ;;  %vm521_vm8 = vcmask 1045508   ;;  %s536_s26 = smov 3  ;;  %vm525_vm9 = vcmask 1047558  }
   0xb   :  { %340 = vst [vmem:[#allocation1 + $0x58] sm:$0xff] %v1716_v27  ;;  %356 = vst [vmem:[#allocation1 + $0x50] sm:$0xff] %v1715_v26  ;;  %v589_v5 = vld [vmem:[#allocation1 + $0xe8] sm:$0x80]   ;;  %v623_v7 = vld [vmem:[#allocation1 + $0xf8] sm:$0x80]  }
   0xc   :  { %372 = vst [vmem:[#allocation1 + $0x48] sm:$0xff] %v1720_v31  ;;  %404 = vst [vmem:[#allocation1 + $0x38] sm:$0xff] %v1724_v32  ;;  %v727_v14 = vld [vmem:[#allocation1 + $0xe6] sm:$0x80]   ;;  %vm527_vm10 = vcmask 64512   ;;  %s539_s27 = smov 12 }
   0xd   :  { %436 = vst [vmem:[#allocation1 + $0x28] sm:$0xff] %v1728_v33  ;;  %484 = vst [vmem:[#allocation1 + $0x10] sm:$0xff] %v1731_v34  ;;  %v585_v61 = vld [vmem:[#allocation1 + $0xc9] sm:$0x40]   ;;  %v619_v63 = vld [vmem:[#allocation1 + $0xd9] sm:$0x40]  }
   0xe   :  { %468 = vst [vmem:[#allocation1 + $0x18] sm:$0xff] %v1732_v36  ;;  %499 = vst [vmem:[#allocation1 + $0x8] sm:$0xff] %v1736_v38  ;;  %v615_v58 = vld [vmem:[#allocation1 + $0xba] sm:$0x20]   ;;  %v723_v21 = vld [vmem:[#allocation1 + $0xc7] sm:$0x40]  }
   0xf   :  { %512 = vst [vmem:[#allocation1] sm:$0xff] %v1735_v37  ;;  %132 = vst [vmem:[#allocation1 + $0xc0] sm:$0xff] %v1687_v39  ;;  %v611_v55 = vld [vmem:[#allocation1 + $0x9b] sm:$0x10]   ;;  %v581_v4 = vld [vmem:[#allocation1 + $0xaa] sm:$0x20]  }
  0x10   :  { %164 = vst [vmem:[#allocation1 + $0xb0] sm:$0xff] %v1691_v40  ;;  %260 = vst [vmem:[#allocation1 + $0x80] sm:$0xff] %v1703_v41  ;;  %v577_v53 = vld [vmem:[#allocation1 + $0x8b] sm:$0x10]   ;;  %v715_v9 = vld [vmem:[#allocation1 + $0x89] sm:$0x10]  }
  0x11   :  { %292 = vst [vmem:[#allocation1 + $0x70] sm:$0xff] %v1707_v42  ;;  %324 = vst [vmem:[#allocation1 + $0x60] sm:$0xff] %v1711_v43  ;;  %v573_v48 = vld [vmem:[#allocation1 + $0x6c] sm:$0x8]   ;;  %v607_v50 = vld [vmem:[#allocation1 + $0x7c] sm:$0x8]  }
  0x12   :  { %36 = vst [vmem:[#allocation1 + $0xf0] sm:$0xff] %v1675_v47  ;;  %388 = vst [vmem:[#allocation1 + $0x40] sm:$0xff] %v1719_v44  ;;  %v603_v49 = vld [vmem:[#allocation1 + $0x5d] sm:$0x4]   ;;  %v711_v2 = vld [vmem:[#allocation1 + $0x6a] sm:$0x8]  }
  0x13   :  { %420 = vst [vmem:[#allocation1 + $0x30] sm:$0xff] %v1723_v45  ;;  %452 = vst [vmem:[#allocation1 + $0x20] sm:$0xff] %v1727_v46  ;;  %v569_v52 = vld [vmem:[#allocation1 + $0x4d] sm:$0x4]   ;;  %v599_v54 = vld [vmem:[#allocation1 + $0x3e] sm:$0x2]  }
  0x14   :  { %v565_v51 = vld [vmem:[#allocation1 + $0x2e] sm:$0x2]   ;;  %v703_v0 = vld [vmem:[#allocation1 + $0x2c] sm:$0x2]   ;;  %v737_v16 = vld [vmem:[#allocation1 + $0x3c] sm:$0x2]  }
  0x15   :  { %v563_v56 = vld [vmem:[#allocation1 + $0xf] sm:$0x1]   ;;  %v597_v57 = vld [vmem:[#allocation1 + $0x1f] sm:$0x1]   ;;  %v701_v59 = vld [vmem:[#allocation1 + $0xd] sm:$0x1]  }
  0x16   :  { %v567_v60 = vsel %vm566_vm0, %v565_v51, %v563_v56  ;;  %v601_v62 = vsel %vm566_vm0, %v599_v54, %v597_v57  ;;  %v707_v1 = vld [vmem:[#allocation1 + $0x4b] sm:$0x4]   ;;  %v705_v8 = vsel %vm566_vm0, %v703_v0, %v701_v59  ;;  %v735_v15 = vld [vmem:[#allocation1 + $0x1d] sm:$0x1]   ;;  %v632_v31 = vld [vmem:[#allocation1 + $0xe] sm:$0x1]  }
  0x17   :  { %v571_v3 = vsel %vm570_vm1, %v569_v52, %v567_v60  ;;  %v605_v6 = vsel %vm570_vm1, %v603_v49, %v601_v62  ;;  %v719_v10 = vld [vmem:[#allocation1 + $0xa8] sm:$0x20]   ;;  %v709_v13 = vsel %vm570_vm1, %v707_v1, %v705_v8  ;;  %v741_v17 = vld [vmem:[#allocation1 + $0x5b] sm:$0x4]   ;;  %v739_v22 = vsel %vm566_vm0, %v737_v16, %v735_v15  ;;  %v634_v37 = vld [vmem:[#allocation1 + $0x2d] sm:$0x2]  }
  0x18   :  { %v575_v11 = vsel %vm574_vm2, %v573_v48, %v571_v3  ;;  %v609_v12 = vsel %vm574_vm2, %v607_v50, %v605_v6  ;;  %v713_v20 = vsel %vm574_vm2, %v711_v2, %v709_v13  ;;  %v745_v23 = vld [vmem:[#allocation1 + $0x7a] sm:$0x8]   ;;  %v743_v28 = vsel %vm570_vm1, %v741_v17, %v739_v22  ;;  %v638_v38 = vld [vmem:[#allocation1 + $0x4c] sm:$0x4]   ;;  %v666_v51 = vld [vmem:[#allocation1 + $0x1e] sm:$0x1]  }
  0x19   :  { %v579_v18 = vsel %vm578_vm3, %v577_v53, %v575_v11  ;;  %v613_v19 = vsel %vm578_vm3, %v611_v55, %v609_v12  ;;  %v749_v24 = vld [vmem:[#allocation1 + $0x99] sm:$0x10]   ;;  %v717_v27 = vsel %vm578_vm3, %v715_v9, %v713_v20  ;;  %v747_v35 = vsel %vm574_vm2, %v745_v23, %v743_v28  ;;  %v642_v43 = vld [vmem:[#allocation1 + $0x6b] sm:$0x8]   ;;  %v668_v52 = vld [vmem:[#allocation1 + $0x3d] sm:$0x2]  }
  0x1a   :  { %v583_v25 = vsel %vm582_vm4, %v581_v4, %v579_v18  ;;  %v617_v26 = vsel %vm582_vm4, %v615_v58, %v613_v19  ;;  %v753_v29 = vld [vmem:[#allocation1 + $0xb8] sm:$0x20]   ;;  %v721_v34 = vsel %vm582_vm4, %v719_v10, %v717_v27  ;;  %v751_v42 = vsel %vm578_vm3, %v749_v24, %v747_v35  ;;  %v646_v44 = vld [vmem:[#allocation1 + $0x8a] sm:$0x10]   ;;  %v672_v56 = vld [vmem:[#allocation1 + $0x5c] sm:$0x4]  }
  0x1b   :  { %v757_v30 = vld [vmem:[#allocation1 + $0xd7] sm:$0x40]   ;;  %v587_v32 = vsel %vm586_vm5, %v585_v61, %v583_v25  ;;  %v621_v33 = vsel %vm586_vm5, %v619_v63, %v617_v26  ;;  %v725_v41 = vsel %vm586_vm5, %v723_v21, %v721_v34  ;;  %v650_v45 = vld [vmem:[#allocation1 + $0xa9] sm:$0x20]   ;;  %v755_v48 = vsel %vm582_vm4, %v753_v29, %v751_v42  ;;  %v676_v57 = vld [vmem:[#allocation1 + $0x7b] sm:$0x8]  }
  0x1c   :  { %v761_v36 = vld [vmem:[#allocation1 + $0xf6] sm:$0x80]   ;;  %v591_v39 = vsel %vm590_vm6, %v589_v5, %v587_v32  ;;  %v625_v40 = vsel %vm590_vm6, %v623_v7, %v621_v33  ;;  %v729_v47 = vsel %vm590_vm6, %v727_v14, %v725_v41  ;;  %v636_v49 = vsel %vm566_vm0, %v634_v37, %v632_v31  ;;  %v654_v50 = vld [vmem:[#allocation1 + $0xc8] sm:$0x40]   ;;  %v680_v58 = vld [vmem:[#allocation1 + $0x9a] sm:$0x10]  }
  0x1d   :  { %v1772_v46 = vpack.i.bf16 %v625_v40, %v591_v39  ;;  %v759_v53 = vsel %vm586_vm5, %v757_v30, %v755_v48  ;;  %v640_v54 = vsel %vm570_vm1, %v638_v38, %v636_v49  ;;  %v670_v55 = vsel %vm566_vm0, %v668_v52, %v666_v51  ;;  %v658_v61 = vld [vmem:[#allocation1 + $0xe7] sm:$0x80]   ;;  %v684_v63 = vld [vmem:[#allocation1 + $0xb9] sm:$0x20]   ;;  %v770_v4 = vld [vmem:[#allocation1 + $0xc] sm:$0x1]  }
  0x1e   :  { %v763_v59 = vsel %vm590_vm6, %v761_v36, %v759_v53  ;;  %v644_v60 = vsel %vm574_vm2, %v642_v43, %v640_v54  ;;  %v674_v62 = vsel %vm570_vm1, %v672_v56, %v670_v55  ;;  %v688_v0 = vld [vmem:[#allocation1 + $0xd8] sm:$0x40]   ;;  %v772_v5 = vld [vmem:[#allocation1 + $0x2b] sm:$0x2]   ;;  %v804_v18 = vld [vmem:[#allocation1 + $0x1c] sm:$0x1]  }
  0x1f   :  { %1773 = vrot.lane.b32.xlu0 %v1772_v46, %s1847_s0  ;;  %v1782_v1 = vpack.i.bf16 %v763_v59, %v729_v47  ;;  %v648_v2 = vsel %vm578_vm3, %v646_v44, %v644_v60  ;;  %v678_v3 = vsel %vm574_vm2, %v676_v57, %v674_v62  ;;  %v776_v6 = vld [vmem:[#allocation1 + $0x4a] sm:$0x4]   ;;  %v692_v9 = vld [vmem:[#allocation1 + $0xf7] sm:$0x80]   ;;  %v774_v10 = vsel %vm566_vm0, %v772_v5, %v770_v4  ;;  %v806_v22 = vld [vmem:[#allocation1 + $0x3b] sm:$0x2]  }
  0x20   :  { %v652_v7 = vsel %vm582_vm4, %v650_v45, %v648_v2  ;;  %v682_v8 = vsel %vm578_vm3, %v680_v58, %v678_v3  ;;  %v780_v11 = vld [vmem:[#allocation1 + $0x69] sm:$0x8]   ;;  %v778_v15 = vsel %vm570_vm1, %v776_v6, %v774_v10  ;;  %v810_v23 = vld [vmem:[#allocation1 + $0x5a] sm:$0x4]   ;;  %v808_v28 = vsel %vm566_vm0, %v806_v22, %v804_v18  ;;  %v839_v35 = vld [vmem:[#allocation1 + $0xb] sm:$0x1]  }
  0x21   :  { %v784_v12 = vld [vmem:[#allocation1 + $0x88] sm:$0x10]   ;;  %1783 = vrot.lane.b32.xlu1 %v1782_v1, %s1848_s9  ;;  %v656_v13 = vsel %vm586_vm5, %v654_v50, %v652_v7  ;;  %v686_v14 = vsel %vm582_vm4, %v684_v63, %v682_v8  ;;  %v782_v21 = vsel %vm574_vm2, %v780_v11, %v778_v15  ;;  %v814_v24 = vld [vmem:[#allocation1 + $0x79] sm:$0x8]   ;;  %v812_v33 = vsel %vm570_vm1, %v810_v23, %v808_v28  ;;  %v841_v36 = vld [vmem:[#allocation1 + $0x2a] sm:$0x2]  }
  0x22   :  { %v788_v16 = vld [vmem:[#allocation1 + $0xa7] sm:$0x20]   ;;  %v660_v19 = vsel %vm590_vm6, %v658_v61, %v656_v13  ;;  %v690_v20 = vsel %vm586_vm5, %v688_v0, %v686_v14  ;;  %v786_v26 = vsel %vm578_vm3, %v784_v12, %v782_v21  ;;  %v818_v29 = vld [vmem:[#allocation1 + $0x98] sm:$0x10]   ;;  %v816_v38 = vsel %vm574_vm2, %v814_v24, %v812_v33  ;;  %v845_v40 = vld [vmem:[#allocation1 + $0x49] sm:$0x4]  }
  0x23   :  { %v792_v17 = vld [vmem:[#allocation1 + $0xc6] sm:$0x40]   ;;  %v694_v25 = vsel %vm590_vm6, %v692_v9, %v690_v20  ;;  %v822_v30 = vld [vmem:[#allocation1 + $0xb7] sm:$0x20]   ;;  %v790_v32 = vsel %vm582_vm4, %v788_v16, %v786_v26  ;;  %v843_v39 = vsel %vm566_vm0, %v841_v36, %v839_v35  ;;  %v849_v41 = vld [vmem:[#allocation1 + $0x68] sm:$0x8]   ;;  %v820_v43 = vsel %vm578_vm3, %v818_v29, %v816_v38 }
  0x24   :  { %v796_v27 = vld [vmem:[#allocation1 + $0xe5] sm:$0x80]   ;;  %v1777_v31 = vpack.i.bf16 %v694_v25, %v660_v19  ;;  %v826_v34 = vld [vmem:[#allocation1 + $0xd6] sm:$0x40]   ;;  %v794_v37 = vsel %vm586_vm5, %v792_v17, %v790_v32  ;;  %v853_v42 = vld [vmem:[#allocation1 + $0x87] sm:$0x10]   ;;  %v847_v45 = vsel %vm570_vm1, %v845_v40, %v843_v39  ;;  %v824_v49 = vsel %vm582_vm4, %v822_v30, %v820_v43 }
  0x25   :  { %v830_v44 = vld [vmem:[#allocation1 + $0xf5] sm:$0x80]   ;;  %v857_v46 = vld [vmem:[#allocation1 + $0xa6] sm:$0x20]   ;;  %v798_v48 = vsel %vm590_vm6, %v796_v27, %v794_v37  ;;  %v851_v50 = vsel %vm574_vm2, %v849_v41, %v847_v45  ;;  %v873_v51 = vld [vmem:[#allocation1 + $0x1b] sm:$0x1]   ;;  %v828_v54 = vsel %vm586_vm5, %v826_v34, %v824_v49 }
  0x26   :  { %1778 = vrot.lane.b32.xlu0 %v1777_v31, %s1849_s10  ;;  %v861_v47 = vld [vmem:[#allocation1 + $0xc5] sm:$0x40]   ;;  %v875_v52 = vld [vmem:[#allocation1 + $0x3a] sm:$0x2]   ;;  %v855_v55 = vsel %vm578_vm3, %v853_v42, %v851_v50  ;;  %v832_v60 = vsel %vm590_vm6, %v830_v44, %v828_v54  ;;  %v908_v1 = vld [vmem:[#allocation1 + $0xa] sm:$0x1]  }
  0x27   :  { %v879_v53 = vld [vmem:[#allocation1 + $0x59] sm:$0x4]   ;;  %v865_v56 = vld [vmem:[#allocation1 + $0xe4] sm:$0x80]   ;;  %v877_v57 = vsel %vm566_vm0, %v875_v52, %v873_v51  ;;  %v859_v61 = vsel %vm582_vm4, %v857_v46, %v855_v55  ;;  %v1787_v2 = vpack.i.bf16 %v832_v60, %v798_v48  ;;  %v910_v5 = vld [vmem:[#allocation1 + $0x29] sm:$0x2]  }
  0x28   :  { %v883_v58 = vld [vmem:[#allocation1 + $0x78] sm:$0x8]   ;;  %v881_v62 = vsel %vm570_vm1, %v879_v53, %v877_v57  ;;  %v863_v3 = vsel %vm586_vm5, %v861_v47, %v859_v61  ;;  %v914_v6 = vld [vmem:[#allocation1 + $0x48] sm:$0x4]   ;;  %v912_v10 = vsel %vm566_vm0, %v910_v5, %v908_v1  ;;  %v942_v17 = vld [vmem:[#allocation1 + $0x1a] sm:$0x1]  }
  0x29   :  { %v887_v59 = vld [vmem:[#allocation1 + $0x97] sm:$0x10]   ;;  %v885_v4 = vsel %vm574_vm2, %v883_v58, %v881_v62  ;;  %v918_v7 = vld [vmem:[#allocation1 + $0x67] sm:$0x8]   ;;  %1788 = vrot.lane.b32.xlu1 %v1787_v2, %s1850_s11  ;;  %v867_v13 = vsel %vm590_vm6, %v865_v56, %v863_v3  ;;  %v916_v15 = vsel %vm570_vm1, %v914_v6, %v912_v10  ;;  %v944_v18 = vld [vmem:[#allocation1 + $0x39] sm:$0x2]  }
  0x2a   :  { %v891_v63 = vld [vmem:[#allocation1 + $0xb6] sm:$0x20]   ;;  %v889_v8 = vsel %vm578_vm3, %v887_v59, %v885_v4  ;;  %v922_v11 = vld [vmem:[#allocation1 + $0x86] sm:$0x10]   ;;  %v920_v20 = vsel %vm574_vm2, %v918_v7, %v916_v15  ;;  %v946_v21 = vsel %vm566_vm0, %v944_v18, %v942_v17  ;;  %v948_v22 = vld [vmem:[#allocation1 + $0x58] sm:$0x4]  }
  0x2b   :  { %v895_v0 = vld [vmem:[#allocation1 + $0xd5] sm:$0x40]   ;;  %v926_v12 = vld [vmem:[#allocation1 + $0xa5] sm:$0x20]   ;;  %v893_v14 = vsel %vm582_vm4, %v891_v63, %v889_v8  ;;  %v952_v23 = vld [vmem:[#allocation1 + $0x77] sm:$0x8]   ;;  %v924_v26 = vsel %vm578_vm3, %v922_v11, %v920_v20  ;;  %v950_v28 = vsel %vm570_vm1, %v948_v22, %v946_v21 }
  0x2c   :  { %v899_v9 = vld [vmem:[#allocation1 + $0xf4] sm:$0x80]   ;;  %v930_v16 = vld [vmem:[#allocation1 + $0xc4] sm:$0x40]   ;;  %v897_v19 = vsel %vm586_vm5, %v895_v0, %v893_v14  ;;  %v956_v24 = vld [vmem:[#allocation1 + $0x96] sm:$0x10]   ;;  %v928_v32 = vsel %vm582_vm4, %v926_v12, %v924_v26  ;;  %v954_v33 = vsel %vm574_vm2, %v952_v23, %v950_v28 }
  0x2d   :  { %v901_v25 = vsel %vm590_vm6, %v899_v9, %v897_v19  ;;  %v934_v27 = vld [vmem:[#allocation1 + $0xe3] sm:$0x80]   ;;  %v960_v29 = vld [vmem:[#allocation1 + $0xb5] sm:$0x20]   ;;  %v977_v34 = vld [vmem:[#allocation1 + $0x9] sm:$0x1]   ;;  %v932_v37 = vsel %vm586_vm5, %v930_v16, %v928_v32  ;;  %v958_v38 = vsel %vm578_vm3, %v956_v24, %v954_v33 }
  0x2e   :  { %v964_v30 = vld [vmem:[#allocation1 + $0xd4] sm:$0x40]   ;;  %v1792_v31 = vpack.i.bf16 %v901_v25, %v867_v13  ;;  %v979_v35 = vld [vmem:[#allocation1 + $0x28] sm:$0x2]   ;;  %v936_v43 = vsel %vm590_vm6, %v934_v27, %v932_v37  ;;  %v962_v44 = vsel %vm582_vm4, %v960_v29, %v958_v38  ;;  %v1011_v48 = vld [vmem:[#allocation1 + $0x19] sm:$0x1]  }
  0x2f   :  { %v983_v36 = vld [vmem:[#allocation1 + $0x47] sm:$0x4]   ;;  %v968_v39 = vld [vmem:[#allocation1 + $0xf3] sm:$0x80]   ;;  %v981_v40 = vsel %vm566_vm0, %v979_v35, %v977_v34  ;;  %v966_v49 = vsel %vm586_vm5, %v964_v30, %v962_v44  ;;  %v1013_v51 = vld [vmem:[#allocation1 + $0x38] sm:$0x2]  }
  0x30   :  { %v987_v41 = vld [vmem:[#allocation1 + $0x66] sm:$0x8]   ;;  %1793 = vrot.lane.b32.xlu0 %v1792_v31, %s1851_s12  ;;  %v985_v45 = vsel %vm570_vm1, %v983_v36, %v981_v40  ;;  %v1017_v52 = vld [vmem:[#allocation1 + $0x57] sm:$0x4]   ;;  %v970_v54 = vsel %vm590_vm6, %v968_v39, %v966_v49  ;;  %v1015_v57 = vsel %vm566_vm0, %v1013_v51, %v1011_v48  ;;  %v1046_v0 = vld [vmem:[#allocation1 + $0x8] sm:$0x1]  }
  0x31   :  { %v991_v42 = vld [vmem:[#allocation1 + $0x85] sm:$0x10]   ;;  %v989_v50 = vsel %vm574_vm2, %v987_v41, %v985_v45  ;;  %v1021_v53 = vld [vmem:[#allocation1 + $0x76] sm:$0x8]   ;;  %v1797_v60 = vpack.i.bf16 %v970_v54, %v936_v43  ;;  %v1019_v62 = vsel %vm570_vm1, %v1017_v52, %v1015_v57  ;;  %v1048_v1 = vld [vmem:[#allocation1 + $0x27] sm:$0x2]  }
  0x32   :  { %v995_v46 = vld [vmem:[#allocation1 + $0xa4] sm:$0x20]   ;;  %v993_v55 = vsel %vm578_vm3, %v991_v42, %v989_v50  ;;  %v1025_v58 = vld [vmem:[#allocation1 + $0x95] sm:$0x10]   ;;  %v1023_v3 = vsel %vm574_vm2, %v1021_v53, %v1019_v62  ;;  %v1050_v4 = vsel %vm566_vm0, %v1048_v1, %v1046_v0  ;;  %v1052_v5 = vld [vmem:[#allocation1 + $0x46] sm:$0x4]  }
  0x33   :  { %v999_v47 = vld [vmem:[#allocation1 + $0xc3] sm:$0x40]   ;;  %v1029_v59 = vld [vmem:[#allocation1 + $0xb4] sm:$0x20]   ;;  %v997_v61 = vsel %vm582_vm4, %v995_v46, %v993_v55  ;;  %v1056_v6 = vld [vmem:[#allocation1 + $0x65] sm:$0x8]   ;;  %1798 = vrot.lane.b32.xlu1 %v1797_v60, %s1852_s13  ;;  %v1027_v8 = vsel %vm578_vm3, %v1025_v58, %v1023_v3  ;;  %v1054_v10 = vsel %vm570_vm1, %v1052_v5, %v1050_v4 }
  0x34   :  { %v1003_v56 = vld [vmem:[#allocation1 + $0xe2] sm:$0x80]   ;;  %v1033_v63 = vld [vmem:[#allocation1 + $0xd3] sm:$0x40]   ;;  %v1001_v2 = vsel %vm586_vm5, %v999_v47, %v997_v61  ;;  %v1060_v7 = vld [vmem:[#allocation1 + $0x84] sm:$0x10]   ;;  %v1031_v14 = vsel %vm582_vm4, %v1029_v59, %v1027_v8  ;;  %v1058_v15 = vsel %vm574_vm2, %v1056_v6, %v1054_v10 }
  0x35   :  { %v1037_v9 = vld [vmem:[#allocation1 + $0xf2] sm:$0x80]   ;;  %v1064_v11 = vld [vmem:[#allocation1 + $0xa3] sm:$0x20]   ;;  %v1005_v13 = vsel %vm590_vm6, %v1003_v56, %v1001_v2  ;;  %v1080_v16 = vld [vmem:[#allocation1 + $0x18] sm:$0x1]   ;;  %v1035_v19 = vsel %vm586_vm5, %v1033_v63, %v1031_v14  ;;  %v1062_v20 = vsel %vm578_vm3, %v1060_v7, %v1058_v15 }
  0x36   :  { %v1068_v12 = vld [vmem:[#allocation1 + $0xc2] sm:$0x40]   ;;  %v1082_v17 = vld [vmem:[#allocation1 + $0x37] sm:$0x2]   ;;  %v1039_v25 = vsel %vm590_vm6, %v1037_v9, %v1035_v19  ;;  %v1066_v26 = vsel %vm582_vm4, %v1064_v11, %v1062_v20  ;;  %v1115_v30 = vld [vmem:[#allocation1 + $0x7] sm:$0x1]  }
  0x37   :  { %v1086_v18 = vld [vmem:[#allocation1 + $0x56] sm:$0x4]   ;;  %v1072_v21 = vld [vmem:[#allocation1 + $0xe1] sm:$0x80]   ;;  %v1084_v22 = vsel %vm566_vm0, %v1082_v17, %v1080_v16  ;;  %v1802_v31 = vpack.i.bf16 %v1039_v25, %v1005_v13  ;;  %v1070_v32 = vsel %vm586_vm5, %v1068_v12, %v1066_v26  ;;  %v1117_v34 = vld [vmem:[#allocation1 + $0x26] sm:$0x2]  }
  0x38   :  { %v1090_v23 = vld [vmem:[#allocation1 + $0x75] sm:$0x8]   ;;  %v1088_v27 = vsel %vm570_vm1, %v1086_v18, %v1084_v22  ;;  %v1121_v35 = vld [vmem:[#allocation1 + $0x45] sm:$0x4]   ;;  %v1119_v39 = vsel %vm566_vm0, %v1117_v34, %v1115_v30  ;;  %v1074_v42 = vsel %vm590_vm6, %v1072_v21, %v1070_v32  ;;  %v1149_v46 = vld [vmem:[#allocation1 + $0x17] sm:$0x1]  }
  0x39   :  { %v1094_v24 = vld [vmem:[#allocation1 + $0x94] sm:$0x10]   ;;  %v1092_v33 = vsel %vm574_vm2, %v1090_v23, %v1088_v27  ;;  %v1125_v36 = vld [vmem:[#allocation1 + $0x64] sm:$0x8]   ;;  %1803 = vrot.lane.b32.xlu0 %v1802_v31, %s1853_s14  ;;  %v1123_v44 = vsel %vm570_vm1, %v1121_v35, %v1119_v39  ;;  %v1151_v47 = vld [vmem:[#allocation1 + $0x36] sm:$0x2]  }
  0x3a   :  { %v1098_v28 = vld [vmem:[#allocation1 + $0xb3] sm:$0x20]   ;;  %v1096_v37 = vsel %vm578_vm3, %v1094_v24, %v1092_v33  ;;  %v1129_v40 = vld [vmem:[#allocation1 + $0x83] sm:$0x10]   ;;  %v1127_v49 = vsel %vm574_vm2, %v1125_v36, %v1123_v44  ;;  %v1153_v50 = vsel %vm566_vm0, %v1151_v47, %v1149_v46  ;;  %v1155_v51 = vld [vmem:[#allocation1 + $0x55] sm:$0x4]  }
  0x3b   :  { %v1102_v29 = vld [vmem:[#allocation1 + $0xd2] sm:$0x40]   ;;  %v1133_v41 = vld [vmem:[#allocation1 + $0xa2] sm:$0x20]   ;;  %v1100_v43 = vsel %vm582_vm4, %v1098_v28, %v1096_v37  ;;  %v1159_v52 = vld [vmem:[#allocation1 + $0x74] sm:$0x8]   ;;  %v1131_v55 = vsel %vm578_vm3, %v1129_v40, %v1127_v49  ;;  %v1157_v57 = vsel %vm570_vm1, %v1155_v51, %v1153_v50 }
  0x3c   :  { %v1106_v38 = vld [vmem:[#allocation1 + $0xf1] sm:$0x80]   ;;  %v1137_v45 = vld [vmem:[#allocation1 + $0xc1] sm:$0x40]   ;;  %v1104_v48 = vsel %vm586_vm5, %v1102_v29, %v1100_v43  ;;  %v1163_v53 = vld [vmem:[#allocation1 + $0x93] sm:$0x10]   ;;  %v1135_v61 = vsel %vm582_vm4, %v1133_v41, %v1131_v55  ;;  %v1161_v62 = vsel %vm574_vm2, %v1159_v52, %v1157_v57 }
  0x3d   :  { %v1108_v54 = vsel %vm590_vm6, %v1106_v38, %v1104_v48  ;;  %v1141_v56 = vld [vmem:[#allocation1 + $0xe0] sm:$0x80]   ;;  %v1167_v58 = vld [vmem:[#allocation1 + $0xb2] sm:$0x20]   ;;  %v1184_v63 = vld [vmem:[#allocation1 + $0x6] sm:$0x1]   ;;  %v1139_v2 = vsel %vm586_vm5, %v1137_v45, %v1135_v61  ;;  %v1165_v3 = vsel %vm578_vm3, %v1163_v53, %v1161_v62 }
  0x3e   :  { %v1171_v59 = vld [vmem:[#allocation1 + $0xd1] sm:$0x40]   ;;  %v1807_v60 = vpack.i.bf16 %v1108_v54, %v1074_v42  ;;  %v1186_v0 = vld [vmem:[#allocation1 + $0x25] sm:$0x2]   ;;  %v1143_v8 = vsel %vm590_vm6, %v1141_v56, %v1139_v2  ;;  %v1169_v9 = vsel %vm582_vm4, %v1167_v58, %v1165_v3  ;;  %v1218_v13 = vld [vmem:[#allocation1 + $0x16] sm:$0x1]  }
  0x3f   :  { %v1190_v1 = vld [vmem:[#allocation1 + $0x44] sm:$0x4]   ;;  %v1175_v4 = vld [vmem:[#allocation1 + $0xf0] sm:$0x80]   ;;  %v1188_v5 = vsel %vm566_vm0, %v1186_v0, %v1184_v63  ;;  %v1173_v14 = vsel %vm586_vm5, %v1171_v59, %v1169_v9  ;;  %v1220_v16 = vld [vmem:[#allocation1 + $0x35] sm:$0x2]  }
  0x40   :  { %v1194_v6 = vld [vmem:[#allocation1 + $0x63] sm:$0x8]   ;;  %1808 = vrot.lane.b32.xlu1 %v1807_v60, %s1854_s15  ;;  %v1192_v10 = vsel %vm570_vm1, %v1190_v1, %v1188_v5  ;;  %v1224_v17 = vld [vmem:[#allocation1 + $0x54] sm:$0x4]   ;;  %v1177_v19 = vsel %vm590_vm6, %v1175_v4, %v1173_v14  ;;  %v1222_v22 = vsel %vm566_vm0, %v1220_v16, %v1218_v13  ;;  %v1253_v29 = vld [vmem:[#allocation1 + $0x5] sm:$0x1]  }
  0x41   :  { %v1198_v7 = vld [vmem:[#allocation1 + $0x82] sm:$0x10]   ;;  %v1196_v15 = vsel %vm574_vm2, %v1194_v6, %v1192_v10  ;;  %v1228_v18 = vld [vmem:[#allocation1 + $0x73] sm:$0x8]   ;;  %v1812_v25 = vpack.i.bf16 %v1177_v19, %v1143_v8  ;;  %v1226_v27 = vsel %vm570_vm1, %v1224_v17, %v1222_v22  ;;  %v1255_v30 = vld [vmem:[#allocation1 + $0x24] sm:$0x2]  }
  0x42   :  { %v1202_v11 = vld [vmem:[#allocation1 + $0xa1] sm:$0x20]   ;;  %v1200_v20 = vsel %vm578_vm3, %v1198_v7, %v1196_v15  ;;  %v1232_v23 = vld [vmem:[#allocation1 + $0x92] sm:$0x10]   ;;  %v1230_v32 = vsel %vm574_vm2, %v1228_v18, %v1226_v27  ;;  %v1257_v33 = vsel %vm566_vm0, %v1255_v30, %v1253_v29  ;;  %v1259_v34 = vld [vmem:[#allocation1 + $0x43] sm:$0x4]  }
  0x43   :  { %v1206_v12 = vld [vmem:[#allocation1 + $0xc0] sm:$0x40]   ;;  %v1236_v24 = vld [vmem:[#allocation1 + $0xb1] sm:$0x20]   ;;  %v1204_v26 = vsel %vm582_vm4, %v1202_v11, %v1200_v20  ;;  %v1263_v35 = vld [vmem:[#allocation1 + $0x62] sm:$0x8]   ;;  %1813 = vrot.lane.b32.xlu0 %v1812_v25, %s1855_s16  ;;  %v1234_v37 = vsel %vm578_vm3, %v1232_v23, %v1230_v32  ;;  %v1261_v39 = vsel %vm570_vm1, %v1259_v34, %v1257_v33 }
  0x44   :  { %v1210_v21 = vld [vmem:[#allocation1 + $0xdf] sm:$0x80]   ;;  %v1240_v28 = vld [vmem:[#allocation1 + $0xd0] sm:$0x40]   ;;  %v1208_v31 = vsel %vm586_vm5, %v1206_v12, %v1204_v26  ;;  %v1267_v36 = vld [vmem:[#allocation1 + $0x81] sm:$0x10]   ;;  %v1238_v43 = vsel %vm582_vm4, %v1236_v24, %v1234_v37  ;;  %v1265_v44 = vsel %vm574_vm2, %v1263_v35, %v1261_v39 }
  0x45   :  { %v1244_v38 = vld [vmem:[#allocation1 + $0xef] sm:$0x80]   ;;  %v1271_v40 = vld [vmem:[#allocation1 + $0xa0] sm:$0x20]   ;;  %v1212_v42 = vsel %vm590_vm6, %v1210_v21, %v1208_v31  ;;  %v1287_v45 = vld [vmem:[#allocation1 + $0x15] sm:$0x1]   ;;  %v1242_v48 = vsel %vm586_vm5, %v1240_v28, %v1238_v43  ;;  %v1269_v49 = vsel %vm578_vm3, %v1267_v36, %v1265_v44 }
  0x46   :  { %v1275_v41 = vld [vmem:[#allocation1 + $0xbf] sm:$0x40]   ;;  %v1289_v46 = vld [vmem:[#allocation1 + $0x34] sm:$0x2]   ;;  %v1246_v54 = vsel %vm590_vm6, %v1244_v38, %v1242_v48  ;;  %v1273_v55 = vsel %vm582_vm4, %v1271_v40, %v1269_v49  ;;  %v1322_v59 = vld [vmem:[#allocation1 + $0x4] sm:$0x1]  }
  0x47   :  { %v1293_v47 = vld [vmem:[#allocation1 + $0x53] sm:$0x4]   ;;  %v1279_v50 = vld [vmem:[#allocation1 + $0xde] sm:$0x80]   ;;  %v1291_v51 = vsel %vm566_vm0, %v1289_v46, %v1287_v45  ;;  %v1817_v60 = vpack.i.bf16 %v1246_v54, %v1212_v42  ;;  %v1277_v61 = vsel %vm586_vm5, %v1275_v41, %v1273_v55  ;;  %v1324_v63 = vld [vmem:[#allocation1 + $0x23] sm:$0x2]  }
  0x48   :  { %v1297_v52 = vld [vmem:[#allocation1 + $0x72] sm:$0x8]   ;;  %v1295_v56 = vsel %vm570_vm1, %v1293_v47, %v1291_v51  ;;  %v1328_v0 = vld [vmem:[#allocation1 + $0x42] sm:$0x4]   ;;  %v1326_v4 = vsel %vm566_vm0, %v1324_v63, %v1322_v59  ;;  %v1281_v7 = vsel %vm590_vm6, %v1279_v50, %v1277_v61  ;;  %v1356_v11 = vld [vmem:[#allocation1 + $0x14] sm:$0x1]  }
  0x49   :  { %v1301_v53 = vld [vmem:[#allocation1 + $0x91] sm:$0x10]   ;;  %v1299_v62 = vsel %vm574_vm2, %v1297_v52, %v1295_v56  ;;  %v1332_v1 = vld [vmem:[#allocation1 + $0x61] sm:$0x8]   ;;  %1818 = vrot.lane.b32.xlu1 %v1817_v60, %s1856_s17  ;;  %v1330_v9 = vsel %vm570_vm1, %v1328_v0, %v1326_v4  ;;  %v1358_v12 = vld [vmem:[#allocation1 + $0x33] sm:$0x2]  }
  0x4a   :  { %v1305_v57 = vld [vmem:[#allocation1 + $0xb0] sm:$0x20]   ;;  %v1303_v2 = vsel %vm578_vm3, %v1301_v53, %v1299_v62  ;;  %v1336_v5 = vld [vmem:[#allocation1 + $0x80] sm:$0x10]   ;;  %v1334_v14 = vsel %vm574_vm2, %v1332_v1, %v1330_v9  ;;  %v1360_v15 = vsel %vm566_vm0, %v1358_v12, %v1356_v11  ;;  %v1362_v16 = vld [vmem:[#allocation1 + $0x52] sm:$0x4]  }
  0x4b   :  { %v1309_v58 = vld [vmem:[#allocation1 + $0xcf] sm:$0x40]   ;;  %v1340_v6 = vld [vmem:[#allocation1 + $0x9f] sm:$0x20]   ;;  %v1307_v8 = vsel %vm582_vm4, %v1305_v57, %v1303_v2  ;;  %v1366_v17 = vld [vmem:[#allocation1 + $0x71] sm:$0x8]   ;;  %v1338_v20 = vsel %vm578_vm3, %v1336_v5, %v1334_v14  ;;  %v1364_v22 = vsel %vm570_vm1, %v1362_v16, %v1360_v15 }
  0x4c   :  { %v1313_v3 = vld [vmem:[#allocation1 + $0xee] sm:$0x80]   ;;  %v1344_v10 = vld [vmem:[#allocation1 + $0xbe] sm:$0x40]   ;;  %v1311_v13 = vsel %vm586_vm5, %v1309_v58, %v1307_v8  ;;  %v1370_v18 = vld [vmem:[#allocation1 + $0x90] sm:$0x10]   ;;  %v1342_v26 = vsel %vm582_vm4, %v1340_v6, %v1338_v20  ;;  %v1368_v27 = vsel %vm574_vm2, %v1366_v17, %v1364_v22 }
  0x4d   :  { %v1315_v19 = vsel %vm590_vm6, %v1313_v3, %v1311_v13  ;;  %v1348_v21 = vld [vmem:[#allocation1 + $0xdd] sm:$0x80]   ;;  %v1374_v23 = vld [vmem:[#allocation1 + $0xaf] sm:$0x20]   ;;  %v1391_v28 = vld [vmem:[#allocation1 + $0x3] sm:$0x1]   ;;  %v1346_v31 = vsel %vm586_vm5, %v1344_v10, %v1342_v26  ;;  %v1372_v32 = vsel %vm578_vm3, %v1370_v18, %v1368_v27 }
  0x4e   :  { %v1378_v24 = vld [vmem:[#allocation1 + $0xce] sm:$0x40]   ;;  %v1822_v25 = vpack.i.bf16 %v1315_v19, %v1281_v7  ;;  %v1393_v29 = vld [vmem:[#allocation1 + $0x22] sm:$0x2]   ;;  %v1350_v37 = vsel %vm590_vm6, %v1348_v21, %v1346_v31  ;;  %v1376_v38 = vsel %vm582_vm4, %v1374_v23, %v1372_v32  ;;  %v1425_v42 = vld [vmem:[#allocation1 + $0x13] sm:$0x1]  }
  0x4f   :  { %v1397_v30 = vld [vmem:[#allocation1 + $0x41] sm:$0x4]   ;;  %v1382_v33 = vld [vmem:[#allocation1 + $0xed] sm:$0x80]   ;;  %v1395_v34 = vsel %vm566_vm0, %v1393_v29, %v1391_v28  ;;  %v1380_v43 = vsel %vm586_vm5, %v1378_v24, %v1376_v38  ;;  %v1427_v45 = vld [vmem:[#allocation1 + $0x32] sm:$0x2]  }
  0x50   :  { %v1401_v35 = vld [vmem:[#allocation1 + $0x60] sm:$0x8]   ;;  %1823 = vrot.lane.b32.xlu0 %v1822_v25, %s1857_s18  ;;  %v1399_v39 = vsel %vm570_vm1, %v1397_v30, %v1395_v34  ;;  %v1431_v46 = vld [vmem:[#allocation1 + $0x51] sm:$0x4]   ;;  %v1384_v48 = vsel %vm590_vm6, %v1382_v33, %v1380_v43  ;;  %v1429_v51 = vsel %vm566_vm0, %v1427_v45, %v1425_v42  ;;  %v1460_v58 = vld [vmem:[#allocation1 + $0x2] sm:$0x1]  }
  0x51   :  { %v1405_v36 = vld [vmem:[#allocation1 + $0x7f] sm:$0x10]   ;;  %v1403_v44 = vsel %vm574_vm2, %v1401_v35, %v1399_v39  ;;  %v1435_v47 = vld [vmem:[#allocation1 + $0x70] sm:$0x8]   ;;  %v1827_v54 = vpack.i.bf16 %v1384_v48, %v1350_v37  ;;  %v1433_v56 = vsel %vm570_vm1, %v1431_v46, %v1429_v51  ;;  %v1462_v59 = vld [vmem:[#allocation1 + $0x21] sm:$0x2]  }
  0x52   :  { %v1409_v40 = vld [vmem:[#allocation1 + $0x9e] sm:$0x20]   ;;  %v1407_v49 = vsel %vm578_vm3, %v1405_v36, %v1403_v44  ;;  %v1439_v52 = vld [vmem:[#allocation1 + $0x8f] sm:$0x10]   ;;  %v1437_v61 = vsel %vm574_vm2, %v1435_v47, %v1433_v56  ;;  %v1464_v62 = vsel %vm566_vm0, %v1462_v59, %v1460_v58  ;;  %v1466_v63 = vld [vmem:[#allocation1 + $0x40] sm:$0x4]  }
  0x53   :  { %v1413_v41 = vld [vmem:[#allocation1 + $0xbd] sm:$0x40]   ;;  %v1443_v53 = vld [vmem:[#allocation1 + $0xae] sm:$0x20]   ;;  %v1411_v55 = vsel %vm582_vm4, %v1409_v40, %v1407_v49  ;;  %v1470_v0 = vld [vmem:[#allocation1 + $0x5f] sm:$0x8]   ;;  %1828 = vrot.lane.b32.xlu1 %v1827_v54, %s1858_s19  ;;  %v1441_v2 = vsel %vm578_vm3, %v1439_v52, %v1437_v61  ;;  %v1468_v4 = vsel %vm570_vm1, %v1466_v63, %v1464_v62 }
  0x54   :  { %v1417_v50 = vld [vmem:[#allocation1 + $0xdc] sm:$0x80]   ;;  %v1447_v57 = vld [vmem:[#allocation1 + $0xcd] sm:$0x40]   ;;  %v1415_v60 = vsel %vm586_vm5, %v1413_v41, %v1411_v55  ;;  %v1474_v1 = vld [vmem:[#allocation1 + $0x7e] sm:$0x10]   ;;  %v1445_v8 = vsel %vm582_vm4, %v1443_v53, %v1441_v2  ;;  %v1472_v9 = vsel %vm574_vm2, %v1470_v0, %v1468_v4 }
  0x55   :  { %v1451_v3 = vld [vmem:[#allocation1 + $0xec] sm:$0x80]   ;;  %v1478_v5 = vld [vmem:[#allocation1 + $0x9d] sm:$0x20]   ;;  %v1419_v7 = vsel %vm590_vm6, %v1417_v50, %v1415_v60  ;;  %v1494_v10 = vld [vmem:[#allocation1 + $0x12] sm:$0x1]   ;;  %v1449_v13 = vsel %vm586_vm5, %v1447_v57, %v1445_v8  ;;  %v1476_v14 = vsel %vm578_vm3, %v1474_v1, %v1472_v9 }
  0x56   :  { %v1482_v6 = vld [vmem:[#allocation1 + $0xbc] sm:$0x40]   ;;  %v1496_v11 = vld [vmem:[#allocation1 + $0x31] sm:$0x2]   ;;  %v1453_v19 = vsel %vm590_vm6, %v1451_v3, %v1449_v13  ;;  %v1480_v20 = vsel %vm582_vm4, %v1478_v5, %v1476_v14  ;;  %v1529_v24 = vld [vmem:[#allocation1 + $0x1] sm:$0x1]  }
  0x57   :  { %v1500_v12 = vld [vmem:[#allocation1 + $0x50] sm:$0x4]   ;;  %v1486_v15 = vld [vmem:[#allocation1 + $0xdb] sm:$0x80]   ;;  %v1498_v16 = vsel %vm566_vm0, %v1496_v11, %v1494_v10  ;;  %v1832_v25 = vpack.i.bf16 %v1453_v19, %v1419_v7  ;;  %v1484_v26 = vsel %vm586_vm5, %v1482_v6, %v1480_v20  ;;  %v1531_v28 = vld [vmem:[#allocation1 + $0x20] sm:$0x2]  }
  0x58   :  { %v1504_v17 = vld [vmem:[#allocation1 + $0x6f] sm:$0x8]   ;;  %v1502_v21 = vsel %vm570_vm1, %v1500_v12, %v1498_v16  ;;  %v1535_v29 = vld [vmem:[#allocation1 + $0x3f] sm:$0x4]   ;;  %v1533_v33 = vsel %vm566_vm0, %v1531_v28, %v1529_v24  ;;  %v1488_v36 = vsel %vm590_vm6, %v1486_v15, %v1484_v26  ;;  %v1563_v40 = vld [vmem:[#allocation1 + $0x11] sm:$0x1]  }
  0x59   :  { %v1508_v18 = vld [vmem:[#allocation1 + $0x8e] sm:$0x10]   ;;  %v1506_v27 = vsel %vm574_vm2, %v1504_v17, %v1502_v21  ;;  %v1539_v30 = vld [vmem:[#allocation1 + $0x5e] sm:$0x8]   ;;  %1833 = vrot.lane.b32.xlu0 %v1832_v25, %s1859_s20  ;;  %v1537_v38 = vsel %vm570_vm1, %v1535_v29, %v1533_v33  ;;  %v1565_v41 = vld [vmem:[#allocation1 + $0x30] sm:$0x2]  }
  0x5a   :  { %v1512_v22 = vld [vmem:[#allocation1 + $0xad] sm:$0x20]   ;;  %v1510_v31 = vsel %vm578_vm3, %v1508_v18, %v1506_v27  ;;  %v1543_v34 = vld [vmem:[#allocation1 + $0x7d] sm:$0x10]   ;;  %v1541_v43 = vsel %vm574_vm2, %v1539_v30, %v1537_v38  ;;  %v1567_v44 = vsel %vm566_vm0, %v1565_v41, %v1563_v40  ;;  %v1569_v45 = vld [vmem:[#allocation1 + $0x4f] sm:$0x4]  }
  0x5b   :  { %v1516_v23 = vld [vmem:[#allocation1 + $0xcc] sm:$0x40]   ;;  %v1547_v35 = vld [vmem:[#allocation1 + $0x9c] sm:$0x20]   ;;  %v1514_v37 = vsel %vm582_vm4, %v1512_v22, %v1510_v31  ;;  %v1573_v46 = vld [vmem:[#allocation1 + $0x6e] sm:$0x8]   ;;  %v1545_v49 = vsel %vm578_vm3, %v1543_v34, %v1541_v43  ;;  %v1571_v51 = vsel %vm570_vm1, %v1569_v45, %v1567_v44 }
  0x5c   :  { %v1520_v32 = vld [vmem:[#allocation1 + $0xeb] sm:$0x80]   ;;  %v1551_v39 = vld [vmem:[#allocation1 + $0xbb] sm:$0x40]   ;;  %v1518_v42 = vsel %vm586_vm5, %v1516_v23, %v1514_v37  ;;  %v1577_v47 = vld [vmem:[#allocation1 + $0x8d] sm:$0x10]   ;;  %v1549_v54 = vsel %vm582_vm4, %v1547_v35, %v1545_v49  ;;  %v1575_v55 = vsel %vm574_vm2, %v1573_v46, %v1571_v51 }
  0x5d   :  { %v1522_v48 = vsel %vm590_vm6, %v1520_v32, %v1518_v42  ;;  %v1555_v50 = vld [vmem:[#allocation1 + $0xda] sm:$0x80]   ;;  %v1581_v52 = vld [vmem:[#allocation1 + $0xac] sm:$0x20]   ;;  %v1553_v58 = vsel %vm586_vm5, %v1551_v39, %v1549_v54  ;;  %v1579_v59 = vsel %vm578_vm3, %v1577_v47, %v1575_v55  ;;  %v514_v60 = vld [vmem:[#allocation1] ss:$16 sm:%s513_s21]  }
  0x5e   :  { %v1837_v53 = vpack.i.bf16 %v1522_v48, %v1488_v36  ;;  %v1585_v56 = vld [vmem:[#allocation1 + $0xcb] sm:$0x40]   ;;  %v516_v61 = vld [vmem:[#allocation1] ss:$16 sm:%s515_s22]   ;;  %v1557_v62 = vsel %vm590_vm6, %v1555_v50, %v1553_v58  ;;  %v1583_v63 = vsel %vm582_vm4, %v1581_v52, %v1579_v59  ;;  %s544_s28 = smov 48  ;;  %s549_s29 = smov 192 }
  0x5f   :  { %v1589_v57 = vld [vmem:[#allocation1 + $0xea] sm:$0x80]   ;;  %v518_v0 = vsel %vm517_vm7, %v516_v61, %v514_v60  ;;  %v520_v1 = vld [vmem:[#allocation1] ss:$16 sm:%s519_s23]   ;;  %v1587_v2 = vsel %vm586_vm5, %v1585_v56, %v1583_v63  ;;  %s1861_s30 = smov 8   ;;  %vm594_vm11 = vcmask 1048512  }
  0x60   :  { %1838 = vrot.lane.b32.xlu1 %v1837_v53, %s1860_s24  ;;  %v522_v3 = vsel %vm521_vm8, %v520_v1, %v518_v0  ;;  %v524_v4 = vld [vmem:[#allocation1] ss:$16 sm:%s523_s25]   ;;  %v1591_v5 = vsel %vm590_vm6, %v1589_v57, %v1587_v2  ;;  %vm663_vm12 = vcmask 982912   ;;  %vm732_vm13 = vcmask 917312  }
  0x61   :  { %v526_v6 = vsel %vm525_vm9, %v524_v4, %v522_v3  ;;  %v537_v7 = vld [vmem:[#allocation1 + $0x80] ss:$16 sm:%s536_s26]   ;;  %v1842_v8 = vpack.i.bf16 %v1591_v5, %v1557_v62  ;;  %vm801_vm14 = vcmask 851712   ;;  %vm870_vm15 = vcmask 786112  }
  0x62   :  { %528 = vst.msk [vmem:[#allocation0] ss:$8 sm:$0x3] %vm527_vm10, %v526_v6   ;;  %530 = vst.msk [vmem:[#allocation0 - $0xf] ss:$8 sm:$0xc] %vm527_vm10, %v526_v6  }
  0x63   :  { %532 = vst.msk [vmem:[#allocation0 - $0x1e] ss:$8 sm:$0x30] %vm527_vm10, %v526_v6   ;;  %534 = vst.msk [vmem:[#allocation0 - $0x2d] ss:$8 sm:$0xc0] %vm527_vm10, %v526_v6   ;;  %1843 = vrot.lane.b32.xlu0 %v1842_v8, %s1861_s30 }
  0x64   :  { %v540_v9 = vld [vmem:[#allocation1 + $0x80] ss:$16 sm:%s539_s27]   ;;  %vm939_vm0 = vcmask 720512   ;;  %vm1008_vm1 = vcmask 654912   ;;  %vm1077_vm2 = vcmask 589312   ;;  %vm1146_vm3 = vcmask 523712  }
  0x65   :  { %v545_v10 = vld [vmem:[#allocation1 + $0x80] ss:$16 sm:%s544_s28]   ;;  %v542_v12 = vsel %vm517_vm7, %v540_v9, %v537_v7  ;;  %vm1215_vm4 = vcmask 458112   ;;  %vm1284_vm5 = vcmask 392512   ;;  %vm1353_vm6 = vcmask 326912  }
  0x66   :  { %v550_v11 = vld [vmem:[#allocation1 + $0x80] ss:$16 sm:%s549_s29]   ;;  %v547_v13 = vsel %vm521_vm8, %v545_v10, %v542_v12  ;;  %vm1422_vm7 = vcmask 261312   ;;  %vm1491_vm8 = vcmask 195712  }
  0x67   :  { %v552_v14 = vsel %vm525_vm9, %v550_v11, %v547_v13  ;;  %vm1560_vm9 = vcmask 130112  }
  0x68   :  { %555 = vst.msk [vmem:[#allocation0 + $0x4] ss:$8 sm:$0x3] %vm527_vm10, %v552_v14   ;;  %557 = vst.msk [vmem:[#allocation0 - $0xb] ss:$8 sm:$0xc] %vm527_vm10, %v552_v14  }
  0x69   :  { %559 = vst.msk [vmem:[#allocation0 - $0x1a] ss:$8 sm:$0x30] %vm527_vm10, %v552_v14   ;;  %561 = vst.msk [vmem:[#allocation0 - $0x29] ss:$8 sm:$0xc0] %vm527_vm10, %v552_v14  }
  0x91   :  { %v1774_v15 = vpop.permute.xlu0 %1773 }
  0x92   :  { %v1776_v16 = vunpack.i.h.bf16 %v1774_v15  ;;  %v1775_v17 = vunpack.i.l.bf16 %v1774_v15 }
  0x93   :  { %v1784_v18 = vpop.permute.xlu1 %1783 }
  0x94   :  { %595 = vst.msk [vmem:[#allocation0] sm:$0xff] %vm594_vm11, %v1775_v17   ;;  %630 = vst.msk [vmem:[#allocation0 + $0x8] sm:$0xff] %vm594_vm11, %v1776_v16   ;;  %v1786_v22 = vunpack.i.h.bf16 %v1784_v18  ;;  %v1785_v23 = vunpack.i.l.bf16 %v1784_v18 }
  0x98   :  { %v1779_v19 = vpop.permute.xlu0 %1778 }
  0x99   :  { %v1781_v20 = vunpack.i.h.bf16 %v1779_v19  ;;  %v1780_v21 = vunpack.i.l.bf16 %v1779_v19 }
  0x9b   :  { %664 = vst.msk [vmem:[#allocation0] sm:$0xff] %vm663_vm12, %v1780_v21   ;;  %699 = vst.msk [vmem:[#allocation0 + $0x8] sm:$0xff] %vm663_vm12, %v1781_v20   ;;  %v1789_v24 = vpop.permute.xlu1 %1788 }
  0x9c   :  { %733 = vst.msk [vmem:[#allocation0] sm:$0xff] %vm732_vm13, %v1785_v23   ;;  %768 = vst.msk [vmem:[#allocation0 + $0x8] sm:$0xff] %vm732_vm13, %v1786_v22   ;;  %v1791_v25 = vunpack.i.h.bf16 %v1789_v24  ;;  %v1790_v26 = vunpack.i.l.bf16 %v1789_v24 }
  0x9e   :  { %802 = vst.msk [vmem:[#allocation0] sm:$0xff] %vm801_vm14, %v1790_v26   ;;  %837 = vst.msk [vmem:[#allocation0 + $0x8] sm:$0xff] %vm801_vm14, %v1791_v25  }
  0xa2   :  { %v1794_v27 = vpop.permute.xlu0 %1793 }
  0xa3   :  { %v1796_v28 = vunpack.i.h.bf16 %v1794_v27  ;;  %v1795_v29 = vunpack.i.l.bf16 %v1794_v27 }
  0xa5   :  { %871 = vst.msk [vmem:[#allocation0] sm:$0xff] %vm870_vm15, %v1795_v29   ;;  %906 = vst.msk [vmem:[#allocation0 + $0x8] sm:$0xff] %vm870_vm15, %v1796_v28   ;;  %v1799_v30 = vpop.permute.xlu1 %1798 }
  0xa6   :  { %v1801_v31 = vunpack.i.h.bf16 %v1799_v30  ;;  %v1800_v32 = vunpack.i.l.bf16 %v1799_v30 }
  0xa8   :  { %940 = vst.msk [vmem:[#allocation0] sm:$0xff] %vm939_vm0, %v1800_v32   ;;  %975 = vst.msk [vmem:[#allocation0 + $0x8] sm:$0xff] %vm939_vm0, %v1801_v31  }
  0xab   :  { %v1804_v33 = vpop.permute.xlu0 %1803 }
  0xac   :  { %v1806_v34 = vunpack.i.h.bf16 %v1804_v33  ;;  %v1805_v35 = vunpack.i.l.bf16 %v1804_v33 }
  0xae   :  { %1009 = vst.msk [vmem:[#allocation0] sm:$0xff] %vm1008_vm1, %v1805_v35   ;;  %1044 = vst.msk [vmem:[#allocation0 + $0x8] sm:$0xff] %vm1008_vm1, %v1806_v34  }
  0xb2   :  { %v1809_v36 = vpop.permute.xlu1 %1808 }
  0xb3   :  { %v1811_v37 = vunpack.i.h.bf16 %v1809_v36  ;;  %v1810_v38 = vunpack.i.l.bf16 %v1809_v36 }
  0xb5   :  { %1078 = vst.msk [vmem:[#allocation0] sm:$0xff] %vm1077_vm2, %v1810_v38   ;;  %1113 = vst.msk [vmem:[#allocation0 + $0x8] sm:$0xff] %vm1077_vm2, %v1811_v37   ;;  %v1814_v39 = vpop.permute.xlu0 %1813 }
  0xb6   :  { %v1816_v40 = vunpack.i.h.bf16 %v1814_v39  ;;  %v1815_v41 = vunpack.i.l.bf16 %v1814_v39 }
  0xb8   :  { %1147 = vst.msk [vmem:[#allocation0] sm:$0xff] %vm1146_vm3, %v1815_v41   ;;  %1182 = vst.msk [vmem:[#allocation0 + $0x8] sm:$0xff] %vm1146_vm3, %v1816_v40  }
  0xbb   :  { %v1819_v42 = vpop.permute.xlu1 %1818 }
  0xbc   :  { %v1821_v43 = vunpack.i.h.bf16 %v1819_v42  ;;  %v1820_v44 = vunpack.i.l.bf16 %v1819_v42 }
  0xbe   :  { %1216 = vst.msk [vmem:[#allocation0] sm:$0xff] %vm1215_vm4, %v1820_v44   ;;  %1251 = vst.msk [vmem:[#allocation0 + $0x8] sm:$0xff] %vm1215_vm4, %v1821_v43  }
  0xc2   :  { %v1824_v45 = vpop.permute.xlu0 %1823 }
  0xc3   :  { %v1826_v46 = vunpack.i.h.bf16 %v1824_v45  ;;  %v1825_v47 = vunpack.i.l.bf16 %v1824_v45 }
  0xc5   :  { %1285 = vst.msk [vmem:[#allocation0] sm:$0xff] %vm1284_vm5, %v1825_v47   ;;  %1320 = vst.msk [vmem:[#allocation0 + $0x8] sm:$0xff] %vm1284_vm5, %v1826_v46   ;;  %v1829_v48 = vpop.permute.xlu1 %1828 }
  0xc6   :  { %v1831_v49 = vunpack.i.h.bf16 %v1829_v48  ;;  %v1830_v50 = vunpack.i.l.bf16 %v1829_v48 }
  0xc8   :  { %1354 = vst.msk [vmem:[#allocation0] sm:$0xff] %vm1353_vm6, %v1830_v50   ;;  %1389 = vst.msk [vmem:[#allocation0 + $0x8] sm:$0xff] %vm1353_vm6, %v1831_v49  }
  0xcb   :  { %v1834_v51 = vpop.permute.xlu0 %1833 }
  0xcc   :  { %v1836_v52 = vunpack.i.h.bf16 %v1834_v51  ;;  %v1835_v53 = vunpack.i.l.bf16 %v1834_v51 }
  0xce   :  { %1423 = vst.msk [vmem:[#allocation0] sm:$0xff] %vm1422_vm7, %v1835_v53   ;;  %1458 = vst.msk [vmem:[#allocation0 + $0x8] sm:$0xff] %vm1422_vm7, %v1836_v52  }
  0xd2   :  { %v1839_v54 = vpop.permute.xlu1 %1838 }
  0xd3   :  { %v1841_v55 = vunpack.i.h.bf16 %v1839_v54  ;;  %v1840_v56 = vunpack.i.l.bf16 %v1839_v54 }
  0xd5   :  { %1492 = vst.msk [vmem:[#allocation0] sm:$0xff] %vm1491_vm8, %v1840_v56   ;;  %1527 = vst.msk [vmem:[#allocation0 + $0x8] sm:$0xff] %vm1491_vm8, %v1841_v55   ;;  %v1844_v57 = vpop.permute.xlu0 %1843 }
  0xd6   :  { %v1846_v58 = vunpack.i.h.bf16 %v1844_v57  ;;  %v1845_v59 = vunpack.i.l.bf16 %v1844_v57 }
  0xd8   :  { %1561 = vst.msk [vmem:[#allocation0] sm:$0xff] %vm1560_vm9, %v1845_v59   ;;  %1596 = vst.msk [vmem:[#allocation0 + $0x8] sm:$0xff] %vm1560_vm9, %v1846_v58  }
  0xdf   :  { %v1601_v60 = vld [vmem:[#allocation0] sm:$0xff]  ;;  %v1606_v61 = vld [vmem:[#allocation0 + $0x8] sm:$0xff] }
  0xe0   :  { %v1740_v62 = vpack.c.bf16 %v1606_v61, %v1601_v60 }
  0xe2   :  { %1741 = vst [vmem:[%s2160_s1] sm:$0xff] %v1740_v62  }

// kernel: augmented_layer_forward.1
= control target key start
LH: loop header
LB: loop body
LE: loop exit
PB: predicated region body
PF: predicated region fallthrough
CT: control target
= control target key end

     0   :  { %s9586_s21 = smov 0   ;;  %s14385_s0 = inlined_call_operand.vmem [shape: f32[2,37,256], index: 0, kind: input, shape index: {}]   ;;  %s14386_s1 = inlined_call_operand.vmem [shape: f32[96,37], index: 1, kind: input, shape index: {}]   ;;  %s14387_s2 = inlined_call_operand.vmem [shape: bf16[8,264], index: 2, kind: input, shape index: {}]   ;;  %s14388_s3 = inlined_call_operand.vmem [shape: f32[256,264], index: 3, kind: input, shape index: {}]   ;;  %s14389_s4 = inlined_call_operand.vmem [shape: bf16[256,256], index: 4, kind: input, shape index: {}]   ;;  %s14390_s5 = inlined_call_operand.vmem [shape: f32[16,17], index: 5, kind: input, shape index: {}]   ;;  %s14391_s6 = inlined_call_operand.vmem [shape: f32[2,32,256], index: 6, kind: output, shape index: {}]  }
   0x1 LB: > { %s7314_s22 = sadd.s32 4294967295, %s9543_s21   ;;  %p7318_p0 = scmp.ge.s32.totalorder %s9543_s21, 1  ;;  %s9543_s21 = sphi %s9586_s21, %s16_s21  }
   0x2   : > { %p212_p1 = scmp.lt.s32.totalorder %s9543_s21, 3 }
   0x4   : > { %p213_p2 = pnand %p7318_p0, %p212_p1 }
   0x6   : > { %216 = sbr.rel (%p213_p2) target bundleno = 5012 (0x1394), region = 44 }
   0xd   : > { %p242_p3 = scmp.lt.s32.totalorder %s7314_s22, 1  ;;  %v14392_v0 = vmov 0.0   ;;  %vm312_vm0 = vcmask 1044480   ;;  %v253_v15 = vld [vmem:[%s14386_s1] sm:$0xff]  ;;  %vm275_vm1 = vcmask 302080   ;;  %v258_v16 = vld [vmem:[%s14386_s1 + $0x28] sm:$0xff] }
   0xe   : > { %383 = vmatprep.mubr.f32.mxu0 %v14392_v0  ;;  %413 = vmatprep.mubr.f32.mxu1 %v14392_v0  ;;  %v254_v17 = vld [vmem:[%s14386_s1 + $0x8] sm:$0xff]  ;;  %v255_v18 = vld [vmem:[%s14386_s1 + $0x10] sm:$0xff]  ;;  %v256_v19 = vld [vmem:[%s14386_s1 + $0x18] sm:$0xff]  ;;  %vm736_vm2 = vcmask 1043456   ;;  %v14394_v41 = vmov 0   ;;  %vm687_vm3 = vcmask 64512  }
   0xf   : > { %s15038_s22 = smov (!%p242_p3, %s7314_s22), 1  ;;  %v257_v20 = vld [vmem:[%s14386_s1 + $0x20] sm:$0xff]  ;;  %v259_v22 = vld [vmem:[%s14386_s1 + $0x30] sm:$0xff]  ;;  %v260_v25 = vld [vmem:[%s14386_s1 + $0x38] sm:$0xff]  ;;  %s9547_s14 = smov 120   ;;  %vm7171_vm5 = vcmask 1040384  }
  0x10   : > { %s8316_s23 = smul.u32 80, %s15038_s22  ;;  %v524_v21 = vld [vmem:[%s14387_s2] sm:$0xff]  ;;  %v262_v28 = vld [vmem:[%s14386_s1 + $0x48] sm:$0xff]  ;;  %v263_v29 = vld [vmem:[%s14386_s1 + $0x50] sm:$0xff]  ;;  %s7577_s29 = sshll.u32 %s15038_s22, 6  ;;  %vm7164_vm6 = vcmask 138240  }
  0x11   : > { %v9637_v23 = vcombine.high %v524_v21, %v524_v21  ;;  %v7336_v24 = vcombine.low %v524_v21, %v524_v21  ;;  %v261_v27 = vld [vmem:[%s14386_s1 + $0x40] sm:$0xff]  ;;  %s9671_s8 = scalar_lea.vmem %s14391_s6, %s7577_s29  ;;  %v264_v38 = vld [vmem:[%s14386_s1 + $0x58] sm:$0xff]  ;;  %v8333_v44 = vld [vmem:[%s14387_s2 + $0x8] ss:$0 sps:$4 sm:$0xff]   ;;  %s9548_s13 = smov 112  }
  0x12   : > { %s246_s26 = scalar_lea.vmem %s14385_s0, %s8316_s23  ;;  %v9687_v45 = vsel %vm736_vm2, %v8333_v44, 0  ;;  %v8334_v48 = vld [vmem:[%s14389_s4 + $0x4] ss:$8 sps:$4 sm:$0xff]   ;;  %v8336_v56 = vld [vmem:[%s14389_s4] ss:$8 sps:$4 sm:$0xff]   ;;  %s9549_s22 = smov 104  }
  0x13   : > { %v266_v1 = vld [vmem:[%s246_s26 + $0x8] sm:$0xff]  ;;  %v268_v2 = vld [vmem:[%s246_s26 + $0x18] sm:$0xff]  ;;  %v265_v3 = vld [vmem:[%s246_s26] sm:$0xff]  ;;  %14591 = vst [vmem:[#allocation3_spill] sm:$0xff] %v9637_v23  ;;  %v9647_v26 = vsel %vm736_vm2, %v7336_v24, 0 }
  0x14   : > { %v7782_v4 = vpack.c.bf16 %v268_v2, %v266_v1  ;;  %v267_v5 = vld [vmem:[%s246_s26 + $0x10] sm:$0xff]  ;;  %v270_v6 = vld [vmem:[%s246_s26 + $0x28] sm:$0xff]  ;;  %v272_v7 = vld [vmem:[%s246_s26 + $0x38] sm:$0xff]  ;;  %14592 = vst [vmem:[#allocation4_spill] sm:$0xff] %v9647_v26 }
  0x15   : > { %v7784_v8 = vpack.c.bf16 %v267_v5, %v265_v3  ;;  %v7786_v9 = vpack.c.bf16 %v272_v7, %v270_v6  ;;  %v269_v10 = vld [vmem:[%s246_s26 + $0x20] sm:$0xff]  ;;  %v271_v11 = vld [vmem:[%s246_s26 + $0x30] sm:$0xff]  ;;  %v274_v13 = vld [vmem:[%s246_s26 + $0x48] sm:$0x1f]  ;;  %14593 = vst [vmem:[#allocation5_spill] sm:$0xff] %v9687_v45 }
  0x16   : > { %7783 = vmatprep.subr.bf16.mxu0 %v7782_v4  ;;  %8050 = vmatprep.subr.bf16.mxu1 %v7782_v4  ;;  %v7788_v12 = vpack.c.bf16 %v271_v11, %v269_v10  ;;  %v273_v14 = vld [vmem:[%s246_s26 + $0x40] sm:$0x1f]  ;;  %v8337_v57 = vld [vmem:[%s14389_s4 + $0x14] ss:$8 sps:$4 sm:$0xff]   ;;  %v8339_v60 = vld [vmem:[%s14389_s4 + $0x10] ss:$8 sps:$4 sm:$0xff]  }
  0x17   : > { %7785 = vmatpush1.bf16.msra.mxu0 %v7784_v8  ;;  %8053 = vmatpush1.bf16.msra.mxu1 %v7784_v8  ;;  %v8340_v61 = vld [vmem:[%s14389_s4 + $0x24] ss:$8 sps:$4 sm:$0xff]   ;;  %v8342_v2 = vld [vmem:[%s14389_s4 + $0x20] ss:$8 sps:$4 sm:$0xff]   ;;  %v8343_v3 = vld [vmem:[%s14389_s4 + $0x34] ss:$8 sps:$4 sm:$0xff]  }
  0x18   : > { %7787 = vmatprep.subr.bf16.mxu0 %v7786_v9  ;;  %8051 = vmatprep.subr.bf16.mxu1 %v7786_v9  ;;  %v8345_v5 = vld [vmem:[%s14389_s4 + $0x30] ss:$8 sps:$4 sm:$0xff]   ;;  %v8346_v6 = vld [vmem:[%s14389_s4 + $0x44] ss:$8 sps:$4 sm:$0xff]   ;;  %v8348_v10 = vld [vmem:[%s14389_s4 + $0x40] ss:$8 sps:$4 sm:$0xff]  }
  0x19   : > { %v8349_v11 = vld [vmem:[%s14389_s4 + $0x54] ss:$8 sps:$4 sm:$0xff]   ;;  %v8358_v24 = vld [vmem:[%s14389_s4 + $0x84] ss:$8 sps:$4 sm:$0xff]  }
  0x1b   : > { %7789 = vmatpush1.bf16.msra.mxu0 %v7788_v12  ;;  %8054 = vmatpush1.bf16.msra.mxu1 %v7788_v12 }
  0x1c   : > { %7322 = vmatprep.subr.msk.mxu0 %vm312_vm0, %v274_v13  ;;  %8052 = vmatprep.subr.msk.mxu1 %vm312_vm0, %v274_v13 }
  0x1f   : > { %7323 = vmatpush1.msk.msra.mxu0 %vm312_vm0, %v273_v14  ;;  %8055 = vmatpush1.msk.msra.mxu1 %vm312_vm0, %v273_v14  ;;  %v8351_v14 = vld [vmem:[%s14389_s4 + $0x50] ss:$8 sps:$4 sm:$0xff]  }
  0x20   : > { %7324 = vmatmul.mubr.msk.f32.vlgmr.msra.gmra.mrb[0].mxu0 %vm275_vm1, %v253_v15  ;;  %7329 = vmatmul.mubr.msk.f32.vlgmr.msra.gmra.mrb[0].mxu1 %vm275_vm1, %v258_v16  ;;  %v8352_v15 = vld [vmem:[%s14389_s4 + $0x64] ss:$8 sps:$4 sm:$0xff]  }
  0x21   : > { %389 = vmatprep.mubr.f32.mxu0 %v14392_v0  ;;  %419 = vmatprep.mubr.f32.mxu1 %v14392_v0 }
  0x22   : > { %7339 = vmatprep.subr.msk.bf16.mxu1 %vm736_vm2, %v9637_v23  ;;  %8312 = vmatprep.subr.msk.bf16.mxu0 %vm736_vm2, %v8333_v44 }
  0x23   : > { %747 = vmatpush1.bf16.msra.mxu1 %v9647_v26  ;;  %7647 = vmatpush3.bf16.msra.mxu0 %v9687_v45 }
  0x24   : > { %7325 = vmatmul.mubr.msk.f32.gmra.mrb[2].mxu0 %vm275_vm1, %v254_v17  ;;  %7330 = vmatmul.mubr.msk.f32.gmra.mrb[2].mxu1 %vm275_vm1, %v259_v22  ;;  %v8357_v22 = vld [vmem:[%s14389_s4 + $0x70] ss:$8 sps:$4 sm:$0xff]  }
  0x25   : > { %395 = vmatprep.mubr.f32.mxu0 %v14392_v0  ;;  %425 = vmatprep.mubr.f32.mxu1 %v14392_v0 }
  0x26   : > { %1458 = vmatprep.subr.bf16.mxu0 %v8334_v48  ;;  %v8369_v48 = vld [vmem:[%s14389_s4 + $0xb0] ss:$8 sps:$4 sm:$0xff]  }
  0x28   : > { %7326 = vmatmul.mubr.msk.f32.gmra.mrb[4].mxu0 %vm275_vm1, %v255_v18  ;;  %7331 = vmatmul.mubr.msk.f32.gmra.mrb[4].mxu1 %vm275_vm1, %v260_v25  ;;  %v8354_v18 = vld [vmem:[%s14389_s4 + $0x60] ss:$8 sps:$4 sm:$0xff]  }
  0x29   : > { %401 = vmatprep.mubr.f32.mxu0 %v14392_v0  ;;  %431 = vmatprep.mubr.f32.mxu1 %v14392_v0 }
  0x2c   : > { %7327 = vmatmul.mubr.msk.f32.gmra.mrb[6].mxu0 %vm275_vm1, %v256_v19  ;;  %7332 = vmatmul.mubr.msk.f32.gmra.mrb[6].mxu1 %vm275_vm1, %v261_v27  ;;  %v8355_v19 = vld [vmem:[%s14389_s4 + $0x74] ss:$8 sps:$4 sm:$0xff]  }
  0x2d   : > { %407 = vmatprep.mubr.f32.mxu0 %v14392_v0  ;;  %437 = vmatprep.mubr.f32.mxu1 %v14392_v0 }
  0x30   : > { %7328 = vmatmul.mubr.msk.f32.gmra.mrb[8].mxu0 %vm275_vm1, %v257_v20  ;;  %7333 = vmatmul.mubr.msk.f32.gmra.mrb[8].mxu1 %vm275_vm1, %v262_v28 }
  0x31   : > { %443 = vmatprep.mubr.f32.mxu1 %v14392_v0 }
  0x34   : > { %7334 = vmatmul.mubr.msk.f32.gmra.mrb[10].mxu1 %vm275_vm1, %v263_v29  ;;  %v8360_v29 = vld [vmem:[%s14389_s4 + $0x80] ss:$8 sps:$4 sm:$0xff]  }
  0x35   : > { %449 = vmatprep.mubr.f32.mxu1 %v14392_v0 }
  0x38   : > { %7335 = vmatmul.mubr.msk.f32.gmra.mrb[12].mxu1 %vm275_vm1, %v264_v38  ;;  %v8366_v38 = vld [vmem:[%s14389_s4 + $0xa0] ss:$8 sps:$4 sm:$0xff]  }
  0x39   : > { %778 = vmatprep.mubr.bf16.mxu1 %v14394_v41 }
  0xf3   : > { %v385_v30 = vpop.f32.mrb[0].mxu0  ;;  %v415_v31 = vpop.f32.mrb[0].mxu1 }
  0xf4   : > { %456 = vst [vmem:[%s9671_s8] sm:$0xff] %v385_v30  ;;  %v387_v32 = vpop.f32.mrb[1].mxu0  ;;  %v417_v33 = vpop.f32.mrb[1].mxu1  ;;  %v8361_v30 = vld [vmem:[%s14389_s4 + $0x94] ss:$8 sps:$4 sm:$0xff]  }
  0xf5   : > { %457 = vst [vmem:[%s9671_s8 + $0x8] sm:$0xff] %v387_v32  ;;  %v8363_v32 = vld [vmem:[%s14389_s4 + $0x90] ss:$8 sps:$4 sm:$0xff]  }
  0xf7   : > { %v391_v34 = vpop.f32.mrb[2].mxu0 }
  0xf8   : > { %458 = vst [vmem:[%s9671_s8 + $0x10] sm:$0xff] %v391_v34  ;;  %v393_v35 = vpop.f32.mrb[3].mxu0 }
  0xf9   : > { %459 = vst [vmem:[%s9671_s8 + $0x18] sm:$0xff] %v393_v35 }
  0xfb   : > { %v397_v36 = vpop.f32.mrb[4].mxu0 }
  0xfc   : > { %460 = vxpose.xlu0.b32.start [1/4] (short) %v397_v36, 128  ;;  %v399_v37 = vpop.f32.mrb[5].mxu0  ;;  %v9825_v36 = vpop.f32.mrb[2].mxu1 }
  0xfd   : > { %492 = vxpose.xlu1.b32.start [1/4] (short) %v399_v37, 128 }
  0xff   : > { %v403_v39 = vpop.f32.mrb[6].mxu0 }
 0x100   : > { %461 = vxpose.xlu0.b32.cont [2/4] (short) %v403_v39, 128  ;;  %v405_v40 = vpop.f32.mrb[7].mxu0  ;;  %v423_v39 = vpop.f32.mrb[3].mxu1 }
 0x101   : > { %493 = vxpose.xlu1.b32.cont [2/4] (short) %v405_v40, 128  ;;  %v8367_v40 = vld [vmem:[%s14389_s4 + $0xb4] ss:$8 sps:$4 sm:$0xff]  }
 0x103   : > { %v409_v42 = vpop.f32.mrb[8].mxu0 }
 0x104   : > { %462 = vxpose.xlu0.b32.cont [3/4] (short) %v409_v42, 128  ;;  %v411_v43 = vpop.f32.mrb[9].mxu0  ;;  %v9835_v42 = vpop.f32.mrb[4].mxu1 }
 0x105   : > { %494 = vxpose.xlu1.b32.cont [3/4] (short) %v411_v43, 128  ;;  %14601 = vst [vmem:[#allocation13_spill] sm:$0xff] %v9835_v42  ;;  %v9841_v43 = vpop.f32.mrb[5].mxu1 }
 0x106   : > { %14602 = vst [vmem:[#allocation14_spill] sm:$0xff] %v9841_v43 }
 0x108   : > { %463 = vxpose.xlu0.b32.end [4/4] (short) %v415_v31, 128 }
 0x109   : > { %495 = vxpose.xlu1.b32.end [4/4] (short) %v417_v33, 128  ;;  %v8364_v33 = vld [vmem:[%s14389_s4 + $0xa4] ss:$8 sps:$4 sm:$0xff]  }
 0x17c   : > { %v476_v46 = vpop.trf.xlu0 }
 0x17d   : > { %v9690_v47 = vpop.trf.xlu1 }
 0x180   : > { %v477_v49 = vpop.trf.xlu0 }
 0x181   : > { %v9695_v50 = vpack.c.bf16 %v477_v49, %v476_v46  ;;  %v9697_v51 = vpop.trf.xlu1  ;;  %v9846_v46 = vpop.f32.mrb[6].mxu1 }
 0x182   : > { %14603 = vst [vmem:[#allocation15_spill] sm:$0xff] %v9846_v46  ;;  %v9851_v49 = vpop.f32.mrb[7].mxu1 }
 0x183   : > { %14594 = vst [vmem:[#allocation6_spill] sm:$0xff] %v9695_v50  ;;  %2415 = vrot.lane.b32.xlu0 %v9695_v50, %s9547_s14  ;;  %7340 = vmatmul.mubr.msk.bf16.vlgmr.msra.gmra.mrb[16].mxu1 %vm687_vm3, %v9695_v50  ;;  %14604 = vst [vmem:[#allocation16_spill] sm:$0xff] %v9851_v49 }
 0x184   : > { %7648 = vmatprep.mubr.msk.bf16.mxu0 %vm687_vm3, %v9695_v50  ;;  %v478_v52 = vpop.trf.xlu0  ;;  %788 = vmatprep.mubr.bf16.mxu1 %v14394_v41 }
 0x185   : > { %v9706_v53 = vpop.trf.xlu1 }
 0x188   : > { %v479_v54 = vpop.trf.xlu0 }
 0x189   : > { %v9708_v55 = vpack.c.bf16 %v479_v54, %v478_v52  ;;  %v9720_v58 = vpop.trf.xlu1  ;;  %v8370_v54 = vld [vmem:[%s14389_s4 + $0xc4] ss:$8 sps:$4 sm:$0xff]  }
 0x18b   : > { %14595 = vst [vmem:[#allocation7_spill] sm:$0xff] %v9708_v55  ;;  %7341 = vmatmul.mubr.msk.bf16.gmra.mrb[20].mxu1 %vm687_vm3, %v9708_v55  ;;  %7649 = vmatmul.mubr.msk.bf16.vlgmr.msra.gmra.mrb[12].mxu0 %vm687_vm3, %v9708_v55 }
 0x18c   : > { %2417 = vrot.lane.b32.xlu1 %v9708_v55, %s9547_s14  ;;  %v480_v59 = vpop.trf.xlu0  ;;  %798 = vmatprep.mubr.bf16.mxu1 %v14394_v41 }
 0x18d   : > { %1459 = vmatpush1.bf16.msra.mxu0 %v8336_v56  ;;  %v9733_v1 = vpop.trf.xlu1  ;;  %v9856_v56 = vpop.f32.mrb[8].mxu1 }
 0x18e   : > { %1460 = vmatprep.subr.bf16.mxu0 %v8337_v57  ;;  %14605 = vst [vmem:[#allocation17_spill] sm:$0xff] %v9856_v56  ;;  %v9858_v57 = vpop.f32.mrb[9].mxu1 }
 0x18f   : > { %14606 = vst [vmem:[#allocation18_spill] sm:$0xff] %v9858_v57 }
 0x190   : > { %v481_v62 = vpop.trf.xlu0 }
 0x191   : > { %v9731_v63 = vpack.c.bf16 %v481_v62, %v480_v59  ;;  %1461 = vmatpush1.bf16.msra.mxu0 %v8339_v60  ;;  %v9754_v7 = vpop.trf.xlu1  ;;  %v9862_v60 = vpack.c.bf16 %v9697_v51, %v9690_v47  ;;  %v8375_v51 = vld [vmem:[%s14389_s4 + $0xd0] ss:$8 sps:$4 sm:$0xff]  }
 0x192   : > { %1462 = vmatprep.subr.bf16.mxu0 %v8340_v61  ;;  %v9864_v61 = vpop.f32.mrb[10].mxu1 }
 0x193   : > { %14596 = vst [vmem:[#allocation8_spill] sm:$0xff] %v9731_v63  ;;  %2419 = vrot.lane.b32.xlu0 %v9731_v63, %s9547_s14  ;;  %7342 = vmatmul.mubr.msk.bf16.gmra.mrb[24].mxu1 %vm687_vm3, %v9731_v63  ;;  %14607 = vst [vmem:[#allocation19_spill] sm:$0xff] %v9862_v60 }
 0x194   : > { %7652 = vmatprep.mubr.msk.bf16.mxu0 %vm687_vm3, %v9731_v63  ;;  %v482_v4 = vpop.trf.xlu0  ;;  %808 = vmatprep.mubr.bf16.mxu1 %v14394_v41  ;;  %14608 = vst [vmem:[#allocation20_spill] sm:$0xff] %v9864_v61 }
 0x195   : > { %1463 = vmatpush1.bf16.msra.mxu0 %v8342_v2  ;;  %v9771_v13 = vpop.trf.xlu1  ;;  %v8372_v2 = vld [vmem:[%s14389_s4 + $0xc0] ss:$8 sps:$4 sm:$0xff]  }
 0x196   : > { %1464 = vmatprep.subr.bf16.mxu0 %v8343_v3  ;;  %v9871_v3 = vpop.f32.mrb[11].mxu1 }
 0x197   : > { %14610 = vst [vmem:[#allocation22_spill] sm:$0xff] %v9871_v3 }
 0x198   : > { %v483_v8 = vpop.trf.xlu0 }
 0x199   : > { %v9756_v9 = vpack.c.bf16 %v483_v8, %v482_v4  ;;  %1465 = vmatpush1.bf16.msra.mxu0 %v8345_v5  ;;  %v9791_v20 = vpop.trf.xlu1  ;;  %v8373_v4 = vld [vmem:[%s14389_s4 + $0xd4] ss:$8 sps:$4 sm:$0xff]   ;;  %v8376_v5 = vld [vmem:[%s14389_s4 + $0xe4] ss:$8 sps:$4 sm:$0xff]   ;;  %v9897_v8 = vpack.c.bf16 %v9754_v7, %v9733_v1 }
 0x19a   : > { %1466 = vmatprep.subr.bf16.mxu0 %v8346_v6  ;;  %v9893_v6 = vpack.c.bf16 %v9720_v58, %v9706_v53  ;;  %v8381_v53 = vld [vmem:[%s14389_s4 + $0xf0] ss:$8 sps:$4 sm:$0xff]   ;;  %v678_v58 = vpack.c.bf16 %v423_v39, %v423_v39  ;;  %v9917_v1 = vpack.c.bf16 %v9791_v20, %v9771_v13  ;;  %v677_v39 = vpack.c.bf16 %v9825_v36, %v9825_v36  ;;  %v535_v36 = vld [vmem:[%s14388_s3 + $0x48] sm:$0xff] }
 0x19b   : > { %14597 = vst [vmem:[#allocation9_spill] sm:$0xff] %v9756_v9  ;;  %7343 = vmatmul.mubr.msk.bf16.gmra.mrb[28].mxu1 %vm687_vm3, %v9756_v9  ;;  %7653 = vmatmul.mubr.msk.bf16.gmra.mrb[16].mxu0 %vm687_vm3, %v9756_v9  ;;  %14612 = vst [vmem:[#allocation24_spill] sm:$0xff] %v9897_v8 }
 0x19c   : > { %2421 = vrot.lane.b32.xlu1 %v9756_v9, %s9547_s14  ;;  %v484_v12 = vpop.trf.xlu0  ;;  %818 = vmatprep.mubr.bf16.mxu1 %v14394_v41  ;;  %14611 = vst [vmem:[#allocation23_spill] sm:$0xff] %v9893_v6  ;;  %14613 = vst [vmem:[#allocation25_spill] sm:$0xff] %v9917_v1 }
 0x19d   : > { %1467 = vmatpush1.bf16.msra.mxu0 %v8348_v10  ;;  %v9804_v28 = vpop.trf.xlu1  ;;  %v8378_v10 = vld [vmem:[%s14389_s4 + $0xe0] ss:$8 sps:$4 sm:$0xff]  }
 0x19e   : > { %1468 = vmatprep.subr.bf16.mxu0 %v8349_v11 }
 0x1a0   : > { %v485_v16 = vpop.trf.xlu0 }
 0x1a1   : > { %v9779_v17 = vpack.c.bf16 %v485_v16, %v484_v12  ;;  %1469 = vmatpush1.bf16.msra.mxu0 %v8351_v14  ;;  %v517_v34 = vpop.trf.xlu1  ;;  %v8379_v12 = vld [vmem:[%s14389_s4 + $0xf4] ss:$8 sps:$4 sm:$0xff]  }
 0x1a2   : > { %1470 = vmatprep.subr.bf16.mxu0 %v8352_v15  ;;  %v9920_v7 = vpack.c.bf16 %v517_v34, %v9804_v28  ;;  %v527_v28 = vld [vmem:[%s14388_s3 + $0x8] sm:$0xff] }
 0x1a3   : > { %14598 = vst [vmem:[#allocation10_spill] sm:$0xff] %v9779_v17  ;;  %2423 = vrot.lane.b32.xlu0 %v9779_v17, %s9547_s14  ;;  %7344 = vmatmul.mubr.msk.bf16.gmra.mrb[32].mxu1 %vm687_vm3, %v9779_v17 }
 0x1a4   : > { %7656 = vmatprep.mubr.msk.bf16.mxu0 %vm687_vm3, %v9779_v17  ;;  %v486_v21 = vpop.trf.xlu0  ;;  %828 = vmatprep.mubr.bf16.mxu1 %v14394_v41  ;;  %14614 = vst [vmem:[#allocation26_spill] sm:$0xff] %v9920_v7 }
 0x1a5   : > { %1471 = vmatpush1.bf16.msra.mxu0 %v8354_v18  ;;  %v518_v52 = vpop.trf.xlu1  ;;  %v9934_v18 = vpop.f32.mrb[12].mxu1 }
 0x1a6   : > { %1472 = vmatprep.subr.bf16.mxu0 %v8355_v19  ;;  %14617 = vst [vmem:[#allocation29_spill] sm:$0xff] %v9934_v18  ;;  %v9936_v19 = vpop.f32.mrb[13].mxu1 }
 0x1a7   : > { %14618 = vst [vmem:[#allocation30_spill] sm:$0xff] %v9936_v19 }
 0x1a8   : > { %v487_v25 = vpop.trf.xlu0 }
 0x1a9   : > { %v9802_v27 = vpack.c.bf16 %v487_v25, %v486_v21  ;;  %1473 = vmatpush1.bf16.msra.mxu0 %v8357_v22  ;;  %v519_v47 = vpop.trf.xlu1  ;;  %v526_v22 = vld [vmem:[%s14388_s3] sm:$0xff]  ;;  %v529_v25 = vld [vmem:[%s14388_s3 + $0x18] sm:$0xff] }
 0x1aa   : > { %1474 = vmatprep.subr.bf16.mxu0 %v8358_v24  ;;  %v9930_v15 = vpack.c.bf16 %v519_v47, %v518_v52  ;;  %v534_v52 = vld [vmem:[%s14388_s3 + $0x40] sm:$0xff] }
 0x1ab   : > { %14599 = vst [vmem:[#allocation11_spill] sm:$0xff] %v9802_v27  ;;  %7345 = vmatmul.mubr.msk.bf16.gmra.mrb[36].mxu1 %vm687_vm3, %v9802_v27  ;;  %7657 = vmatmul.mubr.msk.bf16.gmra.mrb[20].mxu0 %vm687_vm3, %v9802_v27 }
 0x1ac   : > { %2425 = vrot.lane.b32.xlu1 %v9802_v27, %s9547_s14  ;;  %v488_v31 = vpop.trf.xlu0  ;;  %838 = vmatprep.mubr.bf16.mxu1 %v14394_v41  ;;  %14615 = vst [vmem:[#allocation27_spill] sm:$0xff] %v9930_v15 }
 0x1ad   : > { %1475 = vmatpush1.bf16.msra.mxu0 %v8360_v29  ;;  %v520_v11 = vpop.trf.xlu1 }
 0x1ae   : > { %1476 = vmatprep.subr.bf16.mxu0 %v8361_v30  ;;  %v530_v30 = vld [vmem:[%s14388_s3 + $0x20] sm:$0xff] }
 0x1b0   : > { %v489_v35 = vpop.trf.xlu0 }
 0x1b1   : > { %v9827_v37 = vpack.c.bf16 %v489_v35, %v488_v31  ;;  %1477 = vmatpush1.bf16.msra.mxu0 %v8363_v32  ;;  %v521_v14 = vpop.trf.xlu1 }
 0x1b2   : > { %1478 = vmatprep.subr.bf16.mxu0 %v8364_v33  ;;  %v9932_v16 = vpack.c.bf16 %v521_v14, %v520_v11  ;;  %v536_v11 = vld [vmem:[%s14388_s3 + $0x50] sm:$0xff] }
 0x1b3   : > { %14600 = vst [vmem:[#allocation12_spill] sm:$0xff] %v9827_v37  ;;  %2427 = vrot.lane.b32.xlu0 %v9827_v37, %s9547_s14  ;;  %7346 = vmatmul.mubr.msk.bf16.gmra.mrb[40].mxu1 %vm687_vm3, %v9827_v37 }
 0x1b4   : > { %7660 = vmatprep.mubr.msk.bf16.mxu0 %vm687_vm3, %v9827_v37  ;;  %v490_v44 = vpop.trf.xlu0  ;;  %848 = vmatprep.mubr.bf16.mxu1 %v14394_v41  ;;  %14616 = vst [vmem:[#allocation28_spill] sm:$0xff] %v9932_v16 }
 0x1b5   : > { %1479 = vmatpush1.bf16.msra.mxu0 %v8366_v38  ;;  %v522_v13 = vpop.trf.xlu1 }
 0x1b6   : > { %1480 = vmatprep.subr.bf16.mxu0 %v8367_v40 }
 0x1b8   : > { %v491_v59 = vpop.trf.xlu0 }
 0x1b9   : > { %v9866_v62 = vpack.c.bf16 %v491_v59, %v490_v44  ;;  %1481 = vmatpush1.bf16.msra.mxu0 %v8369_v48  ;;  %v523_v20 = vpop.trf.xlu1  ;;  %v532_v48 = vld [vmem:[%s14388_s3 + $0x30] sm:$0xff] }
 0x1ba   : > { %1482 = vmatprep.subr.bf16.mxu0 %v8370_v54  ;;  %v9945_v21 = vpack.c.bf16 %v523_v20, %v522_v13 }
 0x1bb   : > { %14609 = vst [vmem:[#allocation21_spill] sm:$0xff] %v9866_v62  ;;  %7347 = vmatmul.mubr.msk.bf16.gmra.mrb[44].mxu1 %vm687_vm3, %v9866_v62  ;;  %7661 = vmatmul.mubr.msk.bf16.gmra.mrb[24].mxu0 %vm687_vm3, %v9866_v62 }
 0x1bc   : > { %2429 = vrot.lane.b32.xlu1 %v9866_v62, %s9547_s14  ;;  %7664 = vmatprep.mubr.msk.bf16.mxu0 %vm687_vm3, %v9862_v60  ;;  %14619 = vst [vmem:[#allocation31_spill] sm:$0xff] %v9945_v21 }
 0x1bd   : > { %858 = vmatprep.mubr.bf16.mxu1 %v14394_v41  ;;  %1483 = vmatpush1.bf16.msra.mxu0 %v8372_v2  ;;  %v533_v2 = vld [vmem:[%s14388_s3 + $0x38] sm:$0xff] }
 0x1be   : > { %1484 = vmatprep.subr.bf16.mxu0 %v8373_v4  ;;  %v537_v4 = vld [vmem:[%s14388_s3 + $0x58] sm:$0xff] }
 0x1c1   : > { %1485 = vmatpush1.bf16.msra.mxu0 %v8375_v51  ;;  %v528_v51 = vld [vmem:[%s14388_s3 + $0x10] sm:$0xff] }
 0x1c2   : > { %1486 = vmatprep.subr.bf16.mxu0 %v8376_v5 }
 0x1c3   : > { %7348 = vmatmul.mubr.msk.bf16.gmra.mrb[48].mxu1 %vm687_vm3, %v9862_v60  ;;  %7665 = vmatmul.mubr.msk.bf16.gmra.mrb[28].mxu0 %vm687_vm3, %v9893_v6 }
 0x1c4   : > { %868 = vmatprep.mubr.bf16.mxu1 %v14394_v41  ;;  %7668 = vmatprep.mubr.msk.bf16.mxu0 %vm687_vm3, %v9897_v8 }
 0x1c5   : > { %1487 = vmatpush1.bf16.msra.mxu0 %v8378_v10  ;;  %v1453_v10 = vsel %vm736_vm2, %v677_v39, 0 }
 0x1c6   : > { %1488 = vmatprep.subr.bf16.mxu0 %v8379_v12  ;;  %v531_v12 = vld [vmem:[%s14388_s3 + $0x28] sm:$0xff] }
 0x1c9   : > { %1489 = vmatpush1.bf16.msra.mxu0 %v8381_v53 }
 0x1ca   : > { %7404 = vmatprep.subr.msk.bf16.mxu0 %vm736_vm2, %v678_v58 }
 0x1cb   : > { %7349 = vmatmul.mubr.msk.bf16.gmra.mrb[52].mxu1 %vm687_vm3, %v9893_v6  ;;  %7669 = vmatmul.mubr.msk.bf16.gmra.mrb[32].mxu0 %vm687_vm3, %v9917_v1 }
 0x1cc   : > { %878 = vmatprep.mubr.bf16.mxu1 %v14394_v41  ;;  %7672 = vmatprep.mubr.msk.bf16.mxu0 %vm687_vm3, %v9920_v7 }
 0x1d3   : > { %7350 = vmatmul.mubr.msk.bf16.gmra.mrb[56].mxu1 %vm687_vm3, %v9897_v8  ;;  %7673 = vmatmul.mubr.msk.bf16.gmra.mrb[36].mxu0 %vm687_vm3, %v9930_v15 }
 0x1d4   : > { %888 = vmatprep.mubr.bf16.mxu1 %v14394_v41  ;;  %7676 = vmatprep.mubr.msk.bf16.mxu0 %vm687_vm3, %v9932_v16 }
 0x1db   : > { %7351 = vmatmul.mubr.msk.bf16.gmra.mrb[60].mxu1 %vm687_vm3, %v9917_v1  ;;  %7677 = vmatmul.mubr.msk.bf16.gmra.mrb[40].mxu0 %vm687_vm3, %v9945_v21 }
 0x1dc   : > { %898 = vmatprep.mubr.bf16.mxu1 %v14394_v41 }
 0x1e3   : > { %7352 = vmatmul.mubr.msk.bf16.gmra.mrb[64].mxu1 %vm687_vm3, %v9920_v7 }
 0x1e4   : > { %908 = vmatprep.mubr.bf16.mxu1 %v14394_v41 }
 0x1eb   : > { %7353 = vmatmul.mubr.msk.bf16.gmra.mrb[68].mxu1 %vm687_vm3, %v9930_v15 }
 0x1ec   : > { %918 = vmatprep.mubr.bf16.mxu1 %v14394_v41 }
 0x1f3   : > { %7354 = vmatmul.mubr.msk.bf16.gmra.mrb[72].mxu1 %vm687_vm3, %v9932_v16 }
 0x1f4   : > { %928 = vmatprep.mubr.bf16.mxu1 %v14394_v41 }
 0x1fb   : > { %7355 = vmatmul.mubr.msk.bf16.gmra.mrb[76].mxu1 %vm687_vm3, %v9945_v21 }
 0x1fc   : > { %2388 = vmatprep.mubr.f32.mxu1 %v9871_v3 }
 0x256   : > { %v780_v24 = vpop.f32.mrb[16].mxu1 }
 0x257   : > { %v782_v29 = vpop.f32.mrb[17].mxu1  ;;  %v1100_v32 = vmul.f32 %v780_v24, %v526_v22 }
 0x258   : > { %v784_v31 = vpop.f32.mrb[18].mxu1  ;;  %v1101_v35 = vmul.f32 %v782_v29, %v527_v28 }
 0x259   : > { %v1103_v33 = vmul.f32 %v784_v31, %v529_v25  ;;  %v786_v34 = vpop.f32.mrb[19].mxu1 }
 0x25a   : > { %v1104_v38 = vmul.f32 %v786_v34, %v530_v30 }
 0x25b   : > { %v1196_v40 = vpack.c.bf16 %v1103_v33, %v1100_v32 }
 0x25c   : > { %v1197_v44 = vpack.c.bf16 %v1104_v38, %v1101_v35  ;;  %v538_v38 = vld [vmem:[%s14388_s3 + $0x60] sm:$0xff] }
 0x25e   : > { %v790_v54 = vpop.f32.mrb[20].mxu1  ;;  %v7650_v59 = vpop.f32.mrb[12].mxu0  ;;  %1490 = vmatprep.mubr.bf16.mxu0 %v1197_v44  ;;  %v539_v44 = vld [vmem:[%s14388_s3 + $0x68] sm:$0xff] }
 0x25f   : > { %v792_v47 = vpop.f32.mrb[21].mxu1  ;;  %v973_v5 = vpop.f32.mrb[13].mxu0  ;;  %1491 = vmatmul.mubr.bf16.vlgmr.msra.gmra.mrb[44].mxu0 %v1196_v40  ;;  %v1106_v14 = vmul.f32 %v790_v54, %v532_v48  ;;  %v10003_v13 = vmul.f32 %v7650_v59, %v534_v52  ;;  %v541_v40 = vld [vmem:[%s14388_s3 + $0x78] sm:$0xff]  ;;  %v542_v52 = vld [vmem:[%s14388_s3 + $0x80] sm:$0xff] }
 0x260   : > { %1652 = vmatpush1.bf16.msra.mxu0 %v1453_v10  ;;  %v794_v53 = vpop.f32.mrb[22].mxu1  ;;  %v7651_v58 = vpop.f32.mrb[14].mxu0  ;;  %v1107_v28 = vmul.f32 %v792_v47, %v533_v2  ;;  %v10009_v29 = vmul.f32 %v973_v5, %v528_v51  ;;  %v544_v10 = vld [vmem:[%s14388_s3 + $0x90] sm:$0xff] }
 0x261   : > { %v1109_v20 = vmul.f32 %v794_v53, %v535_v36  ;;  %v10005_v22 = vmul.f32 %v7651_v58, %v537_v4  ;;  %v796_v24 = vpop.f32.mrb[23].mxu1  ;;  %v976_v25 = vpop.f32.mrb[15].mxu0  ;;  %7421 = vmatprep.subr.msk.bf16.mxu0 %vm736_vm2, %v9637_v23  ;;  %v545_v58 = vld [vmem:[%s14388_s3 + $0x98] sm:$0xff] }
 0x262   : > { %v1110_v30 = vmul.f32 %v796_v24, %v536_v11  ;;  %v10011_v31 = vmul.f32 %v976_v25, %v531_v12  ;;  %v546_v11 = vld [vmem:[%s14388_s3 + $0xa0] sm:$0xff]  ;;  %v540_v25 = vld [vmem:[%s14388_s3 + $0x70] sm:$0xff] }
 0x263   : > { %v1199_v33 = vpack.c.bf16 %v1109_v20, %v1106_v14  ;;  %v547_v14 = vld [vmem:[%s14388_s3 + $0xa8] sm:$0xff]  ;;  %v549_v20 = vld [vmem:[%s14388_s3 + $0xb8] sm:$0xff] }
 0x264   : > { %v1200_v35 = vpack.c.bf16 %v1110_v30, %v1107_v28  ;;  %v548_v30 = vld [vmem:[%s14388_s3 + $0xb0] sm:$0xff] }
 0x266   : > { %v800_v39 = vpop.f32.mrb[24].mxu1  ;;  %1500 = vmatprep.mubr.bf16.mxu0 %v1200_v35 }
 0x267   : > { %v802_v48 = vpop.f32.mrb[25].mxu1  ;;  %1501 = vmatmul.mubr.bf16.gmra.mrb[48].mxu0 %v1199_v33  ;;  %v1112_v59 = vmul.f32 %v800_v39, %v538_v38  ;;  %v543_v33 = vld [vmem:[%s14388_s3 + $0x88] sm:$0xff] }
 0x268   : > { %v804_v54 = vpop.f32.mrb[26].mxu1  ;;  %v1113_v4 = vmul.f32 %v802_v48, %v539_v44 }
 0x269   : > { %v1115_v2 = vmul.f32 %v804_v54, %v541_v40  ;;  %v806_v36 = vpop.f32.mrb[27].mxu1 }
 0x26a   : > { %v1116_v47 = vmul.f32 %v806_v36, %v542_v52 }
 0x26b   : > { %v1202_v51 = vpack.c.bf16 %v1115_v2, %v1112_v59 }
 0x26c   : > { %v1203_v5 = vpack.c.bf16 %v1116_v47, %v1113_v4 }
 0x26e   : > { %v810_v12 = vpop.f32.mrb[28].mxu1  ;;  %v7654_v53 = vpop.f32.mrb[16].mxu0  ;;  %1510 = vmatprep.mubr.bf16.mxu0 %v1203_v5 }
 0x26f   : > { %v812_v24 = vpop.f32.mrb[29].mxu1  ;;  %v989_v28 = vpop.f32.mrb[17].mxu0  ;;  %1511 = vmatmul.mubr.bf16.gmra.mrb[52].mxu0 %v1202_v51  ;;  %v1118_v39 = vmul.f32 %v810_v12, %v544_v10  ;;  %v10053_v40 = vmul.f32 %v7654_v53, %v546_v11  ;;  %v550_v11 = vld [vmem:[%s14388_s3 + $0xc0] sm:$0xff]  ;;  %v553_v53 = vld [vmem:[%s14388_s3 + $0xd8] sm:$0xff] }
 0x270   : > { %v814_v35 = vpop.f32.mrb[30].mxu1  ;;  %v7655_v38 = vpop.f32.mrb[18].mxu0  ;;  %v1119_v59 = vmul.f32 %v812_v24, %v545_v58  ;;  %v10057_v2 = vmul.f32 %v989_v28, %v540_v25  ;;  %v551_v58 = vld [vmem:[%s14388_s3 + $0xc8] sm:$0xff] }
 0x271   : > { %v1121_v44 = vmul.f32 %v814_v35, %v547_v14  ;;  %v10055_v48 = vmul.f32 %v7655_v38, %v549_v20  ;;  %v816_v52 = vpop.f32.mrb[31].mxu1  ;;  %v992_v54 = vpop.f32.mrb[19].mxu0  ;;  %v554_v20 = vld [vmem:[%s14388_s3 + $0xe0] sm:$0xff] }
 0x272   : > { %v1122_v36 = vmul.f32 %v816_v52, %v548_v30  ;;  %v10059_v4 = vmul.f32 %v992_v54, %v543_v33  ;;  %v558_v52 = vld [vmem:[%s14388_s3 + $0x100] sm:$0xff] }
 0x273   : > { %v1205_v47 = vpack.c.bf16 %v1121_v44, %v1118_v39  ;;  %v556_v44 = vld [vmem:[%s14388_s3 + $0xf0] sm:$0xff] }
 0x274   : > { %v1206_v5 = vpack.c.bf16 %v1122_v36, %v1119_v59  ;;  %v557_v36 = vld [vmem:[%s14388_s3 + $0xf8] sm:$0xff] }
 0x276   : > { %v820_v12 = vpop.f32.mrb[32].mxu1  ;;  %1520 = vmatprep.mubr.bf16.mxu0 %v1206_v5  ;;  %v561_v5 = vld [vmem:[%s14388_s3 + $0x118] sm:$0xff] }
 0x277   : > { %v822_v14 = vpop.f32.mrb[33].mxu1  ;;  %1521 = vmatmul.mubr.bf16.gmra.mrb[56].mxu0 %v1205_v47  ;;  %v1124_v25 = vmul.f32 %v820_v12, %v550_v11  ;;  %v559_v47 = vld [vmem:[%s14388_s3 + $0x108] sm:$0xff]  ;;  %v552_v12 = vld [vmem:[%s14388_s3 + $0xd0] sm:$0xff] }
 0x278   : > { %v824_v24 = vpop.f32.mrb[34].mxu1  ;;  %v1125_v33 = vmul.f32 %v822_v14, %v551_v58  ;;  %v560_v58 = vld [vmem:[%s14388_s3 + $0x110] sm:$0xff]  ;;  %v555_v14 = vld [vmem:[%s14388_s3 + $0xe8] sm:$0xff] }
 0x279   : > { %v1127_v28 = vmul.f32 %v824_v24, %v553_v53  ;;  %v826_v30 = vpop.f32.mrb[35].mxu1 }
 0x27a   : > { %v1128_v35 = vmul.f32 %v826_v30, %v554_v20 }
 0x27b   : > { %v1208_v38 = vpack.c.bf16 %v1127_v28, %v1124_v25 }
 0x27c   : > { %v1209_v39 = vpack.c.bf16 %v1128_v35, %v1125_v33 }
 0x27e   : > { %v830_v54 = vpop.f32.mrb[36].mxu1  ;;  %v7658_v59 = vpop.f32.mrb[20].mxu0  ;;  %1530 = vmatprep.mubr.bf16.mxu0 %v1209_v39 }
 0x27f   : > { %v832_v11 = vpop.f32.mrb[37].mxu1  ;;  %v1005_v53 = vpop.f32.mrb[21].mxu0  ;;  %1531 = vmatmul.mubr.bf16.gmra.mrb[60].mxu0 %v1208_v38  ;;  %v1130_v25 = vmul.f32 %v830_v54, %v556_v44  ;;  %v10101_v28 = vmul.f32 %v7658_v59, %v558_v52  ;;  %v562_v52 = vld [vmem:[%s14388_s3 + $0x120] sm:$0xff]  ;;  %v565_v59 = vld [vmem:[%s14388_s3 + $0x138] sm:$0xff] }
 0x280   : > { %v834_v20 = vpop.f32.mrb[38].mxu1  ;;  %v7659_v24 = vpop.f32.mrb[22].mxu0  ;;  %v1131_v0 = vmul.f32 %v832_v11, %v557_v36  ;;  %v10105_v38 = vmul.f32 %v1005_v53, %v552_v12  ;;  %v563_v36 = vld [vmem:[%s14388_s3 + $0x128] sm:$0xff] }
 0x281   : > { %v1133_v30 = vmul.f32 %v834_v20, %v559_v47  ;;  %v10103_v33 = vmul.f32 %v7659_v24, %v561_v5  ;;  %v836_v35 = vpop.f32.mrb[39].mxu1  ;;  %v1008_v39 = vpop.f32.mrb[23].mxu0  ;;  %v568_v20 = vld [vmem:[%s14388_s3 + $0x150] sm:$0xff] }
 0x282   : > { %v1134_v51 = vmul.f32 %v836_v35, %v560_v58  ;;  %v10107_v10 = vmul.f32 %v1008_v39, %v555_v14  ;;  %v571_v35 = vld [vmem:[%s14388_s3 + $0x168] sm:$0xff]  ;;  %v573_v39 = vld [vmem:[%s14388_s3 + $0x178] sm:$0xff] }
 0x283   : > { %v1211_v32 = vpack.c.bf16 %v1133_v30, %v1130_v25  ;;  %v569_v30 = vld [vmem:[%s14388_s3 + $0x158] sm:$0xff] }
 0x284   : > { %v1212_v41 = vpack.c.bf16 %v1134_v51, %v1131_v0  ;;  %v566_v0 = vld [vmem:[%s14388_s3 + $0x140] sm:$0xff] }
 0x286   : > { %v840_v54 = vpop.f32.mrb[40].mxu1  ;;  %1540 = vmatprep.mubr.bf16.mxu0 %v1212_v41 }
 0x287   : > { %v842_v47 = vpop.f32.mrb[41].mxu1  ;;  %1541 = vmatmul.mubr.bf16.gmra.mrb[64].mxu0 %v1211_v32  ;;  %v1136_v5 = vmul.f32 %v840_v54, %v562_v52  ;;  %v570_v32 = vld [vmem:[%s14388_s3 + $0x160] sm:$0xff]  ;;  %v564_v54 = vld [vmem:[%s14388_s3 + $0x130] sm:$0xff] }
 0x288   : > { %v844_v51 = vpop.f32.mrb[42].mxu1  ;;  %v1137_v53 = vmul.f32 %v842_v47, %v563_v36  ;;  %v572_v36 = vld [vmem:[%s14388_s3 + $0x170] sm:$0xff]  ;;  %v567_v47 = vld [vmem:[%s14388_s3 + $0x148] sm:$0xff] }
 0x289   : > { %v1139_v11 = vmul.f32 %v844_v51, %v565_v59  ;;  %v846_v12 = vpop.f32.mrb[43].mxu1 }
 0x28a   : > { %v1140_v41 = vmul.f32 %v846_v12, %v566_v0 }
 0x28b   : > { %v1214_v58 = vpack.c.bf16 %v1139_v11, %v1136_v5 }
 0x28c   : > { %v1215_v14 = vpack.c.bf16 %v1140_v41, %v1137_v53 }
 0x28e   : > { %v850_v24 = vpop.f32.mrb[44].mxu1  ;;  %v7662_v25 = vpop.f32.mrb[24].mxu0  ;;  %1550 = vmatprep.mubr.bf16.mxu0 %v1215_v14 }
 0x28f   : > { %v852_v52 = vpop.f32.mrb[45].mxu1  ;;  %v1021_v59 = vpop.f32.mrb[25].mxu0  ;;  %1551 = vmatmul.mubr.bf16.gmra.mrb[68].mxu0 %v1214_v58  ;;  %v1142_v5 = vmul.f32 %v850_v24, %v568_v20  ;;  %v10149_v11 = vmul.f32 %v7662_v25, %v570_v32  ;;  %v582_v20 = vld [vmem:[%s14388_s3 + $0x1c0] sm:$0xff]  ;;  %v576_v24 = vld [vmem:[%s14388_s3 + $0x190] sm:$0xff] }
 0x290   : > { %v854_v0 = vpop.f32.mrb[46].mxu1  ;;  %v7663_v51 = vpop.f32.mrb[26].mxu0  ;;  %v1143_v34 = vmul.f32 %v852_v52, %v569_v30  ;;  %v10153_v58 = vmul.f32 %v1021_v59, %v564_v54  ;;  %v574_v25 = vld [vmem:[%s14388_s3 + $0x180] sm:$0xff] }
 0x291   : > { %v1145_v12 = vmul.f32 %v854_v0, %v571_v35  ;;  %v10151_v53 = vmul.f32 %v7663_v51, %v573_v39  ;;  %v856_v41 = vpop.f32.mrb[47].mxu1  ;;  %v1024_v14 = vpop.f32.mrb[27].mxu0  ;;  %v575_v39 = vld [vmem:[%s14388_s3 + $0x188] sm:$0xff] }
 0x292   : > { %v1146_v44 = vmul.f32 %v856_v41, %v572_v36  ;;  %v10155_v56 = vmul.f32 %v1024_v14, %v567_v47  ;;  %v579_v36 = vld [vmem:[%s14388_s3 + $0x1a8] sm:$0xff] }
 0x293   : > { %v1217_v57 = vpack.c.bf16 %v1145_v12, %v1142_v5 }
 0x294   : > { %v1218_v46 = vpack.c.bf16 %v1146_v44, %v1143_v34  ;;  %v577_v34 = vld [vmem:[%s14388_s3 + $0x198] sm:$0xff] }
 0x295   : > { %v585_v44 = vld [vmem:[%s14388_s3 + $0x1d8] sm:$0xff] }
 0x296   : > { %v860_v30 = vpop.f32.mrb[48].mxu1  ;;  %1560 = vmatprep.mubr.bf16.mxu0 %v1218_v46  ;;  %v7666_v35 = vpop.f32.mrb[28].mxu0  ;;  %v578_v46 = vld [vmem:[%s14388_s3 + $0x1a0] sm:$0xff] }
 0x297   : > { %v862_v52 = vpop.f32.mrb[49].mxu1  ;;  %v10179_v54 = vmul.f32 %v7666_v35, %v582_v20  ;;  %1561 = vmatmul.mubr.bf16.gmra.mrb[72].mxu0 %v1217_v57  ;;  %v1037_v59 = vpop.f32.mrb[29].mxu0  ;;  %v1148_v5 = vmul.f32 %v860_v30, %v574_v25  ;;  %v588_v30 = vld [vmem:[%s14388_s3 + $0x1f0] sm:$0xff] }
 0x298   : > { %v864_v47 = vpop.f32.mrb[50].mxu1  ;;  %v10187_v0 = vmul.f32 %v1037_v59, %v576_v24  ;;  %v7667_v51 = vpop.f32.mrb[30].mxu0  ;;  %v1149_v57 = vmul.f32 %v862_v52, %v575_v39  ;;  %v594_v24 = vld [vmem:[%s14388_s3 + $0x220] sm:$0xff]  ;;  %v583_v39 = vld [vmem:[%s14388_s3 + $0x1c8] sm:$0xff]  ;;  %v597_v59 = vld [vmem:[%s14388_s3 + $0x238] sm:$0xff] }
 0x299   : > { %v1151_v12 = vmul.f32 %v864_v47, %v577_v34  ;;  %v866_v41 = vpop.f32.mrb[51].mxu1  ;;  %v10189_v14 = vmul.f32 %v7667_v51, %v585_v44  ;;  %v1040_v20 = vpop.f32.mrb[31].mxu0  ;;  %v580_v34 = vld [vmem:[%s14388_s3 + $0x1b0] sm:$0xff] }
 0x29a   : > { %v1152_v35 = vmul.f32 %v866_v41, %v578_v46  ;;  %v10191_v18 = vmul.f32 %v1040_v20, %v579_v36  ;;  %v581_v46 = vld [vmem:[%s14388_s3 + $0x1b8] sm:$0xff]  ;;  %v584_v47 = vld [vmem:[%s14388_s3 + $0x1d0] sm:$0xff] }
 0x29b   : > { %v1220_v32 = vpack.c.bf16 %v1151_v12, %v1148_v5  ;;  %v591_v5 = vld [vmem:[%s14388_s3 + $0x208] sm:$0xff] }
 0x29c   : > { %v1221_v23 = vpack.c.bf16 %v1152_v35, %v1149_v57 }
 0x29e   : > { %v870_v44 = vpop.f32.mrb[52].mxu1  ;;  %1570 = vmatprep.mubr.bf16.mxu0 %v1221_v23  ;;  %v7670_v52 = vpop.f32.mrb[32].mxu0 }
 0x29f   : > { %v872_v36 = vpop.f32.mrb[53].mxu1  ;;  %1571 = vmatmul.mubr.bf16.gmra.mrb[76].mxu0 %v1220_v32  ;;  %v10218_v23 = vmul.f32 %v7670_v52, %v594_v24  ;;  %v1053_v51 = vpop.f32.mrb[33].mxu0  ;;  %v1154_v57 = vmul.f32 %v870_v44, %v580_v34  ;;  %v600_v44 = vld [vmem:[%s14388_s3 + $0x250] sm:$0xff] }
 0x2a0   : > { %v874_v12 = vpop.f32.mrb[54].mxu1  ;;  %v10223_v41 = vmul.f32 %v1053_v51, %v588_v30  ;;  %v7671_v20 = vpop.f32.mrb[34].mxu0  ;;  %v1155_v62 = vmul.f32 %v872_v36, %v581_v46  ;;  %v606_v30 = vld [vmem:[%s14388_s3 + $0x280] sm:$0xff]  ;;  %v587_v46 = vld [vmem:[%s14388_s3 + $0x1e8] sm:$0xff] }
 0x2a1   : > { %v1157_v35 = vmul.f32 %v874_v12, %v583_v39  ;;  %v876_v49 = vpop.f32.mrb[55].mxu1  ;;  %v10225_v25 = vmul.f32 %v7671_v20, %v597_v59  ;;  %v1056_v32 = vpop.f32.mrb[35].mxu0  ;;  %v609_v59 = vld [vmem:[%s14388_s3 + $0x298] sm:$0xff] }
 0x2a2   : > { %v1158_v37 = vmul.f32 %v876_v49, %v584_v47  ;;  %v10227_v27 = vmul.f32 %v1056_v32, %v591_v5  ;;  %v586_v49 = vld [vmem:[%s14388_s3 + $0x1e0] sm:$0xff]  ;;  %v603_v5 = vld [vmem:[%s14388_s3 + $0x268] sm:$0xff] }
 0x2a3   : > { %v1223_v24 = vpack.c.bf16 %v1157_v35, %v1154_v57  ;;  %v590_v47 = vld [vmem:[%s14388_s3 + $0x200] sm:$0xff] }
 0x2a4   : > { %v1224_v17 = vpack.c.bf16 %v1158_v37, %v1155_v62  ;;  %v589_v37 = vld [vmem:[%s14388_s3 + $0x1f8] sm:$0xff] }
 0x2a6   : > { %v880_v39 = vpop.f32.mrb[56].mxu1  ;;  %1580 = vmatprep.mubr.bf16.mxu0 %v1224_v17  ;;  %v7674_v62 = vpop.f32.mrb[36].mxu0 }
 0x2a7   : > { %v882_v36 = vpop.f32.mrb[57].mxu1  ;;  %1581 = vmatmul.mubr.bf16.gmra.mrb[80].mxu0 %v1223_v24  ;;  %v10254_v17 = vmul.f32 %v7674_v62, %v606_v30  ;;  %v1069_v51 = vpop.f32.mrb[37].mxu0  ;;  %v1160_v35 = vmul.f32 %v880_v39, %v586_v49  ;;  %v612_v39 = vld [vmem:[%s14388_s3 + $0x2b0] sm:$0xff] }
 0x2a8   : > { %v884_v12 = vpop.f32.mrb[58].mxu1  ;;  %v10259_v20 = vmul.f32 %v1069_v51, %v600_v44  ;;  %v7675_v57 = vpop.f32.mrb[38].mxu0  ;;  %v1161_v9 = vmul.f32 %v882_v36, %v587_v46  ;;  %v618_v44 = vld [vmem:[%s14388_s3 + $0x2e0] sm:$0xff]  ;;  %v593_v46 = vld [vmem:[%s14388_s3 + $0x218] sm:$0xff] }
 0x2a9   : > { %v1163_v32 = vmul.f32 %v884_v12, %v589_v37  ;;  %v886_v52 = vpop.f32.mrb[59].mxu1  ;;  %v10261_v34 = vmul.f32 %v7675_v57, %v609_v59  ;;  %v1072_v24 = vpop.f32.mrb[39].mxu0  ;;  %v621_v59 = vld [vmem:[%s14388_s3 + $0x2f8] sm:$0xff] }
 0x2aa   : > { %v1164_v63 = vmul.f32 %v886_v52, %v590_v47  ;;  %v10263_v50 = vmul.f32 %v1072_v24, %v603_v5  ;;  %v592_v52 = vld [vmem:[%s14388_s3 + $0x210] sm:$0xff]  ;;  %v615_v5 = vld [vmem:[%s14388_s3 + $0x2c8] sm:$0xff] }
 0x2ab   : > { %v1226_v30 = vpack.c.bf16 %v1163_v32, %v1160_v35  ;;  %v596_v47 = vld [vmem:[%s14388_s3 + $0x230] sm:$0xff] }
 0x2ac   : > { %v1227_v55 = vpack.c.bf16 %v1164_v63, %v1161_v9  ;;  %v595_v63 = vld [vmem:[%s14388_s3 + $0x228] sm:$0xff] }
 0x2ae   : > { %v890_v37 = vpop.f32.mrb[60].mxu1  ;;  %1590 = vmatprep.mubr.bf16.mxu0 %v1227_v55  ;;  %v7678_v9 = vpop.f32.mrb[40].mxu0 }
 0x2af   : > { %v892_v36 = vpop.f32.mrb[61].mxu1  ;;  %1591 = vmatmul.mubr.bf16.gmra.mrb[84].mxu0 %v1226_v30  ;;  %v10290_v55 = vmul.f32 %v7678_v9, %v618_v44  ;;  %v1085_v51 = vpop.f32.mrb[41].mxu0  ;;  %v1166_v32 = vmul.f32 %v890_v37, %v592_v52  ;;  %v598_v52 = vld [vmem:[%s14388_s3 + $0x240] sm:$0xff] }
 0x2b0   : > { %v894_v12 = vpop.f32.mrb[62].mxu1  ;;  %v10295_v57 = vmul.f32 %v1085_v51, %v612_v39  ;;  %v7679_v35 = vpop.f32.mrb[42].mxu0  ;;  %v1167_v19 = vmul.f32 %v892_v36, %v593_v46 }
 0x2b1   : > { %v1169_v24 = vmul.f32 %v894_v12, %v595_v63  ;;  %v896_v62 = vpop.f32.mrb[63].mxu1  ;;  %v10297_v49 = vmul.f32 %v7679_v35, %v621_v59  ;;  %v1088_v30 = vpop.f32.mrb[43].mxu0  ;;  %v599_v63 = vld [vmem:[%s14388_s3 + $0x248] sm:$0xff]  ;;  %v604_v35 = vld [vmem:[%s14388_s3 + $0x270] sm:$0xff] }
 0x2b2   : > { %v1170_v43 = vmul.f32 %v896_v62, %v596_v47  ;;  %v10299_v42 = vmul.f32 %v1088_v30, %v615_v5  ;;  %v601_v62 = vld [vmem:[%s14388_s3 + $0x258] sm:$0xff] }
 0x2b3   : > { %v1229_v44 = vpack.c.bf16 %v1169_v24, %v1166_v32  ;;  %v1243_v9 = vpack.c.bf16 %v10297_v49, %v10290_v55  ;;  %v607_v24 = vld [vmem:[%s14388_s3 + $0x288] sm:$0xff]  ;;  %v605_v30 = vld [vmem:[%s14388_s3 + $0x278] sm:$0xff] }
 0x2b4   : > { %v1230_v45 = vpack.c.bf16 %v1170_v43, %v1167_v19  ;;  %v1240_v39 = vpack.c.bf16 %v10299_v42, %v10295_v57  ;;  %v602_v43 = vld [vmem:[%s14388_s3 + $0x260] sm:$0xff] }
 0x2b6   : > { %v900_v37 = vpop.f32.mrb[64].mxu1  ;;  %1600 = vmatprep.mubr.bf16.mxu0 %v1230_v45 }
 0x2b7   : > { %v902_v59 = vpop.f32.mrb[65].mxu1  ;;  %1601 = vmatmul.mubr.bf16.gmra.mrb[88].mxu0 %v1229_v44  ;;  %v1172_v46 = vmul.f32 %v900_v37, %v598_v52  ;;  %v608_v52 = vld [vmem:[%s14388_s3 + $0x290] sm:$0xff] }
 0x2b8   : > { %v904_v19 = vpop.f32.mrb[66].mxu1  ;;  %v1173_v51 = vmul.f32 %v902_v59, %v599_v63 }
 0x2b9   : > { %v1175_v36 = vmul.f32 %v904_v19, %v601_v62  ;;  %v906_v47 = vpop.f32.mrb[67].mxu1 }
 0x2ba   : > { %v1176_v45 = vmul.f32 %v906_v47, %v602_v43  ;;  %v610_v47 = vld [vmem:[%s14388_s3 + $0x2a0] sm:$0xff] }
 0x2bb   : > { %v1232_v5 = vpack.c.bf16 %v1175_v36, %v1172_v46 }
 0x2bc   : > { %v1233_v12 = vpack.c.bf16 %v1176_v45, %v1173_v51  ;;  %v613_v45 = vld [vmem:[%s14388_s3 + $0x2b8] sm:$0xff] }
 0x2be   : > { %v910_v32 = vpop.f32.mrb[68].mxu1  ;;  %1610 = vmatprep.mubr.bf16.mxu0 %v1233_v12 }
 0x2bf   : > { %v912_v44 = vpop.f32.mrb[69].mxu1  ;;  %1611 = vmatmul.mubr.bf16.gmra.mrb[92].mxu0 %v1232_v5  ;;  %v1178_v62 = vmul.f32 %v910_v32, %v604_v35  ;;  %v611_v5 = vld [vmem:[%s14388_s3 + $0x2a8] sm:$0xff]  ;;  %v614_v35 = vld [vmem:[%s14388_s3 + $0x2c0] sm:$0xff] }
 0x2c0   : > { %v914_v37 = vpop.f32.mrb[70].mxu1  ;;  %v1179_v43 = vmul.f32 %v912_v44, %v605_v30 }
 0x2c1   : > { %v1181_v63 = vmul.f32 %v914_v37, %v607_v24  ;;  %v916_v59 = vpop.f32.mrb[71].mxu1 }
 0x2c2   : > { %v1182_v19 = vmul.f32 %v916_v59, %v608_v52  ;;  %v616_v59 = vld [vmem:[%s14388_s3 + $0x2d0] sm:$0xff] }
 0x2c3   : > { %v1235_v46 = vpack.c.bf16 %v1181_v63, %v1178_v62 }
 0x2c4   : > { %v1236_v36 = vpack.c.bf16 %v1182_v19, %v1179_v43  ;;  %v619_v19 = vld [vmem:[%s14388_s3 + $0x2e8] sm:$0xff] }
 0x2c6   : > { %v920_v51 = vpop.f32.mrb[72].mxu1  ;;  %1620 = vmatprep.mubr.bf16.mxu0 %v1236_v36 }
 0x2c7   : > { %v922_v12 = vpop.f32.mrb[73].mxu1  ;;  %1621 = vmatmul.mubr.bf16.gmra.mrb[96].mxu0 %v1235_v46  ;;  %v1184_v24 = vmul.f32 %v920_v51, %v610_v47  ;;  %v617_v46 = vld [vmem:[%s14388_s3 + $0x2d8] sm:$0xff]  ;;  %v620_v47 = vld [vmem:[%s14388_s3 + $0x2f0] sm:$0xff] }
 0x2c8   : > { %v924_v32 = vpop.f32.mrb[74].mxu1  ;;  %v1185_v52 = vmul.f32 %v922_v12, %v611_v5 }
 0x2c9   : > { %v1187_v30 = vmul.f32 %v924_v32, %v613_v45  ;;  %v926_v44 = vpop.f32.mrb[75].mxu1 }
 0x2ca   : > { %v1188_v37 = vmul.f32 %v926_v44, %v614_v35  ;;  %v14620_v44 = vmov 0  }
 0x2cb   : > { %v1238_v62 = vpack.c.bf16 %v1187_v30, %v1184_v24 }
 0x2cc   : > { %v1239_v63 = vpack.c.bf16 %v1188_v37, %v1185_v52  ;;  %v14621_v52 = vpack.c.bf16 %v10011_v31, %v10009_v29  ;;  %v14622_v37 = vpack.c.bf16 %v10005_v22, %v10003_v13  ;;  %v14624_v29 = vpack.c.bf16 %v10055_v48, %v10053_v40 }
 0x2cd   : > { %v14625_v13 = vpack.c.bf16 %v10107_v10, %v10105_v38  ;;  %v14626_v22 = vpack.c.bf16 %v10103_v33, %v10101_v28  ;;  %v14627_v31 = vpack.c.bf16 %v10155_v56, %v10153_v58  ;;  %v14628_v40 = vpack.c.bf16 %v10151_v53, %v10149_v11  ;;  %v10440_v10 = vpop.permute.xlu1 %2417 }
 0x2ce   : > { %v930_v43 = vpop.f32.mrb[76].mxu1  ;;  %1630 = vmatprep.mubr.bf16.mxu0 %v1239_v63  ;;  %v14629_v48 = vpack.c.bf16 %v10191_v18, %v10187_v0  ;;  %v14630_v56 = vpack.c.bf16 %v10189_v14, %v10179_v54  ;;  %v14632_v18 = vpack.c.bf16 %v10225_v25, %v10218_v23  ;;  %14636 = vst [vmem:[#allocation33_spill] sm:$0xff] %v10440_v10 }
 0x2cf   : > { %v932_v36 = vpop.f32.mrb[77].mxu1  ;;  %1631 = vmatmul.mubr.bf16.gmra.mrb[100].mxu0 %v1238_v62  ;;  %v1190_v45 = vmul.f32 %v930_v43, %v616_v59  ;;  %v14623_v62 = vpack.c.bf16 %v10059_v4, %v10057_v2  ;;  %v14631_v2 = vpack.c.bf16 %v10227_v27, %v10223_v41  ;;  %v14633_v4 = vpack.c.bf16 %v10263_v50, %v10259_v20  ;;  %v10435_v50 = vpop.permute.xlu0 %2415 }
 0x2d0   : > { %v934_v51 = vpop.f32.mrb[78].mxu1  ;;  %v1191_v35 = vmul.f32 %v932_v36, %v617_v46  ;;  %v14634_v27 = vpack.c.bf16 %v10261_v34, %v10254_v17  ;;  %14635 = vst [vmem:[#allocation32_spill] sm:$0xff] %v10435_v50 }
 0x2d1   : > { %v1193_v5 = vmul.f32 %v934_v51, %v619_v19  ;;  %v936_v12 = vpop.f32.mrb[79].mxu1  ;;  %v10450_v28 = vpop.permute.xlu1 %2421 }
 0x2d2   : > { %v1194_v32 = vmul.f32 %v936_v12, %v620_v47  ;;  %14638 = vst [vmem:[#allocation35_spill] sm:$0xff] %v10450_v28 }
 0x2d3   : > { %v1241_v24 = vpack.c.bf16 %v1193_v5, %v1190_v45  ;;  %v10445_v42 = vpop.permute.xlu0 %2419 }
 0x2d4   : > { %v1242_v30 = vpack.c.bf16 %v1194_v32, %v1191_v35  ;;  %14637 = vst [vmem:[#allocation34_spill] sm:$0xff] %v10445_v42 }
 0x2d5   : > { %v10460_v38 = vpop.permute.xlu1 %2425 }
 0x2d6   : > { %1640 = vmatprep.mubr.bf16.mxu0 %v1242_v30  ;;  %14640 = vst [vmem:[#allocation37_spill] sm:$0xff] %v10460_v38 }
 0x2d7   : > { %1641 = vmatmul.mubr.bf16.gmra.mrb[104].mxu0 %v1241_v24  ;;  %v10455_v33 = vpop.permute.xlu0 %2423 }
 0x2d8   : > { %1683 = vmatprep.mubr.bf16.mxu0 %v14620_v44  ;;  %14639 = vst [vmem:[#allocation36_spill] sm:$0xff] %v10455_v33 }
 0x2d9   : > { %v10470_v53 = vpop.permute.xlu1 %2429 }
 0x2da   : > { %14642 = vst [vmem:[#allocation39_spill] sm:$0xff] %v10470_v53 }
 0x2db   : > { %v10465_v11 = vpop.permute.xlu0 %2427 }
 0x2dc   : > { %14641 = vst [vmem:[#allocation38_spill] sm:$0xff] %v10465_v11 }
 0x2df   : > { %7405 = vmatmul.mubr.msk.bf16.vlgmr.msra.gmra.mrb[44].mxu0 %vm687_vm3, %v14621_v52 }
 0x2e0   : > { %1693 = vmatprep.mubr.bf16.mxu0 %v14620_v44  ;;  %2496 = vmatpush1.bf16.msra.mxu0 %v9647_v26 }
 0x2e7   : > { %7406 = vmatmul.mubr.msk.bf16.gmra.mrb[48].mxu0 %vm687_vm3, %v14622_v37 }
 0x2e8   : > { %1703 = vmatprep.mubr.bf16.mxu0 %v14620_v44 }
 0x2ef   : > { %7407 = vmatmul.mubr.msk.bf16.gmra.mrb[52].mxu0 %vm687_vm3, %v14623_v62 }
 0x2f0   : > { %1713 = vmatprep.mubr.bf16.mxu0 %v14620_v44 }
 0x2f7   : > { %7408 = vmatmul.mubr.msk.bf16.gmra.mrb[56].mxu0 %vm687_vm3, %v14624_v29 }
 0x2f8   : > { %1723 = vmatprep.mubr.bf16.mxu0 %v14620_v44 }
 0x2ff   : > { %7409 = vmatmul.mubr.msk.bf16.gmra.mrb[60].mxu0 %vm687_vm3, %v14625_v13 }
 0x300   : > { %1733 = vmatprep.mubr.bf16.mxu0 %v14620_v44 }
 0x307   : > { %7410 = vmatmul.mubr.msk.bf16.gmra.mrb[64].mxu0 %vm687_vm3, %v14626_v22 }
 0x308   : > { %1743 = vmatprep.mubr.bf16.mxu0 %v14620_v44 }
 0x30f   : > { %7411 = vmatmul.mubr.msk.bf16.gmra.mrb[68].mxu0 %vm687_vm3, %v14627_v31 }
 0x310   : > { %1753 = vmatprep.mubr.bf16.mxu0 %v14620_v44 }
 0x317   : > { %7412 = vmatmul.mubr.msk.bf16.gmra.mrb[72].mxu0 %vm687_vm3, %v14628_v40 }
 0x318   : > { %1763 = vmatprep.mubr.bf16.mxu0 %v14620_v44 }
 0x31f   : > { %7413 = vmatmul.mubr.msk.bf16.gmra.mrb[76].mxu0 %vm687_vm3, %v14629_v48 }
 0x320   : > { %1773 = vmatprep.mubr.bf16.mxu0 %v14620_v44 }
 0x327   : > { %7414 = vmatmul.mubr.msk.bf16.gmra.mrb[80].mxu0 %vm687_vm3, %v14630_v56 }
 0x328   : > { %1783 = vmatprep.mubr.bf16.mxu0 %v14620_v44 }
 0x32f   : > { %7415 = vmatmul.mubr.msk.bf16.gmra.mrb[84].mxu0 %vm687_vm3, %v14631_v2 }
 0x330   : > { %1793 = vmatprep.mubr.bf16.mxu0 %v14620_v44 }
 0x337   : > { %7416 = vmatmul.mubr.msk.bf16.gmra.mrb[88].mxu0 %vm687_vm3, %v14632_v18 }
 0x338   : > { %1803 = vmatprep.mubr.bf16.mxu0 %v14620_v44 }
 0x33f   : > { %7417 = vmatmul.mubr.msk.bf16.gmra.mrb[92].mxu0 %vm687_vm3, %v14633_v4 }
 0x340   : > { %1813 = vmatprep.mubr.bf16.mxu0 %v14620_v44 }
 0x347   : > { %7418 = vmatmul.mubr.msk.bf16.gmra.mrb[96].mxu0 %vm687_vm3, %v14634_v27 }
 0x348   : > { %1823 = vmatprep.mubr.bf16.mxu0 %v14620_v44 }
 0x34f   : > { %7419 = vmatmul.mubr.msk.bf16.gmra.mrb[100].mxu0 %vm687_vm3, %v1240_v39 }
 0x350   : > { %1833 = vmatprep.mubr.bf16.mxu0 %v14620_v44 }
 0x357   : > { %7420 = vmatmul.mubr.msk.bf16.gmra.mrb[104].mxu0 %vm687_vm3, %v1243_v9 }
 0x358   : > { %2527 = vmatprep.mubr.bf16.mxu0 %v14620_v44 }
 0x35f   : > { %7422 = vmatmul.mubr.msk.bf16.vlgmr.msra.gmra.mrb[108].mxu0 %vm687_vm3, %v10435_v50 }
 0x360   : > { %2537 = vmatprep.mubr.bf16.mxu0 %v14620_v44 }
 0x367   : > { %7423 = vmatmul.mubr.msk.bf16.gmra.mrb[112].mxu0 %vm687_vm3, %v10440_v10 }
 0x368   : > { %2547 = vmatprep.mubr.bf16.mxu0 %v14620_v44 }
 0x36f   : > { %7424 = vmatmul.mubr.msk.bf16.gmra.mrb[116].mxu0 %vm687_vm3, %v10445_v42 }
 0x370   : > { %2557 = vmatprep.mubr.bf16.mxu0 %v14620_v44 }
 0x377   : > { %7425 = vmatmul.mubr.msk.bf16.gmra.mrb[120].mxu0 %vm687_vm3, %v10450_v28 }
 0x378   : > { %2567 = vmatprep.mubr.bf16.mxu0 %v14620_v44 }
 0x37f   : > { %7426 = vmatmul.mubr.msk.bf16.gmra.mrb[124].mxu0 %vm687_vm3, %v10455_v33 }
 0x380   : > { %2577 = vmatprep.mubr.bf16.mxu0 %v14620_v44 }
 0x387   : > { %7427 = vmatmul.mubr.msk.bf16.gmra.mrb[128].mxu0 %vm687_vm3, %v10460_v38 }
 0x388   : > { %2587 = vmatprep.mubr.bf16.mxu0 %v14620_v44 }
 0x38f   : > { %7428 = vmatmul.mubr.msk.bf16.gmra.mrb[132].mxu0 %vm687_vm3, %v10465_v11 }
 0x390   : > { %2597 = vmatprep.mubr.bf16.mxu0 %v14620_v44 }
 0x397   : > { %7429 = vmatmul.mubr.msk.bf16.gmra.mrb[136].mxu0 %vm687_vm3, %v10470_v53 }
 0x398   : > { %2607 = vmatprep.mubr.bf16.mxu0 %v14620_v44 }
 0x3b2   : > { %v10475_v58 = vpop.f32.mrb[44].mxu0 }
 0x3b3   : > { %v10477_v54 = vpop.f32.mrb[45].mxu0 }
 0x3b4   : > { %v10479_v0 = vpop.f32.mrb[46].mxu0  ;;  %v1844_v14 = vmax.f32 %v10475_v58, %v10477_v54 }
 0x3b5   : > { %v10483_v25 = vpop.f32.mrb[47].mxu0 }
 0x3b6   : > { %1845 = vmax.xlane.f32.xlu0 %v1844_v14  ;;  %v1847_v23 = vmax.f32 %v10479_v0, %v10483_v25 }
 0x3b8   : > { %1848 = vmax.xlane.f32.xlu1 %v1847_v23 }
 0x3ba   : > { %v10487_v41 = vpop.f32.mrb[48].mxu0 }
 0x3bb   : > { %v10489_v34 = vpop.f32.mrb[49].mxu0 }
 0x3bc   : > { %v10491_v17 = vpop.f32.mrb[50].mxu0  ;;  %v1850_v20 = vmax.f32 %v10487_v41, %v10489_v34 }
 0x3bd   : > { %v10495_v49 = vpop.f32.mrb[51].mxu0 }
 0x3be   : > { %1851 = vmax.xlane.f32.xlu1 %v1850_v20  ;;  %v1853_v55 = vmax.f32 %v10491_v17, %v10495_v49 }
 0x3c2   : > { %1854 = vmax.xlane.f32.xlu1 %v1853_v55  ;;  %v10499_v57 = vpop.f32.mrb[52].mxu0 }
 0x3c3   : > { %v10501_v9 = vpop.f32.mrb[53].mxu0 }
 0x3c4   : > { %v10503_v39 = vpop.f32.mrb[54].mxu0  ;;  %v1856_v63 = vmax.f32 %v10499_v57, %v10501_v9 }
 0x3c5   : > { %v10507_v59 = vpop.f32.mrb[55].mxu0 }
 0x3c6   : > { %1857 = vmax.xlane.f32.xlu0 %v1856_v63  ;;  %v1859_v43 = vmax.f32 %v10503_v39, %v10507_v59 }
 0x3c8   : > { %1860 = vmax.xlane.f32.xlu1 %v1859_v43 }
 0x3ca   : > { %v10511_v19 = vpop.f32.mrb[56].mxu0 }
 0x3cb   : > { %v10513_v46 = vpop.f32.mrb[57].mxu0 }
 0x3cc   : > { %v10515_v36 = vpop.f32.mrb[58].mxu0  ;;  %v1862_v47 = vmax.f32 %v10511_v19, %v10513_v46 }
 0x3cd   : > { %v10519_v51 = vpop.f32.mrb[59].mxu0 }
 0x3ce   : > { %1863 = vmax.xlane.f32.xlu0 %v1862_v47  ;;  %v1865_v45 = vmax.f32 %v10515_v36, %v10519_v51 }
 0x3d0   : > { %1866 = vmax.xlane.f32.xlu1 %v1865_v45 }
 0x3d2   : > { %v10523_v5 = vpop.f32.mrb[60].mxu0 }
 0x3d3   : > { %v10525_v12 = vpop.f32.mrb[61].mxu0 }
 0x3d4   : > { %v10527_v35 = vpop.f32.mrb[62].mxu0  ;;  %v1868_v32 = vmax.f32 %v10523_v5, %v10525_v12 }
 0x3d5   : > { %v10531_v24 = vpop.f32.mrb[63].mxu0 }
 0x3d6   : > { %1869 = vmax.xlane.f32.xlu0 %v1868_v32  ;;  %v1871_v30 = vmax.f32 %v10527_v35, %v10531_v24 }
 0x3d8   : > { %1872 = vmax.xlane.f32.xlu1 %v1871_v30 }
 0x3da   : > { %v10535_v52 = vpop.f32.mrb[64].mxu0 }
 0x3db   : > { %v10537_v37 = vpop.f32.mrb[65].mxu0 }
 0x3dc   : > { %v10539_v62 = vpop.f32.mrb[66].mxu0  ;;  %v1874_v29 = vmax.f32 %v10535_v52, %v10537_v37 }
 0x3dd   : > { %v10543_v13 = vpop.f32.mrb[67].mxu0 }
 0x3de   : > { %1875 = vmax.xlane.f32.xlu0 %v1874_v29  ;;  %v1877_v22 = vmax.f32 %v10539_v62, %v10543_v13 }
 0x3e0   : > { %1878 = vmax.xlane.f32.xlu1 %v1877_v22 }
 0x3e2   : > { %v10547_v31 = vpop.f32.mrb[68].mxu0 }
 0x3e3   : > { %v10549_v40 = vpop.f32.mrb[69].mxu0 }
 0x3e4   : > { %v10551_v48 = vpop.f32.mrb[70].mxu0  ;;  %v1880_v56 = vmax.f32 %v10547_v31, %v10549_v40 }
 0x3e5   : > { %v10555_v2 = vpop.f32.mrb[71].mxu0 }
 0x3e6   : > { %1881 = vmax.xlane.f32.xlu0 %v1880_v56  ;;  %v1883_v18 = vmax.f32 %v10551_v48, %v10555_v2 }
 0x3e8   : > { %1884 = vmax.xlane.f32.xlu1 %v1883_v18 }
 0x3ea   : > { %v10559_v4 = vpop.f32.mrb[72].mxu0 }
 0x3eb   : > { %v10561_v27 = vpop.f32.mrb[73].mxu0 }
 0x3ec   : > { %v10563_v14 = vpop.f32.mrb[74].mxu0  ;;  %v1886_v23 = vmax.f32 %v10559_v4, %v10561_v27 }
 0x3ed   : > { %v10567_v20 = vpop.f32.mrb[75].mxu0 }
 0x3ee   : > { %1887 = vmax.xlane.f32.xlu0 %v1886_v23  ;;  %v1889_v55 = vmax.f32 %v10563_v14, %v10567_v20 }
 0x3f0   : > { %1890 = vmax.xlane.f32.xlu1 %v1889_v55 }
 0x3f2   : > { %v10571_v63 = vpop.f32.mrb[76].mxu0 }
 0x3f3   : > { %v10573_v43 = vpop.f32.mrb[77].mxu0 }
 0x3f4   : > { %v10575_v47 = vpop.f32.mrb[78].mxu0  ;;  %v1892_v45 = vmax.f32 %v10571_v63, %v10573_v43 }
 0x3f5   : > { %v10579_v32 = vpop.f32.mrb[79].mxu0 }
 0x3f6   : > { %1893 = vmax.xlane.f32.xlu0 %v1892_v45  ;;  %v1895_v30 = vmax.f32 %v10575_v47, %v10579_v32 }
 0x3f8   : > { %1896 = vmax.xlane.f32.xlu1 %v1895_v30 }
 0x3fa   : > { %v10583_v29 = vpop.f32.mrb[80].mxu0 }
 0x3fb   : > { %v10585_v22 = vpop.f32.mrb[81].mxu0 }
 0x3fc   : > { %v10587_v56 = vpop.f32.mrb[82].mxu0  ;;  %v1898_v18 = vmax.f32 %v10583_v29, %v10585_v22 }
 0x3fd   : > { %v10591_v23 = vpop.f32.mrb[83].mxu0 }
 0x3fe   : > { %1899 = vmax.xlane.f32.xlu0 %v1898_v18  ;;  %v1901_v55 = vmax.f32 %v10587_v56, %v10591_v23 }
 0x400   : > { %1902 = vmax.xlane.f32.xlu1 %v1901_v55 }
 0x402   : > { %v10595_v45 = vpop.f32.mrb[84].mxu0 }
 0x403   : > { %v10597_v26 = vpop.f32.mrb[85].mxu0 }
 0x404   : > { %14643 = vst [vmem:[#allocation40_spill] sm:$0xff] %v10597_v26  ;;  %v10599_v30 = vpop.f32.mrb[86].mxu0  ;;  %v1904_v53 = vmax.f32 %v10595_v45, %v10597_v26 }
 0x405   : > { %v10603_v11 = vpop.f32.mrb[87].mxu0 }
 0x406   : > { %1905 = vmax.xlane.f32.xlu0 %v1904_v53  ;;  %v1907_v38 = vmax.f32 %v10599_v30, %v10603_v11 }
 0x408   : > { %1908 = vmax.xlane.f32.xlu1 %v1907_v38 }
 0x40a   : > { %v10607_v18 = vpop.f32.mrb[88].mxu0 }
 0x40b   : > { %14644 = vst [vmem:[#allocation41_spill] sm:$0xff] %v10607_v18  ;;  %v10609_v33 = vpop.f32.mrb[89].mxu0 }
 0x40c   : > { %14645 = vst [vmem:[#allocation42_spill] sm:$0xff] %v10609_v33  ;;  %v10611_v55 = vpop.f32.mrb[90].mxu0  ;;  %v1910_v28 = vmax.f32 %v10607_v18, %v10609_v33 }
 0x40d   : > { %v10615_v42 = vpop.f32.mrb[91].mxu0 }
 0x40e   : > { %1911 = vmax.xlane.f32.xlu0 %v1910_v28  ;;  %v1913_v10 = vmax.f32 %v10611_v55, %v10615_v42 }
 0x410   : > { %1914 = vmax.xlane.f32.xlu1 %v1913_v10 }
 0x412   : > { %v10619_v53 = vpop.f32.mrb[92].mxu0 }
 0x413   : > { %14646 = vst [vmem:[#allocation43_spill] sm:$0xff] %v10619_v53  ;;  %v10621_v50 = vpop.f32.mrb[93].mxu0 }
 0x414   : > { %14647 = vst [vmem:[#allocation44_spill] sm:$0xff] %v10621_v50  ;;  %v10623_v38 = vpop.f32.mrb[94].mxu0  ;;  %v1916_v61 = vmax.f32 %v10619_v53, %v10621_v50 }
 0x415   : > { %v10627_v3 = vpop.f32.mrb[95].mxu0 }
 0x416   : > { %1917 = vmax.xlane.f32.xlu0 %v1916_v61  ;;  %v1919_v44 = vmax.f32 %v10623_v38, %v10627_v3 }
 0x418   : > { %1920 = vmax.xlane.f32.xlu1 %v1919_v44 }
 0x41a   : > { %v10631_v28 = vpop.f32.mrb[96].mxu0 }
 0x41b   : > { %14648 = vst [vmem:[#allocation45_spill] sm:$0xff] %v10631_v28  ;;  %v10633_v21 = vpop.f32.mrb[97].mxu0 }
 0x41c   : > { %14649 = vst [vmem:[#allocation46_spill] sm:$0xff] %v10633_v21  ;;  %v10635_v10 = vpop.f32.mrb[98].mxu0  ;;  %v1922_v16 = vmax.f32 %v10631_v28, %v10633_v21 }
 0x41d   : > { %14650 = vst [vmem:[#allocation47_spill] sm:$0xff] %v10635_v10  ;;  %v10639_v15 = vpop.f32.mrb[99].mxu0 }
 0x41e   : > { %14651 = vst [vmem:[#allocation48_spill] sm:$0xff] %v10639_v15  ;;  %1923 = vmax.xlane.f32.xlu0 %v1922_v16  ;;  %v1925_v7 = vmax.f32 %v10635_v10, %v10639_v15  ;;  %v9158_v10 = vld [vmem:[%s14388_s3 + $0x60] sm:$0xff] }
 0x420   : > { %1926 = vmax.xlane.f32.xlu1 %v1925_v7 }
 0x422   : > { %v10643_v61 = vpop.f32.mrb[100].mxu0 }
 0x423   : > { %14652 = vst [vmem:[#allocation49_spill] sm:$0xff] %v10643_v61  ;;  %v10645_v1 = vpop.f32.mrb[101].mxu0 }
 0x424   : > { %14653 = vst [vmem:[#allocation50_spill] sm:$0xff] %v10645_v1  ;;  %v10647_v44 = vpop.f32.mrb[102].mxu0  ;;  %v1928_v8 = vmax.f32 %v10643_v61, %v10645_v1 }
 0x425   : > { %14654 = vst [vmem:[#allocation51_spill] sm:$0xff] %v10647_v44  ;;  %v10651_v50 = vpop.f32.mrb[103].mxu0 }
 0x426   : > { %14655 = vst [vmem:[#allocation52_spill] sm:$0xff] %v10651_v50  ;;  %1929 = vmax.xlane.f32.xlu0 %v1928_v8  ;;  %v1931_v21 = vmax.f32 %v10647_v44, %v10651_v50 }
 0x428   : > { %1932 = vmax.xlane.f32.xlu1 %v1931_v21  ;;  %v9150_v21 = vld [vmem:[%s14388_s3] sm:$0xff] }
 0x42a   : > { %v10655_v16 = vpop.f32.mrb[104].mxu0 }
 0x42b   : > { %14656 = vst [vmem:[#allocation53_spill] sm:$0xff] %v10655_v16  ;;  %v10657_v28 = vpop.f32.mrb[105].mxu0 }
 0x42c   : > { %14657 = vst [vmem:[#allocation54_spill] sm:$0xff] %v10657_v28  ;;  %v10659_v7 = vpop.f32.mrb[106].mxu0  ;;  %v1934_v53 = vmax.f32 %v10655_v16, %v10657_v28  ;;  %v9151_v28 = vld [vmem:[%s14388_s3 + $0x18] sm:$0xff] }
 0x42d   : > { %14658 = vst [vmem:[#allocation55_spill] sm:$0xff] %v10659_v7  ;;  %v10663_v33 = vpop.f32.mrb[107].mxu0 }
 0x42e   : > { %14659 = vst [vmem:[#allocation56_spill] sm:$0xff] %v10663_v33  ;;  %1935 = vmax.xlane.f32.xlu0 %v1934_v53  ;;  %v1937_v1 = vmax.f32 %v10659_v7, %v10663_v33  ;;  %v9153_v7 = vld [vmem:[%s14388_s3 + $0x20] sm:$0xff] }
 0x430   : > { %1938 = vmax.xlane.f32.xlu1 %v1937_v1  ;;  %v9152_v1 = vld [vmem:[%s14388_s3 + $0x8] sm:$0xff] }
 0x432   : > { %v2529_v8 = vpop.f32.mrb[108].mxu0 }
 0x433   : > { %v2531_v61 = vpop.f32.mrb[109].mxu0  ;;  %v10670_v44 = vmul.f32 %v9150_v21, %v2529_v8  ;;  %v9156_v8 = vld [vmem:[%s14388_s3 + $0x38] sm:$0xff] }
 0x434   : > { %v2533_v50 = vpop.f32.mrb[110].mxu0  ;;  %v10680_v33 = vmul.f32 %v9152_v1, %v2531_v61  ;;  %v9154_v61 = vld [vmem:[%s14388_s3 + $0x30] sm:$0xff] }
 0x435   : > { %14660 = vst [vmem:[#allocation57_spill] sm:$0xff] %v10670_v44  ;;  %v10675_v16 = vmul.f32 %v9151_v28, %v2533_v50  ;;  %v2535_v53 = vpop.f32.mrb[111].mxu0  ;;  %v9157_v44 = vld [vmem:[%s14388_s3 + $0x50] sm:$0xff] }
 0x436   : > { %14662 = vst [vmem:[#allocation59_spill] sm:$0xff] %v10680_v33  ;;  %v10685_v18 = vmul.f32 %v9153_v7, %v2535_v53  ;;  %v9155_v7 = vld [vmem:[%s14388_s3 + $0x48] sm:$0xff] }
 0x437   : > { %14661 = vst [vmem:[#allocation58_spill] sm:$0xff] %v10675_v16 }
 0x438   : > { %14663 = vst [vmem:[#allocation60_spill] sm:$0xff] %v10685_v18 }
 0x43a   : > { %v2539_v28 = vpop.f32.mrb[112].mxu0 }
 0x43b   : > { %v2541_v21 = vpop.f32.mrb[113].mxu0  ;;  %v10694_v1 = vmul.f32 %v9154_v61, %v2539_v28 }
 0x43c   : > { %v2543_v26 = vpop.f32.mrb[114].mxu0  ;;  %v10704_v50 = vmul.f32 %v9156_v8, %v2541_v21 }
 0x43d   : > { %14664 = vst [vmem:[#allocation61_spill] sm:$0xff] %v10694_v1  ;;  %v10699_v53 = vmul.f32 %v9155_v7, %v2543_v26  ;;  %v2545_v15 = vpop.f32.mrb[115].mxu0 }
 0x43e   : > { %14666 = vst [vmem:[#allocation63_spill] sm:$0xff] %v10704_v50  ;;  %v10709_v16 = vmul.f32 %v9157_v44, %v2545_v15  ;;  %v9159_v44 = vld [vmem:[%s14388_s3 + $0x78] sm:$0xff] }
 0x43f   : > { %14665 = vst [vmem:[#allocation62_spill] sm:$0xff] %v10699_v53 }
 0x440   : > { %14667 = vst [vmem:[#allocation64_spill] sm:$0xff] %v10709_v16 }
 0x442   : > { %v2549_v61 = vpop.f32.mrb[116].mxu0 }
 0x443   : > { %v1846_v7 = vpop.xlane.xlu0 %1845  ;;  %v2551_v33 = vpop.f32.mrb[117].mxu0  ;;  %v10720_v15 = vmul.f32 %v9158_v10, %v2549_v61 }
 0x444   : > { %v1940_v18 = vsub.f32 %v10475_v58, %v1846_v7  ;;  %v1941_v8 = vsub.f32 %v10477_v54, %v1846_v7  ;;  %v2553_v21 = vpop.f32.mrb[118].mxu0  ;;  %v9160_v7 = vld [vmem:[%s14388_s3 + $0x68] sm:$0xff] }
 0x445   : > { %14668 = vst [vmem:[#allocation65_spill] sm:$0xff] %v10720_v15  ;;  %v10725_v28 = vmul.f32 %v9159_v44, %v2553_v21  ;;  %v1849_v26 = vpop.xlane.xlu1 %1848  ;;  %v2555_v1 = vpop.f32.mrb[119].mxu0  ;;  %v10732_v10 = vmul.f32 %v9160_v7, %v2551_v33  ;;  %v9161_v21 = vld [vmem:[%s14388_s3 + $0x80] sm:$0xff] }
 0x446   : > { %v2004_v53 = vmul.f32 1.442695, %v1940_v18  ;;  %v2006_v50 = vmul.f32 1.442695, %v1941_v8  ;;  %v1942_v58 = vsub.f32 %v10479_v0, %v1849_v26  ;;  %v1943_v54 = vsub.f32 %v10483_v25, %v1849_v26 }
 0x447   : > { %14669 = vst [vmem:[#allocation66_spill] sm:$0xff] %v10725_v28  ;;  %14670 = vst [vmem:[#allocation67_spill] sm:$0xff] %v10732_v10  ;;  %v10739_v44 = vmul.f32 %v9161_v21, %v2555_v1  ;;  %v9162_v1 = vld [vmem:[%s14388_s3 + $0x90] sm:$0xff] }
 0x448   : > { %8382 = vpow2.f32 %v2004_v53  ;;  %v2008_v18 = vmul.f32 1.442695, %v1942_v58  ;;  %v2010_v0 = vmul.f32 1.442695, %v1943_v54 }
 0x449   : > { %14671 = vst [vmem:[#allocation68_spill] sm:$0xff] %v10739_v44  ;;  %8384 = vpow2.f32 %v2006_v50  ;;  %v9163_v50 = vld [vmem:[%s14388_s3 + $0xa8] sm:$0xff] }
 0x44a   : > { %8386 = vpow2.f32 %v2008_v18  ;;  %v2559_v26 = vpop.f32.mrb[120].mxu0 }
 0x44b   : > { %8388 = vpow2.f32 %v2010_v0  ;;  %v1852_v33 = vpop.xlane.xlu1 %1851  ;;  %v2561_v8 = vpop.f32.mrb[121].mxu0  ;;  %v10748_v53 = vmul.f32 %v9162_v1, %v2559_v26  ;;  %v9165_v0 = vld [vmem:[%s14388_s3 + $0xb0] sm:$0xff] }
 0x44c   : > { %v1944_v7 = vsub.f32 %v10487_v41, %v1852_v33  ;;  %v1945_v61 = vsub.f32 %v10489_v34, %v1852_v33  ;;  %v2563_v15 = vpop.f32.mrb[122].mxu0  ;;  %v9164_v41 = vld [vmem:[%s14388_s3 + $0x98] sm:$0xff] }
 0x44d   : > { %14672 = vst [vmem:[#allocation69_spill] sm:$0xff] %v10748_v53  ;;  %v10753_v58 = vmul.f32 %v9163_v50, %v2563_v15  ;;  %v2565_v54 = vpop.f32.mrb[123].mxu0  ;;  %v10758_v34 = vmul.f32 %v9164_v41, %v2561_v8 }
 0x44e   : > { %v2012_v21 = vmul.f32 1.442695, %v1944_v7  ;;  %v2014_v18 = vmul.f32 1.442695, %v1945_v61  ;;  %v10763_v26 = vmul.f32 %v9165_v0, %v2565_v54 }
 0x44f   : > { %14673 = vst [vmem:[#allocation70_spill] sm:$0xff] %v10753_v58  ;;  %14674 = vst [vmem:[#allocation71_spill] sm:$0xff] %v10758_v34  ;;  %v1855_v15 = vpop.xlane.xlu1 %1854 }
 0x450   : > { %14675 = vst [vmem:[#allocation72_spill] sm:$0xff] %v10763_v26  ;;  %8390 = vpow2.f32 %v2012_v21  ;;  %v1946_v7 = vsub.f32 %v10491_v17, %v1855_v15  ;;  %v1947_v1 = vsub.f32 %v10495_v49, %v1855_v15  ;;  %v9166_v49 = vld [vmem:[%s14388_s3 + $0xc0] sm:$0xff]  ;;  %v9167_v15 = vld [vmem:[%s14388_s3 + $0xd8] sm:$0xff] }
 0x451   : > { %8392 = vpow2.f32 %v2014_v18 }
 0x452   : > { %v10771_v8 = vpop.eup %8382  ;;  %v2016_v50 = vmul.f32 1.442695, %v1946_v7  ;;  %v2018_v41 = vmul.f32 1.442695, %v1947_v1  ;;  %v2569_v25 = vpop.f32.mrb[124].mxu0 }
 0x453   : > { %v10773_v54 = vpop.eup %8384  ;;  %v1858_v0 = vpop.xlane.xlu0 %1857  ;;  %v10784_v18 = vmul.f32 %v9166_v49, %v2569_v25  ;;  %v9168_v25 = vld [vmem:[%s14388_s3 + $0xc8] sm:$0xff] }
 0x454   : > { %v2571_v28 = vpop.f32.mrb[125].mxu0  ;;  %v10775_v33 = vpop.eup %8386  ;;  %8394 = vpow2.f32 %v2016_v50  ;;  %v1948_v21 = vsub.f32 %v10499_v57, %v1858_v0  ;;  %v1949_v61 = vsub.f32 %v10501_v9, %v1858_v0  ;;  %v2132_v57 = vadd.f32 %v10773_v54, %v10771_v8 }
 0x455   : > { %v2573_v17 = vpop.f32.mrb[126].mxu0  ;;  %v10779_v53 = vpop.eup %8388  ;;  %8396 = vpow2.f32 %v2018_v41  ;;  %14676 = vst [vmem:[#allocation73_spill] sm:$0xff] %v10784_v18  ;;  %v10798_v49 = vmul.f32 %v9168_v25, %v2571_v28 }
 0x456   : > { %v10789_v7 = vmul.f32 %v9167_v15, %v2573_v17  ;;  %v1861_v1 = vpop.xlane.xlu1 %1860  ;;  %v2575_v9 = vpop.f32.mrb[127].mxu0  ;;  %v2020_v50 = vmul.f32 1.442695, %v1948_v21  ;;  %v2022_v0 = vmul.f32 1.442695, %v1949_v61  ;;  %2133 = vadd.xlane.f32.xlu0 %v2132_v57  ;;  %v9169_v15 = vld [vmem:[%s14388_s3 + $0xe0] sm:$0xff] }
 0x457   : > { %v1950_v41 = vsub.f32 %v10503_v39, %v1861_v1  ;;  %v1951_v58 = vsub.f32 %v10507_v59, %v1861_v1  ;;  %14678 = vst [vmem:[#allocation75_spill] sm:$0xff] %v10798_v49  ;;  %v10805_v21 = vmul.f32 %v9169_v15, %v2575_v9  ;;  %v2135_v39 = vadd.f32 %v10779_v53, %v10775_v33 }
 0x458   : > { %14677 = vst [vmem:[#allocation74_spill] sm:$0xff] %v10789_v7  ;;  %8398 = vpow2.f32 %v2020_v50 }
 0x459   : > { %14679 = vst [vmem:[#allocation76_spill] sm:$0xff] %v10805_v21  ;;  %v2024_v59 = vmul.f32 1.442695, %v1950_v41  ;;  %v2026_v61 = vmul.f32 1.442695, %v1951_v58  ;;  %8400 = vpow2.f32 %v2022_v0  ;;  %2136 = vadd.xlane.f32.xlu1 %v2135_v39  ;;  %v9170_v0 = vld [vmem:[%s14388_s3 + $0xf0] sm:$0xff] }
 0x45a   : > { %v10811_v1 = vpop.eup %8390  ;;  %v2579_v57 = vpop.f32.mrb[128].mxu0 }
 0x45b   : > { %8402 = vpow2.f32 %v2024_v59  ;;  %v10813_v25 = vpop.eup %8392  ;;  %v1864_v9 = vpop.xlane.xlu0 %1863  ;;  %v10822_v39 = vmul.f32 %v9170_v0, %v2579_v57  ;;  %v9171_v59 = vld [vmem:[%s14388_s3 + $0x108] sm:$0xff]  ;;  %v9172_v57 = vld [vmem:[%s14388_s3 + $0xf8] sm:$0xff] }
 0x45c   : > { %8404 = vpow2.f32 %v2026_v61  ;;  %v2581_v15 = vpop.f32.mrb[129].mxu0  ;;  %v1952_v17 = vsub.f32 %v10511_v19, %v1864_v9  ;;  %v1953_v50 = vsub.f32 %v10513_v46, %v1864_v9  ;;  %v2138_v58 = vadd.f32 %v10813_v25, %v10811_v1 }
 0x45d   : > { %v2583_v41 = vpop.f32.mrb[130].mxu0  ;;  %14680 = vst [vmem:[#allocation77_spill] sm:$0xff] %v10822_v39  ;;  %v1867_v28 = vpop.xlane.xlu1 %1866  ;;  %v10838_v0 = vmul.f32 %v9172_v57, %v2581_v15 }
 0x45e   : > { %v10827_v61 = vmul.f32 %v9171_v59, %v2583_v41  ;;  %v2585_v19 = vpop.f32.mrb[131].mxu0  ;;  %v10829_v18 = vpop.eup %8394  ;;  %v2028_v46 = vmul.f32 1.442695, %v1952_v17  ;;  %v2030_v9 = vmul.f32 1.442695, %v1953_v50  ;;  %v1954_v7 = vsub.f32 %v10515_v36, %v1867_v28  ;;  %2139 = vadd.xlane.f32.xlu0 %v2138_v58  ;;  %v9173_v17 = vld [vmem:[%s14388_s3 + $0x110] sm:$0xff] }
 0x45f   : > { %v1955_v49 = vsub.f32 %v10519_v51, %v1867_v28  ;;  %v10833_v21 = vpop.eup %8396  ;;  %14682 = vst [vmem:[#allocation79_spill] sm:$0xff] %v10838_v0  ;;  %v10845_v50 = vmul.f32 %v9173_v17, %v2585_v19 }
 0x460   : > { %14681 = vst [vmem:[#allocation78_spill] sm:$0xff] %v10827_v61  ;;  %8406 = vpow2.f32 %v2028_v46  ;;  %v2032_v36 = vmul.f32 1.442695, %v1954_v7  ;;  %v2141_v28 = vadd.f32 %v10833_v21, %v10829_v18  ;;  %v9176_v61 = vld [vmem:[%s14388_s3 + $0x128] sm:$0xff] }
 0x461   : > { %14683 = vst [vmem:[#allocation80_spill] sm:$0xff] %v10845_v50  ;;  %v2034_v51 = vmul.f32 1.442695, %v1955_v49  ;;  %8408 = vpow2.f32 %v2030_v9 }
 0x462   : > { %v10851_v58 = vpop.eup %8398  ;;  %8410 = vpow2.f32 %v2032_v36  ;;  %2142 = vadd.xlane.f32.xlu1 %v2141_v28  ;;  %v2589_v59 = vpop.f32.mrb[132].mxu0  ;;  %v9174_v36 = vld [vmem:[%s14388_s3 + $0x120] sm:$0xff] }
 0x463   : > { %v10853_v57 = vpop.eup %8400  ;;  %8412 = vpow2.f32 %v2034_v51  ;;  %v1870_v19 = vpop.xlane.xlu0 %1869  ;;  %v10866_v28 = vmul.f32 %v9174_v36, %v2589_v59  ;;  %v9175_v51 = vld [vmem:[%s14388_s3 + $0x138] sm:$0xff]  ;;  %v9177_v36 = vld [vmem:[%s14388_s3 + $0x140] sm:$0xff] }
 0x464   : > { %v2591_v17 = vpop.f32.mrb[133].mxu0  ;;  %v1956_v7 = vsub.f32 %v10523_v5, %v1870_v19  ;;  %v1957_v49 = vsub.f32 %v10525_v12, %v1870_v19  ;;  %v2144_v41 = vadd.f32 %v10853_v57, %v10851_v58 }
 0x465   : > { %v10855_v46 = vpop.eup %8402  ;;  %v2593_v9 = vpop.f32.mrb[134].mxu0  ;;  %14684 = vst [vmem:[#allocation81_spill] sm:$0xff] %v10866_v28  ;;  %v10876_v0 = vmul.f32 %v9176_v61, %v2591_v17 }
 0x466   : > { %v10861_v15 = vpop.eup %8404  ;;  %v10871_v39 = vmul.f32 %v9175_v51, %v2593_v9  ;;  %v2595_v5 = vpop.f32.mrb[135].mxu0  ;;  %v2036_v12 = vmul.f32 1.442695, %v1956_v7  ;;  %v2038_v19 = vmul.f32 1.442695, %v1957_v49  ;;  %2145 = vadd.xlane.f32.xlu0 %v2144_v41 }
 0x467   : > { %14686 = vst [vmem:[#allocation83_spill] sm:$0xff] %v10876_v0  ;;  %v10883_v50 = vmul.f32 %v9177_v36, %v2595_v5  ;;  %v2147_v7 = vadd.f32 %v10861_v15, %v10855_v46 }
 0x468   : > { %14685 = vst [vmem:[#allocation82_spill] sm:$0xff] %v10871_v39  ;;  %8414 = vpow2.f32 %v2036_v12  ;;  %v9178_v12 = vld [vmem:[%s14388_s3 + $0x150] sm:$0xff]  ;;  %v9180_v39 = vld [vmem:[%s14388_s3 + $0x158] sm:$0xff] }
 0x469   : > { %14687 = vst [vmem:[#allocation84_spill] sm:$0xff] %v10883_v50  ;;  %8416 = vpow2.f32 %v2038_v19  ;;  %2148 = vadd.xlane.f32.xlu1 %v2147_v7  ;;  %v9179_v7 = vld [vmem:[%s14388_s3 + $0x168] sm:$0xff] }
 0x46a   : > { %v10889_v61 = vpop.eup %8406  ;;  %v2599_v17 = vpop.f32.mrb[136].mxu0 }
 0x46b   : > { %v10891_v49 = vpop.eup %8408  ;;  %v2601_v9 = vpop.f32.mrb[137].mxu0  ;;  %v10902_v19 = vmul.f32 %v9178_v12, %v2599_v17  ;;  %v9181_v17 = vld [vmem:[%s14388_s3 + $0x170] sm:$0xff] }
 0x46c   : > { %v10893_v51 = vpop.eup %8410  ;;  %v2603_v59 = vpop.f32.mrb[138].mxu0  ;;  %v2150_v5 = vadd.f32 %v10891_v49, %v10889_v61  ;;  %v10912_v0 = vmul.f32 %v9180_v39, %v2601_v9 }
 0x46d   : > { %v10897_v36 = vpop.eup %8412  ;;  %14688 = vst [vmem:[#allocation85_spill] sm:$0xff] %v10902_v19  ;;  %v10907_v41 = vmul.f32 %v9179_v7, %v2603_v59  ;;  %v2605_v28 = vpop.f32.mrb[139].mxu0 }
 0x46e   : > { %2151 = vadd.xlane.f32.xlu0 %v2150_v5  ;;  %14690 = vst [vmem:[#allocation87_spill] sm:$0xff] %v10912_v0  ;;  %v10919_v12 = vmul.f32 %v9181_v17, %v2605_v28  ;;  %v2153_v59 = vadd.f32 %v10897_v36, %v10893_v51  ;;  %v1873_v28 = vpop.xlane.xlu1 %1872  ;;  %v1876_v17 = vpop.xlane.xlu0 %1875 }
 0x46f   : > { %14689 = vst [vmem:[#allocation86_spill] sm:$0xff] %v10907_v41  ;;  %v1959_v5 = vsub.f32 %v10531_v24, %v1873_v28  ;;  %v1960_v0 = vsub.f32 %v10535_v52, %v1876_v17 }
 0x470   : > { %14691 = vst [vmem:[#allocation88_spill] sm:$0xff] %v10919_v12  ;;  %2154 = vadd.xlane.f32.xlu1 %v2153_v59  ;;  %v1958_v59 = vsub.f32 %v10527_v35, %v1873_v28 }
 0x471   : > { %v2042_v10 = vmul.f32 1.442695, %v1959_v5  ;;  %v2044_v16 = vmul.f32 1.442695, %v1960_v0 }
 0x472   : > { %v10925_v7 = vpop.eup %8414  ;;  %v1879_v50 = vpop.xlane.xlu1 %1878 }
 0x473   : > { %14692 = vst [vmem:[#allocation89_spill] sm:$0xff] %v10925_v7  ;;  %v10927_v39 = vpop.eup %8416  ;;  %v1882_v19 = vpop.xlane.xlu0 %1881  ;;  %v1962_v26 = vsub.f32 %v10539_v62, %v1879_v50  ;;  %v1963_v52 = vsub.f32 %v10543_v13, %v1879_v50 }
 0x474   : > { %14693 = vst [vmem:[#allocation90_spill] sm:$0xff] %v10927_v39  ;;  %v2156_v9 = vadd.f32 %v10927_v39, %v10925_v7  ;;  %v1964_v44 = vsub.f32 %v10547_v31, %v1882_v19 }
 0x475   : > { %v2048_v28 = vmul.f32 1.442695, %v1962_v26 }
 0x476   : > { %2157 = vadd.xlane.f32.xlu0 %v2156_v9  ;;  %v1885_v41 = vpop.xlane.xlu1 %1884  ;;  %v1961_v9 = vsub.f32 %v10537_v37, %v1876_v17  ;;  %v2052_v37 = vmul.f32 1.442695, %v1964_v44 }
 0x477   : > { %v1966_v39 = vsub.f32 %v10551_v48, %v1885_v41 }
 0x478   : > { %v2046_v24 = vmul.f32 1.442695, %v1961_v9 }
 0x479   : > { %v2056_v17 = vmul.f32 1.442695, %v1966_v39 }
 0x47b   : > { %v1888_v12 = vpop.xlane.xlu0 %1887 }
 0x47d   : > { %v10938_v34 = vpop.xlane.xlu1 %1890 }
 0x481   : > { %2433 = vrot.lane.b32.xlu1 %v9893_v6, %s9547_s14  ;;  %v2040_v6 = vmul.f32 1.442695, %v1958_v59 }
 0x483   : > { %v1894_v7 = vpop.xlane.xlu0 %1893  ;;  %8418 = vpow2.f32 %v2040_v6  ;;  %v1968_v6 = vsub.f32 %v10559_v4, %v1888_v12 }
 0x484   : > { %8420 = vpow2.f32 %v2042_v10  ;;  %v1972_v62 = vsub.f32 %v10571_v63, %v1894_v7  ;;  %v1973_v31 = vsub.f32 %v10573_v43, %v1894_v7 }
 0x485   : > { %v10944_v35 = vpop.xlane.xlu1 %1896  ;;  %8422 = vpow2.f32 %v2044_v16  ;;  %v1969_v16 = vsub.f32 %v10561_v27, %v1888_v12  ;;  %v2060_v44 = vmul.f32 1.442695, %v1968_v6  ;;  %v1971_v12 = vsub.f32 %v10567_v20, %v10938_v34 }
 0x486   : > { %8424 = vpow2.f32 %v2046_v24  ;;  %v2068_v13 = vmul.f32 1.442695, %v1972_v62  ;;  %v2070_v10 = vmul.f32 1.442695, %v1973_v31 }
 0x487   : > { %8426 = vpow2.f32 %v2048_v28  ;;  %v2062_v27 = vmul.f32 1.442695, %v1969_v16 }
 0x488   : > { %8428 = vpow2.f32 %v2052_v37  ;;  %v2066_v37 = vmul.f32 1.442695, %v1971_v12  ;;  %v14694_v12 = vld [vmem:[#allocation47_spill] sm:$0xff] }
 0x48b   : > { %v1900_v62 = vpop.xlane.xlu0 %1899 }
 0x48c   : > { %2431 = vrot.lane.b32.xlu0 %v9862_v60, %s9547_s14  ;;  %v1965_v60 = vsub.f32 %v10549_v40, %v1882_v19  ;;  %v2050_v40 = vmul.f32 1.442695, %v1963_v52  ;;  %v1967_v19 = vsub.f32 %v10555_v2, %v1885_v41  ;;  %v1970_v2 = vsub.f32 %v10563_v14, %v10938_v34 }
 0x48d   : > { %v1903_v0 = vpop.xlane.xlu1 %1902  ;;  %v10958_v50 = vpop.eup %8418 }
 0x48e   : > { %v2054_v5 = vmul.f32 1.442695, %v1965_v60  ;;  %v1978_v48 = vsub.f32 %v10587_v56, %v1903_v0  ;;  %v1979_v63 = vsub.f32 %v10591_v23, %v1903_v0  ;;  %v2058_v43 = vmul.f32 1.442695, %v1967_v19  ;;  %v10961_v7 = vpop.eup %8420 }
 0x48f   : > { %v10965_v39 = vpop.eup %8422  ;;  %v2064_v14 = vmul.f32 1.442695, %v1970_v2  ;;  %v2159_v20 = vadd.f32 %v10961_v7, %v10958_v50 }
 0x490   : > { %8430 = vpow2.f32 %v2054_v5  ;;  %v2080_v4 = vmul.f32 1.442695, %v1978_v48  ;;  %v2082_v56 = vmul.f32 1.442695, %v1979_v63  ;;  %v10969_v59 = vpop.eup %8424  ;;  %v1976_v48 = vsub.f32 %v10583_v29, %v1900_v62 }
 0x491   : > { %8432 = vpow2.f32 %v2050_v40  ;;  %v10972_v24 = vpop.eup %8426 }
 0x492   : > { %8434 = vpow2.f32 %v2056_v17  ;;  %v10977_v34 = vpop.eup %8428 }
 0x493   : > { %8436 = vpow2.f32 %v2068_v13 }
 0x494   : > { %8438 = vpow2.f32 %v2070_v10  ;;  %v1906_v10 = vpop.xlane.xlu0 %1905 }
 0x495   : > { %v1909_v60 = vpop.xlane.xlu1 %1908  ;;  %8440 = vpow2.f32 %v2058_v43 }
 0x496   : > { %v1982_v26 = vsub.f32 %v10599_v30, %v1909_v60  ;;  %v1983_v23 = vsub.f32 %v10603_v11, %v1909_v60  ;;  %8442 = vpow2.f32 %v2060_v44  ;;  %v1974_v30 = vsub.f32 %v10575_v47, %v10944_v35 }
 0x497   : > { %8444 = vpow2.f32 %v2080_v4  ;;  %v1975_v47 = vsub.f32 %v10579_v32, %v10944_v35  ;;  %v2162_v32 = vadd.f32 %v10969_v59, %v10965_v39  ;;  %v1977_v60 = vsub.f32 %v10585_v22, %v1900_v62 }
 0x498   : > { %v2088_v9 = vmul.f32 1.442695, %v1982_v26  ;;  %8446 = vpow2.f32 %v2082_v56  ;;  %v2090_v52 = vmul.f32 1.442695, %v1983_v23  ;;  %v2076_v4 = vmul.f32 1.442695, %v1976_v48 }
 0x499   : > { %8448 = vpow2.f32 %v2062_v27  ;;  %v2074_v13 = vmul.f32 1.442695, %v1975_v47  ;;  %v1980_v27 = vsub.f32 %v10595_v45, %v1906_v10  ;;  %v14697_v47 = vld [vmem:[#allocation41_spill] sm:$0xff] }
 0x49a   : > { %v10981_v31 = vpop.eup %8430  ;;  %8450 = vpow2.f32 %v2064_v14 }
 0x49b   : > { %v10983_v0 = vpop.eup %8432  ;;  %8452 = vpow2.f32 %v2088_v9  ;;  %v2168_v63 = vadd.f32 %v10981_v31, %v10977_v34  ;;  %v1912_v26 = vpop.xlane.xlu0 %1911 }
 0x49c   : > { %v10986_v19 = vpop.eup %8434  ;;  %8454 = vpow2.f32 %v2090_v52  ;;  %v2165_v29 = vadd.f32 %v10983_v0, %v10972_v24  ;;  %v14696_v52 = vld [vmem:[#allocation40_spill] sm:$0xff]  ;;  %v1984_v62 = vsub.f32 %v14697_v47, %v1912_v26 }
 0x49d   : > { %v1915_v41 = vpop.xlane.xlu1 %1914  ;;  %v10991_v35 = vpop.eup %8436  ;;  %8456 = vpow2.f32 %v2066_v37 }
 0x49e   : > { %v1986_v11 = vsub.f32 %v10611_v55, %v1915_v41  ;;  %v1987_v28 = vsub.f32 %v10615_v42, %v1915_v41  ;;  %v2072_v55 = vmul.f32 1.442695, %v1974_v30  ;;  %v2078_v41 = vmul.f32 1.442695, %v1977_v60  ;;  %v14695_v30 = vld [vmem:[#allocation48_spill] sm:$0xff] }
 0x49f   : > { %v2092_v60 = vmul.f32 1.442695, %v1984_v62 }
 0x4a0   : > { %v2096_v42 = vmul.f32 1.442695, %v1986_v11  ;;  %v2098_v17 = vmul.f32 1.442695, %v1987_v28  ;;  %8458 = vpow2.f32 %v2072_v55  ;;  %v1981_v28 = vsub.f32 %v14696_v52, %v1906_v10  ;;  %v14702_v52 = vld [vmem:[#allocation44_spill] sm:$0xff] }
 0x4a2   : > { %8460 = vpow2.f32 %v2096_v42  ;;  %v14698_v42 = vld [vmem:[#allocation42_spill] sm:$0xff]  ;;  %v2086_v48 = vmul.f32 1.442695, %v1981_v28 }
 0x4a3   : > { %8462 = vpow2.f32 %v2098_v17  ;;  %v1918_v10 = vpop.xlane.xlu0 %1917 }
 0x4a4   : > { %8464 = vpow2.f32 %v2074_v13  ;;  %v1989_v28 = vsub.f32 %v14702_v52, %v1918_v10 }
 0x4a5   : > { %v1921_v5 = vpop.xlane.xlu1 %1920  ;;  %2160 = vadd.xlane.f32.xlu1 %v2159_v20 }
 0x4a6   : > { %v1990_v40 = vsub.f32 %v10623_v38, %v1921_v5  ;;  %v1991_v6 = vsub.f32 %v10627_v3, %v1921_v5  ;;  %v10996_v38 = vpop.eup %8438 }
 0x4a7   : > { %v10999_v3 = vpop.eup %8440  ;;  %v2180_v22 = vadd.f32 %v10996_v38, %v10991_v35 }
 0x4a8   : > { %v2104_v43 = vmul.f32 1.442695, %v1990_v40  ;;  %v11001_v16 = vpop.eup %8442  ;;  %v2106_v44 = vmul.f32 1.442695, %v1991_v6  ;;  %v2171_v20 = vadd.f32 %v10999_v3, %v10986_v19  ;;  %v1985_v40 = vsub.f32 %v14698_v42, %v1912_v26 }
 0x4a9   : > { %2163 = vadd.xlane.f32.xlu1 %v2162_v32  ;;  %v11005_v2 = vpop.eup %8444  ;;  %v2084_v32 = vmul.f32 1.442695, %v1980_v27  ;;  %v14700_v27 = vld [vmem:[#allocation51_spill] sm:$0xff] }
 0x4aa   : > { %v11009_v23 = vpop.eup %8446  ;;  %8466 = vpow2.f32 %v2104_v43 }
 0x4ab   : > { %2169 = vadd.xlane.f32.xlu0 %v2168_v63  ;;  %v11014_v11 = vpop.eup %8448  ;;  %8468 = vpow2.f32 %v2106_v44  ;;  %v2189_v17 = vadd.f32 %v11009_v23, %v11005_v2 }
 0x4ac   : > { %v11019_v37 = vpop.eup %8450  ;;  %8470 = vpow2.f32 %v2076_v4  ;;  %v2174_v43 = vadd.f32 %v11014_v11, %v11001_v16 }
 0x4ad   : > { %v1927_v56 = vpop.xlane.xlu1 %1926  ;;  %2166 = vadd.xlane.f32.xlu1 %v2165_v29  ;;  %v11022_v55 = vpop.eup %8452  ;;  %8472 = vpow2.f32 %v2078_v41  ;;  %v2094_v29 = vmul.f32 1.442695, %v1985_v40 }
 0x4ae   : > { %v1994_v14 = vsub.f32 %v14694_v12, %v1927_v56  ;;  %v1995_v9 = vsub.f32 %v14695_v30, %v1927_v56  ;;  %v11027_v6 = vpop.eup %8454 }
 0x4af   : > { %2181 = vadd.xlane.f32.xlu0 %v2180_v22  ;;  %v11029_v13 = vpop.eup %8456  ;;  %v2195_v26 = vadd.f32 %v11027_v6, %v11022_v55  ;;  %v14699_v22 = vld [vmem:[#allocation43_spill] sm:$0xff] }
 0x4b0   : > { %v2112_v45 = vmul.f32 1.442695, %v1994_v14  ;;  %v2114_v5 = vmul.f32 1.442695, %v1995_v9  ;;  %v11031_v63 = vpop.eup %8458  ;;  %v1988_v41 = vsub.f32 %v14699_v22, %v1918_v10  ;;  %v14701_v14 = vld [vmem:[#allocation52_spill] sm:$0xff] }
 0x4b1   : > { %2172 = vadd.xlane.f32.xlu1 %v2171_v20  ;;  %v11035_v44 = vpop.eup %8460  ;;  %v1924_v20 = vpop.xlane.xlu0 %1923 }
 0x4b2   : > { %8474 = vpow2.f32 %v2112_v45  ;;  %v11039_v56 = vpop.eup %8462  ;;  %v2177_v45 = vadd.f32 %v11029_v13, %v11019_v37 }
 0x4b3   : > { %2190 = vadd.xlane.f32.xlu0 %v2189_v17  ;;  %8476 = vpow2.f32 %v2114_v5  ;;  %v11044_v9 = vpop.eup %8464  ;;  %v2201_v42 = vadd.f32 %v11039_v56, %v11035_v44  ;;  %v2100_v17 = vmul.f32 1.442695, %v1988_v41 }
 0x4b4   : > { %8478 = vpow2.f32 %v2084_v32  ;;  %v11049_v5 = vpop.eup %8466  ;;  %v14704_v32 = vld [vmem:[#allocation45_spill] sm:$0xff] }
 0x4b5   : > { %v1933_v4 = vpop.xlane.xlu1 %1932  ;;  %2175 = vadd.xlane.f32.xlu1 %v2174_v43  ;;  %8480 = vpow2.f32 %v2086_v48  ;;  %14703 = vst [vmem:[#allocation47_spill] sm:$0xff] %v11049_v5  ;;  %v11053_v40 = vpop.eup %8468  ;;  %v1992_v48 = vsub.f32 %v14704_v32, %v1924_v20  ;;  %v14705_v43 = vld [vmem:[#allocation46_spill] sm:$0xff] }
 0x4b6   : > { %v1998_v12 = vsub.f32 %v14700_v27, %v1933_v4  ;;  %v1999_v30 = vsub.f32 %v14701_v14, %v1933_v4  ;;  %8482 = vpow2.f32 %v2092_v60  ;;  %v11056_v10 = vpop.eup %8470  ;;  %v2102_v60 = vmul.f32 1.442695, %v1989_v28 }
 0x4b7   : > { %2196 = vadd.xlane.f32.xlu0 %v2195_v26  ;;  %8484 = vpow2.f32 %v2094_v29  ;;  %v1993_v4 = vsub.f32 %v14705_v43, %v1924_v20  ;;  %v1930_v26 = vpop.xlane.xlu0 %1929  ;;  %v11059_v22 = vpop.eup %8472  ;;  %v2183_v29 = vadd.f32 %v11044_v9, %v11031_v63  ;;  %v2207_v41 = vadd.f32 %v11053_v40, %v11049_v5  ;;  %v14709_v20 = vld [vmem:[#allocation50_spill] sm:$0xff] }
 0x4b8   : > { %v2120_v47 = vmul.f32 1.442695, %v1998_v12  ;;  %v2122_v62 = vmul.f32 1.442695, %v1999_v30  ;;  %v2108_v14 = vmul.f32 1.442695, %v1992_v48 }
 0x4b9   : > { %2178 = vadd.xlane.f32.xlu1 %v2177_v45  ;;  %v14708_v30 = vld [vmem:[#allocation49_spill] sm:$0xff]  ;;  %v2110_v28 = vmul.f32 1.442695, %v1993_v4 }
 0x4ba   : > { %8486 = vpow2.f32 %v2120_v47  ;;  %v1996_v52 = vsub.f32 %v14708_v30, %v1930_v26  ;;  %v1997_v47 = vsub.f32 %v14709_v20, %v1930_v26 }
 0x4bb   : > { %8488 = vpow2.f32 %v2122_v62  ;;  %2202 = vadd.xlane.f32.xlu0 %v2201_v42  ;;  %v1936_v62 = vpop.xlane.xlu0 %1935  ;;  %v2186_v42 = vadd.f32 %v11059_v22, %v11056_v10 }
 0x4bc   : > { %v11063_v27 = vpop.eup %8474  ;;  %8490 = vpow2.f32 %v2100_v17  ;;  %v2116_v43 = vmul.f32 1.442695, %v1996_v52 }
 0x4bd   : > { %14706 = vst [vmem:[#allocation48_spill] sm:$0xff] %v11063_v27  ;;  %v11067_v12 = vpop.eup %8476  ;;  %2184 = vadd.xlane.f32.xlu1 %v2183_v29  ;;  %8492 = vpow2.f32 %v2102_v60  ;;  %v14710_v60 = vld [vmem:[#allocation53_spill] sm:$0xff]  ;;  %v2118_v29 = vmul.f32 1.442695, %v1997_v47 }
 0x4be   : > { %14707 = vst [vmem:[#allocation40_spill] sm:$0xff] %v11067_v12  ;;  %v11071_v45 = vpop.eup %8478  ;;  %v2213_v17 = vadd.f32 %v11067_v12, %v11063_v27  ;;  %8494 = vpow2.f32 %v2108_v14  ;;  %v2000_v4 = vsub.f32 %v14710_v60, %v1936_v62 }
 0x4bf   : > { %2208 = vadd.xlane.f32.xlu0 %v2207_v41  ;;  %v11075_v32 = vpop.eup %8480  ;;  %8496 = vpow2.f32 %v2110_v28  ;;  %v14711_v41 = vld [vmem:[#allocation54_spill] sm:$0xff] }
 0x4c0   : > { %v11079_v48 = vpop.eup %8482  ;;  %v2001_v30 = vsub.f32 %v14711_v41, %v1936_v62  ;;  %v2192_v5 = vadd.f32 %v11075_v32, %v11071_v45  ;;  %8498 = vpow2.f32 %v2116_v43  ;;  %v2124_v14 = vmul.f32 1.442695, %v2000_v4 }
 0x4c1   : > { %2187 = vadd.xlane.f32.xlu1 %v2186_v42  ;;  %v11082_v26 = vpop.eup %8484  ;;  %8500 = vpow2.f32 %v2118_v29 }
 0x4c2   : > { %v2126_v42 = vmul.f32 1.442695, %v2001_v30  ;;  %v2198_v47 = vadd.f32 %v11082_v26, %v11079_v48  ;;  %8502 = vpow2.f32 %v2124_v14 }
 0x4c3   : > { %2214 = vadd.xlane.f32.xlu0 %v2213_v17 }
 0x4c4   : > { %v11085_v20 = vpop.eup %8486  ;;  %8504 = vpow2.f32 %v2126_v42  ;;  %v14719_v42 = vld [vmem:[#allocation24_spill] sm:$0xff] }
 0x4c5   : > { %14712 = vst [vmem:[#allocation41_spill] sm:$0xff] %v11085_v20  ;;  %v11089_v27 = vpop.eup %8488  ;;  %2193 = vadd.xlane.f32.xlu1 %v2192_v5 }
 0x4c6   : > { %14713 = vst [vmem:[#allocation42_spill] sm:$0xff] %v11089_v27  ;;  %v2219_v52 = vadd.f32 %v11089_v27, %v11085_v20  ;;  %v11093_v28 = vpop.eup %8490 }
 0x4c7   : > { %v11097_v62 = vpop.eup %8492 }
 0x4c8   : > { %2220 = vadd.xlane.f32.xlu0 %v2219_v52  ;;  %v11099_v17 = vpop.eup %8494  ;;  %v2204_v5 = vadd.f32 %v11097_v62, %v11093_v28 }
 0x4c9   : > { %2199 = vadd.xlane.f32.xlu1 %v2198_v47  ;;  %14714 = vst [vmem:[#allocation43_spill] sm:$0xff] %v11099_v17  ;;  %v11103_v43 = vpop.eup %8496  ;;  %v1939_v47 = vpop.xlane.xlu1 %1938 }
 0x4ca   : > { %14715 = vst [vmem:[#allocation51_spill] sm:$0xff] %v11103_v43  ;;  %v11105_v60 = vpop.eup %8498  ;;  %v2210_v4 = vadd.f32 %v11103_v43, %v11099_v17 }
 0x4cb   : > { %14716 = vst [vmem:[#allocation52_spill] sm:$0xff] %v11105_v60  ;;  %v11109_v29 = vpop.eup %8500 }
 0x4cc   : > { %14717 = vst [vmem:[#allocation44_spill] sm:$0xff] %v11109_v29  ;;  %v11111_v41 = vpop.eup %8502  ;;  %v2216_v30 = vadd.f32 %v11109_v29, %v11105_v60 }
 0x4cd   : > { %2205 = vadd.xlane.f32.xlu1 %v2204_v5  ;;  %14718 = vst [vmem:[#allocation45_spill] sm:$0xff] %v11111_v41  ;;  %v14720_v5 = vld [vmem:[#allocation55_spill] sm:$0xff] }
 0x4ce   : > { %v11115_v14 = vpop.eup %8504  ;;  %v2002_v20 = vsub.f32 %v14720_v5, %v1939_v47 }
 0x4cf   : > { %v2222_v52 = vadd.f32 %v11115_v14, %v11111_v41 }
 0x4d0   : > { %v2128_v60 = vmul.f32 1.442695, %v2002_v20 }
 0x4d1   : > { %2211 = vadd.xlane.f32.xlu1 %v2210_v4  ;;  %v14721_v4 = vld [vmem:[#allocation56_spill] sm:$0xff] }
 0x4d2   : > { %v2003_v17 = vsub.f32 %v14721_v4, %v1939_v47  ;;  %v14724_v47 = vld [vmem:[#allocation27_spill] sm:$0xff] }
 0x4d4   : > { %v2130_v29 = vmul.f32 1.442695, %v2003_v17 }
 0x4d5   : > { %2217 = vadd.xlane.f32.xlu1 %v2216_v30  ;;  %v14722_v30 = vld [vmem:[#allocation25_spill] sm:$0xff] }
 0x4d9   : > { %2223 = vadd.xlane.f32.xlu1 %v2222_v52 }
 0x4de   : > { %2435 = vrot.lane.b32.xlu0 %v14719_v42, %s9547_s14  ;;  %v14723_v42 = vld [vmem:[#allocation26_spill] sm:$0xff] }
 0x4e3   : > { %v2134_v27 = vpop.xlane.xlu0 %2133 }
 0x4e4   : > { %8506 = vrcp.f32 %v2134_v27 }
 0x4e6   : > { %v2137_v12 = vpop.xlane.xlu1 %2136 }
 0x4e7   : > { %8508 = vrcp.f32 %v2137_v12 }
 0x4e8   : > { %8510 = vpow2.f32 %v2128_v60 }
 0x4e9   : > { %8512 = vpow2.f32 %v2130_v29 }
 0x4ea   : > { %2437 = vrot.lane.b32.xlu1 %v14722_v30, %s9547_s14 }
 0x4eb   : > { %v2140_v43 = vpop.xlane.xlu0 %2139 }
 0x4ec   : > { %8514 = vrcp.f32 %v2140_v43 }
 0x4ee   : > { %v8507_v52 = vpop.eup %8506  ;;  %2439 = vrot.lane.b32.xlu1 %v14723_v42, %s9547_s14 }
 0x4ef   : > { %v2143_v5 = vpop.xlane.xlu1 %2142  ;;  %v2261_v27 = vmul.f32 %v8507_v52, %v10773_v54  ;;  %v2260_v20 = vmul.f32 %v8507_v52, %v10771_v8 }
 0x4f0   : > { %8516 = vrcp.f32 %v2143_v5 }
 0x4f1   : > { %v8509_v41 = vpop.eup %8508 }
 0x4f2   : > { %v2263_v12 = vmul.f32 %v8509_v41, %v10779_v53  ;;  %v2262_v17 = vmul.f32 %v8509_v41, %v10775_v33  ;;  %2441 = vrot.lane.b32.xlu1 %v14724_v47, %s9547_s14  ;;  %v11133_v4 = vpop.eup %8510  ;;  %v14725_v53 = vld [vmem:[#allocation28_spill] sm:$0xff]  ;;  %v14726_v41 = vld [vmem:[#allocation31_spill] sm:$0xff] }
 0x4f3   : > { %v2146_v60 = vpop.xlane.xlu0 %2145  ;;  %v11135_v42 = vpop.eup %8512 }
 0x4f4   : > { %v7790_v43 = vpack.c.bf16 %v2263_v12, %v2261_v27  ;;  %v7792_v29 = vpack.c.bf16 %v2262_v17, %v2260_v20  ;;  %8518 = vrcp.f32 %v2146_v60  ;;  %v2225_v54 = vadd.f32 %v11135_v42, %v11133_v4 }
 0x4f6   : > { %7791 = vmatprep.subr.bf16.mxu1 %v7790_v43  ;;  %v2149_v5 = vpop.xlane.xlu1 %2148  ;;  %2443 = vrot.lane.b32.xlu1 %v14725_v53, %s9547_s14  ;;  %v8515_v8 = vpop.eup %8514 }
 0x4f7   : > { %8520 = vrcp.f32 %v2149_v5  ;;  %7793 = vmatpush1.bf16.xpose.msra.mxu1 %v7792_v29  ;;  %v2265_v27 = vmul.f32 %v8515_v8, %v10813_v25  ;;  %v2264_v20 = vmul.f32 %v8515_v8, %v10811_v1 }
 0x4fa   : > { %v8517_v33 = vpop.eup %8516  ;;  %2445 = vrot.lane.b32.xlu1 %v14726_v41, %s9547_s14 }
 0x4fb   : > { %v2152_v52 = vpop.xlane.xlu0 %2151  ;;  %v2267_v12 = vmul.f32 %v8517_v33, %v10833_v21  ;;  %v2266_v17 = vmul.f32 %v8517_v33, %v10829_v18 }
 0x4fc   : > { %8522 = vrcp.f32 %v2152_v52 }
 0x4fd   : > { %2226 = vadd.xlane.f32.xlu0 %v2225_v54  ;;  %v7794_v60 = vpack.c.bf16 %v2267_v12, %v2265_v27  ;;  %v7796_v43 = vpack.c.bf16 %v2266_v17, %v2264_v20  ;;  %v2155_v29 = vpop.xlane.xlu1 %2154  ;;  %v14727_v27 = vmov 0  }
 0x4fe   : > { %v8519_v5 = vpop.eup %8518  ;;  %8524 = vrcp.f32 %v2155_v29  ;;  %v14728_v29 = vld [vmem:[#allocation90_spill] sm:$0xff] }
 0x4ff   : > { %7795 = vmatprep.subr.bf16.mxu1 %v7794_v60  ;;  %v2269_v41 = vmul.f32 %v8519_v5, %v10853_v57  ;;  %v2268_v18 = vmul.f32 %v8519_v5, %v10851_v58 }
 0x500   : > { %7797 = vmatpush1.bf16.xpose.msra.mxu1 %v7796_v43 }
 0x501   : > { %v8521_v53 = vpop.eup %8520  ;;  %v11160_v12 = vpop.permute.xlu1 %2433 }
 0x502   : > { %v2271_v25 = vmul.f32 %v8521_v53, %v10861_v15  ;;  %v2270_v21 = vmul.f32 %v8521_v53, %v10855_v46 }
 0x503   : > { %v2158_v47 = vpop.xlane.xlu0 %2157 }
 0x504   : > { %v7798_v1 = vpack.c.bf16 %v2271_v25, %v2269_v41  ;;  %v7800_v8 = vpack.c.bf16 %v2270_v21, %v2268_v18  ;;  %8526 = vrcp.f32 %v2158_v47  ;;  %v14729_v21 = vld [vmem:[#allocation89_spill] sm:$0xff] }
 0x506   : > { %7799 = vmatprep.subr.bf16.mxu1 %v7798_v1  ;;  %v8523_v33 = vpop.eup %8522 }
 0x507   : > { %v11151_v54 = vpop.permute.xlu0 %2431  ;;  %v2273_v15 = vmul.f32 %v8523_v33, %v10891_v49  ;;  %v2272_v58 = vmul.f32 %v8523_v33, %v10889_v61 }
 0x508   : > { %7801 = vmatpush1.bf16.xpose.msra.mxu1 %v7800_v8  ;;  %7430 = vmatmul.mubr.msk.bf16.gmra.mrb[140].mxu0 %vm687_vm3, %v11151_v54  ;;  %v8525_v52 = vpop.eup %8524 }
 0x509   : > { %2617 = vmatprep.mubr.bf16.mxu0 %v14727_v27  ;;  %v2275_v57 = vmul.f32 %v8525_v52, %v10897_v36  ;;  %v2274_v46 = vmul.f32 %v8525_v52, %v10893_v51 }
 0x50b   : > { %v7802_v53 = vpack.c.bf16 %v2275_v57, %v2273_v15  ;;  %v7804_v41 = vpack.c.bf16 %v2274_v46, %v2272_v58 }
 0x50d   : > { %7803 = vmatprep.subr.bf16.mxu1 %v7802_v53 }
 0x50e   : > { %v8527_v17 = vpop.eup %8526 }
 0x50f   : > { %v2277_v5 = vmul.f32 %v8527_v17, %v14728_v29  ;;  %v2276_v1 = vmul.f32 %v8527_v17, %v14729_v21 }
 0x510   : > { %7805 = vmatpush1.bf16.xpose.msra.mxu1 %v7804_v41  ;;  %7431 = vmatmul.mubr.msk.bf16.gmra.mrb[144].mxu0 %vm687_vm3, %v11160_v12 }
 0x511   : > { %2627 = vmatprep.mubr.bf16.mxu0 %v14727_v27 }
 0x532   : > { %v2161_v20 = vpop.xlane.xlu1 %2160 }
 0x533   : > { %8528 = vrcp.f32 %v2161_v20 }
 0x536   : > { %v2164_v49 = vpop.xlane.xlu1 %2163 }
 0x537   : > { %8530 = vrcp.f32 %v2164_v49 }
 0x538   : > { %v2170_v36 = vpop.xlane.xlu0 %2169 }
 0x53a   : > { %v2167_v51 = vpop.xlane.xlu1 %2166 }
 0x53b   : > { %8532 = vrcp.f32 %v2167_v51 }
 0x53c   : > { %v2182_v61 = vpop.xlane.xlu0 %2181  ;;  %8534 = vrcp.f32 %v2170_v36 }
 0x53d   : > { %v8529_v60 = vpop.eup %8528 }
 0x53e   : > { %v2173_v43 = vpop.xlane.xlu1 %2172  ;;  %v2279_v25 = vmul.f32 %v8529_v60, %v10961_v7  ;;  %v2278_v47 = vmul.f32 %v8529_v60, %v10958_v50 }
 0x53f   : > { %8536 = vrcp.f32 %v2173_v43 }
 0x540   : > { %v2191_v18 = vpop.xlane.xlu0 %2190  ;;  %v7806_v8 = vpack.c.bf16 %v2279_v25, %v2277_v5  ;;  %v7808_v33 = vpack.c.bf16 %v2278_v47, %v2276_v1 }
 0x541   : > { %v8531_v15 = vpop.eup %8530 }
 0x542   : > { %7807 = vmatprep.subr.bf16.mxu1 %v7806_v8  ;;  %v2176_v52 = vpop.xlane.xlu1 %2175  ;;  %v2281_v58 = vmul.f32 %v8531_v15, %v10969_v59  ;;  %v2280_v41 = vmul.f32 %v8531_v15, %v10965_v39 }
 0x543   : > { %7809 = vmatpush1.bf16.xpose.msra.mxu1 %v7808_v33  ;;  %8538 = vrcp.f32 %v2176_v52 }
 0x544   : > { %v2197_v57 = vpop.xlane.xlu0 %2196 }
 0x545   : > { %v8533_v46 = vpop.eup %8532 }
 0x546   : > { %v2179_v53 = vpop.xlane.xlu1 %2178  ;;  %v2283_v7 = vmul.f32 %v8533_v46, %v10983_v0  ;;  %v2282_v50 = vmul.f32 %v8533_v46, %v10972_v24  ;;  %v8535_v20 = vpop.eup %8534 }
 0x547   : > { %8540 = vrcp.f32 %v2179_v53  ;;  %v2285_v43 = vmul.f32 %v8535_v20, %v10981_v31  ;;  %v2284_v21 = vmul.f32 %v8535_v20, %v10977_v34 }
 0x548   : > { %v2203_v49 = vpop.xlane.xlu0 %2202  ;;  %v7810_v36 = vpack.c.bf16 %v2283_v7, %v2281_v58  ;;  %v7812_v51 = vpack.c.bf16 %v2282_v50, %v2280_v41  ;;  %8542 = vrcp.f32 %v2182_v61 }
 0x549   : > { %v8537_v17 = vpop.eup %8536 }
 0x54a   : > { %7811 = vmatprep.subr.bf16.mxu1 %v7810_v36  ;;  %v2185_v60 = vpop.xlane.xlu1 %2184  ;;  %v2287_v29 = vmul.f32 %v8537_v17, %v10999_v3  ;;  %v2286_v39 = vmul.f32 %v8537_v17, %v10986_v19 }
 0x54b   : > { %8544 = vrcp.f32 %v2185_v60  ;;  %7813 = vmatpush1.bf16.xpose.msra.mxu1 %v7812_v51 }
 0x54c   : > { %v2209_v59 = vpop.xlane.xlu0 %2208  ;;  %v7814_v0 = vpack.c.bf16 %v2287_v29, %v2285_v43  ;;  %v7816_v1 = vpack.c.bf16 %v2286_v39, %v2284_v21 }
 0x54d   : > { %v8539_v5 = vpop.eup %8538 }
 0x54e   : > { %7815 = vmatprep.subr.bf16.mxu1 %v7814_v0  ;;  %v2188_v24 = vpop.xlane.xlu1 %2187  ;;  %v2289_v31 = vmul.f32 %v8539_v5, %v11014_v11  ;;  %v2288_v53 = vmul.f32 %v8539_v5, %v11001_v16 }
 0x54f   : > { %8546 = vrcp.f32 %v2188_v24 }
 0x550   : > { %v11176_v25 = vpop.xlane.xlu0 %2214  ;;  %8548 = vrcp.f32 %v2191_v18 }
 0x551   : > { %v8541_v61 = vpop.eup %8540 }
 0x552   : > { %v2194_v47 = vpop.xlane.xlu1 %2193  ;;  %v2291_v3 = vmul.f32 %v8541_v61, %v11029_v13  ;;  %v8543_v8 = vpop.eup %8542  ;;  %v2290_v15 = vmul.f32 %v8541_v61, %v11019_v37 }
 0x553   : > { %7817 = vmatpush1.bf16.xpose.msra.mxu1 %v7816_v1  ;;  %v2293_v11 = vmul.f32 %v8543_v8, %v10996_v38  ;;  %8550 = vrcp.f32 %v2194_v47  ;;  %v2292_v38 = vmul.f32 %v8543_v8, %v10991_v35  ;;  %v14731_v8 = vld [vmem:[#allocation47_spill] sm:$0xff] }
 0x554   : > { %v7818_v19 = vpack.c.bf16 %v2291_v3, %v2289_v31  ;;  %v7820_v13 = vpack.c.bf16 %v2290_v15, %v2288_v53  ;;  %8552 = vrcp.f32 %v2197_v57 }
 0x555   : > { %v11181_v33 = vpop.xlane.xlu0 %2220  ;;  %v8545_v52 = vpop.eup %8544 }
 0x556   : > { %7819 = vmatprep.subr.bf16.mxu1 %v7818_v19  ;;  %v2200_v46 = vpop.xlane.xlu1 %2199  ;;  %v2295_v34 = vmul.f32 %v8545_v52, %v11044_v9  ;;  %v2294_v16 = vmul.f32 %v8545_v52, %v11031_v63  ;;  %v14732_v52 = vld [vmem:[#allocation40_spill] sm:$0xff] }
 0x557   : > { %8554 = vrcp.f32 %v2200_v46 }
 0x558   : > { %v7822_v7 = vpack.c.bf16 %v2295_v34, %v2293_v11  ;;  %v7824_v36 = vpack.c.bf16 %v2294_v16, %v2292_v38  ;;  %8556 = vrcp.f32 %v2203_v49  ;;  %v14736_v16 = vld [vmem:[#allocation42_spill] sm:$0xff] }
 0x559   : > { %v11186_v58 = vpop.permute.xlu0 %2435  ;;  %v8547_v37 = vpop.eup %8546 }
 0x55a   : > { %7432 = vmatmul.mubr.msk.bf16.gmra.mrb[148].mxu0 %vm687_vm3, %v11186_v58  ;;  %v2206_v18 = vpop.xlane.xlu1 %2205  ;;  %v8549_v9 = vpop.eup %8548  ;;  %v2297_v50 = vmul.f32 %v8547_v37, %v11059_v22  ;;  %v2296_v43 = vmul.f32 %v8547_v37, %v11056_v10  ;;  %v14735_v37 = vld [vmem:[#allocation48_spill] sm:$0xff] }
 0x55b   : > { %2637 = vmatprep.mubr.bf16.mxu0 %v14727_v27  ;;  %7821 = vmatpush1.bf16.xpose.msra.mxu1 %v7820_v13  ;;  %v2299_v20 = vmul.f32 %v8549_v9, %v11009_v23  ;;  %v2298_v22 = vmul.f32 %v8549_v9, %v11005_v2  ;;  %8558 = vrcp.f32 %v2206_v18  ;;  %v14734_v18 = vld [vmem:[#allocation44_spill] sm:$0xff] }
 0x55c   : > { %7823 = vmatprep.subr.bf16.mxu1 %v7822_v7  ;;  %8560 = vrcp.f32 %v2209_v59 }
 0x55d   : > { %v7826_v17 = vpack.c.bf16 %v2299_v20, %v2297_v50  ;;  %v8551_v60 = vpop.eup %8550  ;;  %v7828_v23 = vpack.c.bf16 %v2298_v22, %v2296_v43  ;;  %v14739_v43 = vld [vmem:[#allocation41_spill] sm:$0xff] }
 0x55e   : > { %v2212_v41 = vpop.xlane.xlu1 %2211  ;;  %v8553_v57 = vpop.eup %8552  ;;  %v2301_v63 = vmul.f32 %v8551_v60, %v11075_v32  ;;  %v2300_v32 = vmul.f32 %v8551_v60, %v11071_v45  ;;  %v14738_v60 = vld [vmem:[#allocation52_spill] sm:$0xff] }
 0x55f   : > { %v2303_v35 = vmul.f32 %v8553_v57, %v11027_v6  ;;  %v2302_v6 = vmul.f32 %v8553_v57, %v11022_v55  ;;  %8562 = vrcp.f32 %v2212_v41 }
 0x560   : > { %8564 = vrcp.f32 %v11176_v25 }
 0x561   : > { %v7830_v39 = vpack.c.bf16 %v2303_v35, %v2301_v63  ;;  %v8555_v24 = vpop.eup %8554  ;;  %v7832_v5 = vpack.c.bf16 %v2302_v6, %v2300_v32 }
 0x562   : > { %v2218_v51 = vpop.xlane.xlu1 %2217  ;;  %v8557_v10 = vpop.eup %8556  ;;  %v2305_v2 = vmul.f32 %v8555_v24, %v11082_v26  ;;  %v2304_v55 = vmul.f32 %v8555_v24, %v11079_v48  ;;  %v14740_v24 = vld [vmem:[#allocation45_spill] sm:$0xff] }
 0x563   : > { %7825 = vmatpush1.bf16.xpose.msra.mxu1 %v7824_v36  ;;  %v2307_v49 = vmul.f32 %v8557_v10, %v11039_v56  ;;  %v2306_v26 = vmul.f32 %v8557_v10, %v11035_v44  ;;  %8566 = vrcp.f32 %v2218_v51  ;;  %v14737_v51 = vld [vmem:[#allocation22_spill] sm:$0xff] }
 0x564   : > { %7827 = vmatprep.subr.bf16.mxu1 %v7826_v17  ;;  %8568 = vrcp.f32 %v11181_v33  ;;  %v3916_v17 = vrot.slane %v14737_v51, 4  ;;  %v9213_v51 = vld [vmem:[%s14388_s3 + $0x198] sm:$0xff] }
 0x565   : > { %v7834_v59 = vpack.c.bf16 %v2307_v49, %v2305_v2  ;;  %v8559_v61 = vpop.eup %8558  ;;  %v7836_v47 = vpack.c.bf16 %v2306_v26, %v2304_v55  ;;  %v9182_v49 = vld [vmem:[%s14387_s2 + $0x8] ss:$0 sps:$4 sm:$0xff]   ;;  %v9185_v55 = vld [vmem:[%s14389_s4 + $0x14] ss:$8 sps:$4 sm:$0xff]   ;;  %v9187_v26 = vld [vmem:[%s14389_s4 + $0x24] ss:$8 sps:$4 sm:$0xff]  }
 0x566   : > { %v2224_v29 = vpop.xlane.xlu1 %2223  ;;  %v8561_v45 = vpop.eup %8560  ;;  %v2309_v56 = vmul.f32 %v8559_v61, %v11097_v62  ;;  %v2308_v44 = vmul.f32 %v8559_v61, %v11093_v28  ;;  %v14730_v62 = vld [vmem:[#allocation51_spill] sm:$0xff]  ;;  %v14745_v61 = vld [vmem:[#allocation34_spill] sm:$0xff] }
 0x567   : > { %v2311_v1 = vmul.f32 %v8561_v45, %v11053_v40  ;;  %v2310_v19 = vmul.f32 %v8561_v45, %v14731_v8  ;;  %v14733_v28 = vld [vmem:[#allocation43_spill] sm:$0xff]  ;;  %8570 = vrcp.f32 %v2224_v29  ;;  %v9184_v45 = vld [vmem:[%s14389_s4] ss:$8 sps:$4 sm:$0xff]  }
 0x568   : > { %v9192_v8 = vld [vmem:[%s14389_s4 + $0x40] ss:$8 sps:$4 sm:$0xff]  }
 0x569   : > { %v7838_v25 = vpack.c.bf16 %v2311_v1, %v2309_v56  ;;  %v8563_v3 = vpop.eup %8562  ;;  %v7840_v46 = vpack.c.bf16 %v2310_v19, %v2308_v44  ;;  %v9186_v56 = vld [vmem:[%s14389_s4 + $0x10] ss:$8 sps:$4 sm:$0xff]   ;;  %v9191_v44 = vld [vmem:[%s14389_s4 + $0x44] ss:$8 sps:$4 sm:$0xff]   ;;  %v9193_v19 = vld [vmem:[%s14389_s4 + $0x54] ss:$8 sps:$4 sm:$0xff]  }
 0x56a   : > { %v11200_v0 = vpop.permute.xlu1 %2437  ;;  %v8565_v48 = vpop.eup %8564  ;;  %v2313_v40 = vmul.f32 %v8563_v3, %v14730_v62  ;;  %v2312_v13 = vmul.f32 %v8563_v3, %v14733_v28  ;;  %v14746_v1 = vld [vmem:[#allocation35_spill] sm:$0xff]  ;;  %v14748_v62 = vld [vmem:[#allocation37_spill] sm:$0xff] }
 0x56b   : > { %7829 = vmatpush1.bf16.xpose.msra.mxu1 %v7828_v23  ;;  %7433 = vmatmul.mubr.msk.bf16.gmra.mrb[152].mxu0 %vm687_vm3, %v11200_v0  ;;  %v2315_v15 = vmul.f32 %v8565_v48, %v14732_v52  ;;  %v2314_v9 = vmul.f32 %v8565_v48, %v14735_v37  ;;  %v9189_v3 = vld [vmem:[%s14389_s4 + $0x34] ss:$8 sps:$4 sm:$0xff]   ;;  %v9190_v48 = vld [vmem:[%s14389_s4 + $0x30] ss:$8 sps:$4 sm:$0xff]   ;;  %v9199_v28 = vld [vmem:[%s14389_s4 + $0x84] ss:$8 sps:$4 sm:$0xff]  }
 0x56c   : > { %7831 = vmatprep.subr.bf16.mxu1 %v7830_v39  ;;  %2647 = vmatprep.mubr.bf16.mxu0 %v14727_v27  ;;  %v9194_v52 = vld [vmem:[%s14389_s4 + $0x50] ss:$8 sps:$4 sm:$0xff]  }
 0x56d   : > { %v7842_v33 = vpack.c.bf16 %v2315_v15, %v2313_v40  ;;  %v8567_v53 = vpop.eup %8566  ;;  %v7844_v38 = vpack.c.bf16 %v2314_v9, %v2312_v13  ;;  %v14749_v40 = vld [vmem:[#allocation38_spill] sm:$0xff]  ;;  %v9201_v13 = vld [vmem:[%s14389_s4 + $0x94] ss:$8 sps:$4 sm:$0xff]   ;;  %v9206_v37 = vld [vmem:[%s14389_s4 + $0xb0] ss:$8 sps:$4 sm:$0xff]  }
 0x56e   : > { %v11209_v21 = vpop.permute.xlu1 %2439  ;;  %v8569_v11 = vpop.eup %8568  ;;  %v2317_v7 = vmul.f32 %v8567_v53, %v14734_v18  ;;  %v2316_v57 = vmul.f32 %v8567_v53, %v14738_v60  ;;  %v9195_v15 = vld [vmem:[%s14389_s4 + $0x64] ss:$8 sps:$4 sm:$0xff]   ;;  %v9197_v53 = vld [vmem:[%s14389_s4 + $0x74] ss:$8 sps:$4 sm:$0xff]   ;;  %v9202_v18 = vld [vmem:[%s14389_s4 + $0x90] ss:$8 sps:$4 sm:$0xff]  }
 0x56f   : > { %v2319_v41 = vmul.f32 %v8569_v11, %v14736_v16  ;;  %v2318_v29 = vmul.f32 %v8569_v11, %v14739_v43  ;;  %v9198_v11 = vld [vmem:[%s14389_s4 + $0x70] ss:$8 sps:$4 sm:$0xff]   ;;  %v9209_v9 = vld [vmem:[%s14389_s4 + $0xd4] ss:$8 sps:$4 sm:$0xff]  }
 0x571   : > { %v7846_v36 = vpack.c.bf16 %v2319_v41, %v2317_v7  ;;  %v7848_v63 = vpack.c.bf16 %v2318_v29, %v2316_v57  ;;  %v8571_v22 = vpop.eup %8570  ;;  %v9205_v7 = vld [vmem:[%s14389_s4 + $0xb4] ss:$8 sps:$4 sm:$0xff]   ;;  %v9210_v41 = vld [vmem:[%s14389_s4 + $0xd0] ss:$8 sps:$4 sm:$0xff]   ;;  %v9214_v57 = vld [vmem:[%s14388_s3 + $0x188] sm:$0xff] }
 0x572   : > { %v11219_v31 = vpop.permute.xlu1 %2441  ;;  %v2321_v23 = vmul.f32 %v8571_v22, %v11115_v14  ;;  %v2320_v10 = vmul.f32 %v8571_v22, %v14740_v24  ;;  %v14743_v14 = vld [vmem:[#allocation32_spill] sm:$0xff]  ;;  %v9215_v29 = vld [vmem:[%s14388_s3 + $0x1a0] sm:$0xff] }
 0x573   : > { %7833 = vmatpush1.bf16.xpose.msra.mxu1 %v7832_v5  ;;  %7434 = vmatmul.mubr.msk.bf16.gmra.mrb[156].mxu0 %vm687_vm3, %v11209_v21  ;;  %v14741_v5 = vld [vmem:[#allocation20_spill] sm:$0xff] }
 0x574   : > { %7835 = vmatprep.subr.bf16.mxu1 %v7834_v59  ;;  %2657 = vmatprep.mubr.bf16.mxu0 %v14727_v27  ;;  %v14742_v59 = vld [vmem:[#allocation5_spill] sm:$0xff] }
 0x576   : > { %v11229_v34 = vpop.permute.xlu1 %2443 }
 0x57a   : > { %v11238_v20 = vpop.permute.xlu1 %2445 }
 0x57b   : > { %7837 = vmatpush1.bf16.xpose.msra.mxu1 %v7836_v47  ;;  %7435 = vmatmul.mubr.msk.bf16.gmra.mrb[160].mxu0 %vm687_vm3, %v11219_v31  ;;  %v14747_v47 = vld [vmem:[#allocation36_spill] sm:$0xff] }
 0x57c   : > { %7839 = vmatprep.subr.bf16.mxu1 %v7838_v25  ;;  %2667 = vmatprep.mubr.bf16.mxu0 %v14727_v27  ;;  %v9188_v25 = vld [vmem:[%s14389_s4 + $0x20] ss:$8 sps:$4 sm:$0xff]  }
 0x583   : > { %7841 = vmatpush1.bf16.xpose.msra.mxu1 %v7840_v46  ;;  %7436 = vmatmul.mubr.msk.bf16.gmra.mrb[164].mxu0 %vm687_vm3, %v11229_v34  ;;  %v14750_v46 = vld [vmem:[#allocation39_spill] sm:$0xff] }
 0x584   : > { %7843 = vmatprep.subr.bf16.mxu1 %v7842_v33  ;;  %2677 = vmatprep.mubr.bf16.mxu0 %v14727_v27  ;;  %v9196_v33 = vld [vmem:[%s14389_s4 + $0x60] ss:$8 sps:$4 sm:$0xff]  }
 0x58a   : > { %v2227_v50 = vpop.xlane.xlu0 %2226 }
 0x58b   : > { %8572 = vrcp.f32 %v2227_v50  ;;  %7845 = vmatpush1.bf16.xpose.msra.mxu1 %v7844_v38  ;;  %7437 = vmatmul.mubr.msk.bf16.gmra.mrb[168].mxu0 %vm687_vm3, %v11238_v20  ;;  %v9212_v38 = vld [vmem:[%s14388_s3 + $0x180] sm:$0xff] }
 0x58c   : > { %7847 = vmatprep.subr.bf16.mxu1 %v7846_v36  ;;  %3983 = vmatprep.mubr.f32.mxu0 %v3916_v17 }
 0x593   : > { %7849 = vmatpush1.bf16.xpose.msra.mxu1 %v7848_v63 }
 0x595   : > { %v8573_v35 = vpop.eup %8572 }
 0x596   : > { %v2323_v39 = vmul.f32 %v8573_v35, %v11135_v42  ;;  %v2322_v32 = vmul.f32 %v8573_v35, %v11133_v4  ;;  %v9183_v42 = vld [vmem:[%s14389_s4 + $0x4] ss:$8 sps:$4 sm:$0xff]   ;;  %v9216_v35 = vld [vmem:[%s14389_s4 + $0xe0] ss:$8 sps:$4 sm:$0xff]  }
 0x597   : > { %v14744_v4 = vld [vmem:[#allocation33_spill] sm:$0xff] }
 0x598   : > { %v7850_v2 = vpack.c.bf16 %v2323_v39, %v2321_v23  ;;  %v7852_v6 = vpack.c.bf16 %v2322_v32, %v2320_v10  ;;  %v14751_v23 = vld [vmem:[#allocation60_spill] sm:$0xff]  ;;  %v14752_v39 = vld [vmem:[#allocation59_spill] sm:$0xff] }
 0x599   : > { %v14753_v24 = vpack.c.bf16 %v14751_v23, %v14752_v39  ;;  %v9217_v32 = vld [vmem:[%s14389_s4 + $0xf4] ss:$8 sps:$4 sm:$0xff]  }
 0x59a   : > { %7851 = vmatprep.subr.bf16.mxu1 %v7850_v2  ;;  %v14754_v2 = vld [vmem:[#allocation13_spill] sm:$0xff]  ;;  %v14790_v23 = vld [vmem:[#allocation83_spill] sm:$0xff] }
 0x59b   : > { %7853 = vmatpush1.bf16.xpose.msra.mxu1 %v7852_v6  ;;  %v2397_v6 = vpack.c.bf16 %v14754_v2, %v14754_v2 }
 0x59c   : > { %8313 = vmatprep.subr.msk.bf16.mxu1 %vm736_vm2, %v9182_v49 }
 0x5a2   : > { %2389 = vmatmul.mubr.f32.vlgmr.msra.gmra.mrb[14].mxu1 %v14741_v5 }
 0x5a3   : > { %7681 = vmatpush3.bf16.msra.mxu1 %v14742_v59  ;;  %7682 = vmatprep.mubr.msk.bf16.mxu1 %vm687_vm3, %v14743_v14 }
 0x5a4   : > { %3047 = vmatprep.subr.bf16.mxu1 %v9183_v42  ;;  %v9218_v42 = vld [vmem:[%s14389_s4 + $0xf0] ss:$8 sps:$4 sm:$0xff]  }
 0x5a6   : > { %7683 = vmatmul.mubr.msk.bf16.vlgmr.msra.gmra.mrb[80].mxu1 %vm687_vm3, %v14744_v4 }
 0x5a7   : > { %7686 = vmatprep.mubr.msk.bf16.mxu1 %vm687_vm3, %v14745_v61  ;;  %3048 = vmatpush1.bf16.msra.mxu1 %v9184_v45  ;;  %v9219_v45 = vld [vmem:[%s14388_s3 + $0x1b0] sm:$0xff] }
 0x5a8   : > { %3049 = vmatprep.subr.bf16.mxu1 %v9185_v55 }
 0x5ab   : > { %3050 = vmatpush1.bf16.msra.mxu1 %v9186_v56  ;;  %v9220_v56 = vld [vmem:[%s14388_s3 + $0x1c8] sm:$0xff] }
 0x5ac   : > { %3051 = vmatprep.subr.bf16.mxu1 %v9187_v26 }
 0x5ae   : > { %7687 = vmatmul.mubr.msk.bf16.gmra.mrb[84].mxu1 %vm687_vm3, %v14746_v1 }
 0x5af   : > { %7690 = vmatprep.mubr.msk.bf16.mxu1 %vm687_vm3, %v14747_v47  ;;  %3052 = vmatpush1.bf16.msra.mxu1 %v9188_v25  ;;  %v9221_v47 = vld [vmem:[%s14388_s3 + $0x1b8] sm:$0xff] }
 0x5b0   : > { %3053 = vmatprep.subr.bf16.mxu1 %v9189_v3  ;;  %v9222_v3 = vld [vmem:[%s14388_s3 + $0x1d0] sm:$0xff] }
 0x5b3   : > { %3054 = vmatpush1.bf16.msra.mxu1 %v9190_v48 }
 0x5b4   : > { %3055 = vmatprep.subr.bf16.mxu1 %v9191_v44  ;;  %v14756_v44 = vld [vmem:[#allocation58_spill] sm:$0xff] }
 0x5b6   : > { %7691 = vmatmul.mubr.msk.bf16.gmra.mrb[88].mxu1 %vm687_vm3, %v14748_v62  ;;  %v14757_v62 = vld [vmem:[#allocation57_spill] sm:$0xff] }
 0x5b7   : > { %7694 = vmatprep.mubr.msk.bf16.mxu1 %vm687_vm3, %v14749_v40  ;;  %3056 = vmatpush1.bf16.msra.mxu1 %v9192_v8  ;;  %v14758_v40 = vpack.c.bf16 %v14756_v44, %v14757_v62  ;;  %v3042_v8 = vsel %vm736_vm2, %v2397_v6, 0  ;;  %v14795_v6 = vld [vmem:[#allocation88_spill] sm:$0xff] }
 0x5b8   : > { %3057 = vmatprep.subr.bf16.mxu1 %v9193_v19 }
 0x5bb   : > { %3058 = vmatpush1.bf16.msra.mxu1 %v9194_v52  ;;  %v14759_v52 = vld [vmem:[#allocation64_spill] sm:$0xff] }
 0x5bc   : > { %3059 = vmatprep.subr.bf16.mxu1 %v9195_v15  ;;  %v14760_v15 = vld [vmem:[#allocation63_spill] sm:$0xff] }
 0x5be   : > { %7695 = vmatmul.mubr.msk.bf16.gmra.mrb[92].mxu1 %vm687_vm3, %v14750_v46  ;;  %v14761_v46 = vpack.c.bf16 %v14759_v52, %v14760_v15  ;;  %v9227_v52 = vld [vmem:[%s14388_s3 + $0x210] sm:$0xff] }
 0x5bf   : > { %7698 = vmatprep.mubr.msk.bf16.mxu1 %vm687_vm3, %v11151_v54  ;;  %3060 = vmatpush1.bf16.msra.mxu1 %v9196_v33  ;;  %v9200_v54 = vld [vmem:[%s14389_s4 + $0x80] ss:$8 sps:$4 sm:$0xff]  }
 0x5c0   : > { %3061 = vmatprep.subr.bf16.mxu1 %v9197_v53  ;;  %v14762_v53 = vld [vmem:[#allocation62_spill] sm:$0xff] }
 0x5c3   : > { %3062 = vmatpush1.bf16.msra.mxu1 %v9198_v11  ;;  %v14763_v11 = vld [vmem:[#allocation61_spill] sm:$0xff] }
 0x5c4   : > { %3063 = vmatprep.subr.bf16.mxu1 %v9199_v28  ;;  %v14764_v28 = vpack.c.bf16 %v14762_v53, %v14763_v11  ;;  %v9229_v11 = vld [vmem:[%s14388_s3 + $0x218] sm:$0xff] }
 0x5c6   : > { %7699 = vmatmul.mubr.msk.bf16.gmra.mrb[96].mxu1 %vm687_vm3, %v11160_v12  ;;  %v9203_v12 = vld [vmem:[%s14389_s4 + $0xa4] ss:$8 sps:$4 sm:$0xff]  }
 0x5c7   : > { %7702 = vmatprep.mubr.msk.bf16.mxu1 %vm687_vm3, %v11186_v58  ;;  %3064 = vmatpush1.bf16.msra.mxu1 %v9200_v54  ;;  %v9204_v58 = vld [vmem:[%s14389_s4 + $0xa0] ss:$8 sps:$4 sm:$0xff]   ;;  %v14765_v54 = vld [vmem:[#allocation68_spill] sm:$0xff] }
 0x5c8   : > { %3065 = vmatprep.subr.bf16.mxu1 %v9201_v13  ;;  %v14766_v13 = vld [vmem:[#allocation67_spill] sm:$0xff] }
 0x5cb   : > { %3066 = vmatpush1.bf16.msra.mxu1 %v9202_v18  ;;  %v14767_v18 = vpack.c.bf16 %v14765_v54, %v14766_v13  ;;  %v9230_v54 = vld [vmem:[%s14388_s3 + $0x230] sm:$0xff] }
 0x5cc   : > { %3067 = vmatprep.subr.bf16.mxu1 %v9203_v12  ;;  %v14768_v12 = vld [vmem:[#allocation66_spill] sm:$0xff] }
 0x5ce   : > { %7703 = vmatmul.mubr.msk.bf16.gmra.mrb[100].mxu1 %vm687_vm3, %v11200_v0  ;;  %v9207_v0 = vld [vmem:[%s14389_s4 + $0xc4] ss:$8 sps:$4 sm:$0xff]  }
 0x5cf   : > { %7706 = vmatprep.mubr.msk.bf16.mxu1 %vm687_vm3, %v11209_v21  ;;  %3068 = vmatpush1.bf16.msra.mxu1 %v9204_v58  ;;  %v9208_v21 = vld [vmem:[%s14389_s4 + $0xc0] ss:$8 sps:$4 sm:$0xff]  }
 0x5d0   : > { %3069 = vmatprep.subr.bf16.mxu1 %v9205_v7  ;;  %v14769_v58 = vld [vmem:[#allocation65_spill] sm:$0xff] }
 0x5d1   : > { %v14770_v7 = vpack.c.bf16 %v14768_v12, %v14769_v58 }
 0x5d3   : > { %3070 = vmatpush1.bf16.msra.mxu1 %v9206_v37  ;;  %v14771_v37 = vld [vmem:[#allocation72_spill] sm:$0xff] }
 0x5d4   : > { %3071 = vmatprep.subr.bf16.mxu1 %v9207_v0  ;;  %v14772_v0 = vld [vmem:[#allocation71_spill] sm:$0xff] }
 0x5d6   : > { %7707 = vmatmul.mubr.msk.bf16.gmra.mrb[104].mxu1 %vm687_vm3, %v11219_v31 }
 0x5d7   : > { %7710 = vmatprep.mubr.msk.bf16.mxu1 %vm687_vm3, %v11229_v34  ;;  %3072 = vmatpush1.bf16.msra.mxu1 %v9208_v21  ;;  %v9211_v34 = vld [vmem:[%s14389_s4 + $0xe4] ss:$8 sps:$4 sm:$0xff]   ;;  %v14773_v21 = vpack.c.bf16 %v14771_v37, %v14772_v0 }
 0x5d8   : > { %3073 = vmatprep.subr.bf16.mxu1 %v9209_v9  ;;  %v14774_v9 = vld [vmem:[#allocation70_spill] sm:$0xff]  ;;  %v9231_v0 = vld [vmem:[%s14388_s3 + $0x240] sm:$0xff] }
 0x5db   : > { %v2609_v16 = vpop.f32.mrb[140].mxu0  ;;  %3074 = vmatpush1.bf16.msra.mxu1 %v9210_v41 }
 0x5dc   : > { %v2611_v31 = vpop.f32.mrb[141].mxu0  ;;  %3075 = vmatprep.subr.bf16.mxu1 %v9211_v34  ;;  %v2897_v36 = vmul.f32 %v9212_v38, %v2609_v16  ;;  %v14775_v16 = vld [vmem:[#allocation69_spill] sm:$0xff]  ;;  %v14780_v38 = vld [vmem:[#allocation74_spill] sm:$0xff] }
 0x5dd   : > { %v2613_v50 = vpop.f32.mrb[142].mxu0  ;;  %v2898_v43 = vmul.f32 %v9214_v57, %v2611_v31  ;;  %v14776_v41 = vpack.c.bf16 %v14774_v9, %v14775_v16  ;;  %v14777_v31 = vld [vmem:[#allocation76_spill] sm:$0xff] }
 0x5de   : > { %v2900_v17 = vmul.f32 %v9213_v51, %v2613_v50  ;;  %v2615_v60 = vpop.f32.mrb[143].mxu0  ;;  %7711 = vmatmul.mubr.msk.bf16.gmra.mrb[108].mxu1 %vm687_vm3, %v11238_v20  ;;  %v14755_v20 = vld [vmem:[#allocation14_spill] sm:$0xff]  ;;  %v14778_v50 = vld [vmem:[#allocation75_spill] sm:$0xff]  ;;  %v9232_v9 = vld [vmem:[%s14388_s3 + $0x258] sm:$0xff] }
 0x5df   : > { %v2901_v63 = vmul.f32 %v9215_v29, %v2615_v60  ;;  %3076 = vmatpush1.bf16.msra.mxu1 %v9216_v35  ;;  %3079 = vmatprep.mubr.bf16.mxu1 %v14753_v24  ;;  %v2398_v49 = vpack.c.bf16 %v14755_v20, %v14755_v20  ;;  %v14779_v34 = vpack.c.bf16 %v14777_v31, %v14778_v50  ;;  %v14784_v60 = vld [vmem:[#allocation79_spill] sm:$0xff]  ;;  %v14787_v29 = vld [vmem:[#allocation77_spill] sm:$0xff]  ;;  %v14789_v35 = vld [vmem:[#allocation84_spill] sm:$0xff] }
 0x5e0   : > { %v2969_v22 = vpack.c.bf16 %v2900_v17, %v2897_v36  ;;  %3077 = vmatprep.subr.bf16.mxu1 %v9217_v32  ;;  %v14781_v36 = vld [vmem:[#allocation73_spill] sm:$0xff]  ;;  %v14783_v17 = vld [vmem:[#allocation80_spill] sm:$0xff]  ;;  %v14791_v39 = vpack.c.bf16 %v14789_v35, %v14790_v23  ;;  %v14792_v24 = vld [vmem:[#allocation82_spill] sm:$0xff] }
 0x5e1   : > { %v2970_v10 = vpack.c.bf16 %v2901_v63, %v2898_v43  ;;  %v14782_v51 = vpack.c.bf16 %v14780_v38, %v14781_v36  ;;  %v14785_v57 = vpack.c.bf16 %v14783_v17, %v14784_v60  ;;  %v14786_v43 = vld [vmem:[#allocation78_spill] sm:$0xff]  ;;  %v14793_v32 = vld [vmem:[#allocation81_spill] sm:$0xff]  ;;  %v14796_v20 = vld [vmem:[#allocation87_spill] sm:$0xff] }
 0x5e2   : > { %v14788_v63 = vpack.c.bf16 %v14786_v43, %v14787_v29  ;;  %v14794_v2 = vpack.c.bf16 %v14792_v24, %v14793_v32  ;;  %v9233_v31 = vld [vmem:[%s14388_s3 + $0x248] sm:$0xff]  ;;  %v9235_v43 = vld [vmem:[%s14388_s3 + $0x270] sm:$0xff] }
 0x5e3   : > { %v2619_v14 = vpop.f32.mrb[144].mxu0  ;;  %3078 = vmatpush1.bf16.msra.mxu1 %v9218_v42  ;;  %v14799_v42 = vld [vmem:[#allocation85_spill] sm:$0xff]  ;;  %v9238_v32 = vld [vmem:[%s14388_s3 + $0x290] sm:$0xff] }
 0x5e4   : > { %v2621_v4 = vpop.f32.mrb[145].mxu0  ;;  %7454 = vmatprep.subr.msk.bf16.mxu1 %vm736_vm2, %v2398_v49  ;;  %v2903_v55 = vmul.f32 %v9219_v45, %v2619_v14  ;;  %v14797_v49 = vpack.c.bf16 %v14795_v6, %v14796_v20  ;;  %v14798_v14 = vld [vmem:[#allocation86_spill] sm:$0xff] }
 0x5e5   : > { %v2623_v61 = vpop.f32.mrb[146].mxu0  ;;  %v2904_v25 = vmul.f32 %v9221_v47, %v2621_v4  ;;  %v14800_v4 = vpack.c.bf16 %v14798_v14, %v14799_v42 }
 0x5e6   : > { %v2906_v26 = vmul.f32 %v9220_v56, %v2623_v61  ;;  %v2625_v1 = vpop.f32.mrb[147].mxu0  ;;  %3080 = vmatmul.mubr.bf16.vlgmr.msra.gmra.mrb[112].mxu1 %v14758_v40  ;;  %v9223_v56 = vld [vmem:[%s14388_s3 + $0x1e0] sm:$0xff] }
 0x5e7   : > { %v2907_v48 = vmul.f32 %v9222_v3, %v2625_v1  ;;  %3089 = vmatprep.mubr.bf16.mxu1 %v14761_v46  ;;  %3241 = vmatpush1.bf16.msra.mxu1 %v3042_v8  ;;  %v9224_v1 = vld [vmem:[%s14388_s3 + $0x1f8] sm:$0xff]  ;;  %v9226_v3 = vld [vmem:[%s14388_s3 + $0x200] sm:$0xff]  ;;  %v9228_v46 = vld [vmem:[%s14388_s3 + $0x228] sm:$0xff] }
 0x5e8   : > { %v2972_v19 = vpack.c.bf16 %v2906_v26, %v2903_v55 }
 0x5e9   : > { %v2973_v33 = vpack.c.bf16 %v2907_v48, %v2904_v25 }
 0x5ee   : > { %3090 = vmatmul.mubr.bf16.gmra.mrb[116].mxu1 %v14764_v28 }
 0x5ef   : > { %3099 = vmatprep.mubr.bf16.mxu1 %v14767_v18 }
 0x5f6   : > { %3100 = vmatmul.mubr.bf16.gmra.mrb[120].mxu1 %v14770_v7 }
 0x5f7   : > { %3109 = vmatprep.mubr.bf16.mxu1 %v14773_v21 }
 0x5fe   : > { %3110 = vmatmul.mubr.bf16.gmra.mrb[124].mxu1 %v14776_v41 }
 0x5ff   : > { %3119 = vmatprep.mubr.bf16.mxu1 %v14779_v34  ;;  %v9234_v34 = vld [vmem:[%s14388_s3 + $0x260] sm:$0xff] }
 0x606   : > { %3120 = vmatmul.mubr.bf16.gmra.mrb[128].mxu1 %v14782_v51 }
 0x607   : > { %3129 = vmatprep.mubr.bf16.mxu1 %v14785_v57 }
 0x60e   : > { %3130 = vmatmul.mubr.bf16.gmra.mrb[132].mxu1 %v14788_v63  ;;  %v9236_v63 = vld [vmem:[%s14388_s3 + $0x288] sm:$0xff] }
 0x60f   : > { %3139 = vmatprep.mubr.bf16.mxu1 %v14791_v39  ;;  %v9237_v39 = vld [vmem:[%s14388_s3 + $0x278] sm:$0xff] }
 0x616   : > { %3140 = vmatmul.mubr.bf16.gmra.mrb[136].mxu1 %v14794_v2 }
 0x617   : > { %3149 = vmatprep.mubr.bf16.mxu1 %v14797_v49 }
 0x61e   : > { %3150 = vmatmul.mubr.bf16.gmra.mrb[140].mxu1 %v14800_v4  ;;  %v9239_v4 = vld [vmem:[%s14388_s3 + $0x2a0] sm:$0xff] }
 0x61f   : > { %3159 = vmatprep.mubr.bf16.mxu1 %v2970_v10 }
 0x626   : > { %3160 = vmatmul.mubr.bf16.gmra.mrb[144].mxu1 %v2969_v22  ;;  %v9225_v22 = vld [vmem:[%s14388_s3 + $0x1e8] sm:$0xff] }
 0x627   : > { %3169 = vmatprep.mubr.bf16.mxu1 %v2973_v33 }
 0x62d   : > { %v2629_v61 = vpop.f32.mrb[148].mxu0 }
 0x62e   : > { %v2631_v45 = vpop.f32.mrb[149].mxu0  ;;  %3170 = vmatmul.mubr.bf16.gmra.mrb[148].mxu1 %v2972_v19  ;;  %v2909_v26 = vmul.f32 %v9223_v56, %v2629_v61 }
 0x62f   : > { %v2633_v55 = vpop.f32.mrb[150].mxu0  ;;  %v2910_v10 = vmul.f32 %v9225_v22, %v2631_v45  ;;  %v9240_v45 = vld [vmem:[%s14388_s3 + $0x2b8] sm:$0xff] }
 0x630   : > { %v2912_v47 = vmul.f32 %v9224_v1, %v2633_v55  ;;  %v2635_v25 = vpop.f32.mrb[151].mxu0 }
 0x631   : > { %v2913_v48 = vmul.f32 %v9226_v3, %v2635_v25 }
 0x632   : > { %v2975_v44 = vpack.c.bf16 %v2912_v47, %v2909_v26  ;;  %v9241_v26 = vld [vmem:[%s14388_s3 + $0x2a8] sm:$0xff]  ;;  %v9242_v47 = vld [vmem:[%s14388_s3 + $0x2c0] sm:$0xff] }
 0x633   : > { %v2976_v62 = vpack.c.bf16 %v2913_v48, %v2910_v10 }
 0x635   : > { %3179 = vmatprep.mubr.bf16.mxu1 %v2976_v62  ;;  %v9243_v62 = vld [vmem:[%s14388_s3 + $0x2d0] sm:$0xff] }
 0x636   : > { %3180 = vmatmul.mubr.bf16.gmra.mrb[152].mxu1 %v2975_v44 }
 0x63e   : > { %v2639_v40 = vpop.f32.mrb[152].mxu0 }
 0x63f   : > { %v2641_v8 = vpop.f32.mrb[153].mxu0  ;;  %v2915_v15 = vmul.f32 %v9227_v52, %v2639_v40 }
 0x640   : > { %v2643_v19 = vpop.f32.mrb[154].mxu0  ;;  %v2916_v28 = vmul.f32 %v9229_v11, %v2641_v8  ;;  %v9244_v8 = vld [vmem:[%s14388_s3 + $0x2e8] sm:$0xff] }
 0x641   : > { %v2918_v33 = vmul.f32 %v9228_v46, %v2643_v19  ;;  %v2645_v53 = vpop.f32.mrb[155].mxu0 }
 0x642   : > { %v2919_v13 = vmul.f32 %v9230_v54, %v2645_v53 }
 0x643   : > { %v2978_v18 = vpack.c.bf16 %v2918_v33, %v2915_v15  ;;  %v9245_v15 = vld [vmem:[%s14388_s3 + $0x2d8] sm:$0xff]  ;;  %v9246_v33 = vld [vmem:[%s14388_s3 + $0x2f0] sm:$0xff] }
 0x644   : > { %v2979_v12 = vpack.c.bf16 %v2919_v13, %v2916_v28 }
 0x646   : > { %v2649_v58 = vpop.f32.mrb[156].mxu0  ;;  %3189 = vmatprep.mubr.bf16.mxu1 %v2979_v12 }
 0x647   : > { %v2651_v7 = vpop.f32.mrb[157].mxu0  ;;  %3190 = vmatmul.mubr.bf16.gmra.mrb[156].mxu1 %v2978_v18  ;;  %v2921_v21 = vmul.f32 %v9231_v0, %v2649_v58  ;;  %v9248_v0 = vld [vmem:[%s14388_s3 + $0x58] sm:$0xff] }
 0x648   : > { %v2653_v37 = vpop.f32.mrb[158].mxu0  ;;  %v2922_v50 = vmul.f32 %v9233_v31, %v2651_v7  ;;  %v9247_v7 = vld [vmem:[%s14388_s3 + $0x40] sm:$0xff]  ;;  %v9250_v31 = vld [vmem:[%s14388_s3 + $0x28] sm:$0xff] }
 0x649   : > { %v2924_v16 = vmul.f32 %v9232_v9, %v2653_v37  ;;  %v2655_v41 = vpop.f32.mrb[159].mxu0 }
 0x64a   : > { %v2925_v38 = vmul.f32 %v9234_v34, %v2655_v41 }
 0x64b   : > { %v2981_v36 = vpack.c.bf16 %v2924_v16, %v2921_v21  ;;  %v9249_v16 = vld [vmem:[%s14388_s3 + $0x10] sm:$0xff] }
 0x64c   : > { %v2982_v51 = vpack.c.bf16 %v2925_v38, %v2922_v50 }
 0x64e   : > { %v2659_v17 = vpop.f32.mrb[160].mxu0  ;;  %3199 = vmatprep.mubr.bf16.mxu1 %v2982_v51 }
 0x64f   : > { %v2661_v60 = vpop.f32.mrb[161].mxu0  ;;  %3200 = vmatmul.mubr.bf16.gmra.mrb[160].mxu1 %v2981_v36  ;;  %v2927_v29 = vmul.f32 %v9235_v43, %v2659_v17  ;;  %v9252_v43 = vld [vmem:[%s14388_s3 + $0xb8] sm:$0xff] }
 0x650   : > { %v2663_v57 = vpop.f32.mrb[162].mxu0  ;;  %v2928_v24 = vmul.f32 %v9237_v39, %v2661_v60  ;;  %v9251_v60 = vld [vmem:[%s14388_s3 + $0xa0] sm:$0xff]  ;;  %v9254_v39 = vld [vmem:[%s14388_s3 + $0x88] sm:$0xff] }
 0x651   : > { %v2930_v35 = vmul.f32 %v9236_v63, %v2663_v57  ;;  %v2665_v23 = vpop.f32.mrb[163].mxu0 }
 0x652   : > { %v2931_v2 = vmul.f32 %v9238_v32, %v2665_v23 }
 0x653   : > { %v2984_v6 = vpack.c.bf16 %v2930_v35, %v2927_v29  ;;  %v9253_v35 = vld [vmem:[%s14388_s3 + $0x70] sm:$0xff] }
 0x654   : > { %v2985_v20 = vpack.c.bf16 %v2931_v2, %v2928_v24 }
 0x656   : > { %v2669_v49 = vpop.f32.mrb[164].mxu0  ;;  %3209 = vmatprep.mubr.bf16.mxu1 %v2985_v20 }
 0x657   : > { %v2671_v14 = vpop.f32.mrb[165].mxu0  ;;  %3210 = vmatmul.mubr.bf16.gmra.mrb[164].mxu1 %v2984_v6  ;;  %v2933_v61 = vmul.f32 %v9239_v4, %v2669_v49  ;;  %v9256_v4 = vld [vmem:[%s14388_s3 + $0x118] sm:$0xff] }
 0x658   : > { %v2673_v42 = vpop.f32.mrb[166].mxu0  ;;  %v2934_v1 = vmul.f32 %v9241_v26, %v2671_v14  ;;  %v9255_v14 = vld [vmem:[%s14388_s3 + $0x100] sm:$0xff]  ;;  %v9258_v26 = vld [vmem:[%s14388_s3 + $0xe8] sm:$0xff] }
 0x659   : > { %v2936_v55 = vmul.f32 %v9240_v45, %v2673_v42  ;;  %v2675_v56 = vpop.f32.mrb[167].mxu0 }
 0x65a   : > { %v2937_v25 = vmul.f32 %v9242_v47, %v2675_v56 }
 0x65b   : > { %v2987_v22 = vpack.c.bf16 %v2936_v55, %v2933_v61  ;;  %v9257_v55 = vld [vmem:[%s14388_s3 + $0xd0] sm:$0xff] }
 0x65c   : > { %v2988_v10 = vpack.c.bf16 %v2937_v25, %v2934_v1 }
 0x65e   : > { %v2679_v3 = vpop.f32.mrb[168].mxu0  ;;  %3219 = vmatprep.mubr.bf16.mxu1 %v2988_v10 }
 0x65f   : > { %v2681_v48 = vpop.f32.mrb[169].mxu0  ;;  %3220 = vmatmul.mubr.bf16.gmra.mrb[168].mxu1 %v2987_v22  ;;  %v2939_v40 = vmul.f32 %v9243_v62, %v2679_v3  ;;  %v9260_v62 = vld [vmem:[%s14388_s3 + $0x178] sm:$0xff] }
 0x660   : > { %v2683_v44 = vpop.f32.mrb[170].mxu0  ;;  %v2940_v46 = vmul.f32 %v9245_v15, %v2681_v48  ;;  %v9259_v48 = vld [vmem:[%s14388_s3 + $0x160] sm:$0xff]  ;;  %v9262_v15 = vld [vmem:[%s14388_s3 + $0x148] sm:$0xff] }
 0x661   : > { %v2942_v19 = vmul.f32 %v9244_v8, %v2683_v44  ;;  %v2685_v52 = vpop.f32.mrb[171].mxu0 }
 0x662   : > { %v2943_v53 = vmul.f32 %v9246_v33, %v2685_v52 }
 0x663   : > { %v2990_v11 = vpack.c.bf16 %v2942_v19, %v2939_v40  ;;  %v9261_v19 = vld [vmem:[%s14388_s3 + $0x130] sm:$0xff] }
 0x664   : > { %v2991_v28 = vpack.c.bf16 %v2943_v53, %v2940_v46 }
 0x666   : > { %3229 = vmatprep.mubr.bf16.mxu1 %v2991_v28 }
 0x667   : > { %3230 = vmatmul.mubr.bf16.gmra.mrb[172].mxu1 %v2990_v11 }
 0x668   : > { %3272 = vmatprep.mubr.bf16.mxu1 %v14727_v27 }
 0x675   : > { %v2390_v54 = vpop.f32.mrb[14].mxu1 }
 0x676   : > { %2395 = vst [vmem:[#allocation2] sm:$0xf] %v2390_v54  ;;  %v2392_v13 = vpop.f32.mrb[15].mxu1 }
 0x677   : > { %2396 = vst [vmem:[#allocation2 + $0x8] sm:$0xf] %v2392_v13  ;;  %v9263_v13 = vld [vmem:[%s14388_s3 + $0x1c0] sm:$0xff] }
 0x679   : > { %v7684_v18 = vpop.f32.mrb[80].mxu1 }
 0x67a   : > { %v2722_v12 = vpop.f32.mrb[81].mxu1  ;;  %v2857_v37 = vmul.f32 %v9247_v7, %v7684_v18 }
 0x67b   : > { %v7685_v58 = vpop.f32.mrb[82].mxu1  ;;  %v2851_v41 = vmul.f32 %v9249_v16, %v2722_v12  ;;  %v9264_v12 = vld [vmem:[%s14388_s3 + $0x1d8] sm:$0xff] }
 0x67c   : > { %v2860_v21 = vmul.f32 %v9248_v0, %v7685_v58  ;;  %v2725_v9 = vpop.f32.mrb[83].mxu1 }
 0x67d   : > { %v2854_v50 = vmul.f32 %v9250_v31, %v2725_v9 }
 0x67e   : > { %v2950_v34 = vpack.c.bf16 %v2860_v21, %v2857_v37  ;;  %v9265_v37 = vld [vmem:[%s14388_s3 + $0x190] sm:$0xff]  ;;  %v9266_v21 = vld [vmem:[%s14388_s3 + $0x1a8] sm:$0xff] }
 0x67f   : > { %v2947_v38 = vpack.c.bf16 %v2854_v50, %v2851_v41 }
 0x681   : > { %v7688_v36 = vpop.f32.mrb[84].mxu1  ;;  %7455 = vmatmul.mubr.msk.bf16.vlgmr.msra.gmra.mrb[112].mxu1 %vm687_vm3, %v2947_v38  ;;  %v9267_v38 = vld [vmem:[%s14388_s3 + $0x220] sm:$0xff] }
 0x682   : > { %v2738_v51 = vpop.f32.mrb[85].mxu1  ;;  %3282 = vmatprep.mubr.bf16.mxu1 %v14727_v27  ;;  %v2869_v57 = vmul.f32 %v9251_v60, %v7688_v36 }
 0x683   : > { %v7689_v17 = vpop.f32.mrb[86].mxu1  ;;  %v2863_v23 = vmul.f32 %v9253_v35, %v2738_v51  ;;  %v9268_v51 = vld [vmem:[%s14388_s3 + $0x238] sm:$0xff] }
 0x684   : > { %v2872_v29 = vmul.f32 %v9252_v43, %v7689_v17  ;;  %v2741_v63 = vpop.f32.mrb[87].mxu1 }
 0x685   : > { %v2866_v24 = vmul.f32 %v9254_v39, %v2741_v63 }
 0x686   : > { %v2956_v32 = vpack.c.bf16 %v2872_v29, %v2869_v57  ;;  %v9269_v57 = vld [vmem:[%s14388_s3 + $0x1f0] sm:$0xff]  ;;  %v9270_v29 = vld [vmem:[%s14388_s3 + $0x208] sm:$0xff] }
 0x687   : > { %v2953_v2 = vpack.c.bf16 %v2866_v24, %v2863_v23 }
 0x689   : > { %v7692_v6 = vpop.f32.mrb[88].mxu1  ;;  %7456 = vmatmul.mubr.msk.bf16.gmra.mrb[116].mxu1 %vm687_vm3, %v2950_v34 }
 0x68a   : > { %v2754_v20 = vpop.f32.mrb[89].mxu1  ;;  %3292 = vmatprep.mubr.bf16.mxu1 %v14727_v27  ;;  %v2881_v42 = vmul.f32 %v9255_v14, %v7692_v6 }
 0x68b   : > { %v7693_v49 = vpop.f32.mrb[90].mxu1  ;;  %v2875_v56 = vmul.f32 %v9257_v55, %v2754_v20  ;;  %v9272_v20 = vld [vmem:[%s14388_s3 + $0x298] sm:$0xff] }
 0x68c   : > { %v2884_v61 = vmul.f32 %v9256_v4, %v7693_v49  ;;  %v2757_v45 = vpop.f32.mrb[91].mxu1 }
 0x68d   : > { %v2878_v1 = vmul.f32 %v9258_v26, %v2757_v45 }
 0x68e   : > { %v2962_v47 = vpack.c.bf16 %v2884_v61, %v2881_v42  ;;  %v9273_v42 = vld [vmem:[%s14388_s3 + $0x250] sm:$0xff]  ;;  %v9274_v61 = vld [vmem:[%s14388_s3 + $0x268] sm:$0xff] }
 0x68f   : > { %v2959_v25 = vpack.c.bf16 %v2878_v1, %v2875_v56 }
 0x691   : > { %v7696_v22 = vpop.f32.mrb[92].mxu1  ;;  %7457 = vmatmul.mubr.msk.bf16.gmra.mrb[120].mxu1 %vm687_vm3, %v2953_v2  ;;  %v9271_v2 = vld [vmem:[%s14388_s3 + $0x280] sm:$0xff] }
 0x692   : > { %v2770_v10 = vpop.f32.mrb[93].mxu1  ;;  %3302 = vmatprep.mubr.bf16.mxu1 %v14727_v27  ;;  %v11579_v44 = vmul.f32 %v9259_v48, %v7696_v22 }
 0x693   : > { %v7697_v3 = vpop.f32.mrb[94].mxu1  ;;  %v2887_v52 = vmul.f32 %v9261_v19, %v2770_v10  ;;  %v9276_v10 = vld [vmem:[%s14388_s3 + $0x2f8] sm:$0xff]  ;;  %v9278_v19 = vld [vmem:[%s14388_s3 + $0x2c8] sm:$0xff] }
 0x694   : > { %v11584_v40 = vmul.f32 %v9260_v62, %v7697_v3  ;;  %v2773_v8 = vpop.f32.mrb[95].mxu1  ;;  %v9277_v62 = vld [vmem:[%s14388_s3 + $0x2b0] sm:$0xff] }
 0x695   : > { %v2890_v46 = vmul.f32 %v9262_v15, %v2773_v8 }
 0x696   : > { %v2968_v33 = vpack.c.bf16 %v11584_v40, %v11579_v44  ;;  %v14801_v44 = vld [vmem:[#allocation30_spill] sm:$0xff] }
 0x697   : > { %v2965_v53 = vpack.c.bf16 %v2890_v46, %v2887_v52 }
 0x699   : > { %v7700_v11 = vpop.f32.mrb[96].mxu1  ;;  %7458 = vmatmul.mubr.msk.bf16.gmra.mrb[124].mxu1 %vm687_vm3, %v2956_v32 }
 0x69a   : > { %v2786_v28 = vpop.f32.mrb[97].mxu1  ;;  %3312 = vmatprep.mubr.bf16.mxu1 %v14727_v27  ;;  %v11599_v18 = vmul.f32 %v9263_v13, %v7700_v11 }
 0x69b   : > { %v7701_v54 = vpop.f32.mrb[98].mxu1  ;;  %v2899_v0 = vmul.f32 %v9265_v37, %v2786_v28 }
 0x69c   : > { %v2908_v58 = vmul.f32 %v9264_v12, %v7701_v54  ;;  %v2789_v7 = vpop.f32.mrb[99].mxu1 }
 0x69d   : > { %v2902_v9 = vmul.f32 %v9266_v21, %v2789_v7 }
 0x69e   : > { %v2974_v16 = vpack.c.bf16 %v2908_v58, %v11599_v18 }
 0x69f   : > { %v2971_v41 = vpack.c.bf16 %v2902_v9, %v2899_v0 }
 0x6a1   : > { %v7704_v31 = vpop.f32.mrb[100].mxu1  ;;  %7459 = vmatmul.mubr.msk.bf16.gmra.mrb[128].mxu1 %vm687_vm3, %v2959_v25  ;;  %v9275_v25 = vld [vmem:[%s14388_s3 + $0x2e0] sm:$0xff] }
 0x6a2   : > { %v2802_v50 = vpop.f32.mrb[101].mxu1  ;;  %3322 = vmatprep.mubr.bf16.mxu1 %v14727_v27  ;;  %v2917_v36 = vmul.f32 %v9267_v38, %v7704_v31 }
 0x6a3   : > { %v7705_v34 = vpop.f32.mrb[102].mxu1  ;;  %v2911_v43 = vmul.f32 %v9269_v57, %v2802_v50 }
 0x6a4   : > { %v2920_v17 = vmul.f32 %v9268_v51, %v7705_v34  ;;  %v2805_v60 = vpop.f32.mrb[103].mxu1 }
 0x6a5   : > { %v2914_v63 = vmul.f32 %v9270_v29, %v2805_v60 }
 0x6a6   : > { %v2980_v35 = vpack.c.bf16 %v2920_v17, %v2917_v36 }
 0x6a7   : > { %v2977_v23 = vpack.c.bf16 %v2914_v63, %v2911_v43 }
 0x6a9   : > { %v7708_v39 = vpop.f32.mrb[104].mxu1  ;;  %7460 = vmatmul.mubr.msk.bf16.gmra.mrb[132].mxu1 %vm687_vm3, %v2962_v47 }
 0x6aa   : > { %v2818_v24 = vpop.f32.mrb[105].mxu1  ;;  %3332 = vmatprep.mubr.bf16.mxu1 %v14727_v27  ;;  %v2929_v6 = vmul.f32 %v9271_v2, %v7708_v39 }
 0x6ab   : > { %v7709_v32 = vpop.f32.mrb[106].mxu1  ;;  %v2923_v4 = vmul.f32 %v9273_v42, %v2818_v24 }
 0x6ac   : > { %v2932_v49 = vmul.f32 %v9272_v20, %v7709_v32  ;;  %v2821_v14 = vpop.f32.mrb[107].mxu1 }
 0x6ad   : > { %v2926_v45 = vmul.f32 %v9274_v61, %v2821_v14 }
 0x6ae   : > { %v2986_v55 = vpack.c.bf16 %v2932_v49, %v2929_v6 }
 0x6af   : > { %v2983_v56 = vpack.c.bf16 %v2926_v45, %v2923_v4 }
 0x6b1   : > { %v7712_v26 = vpop.f32.mrb[108].mxu1  ;;  %7461 = vmatmul.mubr.msk.bf16.gmra.mrb[136].mxu1 %vm687_vm3, %v2965_v53 }
 0x6b2   : > { %v2834_v1 = vpop.f32.mrb[109].mxu1  ;;  %3342 = vmatprep.mubr.bf16.mxu1 %v14727_v27  ;;  %v2941_v22 = vmul.f32 %v9275_v25, %v7712_v26 }
 0x6b3   : > { %v7713_v47 = vpop.f32.mrb[110].mxu1  ;;  %v2935_v8 = vmul.f32 %v9277_v62, %v2834_v1 }
 0x6b4   : > { %v2944_v3 = vmul.f32 %v9276_v10, %v7713_v47  ;;  %v2837_v48 = vpop.f32.mrb[111].mxu1 }
 0x6b5   : > { %v2938_v52 = vmul.f32 %v9278_v19, %v2837_v48 }
 0x6b6   : > { %v2992_v15 = vpack.c.bf16 %v2944_v3, %v2941_v22 }
 0x6b7   : > { %v2989_v46 = vpack.c.bf16 %v2938_v52, %v2935_v8 }
 0x6b9   : > { %7462 = vmatmul.mubr.msk.bf16.gmra.mrb[140].mxu1 %vm687_vm3, %v2968_v33 }
 0x6ba   : > { %3352 = vmatprep.mubr.bf16.mxu1 %v14727_v27 }
 0x6c1   : > { %7463 = vmatmul.mubr.msk.bf16.gmra.mrb[144].mxu1 %vm687_vm3, %v2971_v41 }
 0x6c2   : > { %3362 = vmatprep.mubr.bf16.mxu1 %v14727_v27 }
 0x6c9   : > { %7464 = vmatmul.mubr.msk.bf16.gmra.mrb[148].mxu1 %vm687_vm3, %v2974_v16 }
 0x6ca   : > { %3372 = vmatprep.mubr.bf16.mxu1 %v14727_v27 }
 0x6d1   : > { %7465 = vmatmul.mubr.msk.bf16.gmra.mrb[152].mxu1 %vm687_vm3, %v2977_v23 }
 0x6d2   : > { %3382 = vmatprep.mubr.bf16.mxu1 %v14727_v27 }
 0x6d9   : > { %7466 = vmatmul.mubr.msk.bf16.gmra.mrb[156].mxu1 %vm687_vm3, %v2980_v35 }
 0x6da   : > { %3392 = vmatprep.mubr.bf16.mxu1 %v14727_v27 }
 0x6e1   : > { %7467 = vmatmul.mubr.msk.bf16.gmra.mrb[160].mxu1 %vm687_vm3, %v2983_v56 }
 0x6e2   : > { %3402 = vmatprep.mubr.bf16.mxu1 %v14727_v27 }
 0x6e9   : > { %7468 = vmatmul.mubr.msk.bf16.gmra.mrb[164].mxu1 %vm687_vm3, %v2986_v55 }
 0x6ea   : > { %3412 = vmatprep.mubr.bf16.mxu1 %v14727_v27 }
 0x6f1   : > { %7469 = vmatmul.mubr.msk.bf16.gmra.mrb[168].mxu1 %vm687_vm3, %v2989_v46 }
 0x6f2   : > { %3422 = vmatprep.mubr.bf16.mxu1 %v14727_v27 }
 0x6f9   : > { %7470 = vmatmul.mubr.msk.bf16.gmra.mrb[172].mxu1 %vm687_vm3, %v2992_v15 }
 0x6fa   : > { %5562 = vmatprep.mubr.f32.mxu1 %v14801_v44 }
 0x754   : > { %v11674_v40 = vpop.f32.mrb[112].mxu1 }
 0x755   : > { %v11676_v33 = vpop.f32.mrb[113].mxu1 }
 0x756   : > { %v3433_v53 = vmax.f32 %v11674_v40, %v11676_v33  ;;  %v11680_v11 = vpop.f32.mrb[114].mxu1 }
 0x757   : > { %v11682_v28 = vpop.f32.mrb[115].mxu1 }
 0x758   : > { %v3436_v54 = vmax.f32 %v11680_v11, %v11682_v28  ;;  %3434 = vmax.xlane.f32.xlu0 %v3433_v53 }
 0x75a   : > { %3437 = vmax.xlane.f32.xlu1 %v3436_v54 }
 0x75c   : > { %v11686_v13 = vpop.f32.mrb[116].mxu1 }
 0x75d   : > { %v11688_v18 = vpop.f32.mrb[117].mxu1 }
 0x75e   : > { %v3439_v12 = vmax.f32 %v11686_v13, %v11688_v18  ;;  %v11692_v58 = vpop.f32.mrb[118].mxu1 }
 0x75f   : > { %v11694_v7 = vpop.f32.mrb[119].mxu1 }
 0x760   : > { %v3442_v37 = vmax.f32 %v11692_v58, %v11694_v7  ;;  %3440 = vmax.xlane.f32.xlu0 %v3439_v12 }
 0x764   : > { %3443 = vmax.xlane.f32.xlu0 %v3442_v37  ;;  %v11698_v0 = vpop.f32.mrb[120].mxu1 }
 0x765   : > { %v11700_v21 = vpop.f32.mrb[121].mxu1 }
 0x766   : > { %v3445_v9 = vmax.f32 %v11698_v0, %v11700_v21  ;;  %v11704_v16 = vpop.f32.mrb[122].mxu1 }
 0x767   : > { %v11706_v41 = vpop.f32.mrb[123].mxu1 }
 0x768   : > { %v3448_v31 = vmax.f32 %v11704_v16, %v11706_v41  ;;  %3446 = vmax.xlane.f32.xlu0 %v3445_v9 }
 0x76c   : > { %3449 = vmax.xlane.f32.xlu0 %v3448_v31  ;;  %v11710_v50 = vpop.f32.mrb[124].mxu1 }
 0x76d   : > { %v11712_v34 = vpop.f32.mrb[125].mxu1 }
 0x76e   : > { %v3451_v38 = vmax.f32 %v11710_v50, %v11712_v34  ;;  %v11716_v36 = vpop.f32.mrb[126].mxu1 }
 0x76f   : > { %v11718_v51 = vpop.f32.mrb[127].mxu1 }
 0x770   : > { %v3454_v17 = vmax.f32 %v11716_v36, %v11718_v51  ;;  %3452 = vmax.xlane.f32.xlu0 %v3451_v38 }
 0x774   : > { %3455 = vmax.xlane.f32.xlu0 %v3454_v17  ;;  %v11722_v60 = vpop.f32.mrb[128].mxu1 }
 0x775   : > { %v11724_v57 = vpop.f32.mrb[129].mxu1 }
 0x776   : > { %v3457_v43 = vmax.f32 %v11722_v60, %v11724_v57  ;;  %v11728_v29 = vpop.f32.mrb[130].mxu1 }
 0x777   : > { %v11730_v63 = vpop.f32.mrb[131].mxu1 }
 0x778   : > { %v3460_v35 = vmax.f32 %v11728_v29, %v11730_v63  ;;  %3458 = vmax.xlane.f32.xlu0 %v3457_v43 }
 0x77c   : > { %3461 = vmax.xlane.f32.xlu0 %v3460_v35  ;;  %v11734_v23 = vpop.f32.mrb[132].mxu1 }
 0x77d   : > { %v11736_v39 = vpop.f32.mrb[133].mxu1 }
 0x77e   : > { %v3463_v24 = vmax.f32 %v11734_v23, %v11736_v39  ;;  %v11740_v32 = vpop.f32.mrb[134].mxu1 }
 0x77f   : > { %v11742_v2 = vpop.f32.mrb[135].mxu1 }
 0x780   : > { %v3466_v6 = vmax.f32 %v11740_v32, %v11742_v2  ;;  %3464 = vmax.xlane.f32.xlu0 %v3463_v24 }
 0x782   : > { %3467 = vmax.xlane.f32.xlu1 %v3466_v6 }
 0x784   : > { %v11746_v20 = vpop.f32.mrb[136].mxu1 }
 0x785   : > { %v11748_v49 = vpop.f32.mrb[137].mxu1 }
 0x786   : > { %v3469_v14 = vmax.f32 %v11746_v20, %v11748_v49  ;;  %v11752_v42 = vpop.f32.mrb[138].mxu1 }
 0x787   : > { %v11754_v4 = vpop.f32.mrb[139].mxu1 }
 0x788   : > { %v3472_v61 = vmax.f32 %v11752_v42, %v11754_v4  ;;  %3470 = vmax.xlane.f32.xlu0 %v3469_v14 }
 0x78a   : > { %3473 = vmax.xlane.f32.xlu1 %v3472_v61 }
 0x78c   : > { %v11758_v45 = vpop.f32.mrb[140].mxu1 }
 0x78d   : > { %v11760_v55 = vpop.f32.mrb[141].mxu1 }
 0x78e   : > { %v3475_v56 = vmax.f32 %v11758_v45, %v11760_v55  ;;  %v11764_v26 = vpop.f32.mrb[142].mxu1 }
 0x78f   : > { %v11766_v1 = vpop.f32.mrb[143].mxu1 }
 0x790   : > { %v3478_v47 = vmax.f32 %v11764_v26, %v11766_v1  ;;  %3476 = vmax.xlane.f32.xlu0 %v3475_v56 }
 0x792   : > { %3479 = vmax.xlane.f32.xlu1 %v3478_v47 }
 0x794   : > { %v11770_v25 = vpop.f32.mrb[144].mxu1 }
 0x795   : > { %v11772_v22 = vpop.f32.mrb[145].mxu1 }
 0x796   : > { %v3481_v10 = vmax.f32 %v11770_v25, %v11772_v22  ;;  %v11776_v3 = vpop.f32.mrb[146].mxu1 }
 0x797   : > { %v11778_v48 = vpop.f32.mrb[147].mxu1 }
 0x798   : > { %14802 = vst [vmem:[#allocation46_spill] sm:$0xff] %v11778_v48  ;;  %v3484_v62 = vmax.f32 %v11776_v3, %v11778_v48  ;;  %3482 = vmax.xlane.f32.xlu0 %v3481_v10 }
 0x79a   : > { %3485 = vmax.xlane.f32.xlu1 %v3484_v62 }
 0x79c   : > { %v11782_v8 = vpop.f32.mrb[148].mxu1 }
 0x79d   : > { %14803 = vst [vmem:[#allocation49_spill] sm:$0xff] %v11782_v8  ;;  %v11784_v19 = vpop.f32.mrb[149].mxu1 }
 0x79e   : > { %14804 = vst [vmem:[#allocation50_spill] sm:$0xff] %v11784_v19  ;;  %v3487_v52 = vmax.f32 %v11782_v8, %v11784_v19  ;;  %v11788_v15 = vpop.f32.mrb[150].mxu1 }
 0x79f   : > { %14805 = vst [vmem:[#allocation53_spill] sm:$0xff] %v11788_v15  ;;  %v11790_v46 = vpop.f32.mrb[151].mxu1 }
 0x7a0   : > { %14806 = vst [vmem:[#allocation54_spill] sm:$0xff] %v11790_v46  ;;  %v3490_v53 = vmax.f32 %v11788_v15, %v11790_v46  ;;  %3488 = vmax.xlane.f32.xlu0 %v3487_v52 }
 0x7a2   : > { %3491 = vmax.xlane.f32.xlu1 %v3490_v53 }
 0x7a4   : > { %v11794_v54 = vpop.f32.mrb[152].mxu1 }
 0x7a5   : > { %14807 = vst [vmem:[#allocation55_spill] sm:$0xff] %v11794_v54  ;;  %v11796_v12 = vpop.f32.mrb[153].mxu1 }
 0x7a6   : > { %14808 = vst [vmem:[#allocation56_spill] sm:$0xff] %v11796_v12  ;;  %v3493_v37 = vmax.f32 %v11794_v54, %v11796_v12  ;;  %v11800_v9 = vpop.f32.mrb[154].mxu1 }
 0x7a7   : > { %14809 = vst [vmem:[#allocation90_spill] sm:$0xff] %v11800_v9  ;;  %v11802_v31 = vpop.f32.mrb[155].mxu1 }
 0x7a8   : > { %14810 = vst [vmem:[#allocation89_spill] sm:$0xff] %v11802_v31  ;;  %v3496_v38 = vmax.f32 %v11800_v9, %v11802_v31  ;;  %3494 = vmax.xlane.f32.xlu0 %v3493_v37 }
 0x7aa   : > { %3497 = vmax.xlane.f32.xlu1 %v3496_v38 }
 0x7ac   : > { %v11806_v17 = vpop.f32.mrb[156].mxu1 }
 0x7ad   : > { %14811 = vst [vmem:[#allocation51_spill] sm:$0xff] %v11806_v17  ;;  %v11808_v43 = vpop.f32.mrb[157].mxu1 }
 0x7ae   : > { %14812 = vst [vmem:[#allocation47_spill] sm:$0xff] %v11808_v43  ;;  %v3499_v35 = vmax.f32 %v11806_v17, %v11808_v43  ;;  %v11812_v24 = vpop.f32.mrb[158].mxu1 }
 0x7af   : > { %14813 = vst [vmem:[#allocation40_spill] sm:$0xff] %v11812_v24  ;;  %v11814_v6 = vpop.f32.mrb[159].mxu1 }
 0x7b0   : > { %14814 = vst [vmem:[#allocation43_spill] sm:$0xff] %v11814_v6  ;;  %v3502_v14 = vmax.f32 %v11812_v24, %v11814_v6  ;;  %3500 = vmax.xlane.f32.xlu0 %v3499_v35 }
 0x7b2   : > { %3503 = vmax.xlane.f32.xlu1 %v3502_v14 }
 0x7b4   : > { %v11818_v61 = vpop.f32.mrb[160].mxu1 }
 0x7b5   : > { %v11820_v56 = vpop.f32.mrb[161].mxu1 }
 0x7b6   : > { %v11824_v10 = vpop.f32.mrb[162].mxu1 }
 0x7b7   : > { %v11826_v62 = vpop.f32.mrb[163].mxu1 }
 0x7bc   : > { %v11830_v53 = vpop.f32.mrb[164].mxu1 }
 0x7bd   : > { %v11832_v37 = vpop.f32.mrb[165].mxu1 }
 0x7be   : > { %v11836_v35 = vpop.f32.mrb[166].mxu1 }
 0x7bf   : > { %v11838_v14 = vpop.f32.mrb[167].mxu1 }
 0x7c4   : > { %v11842_v44 = vpop.f32.mrb[168].mxu1 }
 0x7c5   : > { %v11844_v59 = vpop.f32.mrb[169].mxu1 }
 0x7c6   : > { %v11848_v27 = vpop.f32.mrb[170].mxu1 }
 0x7c7   : > { %v11850_v5 = vpop.f32.mrb[171].mxu1 }
 0x7cc   : > { %v11854_v30 = vpop.f32.mrb[172].mxu1 }
 0x7cd   : > { %v11856_v6 = vpop.f32.mrb[173].mxu1 }
 0x7ce   : > { %v11860_v24 = vpop.f32.mrb[174].mxu1 }
 0x7cf   : > { %v11862_v43 = vpop.f32.mrb[175].mxu1 }
 0x7e5   : > { %v3435_v17 = vpop.xlane.xlu0 %3434 }
 0x7e6   : > { %v3529_v31 = vsub.f32 %v11674_v40, %v3435_v17  ;;  %v3530_v9 = vsub.f32 %v11676_v33, %v3435_v17 }
 0x7e7   : > { %v3438_v38 = vpop.xlane.xlu1 %3437 }
 0x7e8   : > { %v3593_v12 = vmul.f32 1.442695, %v3529_v31  ;;  %v3595_v54 = vmul.f32 1.442695, %v3530_v9  ;;  %v3531_v46 = vsub.f32 %v11680_v11, %v3438_v38  ;;  %v3532_v15 = vsub.f32 %v11682_v28, %v3438_v38 }
 0x7ea   : > { %8574 = vpow2.f32 %v3593_v12  ;;  %v3597_v47 = vmul.f32 1.442695, %v3531_v46  ;;  %v3599_v19 = vmul.f32 1.442695, %v3532_v15 }
 0x7eb   : > { %8576 = vpow2.f32 %v3595_v54 }
 0x7ec   : > { %8578 = vpow2.f32 %v3597_v47 }
 0x7ed   : > { %8580 = vpow2.f32 %v3599_v19  ;;  %v3441_v8 = vpop.xlane.xlu0 %3440 }
 0x7ee   : > { %v3533_v52 = vsub.f32 %v11686_v13, %v3441_v8  ;;  %v3534_v40 = vsub.f32 %v11688_v18, %v3441_v8 }
 0x7f0   : > { %v3601_v48 = vmul.f32 1.442695, %v3533_v52  ;;  %v3603_v33 = vmul.f32 1.442695, %v3534_v40 }
 0x7f1   : > { %v3444_v17 = vpop.xlane.xlu0 %3443 }
 0x7f2   : > { %8582 = vpow2.f32 %v3601_v48  ;;  %v3535_v9 = vsub.f32 %v11692_v58, %v3444_v17  ;;  %v3536_v11 = vsub.f32 %v11694_v7, %v3444_v17 }
 0x7f3   : > { %8584 = vpow2.f32 %v3603_v33  ;;  %v14815_v33 = vmax.f32 %v11818_v61, %v11820_v56 }
 0x7f4   : > { %v11874_v28 = vpop.eup %8574  ;;  %v3605_v15 = vmul.f32 1.442695, %v3535_v9  ;;  %v3607_v46 = vmul.f32 1.442695, %v3536_v11 }
 0x7f5   : > { %v11876_v54 = vpop.eup %8576  ;;  %v3447_v19 = vpop.xlane.xlu0 %3446 }
 0x7f6   : > { %v11878_v12 = vpop.eup %8578  ;;  %8586 = vpow2.f32 %v3605_v15  ;;  %v3537_v13 = vsub.f32 %v11698_v0, %v3447_v19  ;;  %v3538_v18 = vsub.f32 %v11700_v21, %v3447_v19  ;;  %v3721_v58 = vadd.f32 %v11876_v54, %v11874_v28 }
 0x7f7   : > { %v11884_v48 = vpop.eup %8580  ;;  %8588 = vpow2.f32 %v3607_v46 }
 0x7f8   : > { %v3609_v7 = vmul.f32 1.442695, %v3537_v13  ;;  %v3611_v8 = vmul.f32 1.442695, %v3538_v18  ;;  %3722 = vadd.xlane.f32.xlu0 %v3721_v58  ;;  %v3724_v31 = vadd.f32 %v11884_v48, %v11878_v12 }
 0x7f9   : > { %v3450_v47 = vpop.xlane.xlu0 %3449 }
 0x7fa   : > { %8590 = vpow2.f32 %v3609_v7  ;;  %v3539_v52 = vsub.f32 %v11704_v16, %v3450_v47  ;;  %v3540_v0 = vsub.f32 %v11706_v41, %v3450_v47  ;;  %3725 = vadd.xlane.f32.xlu1 %v3724_v31  ;;  %v14816_v41 = vmax.f32 %v11824_v10, %v11826_v62 }
 0x7fb   : > { %8592 = vpow2.f32 %v3611_v8 }
 0x7fc   : > { %v11890_v21 = vpop.eup %8582  ;;  %v3613_v38 = vmul.f32 1.442695, %v3539_v52  ;;  %v3615_v40 = vmul.f32 1.442695, %v3540_v0  ;;  %3506 = vmax.xlane.f32.xlu0 %v14815_v33  ;;  %v14817_v52 = vmax.f32 %v11830_v53, %v11832_v37 }
 0x7fd   : > { %v11895_v17 = vpop.eup %8584  ;;  %v3453_v9 = vpop.xlane.xlu0 %3452 }
 0x7fe   : > { %8594 = vpow2.f32 %v3613_v38  ;;  %v3541_v11 = vsub.f32 %v11710_v50, %v3453_v9  ;;  %v3542_v16 = vsub.f32 %v11712_v34, %v3453_v9  ;;  %3509 = vmax.xlane.f32.xlu1 %v14816_v41  ;;  %v3727_v15 = vadd.f32 %v11895_v17, %v11890_v21 }
 0x7ff   : > { %8596 = vpow2.f32 %v3615_v40 }
 0x800   : > { %v11904_v46 = vpop.eup %8586  ;;  %v3617_v19 = vmul.f32 1.442695, %v3541_v11  ;;  %v3619_v13 = vmul.f32 1.442695, %v3542_v16  ;;  %3728 = vadd.xlane.f32.xlu0 %v3727_v15  ;;  %v14818_v16 = vmax.f32 %v11836_v35, %v11838_v14 }
 0x801   : > { %v11906_v18 = vpop.eup %8588  ;;  %v3456_v58 = vpop.xlane.xlu0 %3455 }
 0x802   : > { %8598 = vpow2.f32 %v3617_v19  ;;  %v3543_v50 = vsub.f32 %v11716_v36, %v3456_v58  ;;  %v3544_v34 = vsub.f32 %v11718_v51, %v3456_v58  ;;  %v3730_v7 = vadd.f32 %v11906_v18, %v11904_v46 }
 0x803   : > { %8600 = vpow2.f32 %v3619_v13 }
 0x804   : > { %v11912_v8 = vpop.eup %8590  ;;  %v3621_v31 = vmul.f32 1.442695, %v3543_v50  ;;  %v3623_v47 = vmul.f32 1.442695, %v3544_v34  ;;  %3731 = vadd.xlane.f32.xlu1 %v3730_v7  ;;  %3512 = vmax.xlane.f32.xlu0 %v14817_v52  ;;  %v14819_v34 = vmax.f32 %v11842_v44, %v11844_v59 }
 0x805   : > { %v11917_v0 = vpop.eup %8592  ;;  %v3459_v38 = vpop.xlane.xlu0 %3458 }
 0x806   : > { %8602 = vpow2.f32 %v3621_v31  ;;  %v3545_v36 = vsub.f32 %v11722_v60, %v3459_v38  ;;  %v3546_v51 = vsub.f32 %v11724_v57, %v3459_v38  ;;  %v3733_v40 = vadd.f32 %v11917_v0, %v11912_v8 }
 0x807   : > { %8604 = vpow2.f32 %v3623_v47 }
 0x808   : > { %v11923_v33 = vpop.eup %8594  ;;  %v3625_v9 = vmul.f32 1.442695, %v3545_v36  ;;  %v3627_v11 = vmul.f32 1.442695, %v3546_v51  ;;  %3734 = vadd.xlane.f32.xlu0 %v3733_v40  ;;  %3515 = vmax.xlane.f32.xlu1 %v14818_v16 }
 0x809   : > { %v11928_v41 = vpop.eup %8596  ;;  %v3462_v15 = vpop.xlane.xlu0 %3461 }
 0x80a   : > { %8606 = vpow2.f32 %v3625_v9  ;;  %v3547_v60 = vsub.f32 %v11728_v29, %v3462_v15  ;;  %v3548_v57 = vsub.f32 %v11730_v63, %v3462_v15  ;;  %v3736_v19 = vadd.f32 %v11928_v41, %v11923_v33 }
 0x80b   : > { %8608 = vpow2.f32 %v3627_v11  ;;  %v14820_v11 = vmax.f32 %v11848_v27, %v11850_v5 }
 0x80c   : > { %v11934_v13 = vpop.eup %8598  ;;  %v3629_v58 = vmul.f32 1.442695, %v3547_v60  ;;  %v3631_v50 = vmul.f32 1.442695, %v3548_v57  ;;  %3737 = vadd.xlane.f32.xlu1 %v3736_v19  ;;  %3518 = vmax.xlane.f32.xlu0 %v14819_v34 }
 0x80d   : > { %v11939_v7 = vpop.eup %8600  ;;  %v3465_v31 = vpop.xlane.xlu0 %3464 }
 0x80e   : > { %8610 = vpow2.f32 %v3629_v58  ;;  %v3549_v29 = vsub.f32 %v11734_v23, %v3465_v31  ;;  %v3550_v63 = vsub.f32 %v11736_v39, %v3465_v31  ;;  %v3739_v47 = vadd.f32 %v11939_v7, %v11934_v13 }
 0x80f   : > { %8612 = vpow2.f32 %v3631_v50  ;;  %v3468_v52 = vpop.xlane.xlu1 %3467 }
 0x810   : > { %v11945_v38 = vpop.eup %8602  ;;  %v3633_v36 = vmul.f32 1.442695, %v3549_v29  ;;  %v3635_v51 = vmul.f32 1.442695, %v3550_v63  ;;  %v3551_v40 = vsub.f32 %v11740_v32, %v3468_v52  ;;  %v3552_v9 = vsub.f32 %v11742_v2, %v3468_v52  ;;  %3740 = vadd.xlane.f32.xlu0 %v3739_v47  ;;  %3521 = vmax.xlane.f32.xlu1 %v14820_v11 }
 0x811   : > { %v11952_v23 = vpop.eup %8604  ;;  %v14821_v32 = vmax.f32 %v11854_v30, %v11856_v6 }
 0x812   : > { %8614 = vpow2.f32 %v3633_v36  ;;  %v3637_v39 = vmul.f32 1.442695, %v3551_v40  ;;  %v3639_v16 = vmul.f32 1.442695, %v3552_v9  ;;  %v3742_v15 = vadd.f32 %v11952_v23, %v11945_v38 }
 0x813   : > { %8616 = vpow2.f32 %v3635_v51  ;;  %v14822_v36 = vmax.f32 %v11860_v24, %v11862_v43 }
 0x814   : > { %v11956_v60 = vpop.eup %8606  ;;  %8618 = vpow2.f32 %v3637_v39  ;;  %3743 = vadd.xlane.f32.xlu1 %v3742_v15  ;;  %3524 = vmax.xlane.f32.xlu0 %v14821_v32 }
 0x815   : > { %v11961_v2 = vpop.eup %8608  ;;  %8620 = vpow2.f32 %v3639_v16  ;;  %v3471_v57 = vpop.xlane.xlu0 %3470 }
 0x816   : > { %v3553_v19 = vsub.f32 %v11746_v20, %v3471_v57  ;;  %v3554_v58 = vsub.f32 %v11748_v49, %v3471_v57  ;;  %v3745_v50 = vadd.f32 %v11961_v2, %v11956_v60 }
 0x817   : > { %v3474_v34 = vpop.xlane.xlu1 %3473 }
 0x818   : > { %v11967_v31 = vpop.eup %8610  ;;  %v3641_v29 = vmul.f32 1.442695, %v3553_v19  ;;  %v3643_v63 = vmul.f32 1.442695, %v3554_v58  ;;  %v3555_v47 = vsub.f32 %v11752_v42, %v3474_v34  ;;  %v3556_v52 = vsub.f32 %v11754_v4, %v3474_v34  ;;  %3746 = vadd.xlane.f32.xlu0 %v3745_v50  ;;  %3527 = vmax.xlane.f32.xlu1 %v14822_v36 }
 0x819   : > { %v11974_v20 = vpop.eup %8612 }
 0x81a   : > { %8622 = vpow2.f32 %v3641_v29  ;;  %v3645_v49 = vmul.f32 1.442695, %v3555_v47  ;;  %v3647_v51 = vmul.f32 1.442695, %v3556_v52  ;;  %v3748_v40 = vadd.f32 %v11974_v20, %v11967_v31 }
 0x81b   : > { %8624 = vpow2.f32 %v3643_v63 }
 0x81c   : > { %v11978_v9 = vpop.eup %8614  ;;  %8626 = vpow2.f32 %v3645_v49  ;;  %3749 = vadd.xlane.f32.xlu1 %v3748_v40 }
 0x81d   : > { %v11980_v42 = vpop.eup %8616  ;;  %8628 = vpow2.f32 %v3647_v51  ;;  %v3477_v4 = vpop.xlane.xlu0 %3476 }
 0x81e   : > { %v11982_v11 = vpop.eup %8618  ;;  %v3557_v39 = vsub.f32 %v11758_v45, %v3477_v4  ;;  %v3558_v16 = vsub.f32 %v11760_v55, %v3477_v4  ;;  %v3751_v15 = vadd.f32 %v11980_v42, %v11978_v9 }
 0x81f   : > { %v11988_v32 = vpop.eup %8620  ;;  %v3480_v57 = vpop.xlane.xlu1 %3479 }
 0x820   : > { %v3649_v19 = vmul.f32 1.442695, %v3557_v39  ;;  %v3651_v58 = vmul.f32 1.442695, %v3558_v16  ;;  %v3559_v50 = vsub.f32 %v11764_v26, %v3480_v57  ;;  %v3560_v34 = vsub.f32 %v11766_v1, %v3480_v57  ;;  %3752 = vadd.xlane.f32.xlu0 %v3751_v15  ;;  %v14823_v15 = vld [vmem:[#allocation46_spill] sm:$0xff] }
 0x821   : > { %v3754_v29 = vadd.f32 %v11988_v32, %v11982_v11 }
 0x822   : > { %8630 = vpow2.f32 %v3649_v19  ;;  %v3653_v45 = vmul.f32 1.442695, %v3559_v50  ;;  %v3655_v63 = vmul.f32 1.442695, %v3560_v34 }
 0x823   : > { %8632 = vpow2.f32 %v3651_v58  ;;  %3755 = vadd.xlane.f32.xlu1 %v3754_v29 }
 0x824   : > { %v11994_v55 = vpop.eup %8622  ;;  %8634 = vpow2.f32 %v3653_v45 }
 0x825   : > { %v11996_v47 = vpop.eup %8624  ;;  %8636 = vpow2.f32 %v3655_v63  ;;  %v3483_v52 = vpop.xlane.xlu0 %3482  ;;  %v14827_v63 = vld [vmem:[#allocation50_spill] sm:$0xff] }
 0x826   : > { %v11998_v36 = vpop.eup %8626  ;;  %v3561_v26 = vsub.f32 %v11770_v25, %v3483_v52  ;;  %v3562_v1 = vsub.f32 %v11772_v22, %v3483_v52  ;;  %v3757_v49 = vadd.f32 %v11996_v47, %v11994_v55 }
 0x827   : > { %v12004_v51 = vpop.eup %8628  ;;  %v3486_v40 = vpop.xlane.xlu1 %3485 }
 0x828   : > { %v3657_v4 = vmul.f32 1.442695, %v3561_v26  ;;  %v3659_v39 = vmul.f32 1.442695, %v3562_v1  ;;  %v3563_v16 = vsub.f32 %v11776_v3, %v3486_v40  ;;  %v3564_v57 = vsub.f32 %v14823_v15, %v3486_v40  ;;  %3758 = vadd.xlane.f32.xlu0 %v3757_v49  ;;  %v14826_v3 = vld [vmem:[#allocation49_spill] sm:$0xff]  ;;  %v14830_v15 = vld [vmem:[#allocation54_spill] sm:$0xff] }
 0x829   : > { %v3760_v19 = vadd.f32 %v12004_v51, %v11998_v36 }
 0x82a   : > { %8638 = vpow2.f32 %v3657_v4  ;;  %v3661_v25 = vmul.f32 1.442695, %v3563_v16  ;;  %v3663_v58 = vmul.f32 1.442695, %v3564_v57 }
 0x82b   : > { %8640 = vpow2.f32 %v3659_v39  ;;  %3761 = vadd.xlane.f32.xlu1 %v3760_v19  ;;  %v14829_v39 = vld [vmem:[#allocation53_spill] sm:$0xff] }
 0x82c   : > { %v12010_v22 = vpop.eup %8630  ;;  %8642 = vpow2.f32 %v3661_v25 }
 0x82d   : > { %14824 = vst [vmem:[#allocation44_spill] sm:$0xff] %v12010_v22  ;;  %v12012_v50 = vpop.eup %8632  ;;  %8644 = vpow2.f32 %v3663_v58  ;;  %v3489_v34 = vpop.xlane.xlu0 %3488 }
 0x82e   : > { %v12014_v29 = vpop.eup %8634  ;;  %v3565_v45 = vsub.f32 %v14826_v3, %v3489_v34  ;;  %v3566_v52 = vsub.f32 %v14827_v63, %v3489_v34  ;;  %v3763_v26 = vadd.f32 %v12012_v50, %v12010_v22  ;;  %v14838_v22 = vld [vmem:[#allocation89_spill] sm:$0xff] }
 0x82f   : > { %14825 = vst [vmem:[#allocation48_spill] sm:$0xff] %v12014_v29  ;;  %v12020_v1 = vpop.eup %8636  ;;  %v3492_v49 = vpop.xlane.xlu1 %3491 }
 0x830   : > { %14828 = vst [vmem:[#allocation42_spill] sm:$0xff] %v12020_v1  ;;  %v3665_v40 = vmul.f32 1.442695, %v3565_v45  ;;  %v3667_v4 = vmul.f32 1.442695, %v3566_v52  ;;  %v3567_v16 = vsub.f32 %v14829_v39, %v3492_v49  ;;  %v3568_v57 = vsub.f32 %v14830_v15, %v3492_v49  ;;  %3764 = vadd.xlane.f32.xlu0 %v3763_v26  ;;  %v14834_v52 = vld [vmem:[#allocation55_spill] sm:$0xff] }
 0x831   : > { %v3766_v19 = vadd.f32 %v12020_v1, %v12014_v29  ;;  %v14835_v26 = vld [vmem:[#allocation56_spill] sm:$0xff] }
 0x832   : > { %8646 = vpow2.f32 %v3665_v40  ;;  %v3669_v25 = vmul.f32 1.442695, %v3567_v16  ;;  %v3671_v58 = vmul.f32 1.442695, %v3568_v57 }
 0x833   : > { %8648 = vpow2.f32 %v3667_v4  ;;  %3767 = vadd.xlane.f32.xlu1 %v3766_v19  ;;  %v14837_v19 = vld [vmem:[#allocation90_spill] sm:$0xff] }
 0x834   : > { %v12026_v34 = vpop.eup %8638  ;;  %8650 = vpow2.f32 %v3669_v25 }
 0x835   : > { %14831 = vst [vmem:[#allocation22_spill] sm:$0xff] %v12026_v34  ;;  %v12028_v3 = vpop.eup %8640  ;;  %8652 = vpow2.f32 %v3671_v58  ;;  %v3495_v45 = vpop.xlane.xlu0 %3494 }
 0x836   : > { %14832 = vst [vmem:[#allocation52_spill] sm:$0xff] %v12028_v3  ;;  %v12030_v63 = vpop.eup %8642  ;;  %v3569_v49 = vsub.f32 %v14834_v52, %v3495_v45  ;;  %v3570_v39 = vsub.f32 %v14835_v26, %v3495_v45  ;;  %v3769_v40 = vadd.f32 %v12028_v3, %v12026_v34  ;;  %v14841_v34 = vld [vmem:[#allocation40_spill] sm:$0xff] }
 0x837   : > { %14833 = vst [vmem:[#allocation41_spill] sm:$0xff] %v12030_v63  ;;  %v12036_v16 = vpop.eup %8644  ;;  %v3498_v4 = vpop.xlane.xlu1 %3497 }
 0x838   : > { %14836 = vst [vmem:[#allocation45_spill] sm:$0xff] %v12036_v16  ;;  %v3673_v15 = vmul.f32 1.442695, %v3569_v49  ;;  %v3675_v57 = vmul.f32 1.442695, %v3570_v39  ;;  %v3571_v25 = vsub.f32 %v14837_v19, %v3498_v4  ;;  %v3572_v29 = vsub.f32 %v14838_v22, %v3498_v4  ;;  %3770 = vadd.xlane.f32.xlu0 %v3769_v40  ;;  %v14839_v19 = vld [vmem:[#allocation51_spill] sm:$0xff] }
 0x839   : > { %v3772_v58 = vadd.f32 %v12036_v16, %v12030_v63  ;;  %v14840_v40 = vld [vmem:[#allocation47_spill] sm:$0xff] }
 0x83a   : > { %8654 = vpow2.f32 %v3673_v15  ;;  %v3677_v52 = vmul.f32 1.442695, %v3571_v25  ;;  %v3679_v1 = vmul.f32 1.442695, %v3572_v29  ;;  %v14842_v63 = vld [vmem:[#allocation43_spill] sm:$0xff] }
 0x83b   : > { %8656 = vpow2.f32 %v3675_v57  ;;  %3773 = vadd.xlane.f32.xlu1 %v3772_v58 }
 0x83c   : > { %v12042_v45 = vpop.eup %8646  ;;  %8658 = vpow2.f32 %v3677_v52 }
 0x83d   : > { %v12044_v26 = vpop.eup %8648  ;;  %8660 = vpow2.f32 %v3679_v1  ;;  %v3501_v49 = vpop.xlane.xlu0 %3500 }
 0x83e   : > { %v12046_v39 = vpop.eup %8650  ;;  %v3573_v22 = vsub.f32 %v14839_v19, %v3501_v49  ;;  %v3574_v4 = vsub.f32 %v14840_v40, %v3501_v49  ;;  %v3775_v15 = vadd.f32 %v12044_v26, %v12042_v45 }
 0x83f   : > { %v12052_v25 = vpop.eup %8652  ;;  %v3504_v29 = vpop.xlane.xlu1 %3503 }
 0x840   : > { %v3681_v57 = vmul.f32 1.442695, %v3573_v22  ;;  %v3683_v58 = vmul.f32 1.442695, %v3574_v4  ;;  %v3575_v52 = vsub.f32 %v14841_v34, %v3504_v29  ;;  %v3576_v16 = vsub.f32 %v14842_v63, %v3504_v29  ;;  %3776 = vadd.xlane.f32.xlu0 %v3775_v15 }
 0x841   : > { %v3778_v1 = vadd.f32 %v12052_v25, %v12046_v39 }
 0x842   : > { %8662 = vpow2.f32 %v3681_v57  ;;  %v3685_v19 = vmul.f32 1.442695, %v3575_v52  ;;  %v3687_v3 = vmul.f32 1.442695, %v3576_v16 }
 0x843   : > { %8664 = vpow2.f32 %v3683_v58  ;;  %3779 = vadd.xlane.f32.xlu1 %v3778_v1 }
 0x844   : > { %v12058_v49 = vpop.eup %8654  ;;  %8666 = vpow2.f32 %v3685_v19 }
 0x845   : > { %14843 = vst [vmem:[#allocation32_spill] sm:$0xff] %v12058_v49  ;;  %v12060_v40 = vpop.eup %8656  ;;  %8668 = vpow2.f32 %v3687_v3 }
 0x846   : > { %v12062_v22 = vpop.eup %8658  ;;  %v3781_v34 = vadd.f32 %v12060_v40, %v12058_v49 }
 0x847   : > { %14844 = vst [vmem:[#allocation33_spill] sm:$0xff] %v12062_v22  ;;  %v12066_v63 = vpop.eup %8660 }
 0x848   : > { %14845 = vst [vmem:[#allocation34_spill] sm:$0xff] %v12066_v63  ;;  %3782 = vadd.xlane.f32.xlu0 %v3781_v34  ;;  %v3784_v4 = vadd.f32 %v12066_v63, %v12062_v22 }
 0x84a   : > { %3785 = vadd.xlane.f32.xlu1 %v3784_v4 }
 0x84c   : > { %v12070_v16 = vpop.eup %8662 }
 0x84d   : > { %14846 = vst [vmem:[#allocation35_spill] sm:$0xff] %v12070_v16  ;;  %v12072_v15 = vpop.eup %8664 }
 0x84e   : > { %14847 = vst [vmem:[#allocation36_spill] sm:$0xff] %v12072_v15  ;;  %v12074_v29 = vpop.eup %8666  ;;  %v3787_v3 = vadd.f32 %v12072_v15, %v12070_v16 }
 0x84f   : > { %14848 = vst [vmem:[#allocation37_spill] sm:$0xff] %v12074_v29  ;;  %v12078_v57 = vpop.eup %8668 }
 0x850   : > { %14849 = vst [vmem:[#allocation38_spill] sm:$0xff] %v12078_v57  ;;  %3788 = vadd.xlane.f32.xlu0 %v3787_v3  ;;  %v3790_v58 = vadd.f32 %v12078_v57, %v12074_v29 }
 0x852   : > { %3791 = vadd.xlane.f32.xlu1 %v3790_v58 }
 0x885   : > { %v3723_v52 = vpop.xlane.xlu0 %3722 }
 0x886   : > { %8670 = vrcp.f32 %v3723_v52 }
 0x887   : > { %v3726_v1 = vpop.xlane.xlu1 %3725 }
 0x888   : > { %8672 = vrcp.f32 %v3726_v1 }
 0x889   : > { %v3507_v19 = vpop.xlane.xlu0 %3506 }
 0x88a   : > { %v3577_v34 = vsub.f32 %v11818_v61, %v3507_v19  ;;  %v3578_v4 = vsub.f32 %v11820_v56, %v3507_v19 }
 0x88b   : > { %v3510_v49 = vpop.xlane.xlu1 %3509 }
 0x88c   : > { %v3689_v22 = vmul.f32 1.442695, %v3577_v34  ;;  %v3691_v63 = vmul.f32 1.442695, %v3578_v4  ;;  %v3579_v16 = vsub.f32 %v11824_v10, %v3510_v49  ;;  %v3580_v3 = vsub.f32 %v11826_v62, %v3510_v49 }
 0x88d   : > { %v3729_v15 = vpop.xlane.xlu0 %3728 }
 0x88e   : > { %8674 = vpow2.f32 %v3689_v22  ;;  %v3693_v29 = vmul.f32 1.442695, %v3579_v16  ;;  %v3695_v58 = vmul.f32 1.442695, %v3580_v3 }
 0x88f   : > { %8676 = vpow2.f32 %v3691_v63 }
 0x890   : > { %v8671_v52 = vpop.eup %8670  ;;  %8678 = vpow2.f32 %v3693_v29 }
 0x891   : > { %8680 = vpow2.f32 %v3695_v58  ;;  %v3732_v1 = vpop.xlane.xlu1 %3731  ;;  %v3513_v57 = vpop.xlane.xlu0 %3512  ;;  %v3850_v10 = vmul.f32 %v8671_v52, %v11876_v54  ;;  %v3849_v49 = vmul.f32 %v8671_v52, %v11874_v28 }
 0x892   : > { %v8673_v61 = vpop.eup %8672  ;;  %8682 = vrcp.f32 %v3729_v15  ;;  %v3581_v56 = vsub.f32 %v11830_v53, %v3513_v57  ;;  %v3582_v19 = vsub.f32 %v11832_v37, %v3513_v57 }
 0x893   : > { %8684 = vrcp.f32 %v3732_v1  ;;  %v3852_v62 = vmul.f32 %v8673_v61, %v11884_v48  ;;  %v3851_v22 = vmul.f32 %v8673_v61, %v11878_v12 }
 0x894   : > { %v3697_v63 = vmul.f32 1.442695, %v3581_v56  ;;  %v3699_v16 = vmul.f32 1.442695, %v3582_v19 }
 0x895   : > { %v3735_v29 = vpop.xlane.xlu0 %3734  ;;  %v3516_v34 = vpop.xlane.xlu1 %3515  ;;  %v7854_v4 = vpack.c.bf16 %v3852_v62, %v3850_v10  ;;  %v7856_v3 = vpack.c.bf16 %v3851_v22, %v3849_v49 }
 0x896   : > { %8686 = vpow2.f32 %v3697_v63  ;;  %v3583_v53 = vsub.f32 %v11836_v35, %v3516_v34  ;;  %v3584_v37 = vsub.f32 %v11838_v14, %v3516_v34 }
 0x897   : > { %8688 = vpow2.f32 %v3699_v16  ;;  %7855 = vmatprep.subr.bf16.mxu0 %v7854_v4 }
 0x898   : > { %v12094_v54 = vpop.eup %8674  ;;  %8690 = vrcp.f32 %v3735_v29  ;;  %v3701_v48 = vmul.f32 1.442695, %v3583_v53  ;;  %v3703_v28 = vmul.f32 1.442695, %v3584_v37  ;;  %7857 = vmatpush1.bf16.xpose.msra.mxu0 %v7856_v3 }
 0x899   : > { %v12096_v12 = vpop.eup %8676  ;;  %v3738_v15 = vpop.xlane.xlu1 %3737 }
 0x89a   : > { %v3519_v57 = vpop.xlane.xlu0 %3518  ;;  %v12098_v58 = vpop.eup %8678  ;;  %8692 = vpow2.f32 %v3701_v48  ;;  %v3793_v14 = vadd.f32 %v12096_v12, %v12094_v54 }
 0x89b   : > { %v3585_v52 = vsub.f32 %v11842_v44, %v3519_v57  ;;  %v3586_v35 = vsub.f32 %v11844_v59, %v3519_v57  ;;  %v12104_v1 = vpop.eup %8680  ;;  %8694 = vpow2.f32 %v3703_v28 }
 0x89c   : > { %v8683_v61 = vpop.eup %8682  ;;  %8696 = vrcp.f32 %v3738_v15  ;;  %3794 = vadd.xlane.f32.xlu0 %v3793_v14  ;;  %v3796_v10 = vadd.f32 %v12104_v1, %v12098_v58 }
 0x89d   : > { %v3705_v56 = vmul.f32 1.442695, %v3585_v52  ;;  %v3707_v19 = vmul.f32 1.442695, %v3586_v35  ;;  %v8685_v62 = vpop.eup %8684  ;;  %v3522_v22 = vpop.xlane.xlu1 %3521  ;;  %v3854_v44 = vmul.f32 %v8683_v61, %v11895_v17  ;;  %v3853_v29 = vmul.f32 %v8683_v61, %v11890_v21 }
 0x89e   : > { %v3741_v49 = vpop.xlane.xlu0 %3740  ;;  %v3587_v59 = vsub.f32 %v11848_v27, %v3522_v22  ;;  %v3588_v63 = vsub.f32 %v11850_v5, %v3522_v22  ;;  %3797 = vadd.xlane.f32.xlu1 %v3796_v10  ;;  %v3856_v16 = vmul.f32 %v8685_v62, %v11906_v18  ;;  %v3855_v34 = vmul.f32 %v8685_v62, %v11904_v46 }
 0x89f   : > { %8698 = vpow2.f32 %v3705_v56 }
 0x8a0   : > { %8700 = vpow2.f32 %v3707_v19  ;;  %v12114_v4 = vpop.eup %8686  ;;  %v3709_v3 = vmul.f32 1.442695, %v3587_v59  ;;  %v3711_v53 = vmul.f32 1.442695, %v3588_v63  ;;  %v7858_v37 = vpack.c.bf16 %v3856_v16, %v3854_v44 }
 0x8a1   : > { %v12116_v48 = vpop.eup %8688  ;;  %8702 = vrcp.f32 %v3741_v49  ;;  %v3744_v17 = vpop.xlane.xlu1 %3743  ;;  %v7860_v28 = vpack.c.bf16 %v3855_v34, %v3853_v29 }
 0x8a2   : > { %v3525_v27 = vpop.xlane.xlu0 %3524  ;;  %v8691_v5 = vpop.eup %8690  ;;  %8704 = vpow2.f32 %v3709_v3  ;;  %7859 = vmatprep.subr.bf16.mxu0 %v7858_v37  ;;  %v3799_v46 = vadd.f32 %v12116_v48, %v12114_v4 }
 0x8a3   : > { %v3589_v18 = vsub.f32 %v11854_v30, %v3525_v27  ;;  %v3590_v21 = vsub.f32 %v11856_v6, %v3525_v27  ;;  %8706 = vpow2.f32 %v3711_v53  ;;  %7861 = vmatpush1.bf16.xpose.msra.mxu0 %v7860_v28  ;;  %v3858_v61 = vmul.f32 %v8691_v5, %v11917_v0 }
 0x8a4   : > { %v12122_v15 = vpop.eup %8692  ;;  %8708 = vrcp.f32 %v3744_v17  ;;  %3800 = vadd.xlane.f32.xlu0 %v3799_v46  ;;  %v3857_v49 = vmul.f32 %v8691_v5, %v11912_v8 }
 0x8a5   : > { %v3713_v57 = vmul.f32 1.442695, %v3589_v18  ;;  %v3715_v52 = vmul.f32 1.442695, %v3590_v21  ;;  %v12124_v35 = vpop.eup %8694  ;;  %v3528_v14 = vpop.xlane.xlu1 %3527 }
 0x8a6   : > { %v8697_v56 = vpop.eup %8696  ;;  %v3747_v30 = vpop.xlane.xlu0 %3746  ;;  %v3591_v6 = vsub.f32 %v11860_v24, %v3528_v14  ;;  %v3592_v19 = vsub.f32 %v11862_v43, %v3528_v14  ;;  %v3802_v10 = vadd.f32 %v12124_v35, %v12122_v15 }
 0x8a7   : > { %8710 = vpow2.f32 %v3713_v57  ;;  %v3860_v62 = vmul.f32 %v8697_v56, %v11928_v41  ;;  %v3859_v22 = vmul.f32 %v8697_v56, %v11923_v33 }
 0x8a8   : > { %8712 = vpow2.f32 %v3715_v52  ;;  %v3717_v0 = vmul.f32 1.442695, %v3591_v6  ;;  %v3719_v59 = vmul.f32 1.442695, %v3592_v19  ;;  %3803 = vadd.xlane.f32.xlu1 %v3802_v10 }
 0x8a9   : > { %v12134_v44 = vpop.eup %8698  ;;  %8714 = vrcp.f32 %v3747_v30  ;;  %v7862_v24 = vpack.c.bf16 %v3860_v62, %v3858_v61  ;;  %v3750_v43 = vpop.xlane.xlu1 %3749  ;;  %v7864_v16 = vpack.c.bf16 %v3859_v22, %v3857_v49 }
 0x8aa   : > { %v12136_v63 = vpop.eup %8700  ;;  %8716 = vpow2.f32 %v3717_v0 }
 0x8ab   : > { %v3805_v29 = vadd.f32 %v12136_v63, %v12134_v44  ;;  %v8703_v41 = vpop.eup %8702  ;;  %8718 = vpow2.f32 %v3719_v59  ;;  %7863 = vmatprep.subr.bf16.mxu0 %v7862_v24 }
 0x8ac   : > { %v12140_v8 = vpop.eup %8704  ;;  %8720 = vrcp.f32 %v3750_v43  ;;  %7865 = vmatpush1.bf16.xpose.msra.mxu0 %v7864_v16  ;;  %v3862_v37 = vmul.f32 %v8703_v41, %v11939_v7  ;;  %v3861_v27 = vmul.f32 %v8703_v41, %v11934_v13 }
 0x8ad   : > { %3806 = vadd.xlane.f32.xlu0 %v3805_v29  ;;  %v12142_v33 = vpop.eup %8706  ;;  %v3753_v34 = vpop.xlane.xlu0 %3752 }
 0x8ae   : > { %v8709_v3 = vpop.eup %8708  ;;  %v3808_v53 = vadd.f32 %v12142_v33, %v12140_v8  ;;  %8722 = vrcp.f32 %v3753_v34 }
 0x8af   : > { %v3864_v17 = vmul.f32 %v8709_v3, %v11952_v23  ;;  %v3863_v28 = vmul.f32 %v8709_v3, %v11945_v38 }
 0x8b0   : > { %3809 = vadd.xlane.f32.xlu1 %v3808_v53  ;;  %v3756_v18 = vpop.xlane.xlu1 %3755 }
 0x8b1   : > { %v12150_v5 = vpop.eup %8710  ;;  %8724 = vrcp.f32 %v3756_v18  ;;  %v7866_v46 = vpack.c.bf16 %v3864_v17, %v3862_v37  ;;  %v7868_v57 = vpack.c.bf16 %v3863_v28, %v3861_v27  ;;  %v14851_v27 = vld [vmem:[#allocation6_spill] sm:$0xff] }
 0x8b2   : > { %v12152_v21 = vpop.eup %8712 }
 0x8b3   : > { %v3811_v52 = vadd.f32 %v12152_v21, %v12150_v5  ;;  %v8715_v7 = vpop.eup %8714  ;;  %7867 = vmatprep.subr.bf16.mxu0 %v7866_v46  ;;  %v14853_v46 = vld [vmem:[#allocation8_spill] sm:$0xff] }
 0x8b4   : > { %v12156_v14 = vpop.eup %8716  ;;  %7869 = vmatpush1.bf16.xpose.msra.mxu0 %v7868_v57  ;;  %v3866_v56 = vmul.f32 %v8715_v7, %v11961_v2  ;;  %v3865_v6 = vmul.f32 %v8715_v7, %v11956_v60  ;;  %v14854_v57 = vld [vmem:[#allocation9_spill] sm:$0xff]  ;;  %v14855_v7 = vld [vmem:[#allocation48_spill] sm:$0xff] }
 0x8b5   : > { %3812 = vadd.xlane.f32.xlu0 %v3811_v52  ;;  %v12158_v13 = vpop.eup %8718  ;;  %v3759_v38 = vpop.xlane.xlu0 %3758 }
 0x8b6   : > { %v8721_v23 = vpop.eup %8720  ;;  %v3814_v61 = vadd.f32 %v12158_v13, %v12156_v14  ;;  %8726 = vrcp.f32 %v3759_v38 }
 0x8b7   : > { %v3868_v30 = vmul.f32 %v8721_v23, %v11974_v20  ;;  %v3867_v19 = vmul.f32 %v8721_v23, %v11967_v31 }
 0x8b8   : > { %3815 = vadd.xlane.f32.xlu1 %v3814_v61  ;;  %v3762_v10 = vpop.xlane.xlu1 %3761  ;;  %v8723_v62 = vpop.eup %8722  ;;  %v14856_v61 = vld [vmem:[#allocation44_spill] sm:$0xff] }
 0x8b9   : > { %8728 = vrcp.f32 %v3762_v10  ;;  %v7870_v49 = vpack.c.bf16 %v3868_v30, %v3866_v56  ;;  %v7872_v22 = vpack.c.bf16 %v3867_v19, %v3865_v6  ;;  %v3870_v59 = vmul.f32 %v8723_v62, %v11980_v42  ;;  %v14858_v6 = vld [vmem:[#allocation11_spill] sm:$0xff] }
 0x8ba   : > { %v3869_v31 = vmul.f32 %v8723_v62, %v11978_v9  ;;  %v14850_v9 = vld [vmem:[#allocation7_spill] sm:$0xff]  ;;  %v14859_v62 = vld [vmem:[#allocation52_spill] sm:$0xff] }
 0x8bb   : > { %v8725_v0 = vpop.eup %8724  ;;  %7871 = vmatprep.subr.bf16.mxu0 %v7870_v49 }
 0x8bc   : > { %7873 = vmatpush1.bf16.xpose.msra.mxu0 %v7872_v22  ;;  %v3872_v2 = vmul.f32 %v8725_v0, %v11988_v32  ;;  %v3871_v20 = vmul.f32 %v8725_v0, %v11982_v11  ;;  %v14860_v22 = vld [vmem:[#allocation45_spill] sm:$0xff] }
 0x8bd   : > { %v3765_v24 = vpop.xlane.xlu0 %3764 }
 0x8be   : > { %v7874_v43 = vpack.c.bf16 %v3872_v2, %v3870_v59  ;;  %8730 = vrcp.f32 %v3765_v24  ;;  %v7876_v29 = vpack.c.bf16 %v3871_v20, %v3869_v31  ;;  %v14861_v59 = vld [vmem:[#allocation12_spill] sm:$0xff]  ;;  %v14862_v24 = vld [vmem:[#allocation21_spill] sm:$0xff] }
 0x8bf   : > { %v14863_v20 = vld [vmem:[#allocation41_spill] sm:$0xff] }
 0x8c0   : > { %7875 = vmatprep.subr.bf16.mxu0 %v7874_v43  ;;  %v3768_v60 = vpop.xlane.xlu1 %3767  ;;  %v8727_v16 = vpop.eup %8726 }
 0x8c1   : > { %8732 = vrcp.f32 %v3768_v60  ;;  %v3874_v34 = vmul.f32 %v8727_v16, %v11996_v47  ;;  %v3873_v37 = vmul.f32 %v8727_v16, %v11994_v55  ;;  %v14864_v16 = vld [vmem:[#allocation22_spill] sm:$0xff] }
 0x8c3   : > { %v8729_v41 = vpop.eup %8728 }
 0x8c4   : > { %7877 = vmatpush1.bf16.xpose.msra.mxu0 %v7876_v29  ;;  %v3876_v42 = vmul.f32 %v8729_v41, %v12004_v51  ;;  %v3875_v53 = vmul.f32 %v8729_v41, %v11998_v36  ;;  %v14852_v36 = vld [vmem:[#allocation42_spill] sm:$0xff] }
 0x8c5   : > { %v3771_v3 = vpop.xlane.xlu0 %3770 }
 0x8c6   : > { %v7878_v32 = vpack.c.bf16 %v3876_v42, %v3874_v34  ;;  %8734 = vrcp.f32 %v3771_v3  ;;  %v7880_v47 = vpack.c.bf16 %v3875_v53, %v3873_v37  ;;  %v14865_v34 = vld [vmem:[#allocation19_spill] sm:$0xff]  ;;  %v14867_v37 = vld [vmem:[#allocation24_spill] sm:$0xff] }
 0x8c7   : > { %v14866_v42 = vld [vmem:[#allocation23_spill] sm:$0xff] }
 0x8c8   : > { %7879 = vmatprep.subr.bf16.mxu0 %v7878_v32  ;;  %v3774_v11 = vpop.xlane.xlu1 %3773  ;;  %v8731_v17 = vpop.eup %8730 }
 0x8c9   : > { %8736 = vrcp.f32 %v3774_v11  ;;  %4002 = vrot.lane.b32.xlu1 %v14850_v9, %s9548_s13  ;;  %v3878_v28 = vmul.f32 %v8731_v17, %v12012_v50  ;;  %v3877_v56 = vmul.f32 %v8731_v17, %v14856_v61  ;;  %v14857_v50 = vld [vmem:[#allocation10_spill] sm:$0xff] }
 0x8cb   : > { %4000 = vrot.lane.b32.xlu0 %v14851_v27, %s9548_s13  ;;  %v8733_v51 = vpop.eup %8732 }
 0x8cc   : > { %7881 = vmatpush1.bf16.xpose.msra.mxu0 %v7880_v47  ;;  %v3880_v18 = vmul.f32 %v8733_v51, %v14852_v36  ;;  %v3879_v38 = vmul.f32 %v8733_v51, %v14855_v7  ;;  %v14868_v47 = vld [vmem:[#allocation25_spill] sm:$0xff] }
 0x8cd   : > { %4004 = vrot.lane.b32.xlu1 %v14853_v46, %s9548_s13  ;;  %v3777_v55 = vpop.xlane.xlu0 %3776 }
 0x8ce   : > { %v7882_v52 = vpack.c.bf16 %v3880_v18, %v3878_v28  ;;  %8738 = vrcp.f32 %v3777_v55  ;;  %v7884_v19 = vpack.c.bf16 %v3879_v38, %v3877_v56 }
 0x8cf   : > { %4006 = vrot.lane.b32.xlu0 %v14854_v57, %s9548_s13 }
 0x8d0   : > { %7883 = vmatprep.subr.bf16.mxu0 %v7882_v52  ;;  %v3780_v23 = vpop.xlane.xlu1 %3779  ;;  %v8735_v30 = vpop.eup %8734  ;;  %v14870_v52 = vld [vmem:[#allocation27_spill] sm:$0xff] }
 0x8d1   : > { %8740 = vrcp.f32 %v3780_v23  ;;  %4008 = vrot.lane.b32.xlu1 %v14857_v50, %s9548_s13  ;;  %v3882_v49 = vmul.f32 %v8735_v30, %v14859_v62  ;;  %v3881_v29 = vmul.f32 %v8735_v30, %v14864_v16  ;;  %v14871_v23 = vld [vmem:[#allocation34_spill] sm:$0xff]  ;;  %v14873_v30 = vld [vmem:[#allocation31_spill] sm:$0xff]  ;;  %v14875_v62 = vld [vmem:[#allocation32_spill] sm:$0xff] }
 0x8d3   : > { %4010 = vrot.lane.b32.xlu0 %v14858_v6, %s9548_s13  ;;  %v8737_v10 = vpop.eup %8736 }
 0x8d4   : > { %7885 = vmatpush1.bf16.xpose.msra.mxu0 %v7884_v19  ;;  %v3884_v0 = vmul.f32 %v8737_v10, %v14860_v22  ;;  %v3883_v60 = vmul.f32 %v8737_v10, %v14863_v20 }
 0x8d5   : > { %4012 = vrot.lane.b32.xlu1 %v14861_v59, %s9548_s13  ;;  %v3783_v2 = vpop.xlane.xlu0 %3782 }
 0x8d6   : > { %8742 = vrcp.f32 %v3783_v2  ;;  %v7886_v43 = vpack.c.bf16 %v3884_v0, %v3882_v49  ;;  %v7888_v3 = vpack.c.bf16 %v3883_v60, %v3881_v29  ;;  %v14876_v2 = vld [vmem:[#allocation36_spill] sm:$0xff]  ;;  %v14879_v29 = vld [vmem:[#allocation35_spill] sm:$0xff] }
 0x8d7   : > { %4014 = vrot.lane.b32.xlu0 %v14862_v24, %s9548_s13  ;;  %v3786_v31 = vpop.xlane.xlu1 %3785 }
 0x8d8   : > { %7887 = vmatprep.subr.bf16.mxu0 %v7886_v43  ;;  %8744 = vrcp.f32 %v3786_v31  ;;  %v8739_v41 = vpop.eup %8738  ;;  %v14877_v43 = vld [vmem:[#allocation38_spill] sm:$0xff]  ;;  %v14878_v31 = vld [vmem:[#allocation37_spill] sm:$0xff] }
 0x8d9   : > { %4016 = vrot.lane.b32.xlu1 %v14865_v34, %s9548_s13  ;;  %v3886_v53 = vmul.f32 %v8739_v41, %v12044_v26  ;;  %v3885_v55 = vmul.f32 %v8739_v41, %v12042_v45  ;;  %v14869_v26 = vld [vmem:[#allocation26_spill] sm:$0xff]  ;;  %v14874_v45 = vld [vmem:[#allocation33_spill] sm:$0xff] }
 0x8db   : > { %4018 = vrot.lane.b32.xlu0 %v14866_v42, %s9548_s13  ;;  %v8741_v32 = vpop.eup %8740 }
 0x8dc   : > { %7889 = vmatpush1.bf16.xpose.msra.mxu0 %v7888_v3  ;;  %v3888_v11 = vmul.f32 %v8741_v32, %v12052_v25  ;;  %v3887_v28 = vmul.f32 %v8741_v32, %v12046_v39  ;;  %v14872_v39 = vld [vmem:[#allocation28_spill] sm:$0xff] }
 0x8dd   : > { %4020 = vrot.lane.b32.xlu1 %v14867_v37, %s9548_s13  ;;  %v3789_v17 = vpop.xlane.xlu0 %3788 }
 0x8de   : > { %8746 = vrcp.f32 %v3789_v17  ;;  %v7890_v51 = vpack.c.bf16 %v3888_v11, %v3886_v53  ;;  %v7892_v7 = vpack.c.bf16 %v3887_v28, %v3885_v55 }
 0x8df   : > { %4022 = vrot.lane.b32.xlu0 %v14868_v47, %s9548_s13  ;;  %v3792_v36 = vpop.xlane.xlu1 %3791 }
 0x8e0   : > { %v8743_v18 = vpop.eup %8742  ;;  %7891 = vmatprep.subr.bf16.mxu0 %v7890_v51  ;;  %8748 = vrcp.f32 %v3792_v36 }
 0x8e1   : > { %4024 = vrot.lane.b32.xlu1 %v14869_v26, %s9548_s13  ;;  %v3890_v38 = vmul.f32 %v8743_v18, %v12060_v40  ;;  %v3889_v49 = vmul.f32 %v8743_v18, %v14875_v62 }
 0x8e2   : > { %v8745_v25 = vpop.eup %8744 }
 0x8e3   : > { %4026 = vrot.lane.b32.xlu0 %v14870_v52, %s9548_s13  ;;  %v3892_v61 = vmul.f32 %v8745_v25, %v14871_v23  ;;  %v3891_v19 = vmul.f32 %v8745_v25, %v14874_v45 }
 0x8e4   : > { %7893 = vmatpush1.bf16.xpose.msra.mxu0 %v7892_v7 }
 0x8e5   : > { %4028 = vrot.lane.b32.xlu1 %v14872_v39, %s9548_s13  ;;  %v7894_v56 = vpack.c.bf16 %v3892_v61, %v3890_v38  ;;  %v7896_v0 = vpack.c.bf16 %v3891_v19, %v3889_v49 }
 0x8e7   : > { %4030 = vrot.lane.b32.xlu0 %v14873_v30, %s9548_s13  ;;  %7895 = vmatprep.subr.bf16.mxu0 %v7894_v56 }
 0x8e8   : > { %v8747_v10 = vpop.eup %8746 }
 0x8e9   : > { %v3894_v40 = vmul.f32 %v8747_v10, %v14876_v2  ;;  %v3893_v41 = vmul.f32 %v8747_v10, %v14879_v29 }
 0x8ea   : > { %v8749_v22 = vpop.eup %8748 }
 0x8eb   : > { %v3896_v20 = vmul.f32 %v8749_v22, %v14877_v43  ;;  %v3895_v16 = vmul.f32 %v8749_v22, %v14878_v31 }
 0x8ec   : > { %7897 = vmatpush1.bf16.xpose.msra.mxu0 %v7896_v0 }
 0x8ed   : > { %v7898_v60 = vpack.c.bf16 %v3896_v20, %v3894_v40  ;;  %v7900_v3 = vpack.c.bf16 %v3895_v16, %v3893_v41 }
 0x8ef   : > { %7899 = vmatprep.subr.bf16.mxu0 %v7898_v60 }
 0x8f4   : > { %7901 = vmatpush1.bf16.xpose.msra.mxu0 %v7900_v3  ;;  %v14882_v3 = vld [vmem:[#allocation4_spill] sm:$0xff] }
 0x929   : > { %v3795_v32 = vpop.xlane.xlu0 %3794 }
 0x92a   : > { %8750 = vrcp.f32 %v3795_v32  ;;  %v14883_v32 = vmov 0  }
 0x92b   : > { %v3798_v53 = vpop.xlane.xlu1 %3797 }
 0x92c   : > { %8752 = vrcp.f32 %v3798_v53 }
 0x931   : > { %v3801_v11 = vpop.xlane.xlu0 %3800 }
 0x932   : > { %8754 = vrcp.f32 %v3801_v11 }
 0x934   : > { %v8751_v17 = vpop.eup %8750 }
 0x935   : > { %v3804_v51 = vpop.xlane.xlu1 %3803  ;;  %v3898_v36 = vmul.f32 %v8751_v17, %v12096_v12  ;;  %v3897_v55 = vmul.f32 %v8751_v17, %v12094_v54 }
 0x936   : > { %v8753_v28 = vpop.eup %8752  ;;  %8756 = vrcp.f32 %v3804_v51 }
 0x937   : > { %v3900_v18 = vmul.f32 %v8753_v28, %v12104_v1  ;;  %v3899_v25 = vmul.f32 %v8753_v28, %v12098_v58 }
 0x939   : > { %v7902_v38 = vpack.c.bf16 %v3900_v18, %v3898_v36  ;;  %v7904_v23 = vpack.c.bf16 %v3899_v25, %v3897_v55 }
 0x93a   : > { %v3807_v7 = vpop.xlane.xlu0 %3806 }
 0x93b   : > { %7903 = vmatprep.subr.bf16.mxu0 %v7902_v38  ;;  %8758 = vrcp.f32 %v3807_v7 }
 0x93c   : > { %7905 = vmatpush1.bf16.xpose.msra.mxu0 %v7904_v23  ;;  %v8755_v56 = vpop.eup %8754 }
 0x93d   : > { %v3810_v61 = vpop.xlane.xlu1 %3809  ;;  %v3902_v10 = vmul.f32 %v8755_v56, %v12116_v48  ;;  %v3901_v1 = vmul.f32 %v8755_v56, %v12114_v4 }
 0x93e   : > { %8760 = vrcp.f32 %v3810_v61 }
 0x940   : > { %v8757_v45 = vpop.eup %8756 }
 0x941   : > { %v3904_v12 = vmul.f32 %v8757_v45, %v12124_v35  ;;  %v3903_v54 = vmul.f32 %v8757_v45, %v12122_v15 }
 0x942   : > { %v3813_v19 = vpop.xlane.xlu0 %3812 }
 0x943   : > { %v7906_v58 = vpack.c.bf16 %v3904_v12, %v3902_v10  ;;  %v7908_v62 = vpack.c.bf16 %v3903_v54, %v3901_v1  ;;  %8762 = vrcp.f32 %v3813_v19  ;;  %v9281_v19 = vld [vmem:[%s14389_s4] ss:$8 sps:$4 sm:$0xff]   ;;  %v9282_v10 = vld [vmem:[%s14389_s4 + $0x14] ss:$8 sps:$4 sm:$0xff]   ;;  %v9283_v12 = vld [vmem:[%s14389_s4 + $0x10] ss:$8 sps:$4 sm:$0xff]  }
 0x944   : > { %v9284_v1 = vld [vmem:[%s14389_s4 + $0x24] ss:$8 sps:$4 sm:$0xff]   ;;  %v9285_v54 = vld [vmem:[%s14389_s4 + $0x20] ss:$8 sps:$4 sm:$0xff]  }
 0x945   : > { %7907 = vmatprep.subr.bf16.mxu0 %v7906_v58  ;;  %v3816_v49 = vpop.xlane.xlu1 %3815  ;;  %v8759_v22 = vpop.eup %8758  ;;  %v9286_v58 = vld [vmem:[%s14389_s4 + $0x34] ss:$8 sps:$4 sm:$0xff]  }
 0x946   : > { %8764 = vrcp.f32 %v3816_v49  ;;  %7909 = vmatpush1.bf16.xpose.msra.mxu0 %v7908_v62  ;;  %v3906_v2 = vmul.f32 %v8759_v22, %v12136_v63  ;;  %v3905_v48 = vmul.f32 %v8759_v22, %v12134_v44  ;;  %v14880_v44 = vld [vmem:[#allocation3_spill] sm:$0xff]  ;;  %v9288_v49 = vld [vmem:[%s14389_s4 + $0x44] ss:$8 sps:$4 sm:$0xff]   ;;  %v9289_v22 = vld [vmem:[%s14389_s4 + $0x40] ss:$8 sps:$4 sm:$0xff]  }
 0x947   : > { %v9287_v62 = vld [vmem:[%s14389_s4 + $0x30] ss:$8 sps:$4 sm:$0xff]  }
 0x948   : > { %v8761_v0 = vpop.eup %8760 }
 0x949   : > { %v3908_v40 = vmul.f32 %v8761_v0, %v12142_v33  ;;  %v3907_v35 = vmul.f32 %v8761_v0, %v12140_v8  ;;  %v14881_v8 = vld [vmem:[#allocation20_spill] sm:$0xff]  ;;  %v4003_v53 = vpop.permute.xlu1 %4002 }
 0x94a   : > { %v3915_v41 = vrot.slane %v14881_v8, 4  ;;  %v9290_v0 = vld [vmem:[%s14389_s4 + $0x54] ss:$8 sps:$4 sm:$0xff]   ;;  %v9305_v8 = vld [vmem:[%s14389_s4 + $0xc0] ss:$8 sps:$4 sm:$0xff]  }
 0x94b   : > { %v7910_v4 = vpack.c.bf16 %v3908_v40, %v3906_v2  ;;  %v7912_v43 = vpack.c.bf16 %v3907_v35, %v3905_v48  ;;  %v9291_v2 = vld [vmem:[%s14389_s4 + $0x50] ss:$8 sps:$4 sm:$0xff]   ;;  %v9292_v40 = vld [vmem:[%s14389_s4 + $0x64] ss:$8 sps:$4 sm:$0xff]   ;;  %v9293_v48 = vld [vmem:[%s14389_s4 + $0x60] ss:$8 sps:$4 sm:$0xff]  }
 0x94c   : > { %v9294_v35 = vld [vmem:[%s14389_s4 + $0x74] ss:$8 sps:$4 sm:$0xff]  }
 0x94d   : > { %7911 = vmatprep.subr.bf16.mxu0 %v7910_v4  ;;  %v8763_v15 = vpop.eup %8762  ;;  %v4005_v11 = vpop.permute.xlu1 %4004  ;;  %v9295_v4 = vld [vmem:[%s14389_s4 + $0x70] ss:$8 sps:$4 sm:$0xff]  }
 0x94e   : > { %7913 = vmatpush1.bf16.xpose.msra.mxu0 %v7912_v43  ;;  %v3910_v60 = vmul.f32 %v8763_v15, %v12152_v21  ;;  %v3909_v16 = vmul.f32 %v8763_v15, %v12150_v5  ;;  %v9279_v5 = vld [vmem:[%s14387_s2 + $0x8] ss:$0 sps:$4 sm:$0xff]   ;;  %v4001_v21 = vpop.permute.xlu0 %4000  ;;  %v9296_v43 = vld [vmem:[%s14389_s4 + $0x84] ss:$8 sps:$4 sm:$0xff]  }
 0x94f   : > { %v9297_v15 = vld [vmem:[%s14389_s4 + $0x80] ss:$8 sps:$4 sm:$0xff]  }
 0x950   : > { %v8765_v20 = vpop.eup %8764 }
 0x951   : > { %v3912_v31 = vmul.f32 %v8765_v20, %v12158_v13  ;;  %v3911_v63 = vmul.f32 %v8765_v20, %v12156_v14  ;;  %v14884_v14 = vld [vmem:[#allocation5_spill] sm:$0xff]  ;;  %v4009_v51 = vpop.permute.xlu1 %4008  ;;  %v9298_v20 = vld [vmem:[%s14389_s4 + $0x94] ss:$8 sps:$4 sm:$0xff]  }
 0x952   : > { %v9280_v13 = vld [vmem:[%s14389_s4 + $0x4] ss:$8 sps:$4 sm:$0xff]   ;;  %v4007_v17 = vpop.permute.xlu0 %4006 }
 0x953   : > { %v7914_v29 = vpack.c.bf16 %v3912_v31, %v3910_v60  ;;  %v7916_v33 = vpack.c.bf16 %v3911_v63, %v3909_v16  ;;  %v9299_v60 = vld [vmem:[%s14389_s4 + $0x90] ss:$8 sps:$4 sm:$0xff]   ;;  %v9300_v31 = vld [vmem:[%s14389_s4 + $0xa4] ss:$8 sps:$4 sm:$0xff]   ;;  %v9301_v16 = vld [vmem:[%s14389_s4 + $0xa0] ss:$8 sps:$4 sm:$0xff]  }
 0x954   : > { %v9302_v63 = vld [vmem:[%s14389_s4 + $0xb4] ss:$8 sps:$4 sm:$0xff]  }
 0x955   : > { %7915 = vmatprep.subr.bf16.mxu0 %v7914_v29  ;;  %v4013_v36 = vpop.permute.xlu1 %4012  ;;  %v9303_v29 = vld [vmem:[%s14389_s4 + $0xb0] ss:$8 sps:$4 sm:$0xff]  }
 0x956   : > { %7917 = vmatpush1.bf16.xpose.msra.mxu0 %v7916_v33  ;;  %v4011_v28 = vpop.permute.xlu0 %4010  ;;  %v9304_v33 = vld [vmem:[%s14389_s4 + $0xc4] ss:$8 sps:$4 sm:$0xff]  }
 0x957   : > { %7471 = vmatprep.subr.msk.bf16.mxu0 %vm736_vm2, %v14880_v44 }
 0x959   : > { %v4017_v55 = vpop.permute.xlu1 %4016 }
 0x95a   : > { %v4015_v18 = vpop.permute.xlu0 %4014 }
 0x95d   : > { %3984 = vmatmul.mubr.f32.vlgmr.msra.gmra.mrb[10].mxu0 %v3915_v41  ;;  %v4021_v7 = vpop.permute.xlu1 %4020  ;;  %v9306_v41 = vld [vmem:[%s14389_s4 + $0xd4] ss:$8 sps:$4 sm:$0xff]  }
 0x95e   : > { %4081 = vmatpush1.bf16.msra.mxu0 %v14882_v3  ;;  %4112 = vmatprep.mubr.bf16.mxu0 %v14883_v32  ;;  %v4019_v25 = vpop.permute.xlu0 %4018 }
 0x95f   : > { %8314 = vmatprep.subr.msk.bf16.mxu0 %vm736_vm2, %v9279_v5  ;;  %v9307_v5 = vld [vmem:[%s14389_s4 + $0xd0] ss:$8 sps:$4 sm:$0xff]  }
 0x961   : > { %7472 = vmatmul.mubr.msk.bf16.vlgmr.msra.gmra.mrb[172].mxu0 %vm687_vm3, %v4001_v21  ;;  %v12282_v23 = vpop.permute.xlu1 %4024 }
 0x962   : > { %7715 = vmatpush3.bf16.msra.mxu0 %v14884_v14  ;;  %4122 = vmatprep.mubr.bf16.mxu0 %v14883_v32  ;;  %v12277_v38 = vpop.permute.xlu0 %4022 }
 0x963   : > { %4632 = vmatprep.subr.bf16.mxu0 %v9280_v13  ;;  %v9309_v13 = vld [vmem:[%s14389_s4 + $0xe0] ss:$8 sps:$4 sm:$0xff]  }
 0x965   : > { %v12292_v56 = vpop.permute.xlu1 %4028 }
 0x966   : > { %v12287_v61 = vpop.permute.xlu0 %4026 }
 0x969   : > { %7473 = vmatmul.mubr.msk.bf16.gmra.mrb[176].mxu0 %vm687_vm3, %v4003_v53 }
 0x96a   : > { %4132 = vmatprep.mubr.bf16.mxu0 %v14883_v32  ;;  %v12297_v45 = vpop.permute.xlu0 %4030 }
 0x971   : > { %7474 = vmatmul.mubr.msk.bf16.gmra.mrb[180].mxu0 %vm687_vm3, %v4005_v11 }
 0x972   : > { %4142 = vmatprep.mubr.bf16.mxu0 %v14883_v32 }
 0x979   : > { %7475 = vmatmul.mubr.msk.bf16.gmra.mrb[184].mxu0 %vm687_vm3, %v4007_v17 }
 0x97a   : > { %4152 = vmatprep.mubr.bf16.mxu0 %v14883_v32 }
 0x981   : > { %7476 = vmatmul.mubr.msk.bf16.gmra.mrb[188].mxu0 %vm687_vm3, %v4009_v51 }
 0x982   : > { %4162 = vmatprep.mubr.bf16.mxu0 %v14883_v32 }
 0x989   : > { %7477 = vmatmul.mubr.msk.bf16.gmra.mrb[192].mxu0 %vm687_vm3, %v4011_v28 }
 0x98a   : > { %4172 = vmatprep.mubr.bf16.mxu0 %v14883_v32 }
 0x991   : > { %7478 = vmatmul.mubr.msk.bf16.gmra.mrb[196].mxu0 %vm687_vm3, %v4013_v36 }
 0x992   : > { %4182 = vmatprep.mubr.bf16.mxu0 %v14883_v32 }
 0x999   : > { %7479 = vmatmul.mubr.msk.bf16.gmra.mrb[200].mxu0 %vm687_vm3, %v4015_v18 }
 0x99a   : > { %4192 = vmatprep.mubr.bf16.mxu0 %v14883_v32 }
 0x9a1   : > { %7480 = vmatmul.mubr.msk.bf16.gmra.mrb[204].mxu0 %vm687_vm3, %v4017_v55 }
 0x9a2   : > { %4202 = vmatprep.mubr.bf16.mxu0 %v14883_v32 }
 0x9a9   : > { %7481 = vmatmul.mubr.msk.bf16.gmra.mrb[208].mxu0 %vm687_vm3, %v4019_v25 }
 0x9aa   : > { %4212 = vmatprep.mubr.bf16.mxu0 %v14883_v32 }
 0x9b1   : > { %7482 = vmatmul.mubr.msk.bf16.gmra.mrb[212].mxu0 %vm687_vm3, %v4021_v7 }
 0x9b2   : > { %4222 = vmatprep.mubr.bf16.mxu0 %v14883_v32 }
 0x9b9   : > { %7483 = vmatmul.mubr.msk.bf16.gmra.mrb[216].mxu0 %vm687_vm3, %v12277_v38 }
 0x9ba   : > { %4232 = vmatprep.mubr.bf16.mxu0 %v14883_v32 }
 0x9c1   : > { %7484 = vmatmul.mubr.msk.bf16.gmra.mrb[220].mxu0 %vm687_vm3, %v12282_v23 }
 0x9c2   : > { %4242 = vmatprep.mubr.bf16.mxu0 %v14883_v32 }
 0x9c9   : > { %7485 = vmatmul.mubr.msk.bf16.gmra.mrb[224].mxu0 %vm687_vm3, %v12287_v61 }
 0x9ca   : > { %4252 = vmatprep.mubr.bf16.mxu0 %v14883_v32 }
 0x9d1   : > { %7486 = vmatmul.mubr.msk.bf16.gmra.mrb[228].mxu0 %vm687_vm3, %v12292_v56 }
 0x9d2   : > { %4262 = vmatprep.mubr.bf16.mxu0 %v14883_v32 }
 0x9d9   : > { %7487 = vmatmul.mubr.msk.bf16.gmra.mrb[232].mxu0 %vm687_vm3, %v12297_v45 }
 0x9da   : > { %7716 = vmatprep.mubr.msk.bf16.mxu0 %vm687_vm3, %v4001_v21  ;;  %v9308_v21 = vld [vmem:[%s14389_s4 + $0xe4] ss:$8 sps:$4 sm:$0xff]  }
 0x9e1   : > { %7717 = vmatmul.mubr.msk.bf16.vlgmr.msra.gmra.mrb[236].mxu0 %vm687_vm3, %v4003_v53  ;;  %v9310_v53 = vld [vmem:[%s14389_s4 + $0xf4] ss:$8 sps:$4 sm:$0xff]  }
 0x9e2   : > { %4633 = vmatpush1.bf16.msra.mxu0 %v9281_v19  ;;  %7720 = vmatprep.mubr.msk.bf16.mxu0 %vm687_vm3, %v4005_v11  ;;  %v14885_v11 = vld [vmem:[#allocation16_spill] sm:$0xff] }
 0x9e3   : > { %4634 = vmatprep.subr.bf16.mxu0 %v9282_v10  ;;  %v9314_v10 = vld [vmem:[%s14388_s3 + $0x8] sm:$0xff] }
 0x9e6   : > { %4635 = vmatpush1.bf16.msra.mxu0 %v9283_v12 }
 0x9e7   : > { %4636 = vmatprep.subr.bf16.mxu0 %v9284_v1  ;;  %v9315_v1 = vld [vmem:[%s14388_s3 + $0x20] sm:$0xff] }
 0x9e9   : > { %7721 = vmatmul.mubr.msk.bf16.gmra.mrb[240].mxu0 %vm687_vm3, %v4007_v17  ;;  %v3999_v17 = vpack.c.bf16 %v14885_v11, %v14885_v11 }
 0x9ea   : > { %4637 = vmatpush1.bf16.msra.mxu0 %v9285_v54  ;;  %7724 = vmatprep.mubr.msk.bf16.mxu0 %vm687_vm3, %v4009_v51  ;;  %v9311_v51 = vld [vmem:[%s14389_s4 + $0xf0] ss:$8 sps:$4 sm:$0xff]  }
 0x9eb   : > { %4638 = vmatprep.subr.bf16.mxu0 %v9286_v58  ;;  %v14886_v58 = vld [vmem:[#allocation15_spill] sm:$0xff] }
 0x9ee   : > { %4639 = vmatpush1.bf16.msra.mxu0 %v9287_v62  ;;  %v3998_v62 = vpack.c.bf16 %v14886_v58, %v14886_v58 }
 0x9ef   : > { %4640 = vmatprep.subr.bf16.mxu0 %v9288_v49 }
 0x9f1   : > { %7725 = vmatmul.mubr.msk.bf16.gmra.mrb[244].mxu0 %vm687_vm3, %v4011_v28 }
 0x9f2   : > { %4641 = vmatpush1.bf16.msra.mxu0 %v9289_v22  ;;  %7728 = vmatprep.mubr.msk.bf16.mxu0 %vm687_vm3, %v4013_v36 }
 0x9f3   : > { %4642 = vmatprep.subr.bf16.mxu0 %v9290_v0 }
 0x9f6   : > { %4643 = vmatpush1.bf16.msra.mxu0 %v9291_v2 }
 0x9f7   : > { %4644 = vmatprep.subr.bf16.mxu0 %v9292_v40  ;;  %v4627_v40 = vsel %vm736_vm2, %v3998_v62, 0 }
 0x9f9   : > { %7729 = vmatmul.mubr.msk.bf16.gmra.mrb[248].mxu0 %vm687_vm3, %v4015_v18 }
 0x9fa   : > { %4645 = vmatpush1.bf16.msra.mxu0 %v9293_v48  ;;  %7732 = vmatprep.mubr.msk.bf16.mxu0 %vm687_vm3, %v4017_v55 }
 0x9fb   : > { %4646 = vmatprep.subr.bf16.mxu0 %v9294_v35  ;;  %v9316_v35 = vld [vmem:[%s14388_s3 + $0x30] sm:$0xff] }
 0x9fe   : > { %4647 = vmatpush1.bf16.msra.mxu0 %v9295_v4 }
 0x9ff   : > { %4648 = vmatprep.subr.bf16.mxu0 %v9296_v43  ;;  %v9317_v43 = vld [vmem:[%s14388_s3 + $0x48] sm:$0xff] }
 0xa01   : > { %7733 = vmatmul.mubr.msk.bf16.gmra.mrb[252].mxu0 %vm687_vm3, %v4019_v25 }
 0xa02   : > { %4649 = vmatpush1.bf16.msra.mxu0 %v9297_v15  ;;  %7736 = vmatprep.mubr.msk.bf16.mxu0 %vm687_vm3, %v4021_v7 }
 0xa03   : > { %4650 = vmatprep.subr.bf16.mxu0 %v9298_v20 }
 0xa06   : > { %4651 = vmatpush1.bf16.msra.mxu0 %v9299_v60  ;;  %v9318_v60 = vld [vmem:[%s14388_s3 + $0x38] sm:$0xff] }
 0xa07   : > { %4652 = vmatprep.subr.bf16.mxu0 %v9300_v31 }
 0xa09   : > { %7737 = vmatmul.mubr.msk.bf16.gmra.mrb[0].mxu0 %vm687_vm3, %v12277_v38 }
 0xa0a   : > { %4653 = vmatpush1.bf16.msra.mxu0 %v9301_v16  ;;  %7740 = vmatprep.mubr.msk.bf16.mxu0 %vm687_vm3, %v12282_v23  ;;  %v9312_v23 = vld [vmem:[%s14388_s3] sm:$0xff]  ;;  %v9319_v16 = vld [vmem:[%s14388_s3 + $0x50] sm:$0xff] }
 0xa0b   : > { %4654 = vmatprep.subr.bf16.mxu0 %v9302_v63 }
 0xa0e   : > { %4655 = vmatpush1.bf16.msra.mxu0 %v9303_v29 }
 0xa0f   : > { %4656 = vmatprep.subr.bf16.mxu0 %v9304_v33 }
 0xa11   : > { %7741 = vmatmul.mubr.msk.bf16.gmra.mrb[4].mxu0 %vm687_vm3, %v12287_v61 }
 0xa12   : > { %4657 = vmatpush1.bf16.msra.mxu0 %v9305_v8  ;;  %7744 = vmatprep.mubr.msk.bf16.mxu0 %vm687_vm3, %v12292_v56  ;;  %v9313_v56 = vld [vmem:[%s14388_s3 + $0x18] sm:$0xff] }
 0xa13   : > { %4658 = vmatprep.subr.bf16.mxu0 %v9306_v41 }
 0xa16   : > { %4659 = vmatpush1.bf16.msra.mxu0 %v9307_v5 }
 0xa17   : > { %4660 = vmatprep.subr.bf16.mxu0 %v9308_v21  ;;  %v9320_v21 = vld [vmem:[%s14388_s3 + $0x60] sm:$0xff] }
 0xa19   : > { %7745 = vmatmul.mubr.msk.bf16.gmra.mrb[12].mxu0 %vm687_vm3, %v12297_v45 }
 0xa1a   : > { %4661 = vmatpush1.bf16.msra.mxu0 %v9309_v13 }
 0xa1b   : > { %4662 = vmatprep.subr.bf16.mxu0 %v9310_v53  ;;  %v9321_v53 = vld [vmem:[%s14388_s3 + $0x78] sm:$0xff] }
 0xa1e   : > { %4663 = vmatpush1.bf16.msra.mxu0 %v9311_v51  ;;  %v9322_v51 = vld [vmem:[%s14388_s3 + $0x68] sm:$0xff] }
 0xa1f   : > { %7504 = vmatprep.subr.msk.bf16.mxu0 %vm736_vm2, %v3999_v17 }
 0xa30   : > { %v3985_v28 = vpop.f32.mrb[10].mxu0 }
 0xa31   : > { %v3992_v36 = vrot.slane %v3985_v28, 4  ;;  %v3987_v18 = vpop.f32.mrb[11].mxu0 }
 0xa32   : > { %v3993_v55 = vrot.slane %v3987_v18, 4 }
 0xa33   : > { %3996 = vst [vmem:[#allocation2] sm:$0xf0] %v3992_v36  ;;  %v9323_v36 = vld [vmem:[%s14388_s3 + $0x80] sm:$0xff] }
 0xa34   : > { %3997 = vst [vmem:[#allocation2 + $0x8] sm:$0xf0] %v3993_v55  ;;  %v4114_v25 = vpop.f32.mrb[172].mxu0 }
 0xa35   : > { %v4116_v7 = vpop.f32.mrb[173].mxu0  ;;  %v4434_v61 = vmul.f32 %v9312_v23, %v4114_v25 }
 0xa36   : > { %v4118_v38 = vpop.f32.mrb[174].mxu0  ;;  %v4435_v12 = vmul.f32 %v9314_v10, %v4116_v7 }
 0xa37   : > { %v4437_v45 = vmul.f32 %v9313_v56, %v4118_v38  ;;  %v4120_v19 = vpop.f32.mrb[175].mxu0 }
 0xa38   : > { %v4438_v54 = vmul.f32 %v9315_v1, %v4120_v19 }
 0xa39   : > { %v4530_v49 = vpack.c.bf16 %v4437_v45, %v4434_v61  ;;  %v9324_v61 = vld [vmem:[%s14388_s3 + $0x90] sm:$0xff]  ;;  %v9325_v45 = vld [vmem:[%s14388_s3 + $0xa8] sm:$0xff] }
 0xa3a   : > { %v4531_v22 = vpack.c.bf16 %v4438_v54, %v4435_v12  ;;  %v9326_v12 = vld [vmem:[%s14388_s3 + $0x98] sm:$0xff]  ;;  %v9327_v54 = vld [vmem:[%s14388_s3 + $0xb0] sm:$0xff] }
 0xa3c   : > { %v4124_v0 = vpop.f32.mrb[176].mxu0  ;;  %4664 = vmatprep.mubr.bf16.mxu0 %v4531_v22 }
 0xa3d   : > { %v4126_v2 = vpop.f32.mrb[177].mxu0  ;;  %4665 = vmatmul.mubr.bf16.vlgmr.msra.gmra.mrb[16].mxu0 %v4530_v49  ;;  %v4440_v4 = vmul.f32 %v9316_v35, %v4124_v0  ;;  %v9329_v35 = vld [vmem:[%s14388_s3 + $0xd8] sm:$0xff] }
 0xa3e   : > { %4826 = vmatpush1.bf16.msra.mxu0 %v4627_v40  ;;  %v4128_v48 = vpop.f32.mrb[178].mxu0  ;;  %v4441_v31 = vmul.f32 %v9318_v60, %v4126_v2  ;;  %v9328_v40 = vld [vmem:[%s14388_s3 + $0xc0] sm:$0xff] }
 0xa3f   : > { %v4443_v15 = vmul.f32 %v9317_v43, %v4128_v48  ;;  %v4130_v20 = vpop.f32.mrb[179].mxu0  ;;  %v9331_v60 = vld [vmem:[%s14388_s3 + $0xe0] sm:$0xff] }
 0xa40   : > { %v4444_v63 = vmul.f32 %v9319_v16, %v4130_v20 }
 0xa41   : > { %v4533_v29 = vpack.c.bf16 %v4443_v15, %v4440_v4  ;;  %v9330_v15 = vld [vmem:[%s14388_s3 + $0xc8] sm:$0xff] }
 0xa42   : > { %v4534_v33 = vpack.c.bf16 %v4444_v63, %v4441_v31 }
 0xa44   : > { %v4134_v8 = vpop.f32.mrb[180].mxu0  ;;  %4674 = vmatprep.mubr.bf16.mxu0 %v4534_v33 }
 0xa45   : > { %v4136_v41 = vpop.f32.mrb[181].mxu0  ;;  %4675 = vmatmul.mubr.bf16.gmra.mrb[20].mxu0 %v4533_v29  ;;  %v4446_v13 = vmul.f32 %v9320_v21, %v4134_v8  ;;  %v9333_v21 = vld [vmem:[%s14388_s3 + $0x108] sm:$0xff] }
 0xa46   : > { %v4138_v5 = vpop.f32.mrb[182].mxu0  ;;  %v4447_v28 = vmul.f32 %v9322_v51, %v4136_v41  ;;  %v9332_v41 = vld [vmem:[%s14388_s3 + $0xf0] sm:$0xff] }
 0xa47   : > { %v4449_v11 = vmul.f32 %v9321_v53, %v4138_v5  ;;  %v4140_v17 = vpop.f32.mrb[183].mxu0  ;;  %v9335_v51 = vld [vmem:[%s14388_s3 + $0x110] sm:$0xff] }
 0xa48   : > { %v4450_v18 = vmul.f32 %v9323_v36, %v4140_v17 }
 0xa49   : > { %v4536_v55 = vpack.c.bf16 %v4449_v11, %v4446_v13  ;;  %v9334_v11 = vld [vmem:[%s14388_s3 + $0xf8] sm:$0xff] }
 0xa4a   : > { %v4537_v25 = vpack.c.bf16 %v4450_v18, %v4447_v28 }
 0xa4c   : > { %v4144_v7 = vpop.f32.mrb[184].mxu0  ;;  %4684 = vmatprep.mubr.bf16.mxu0 %v4537_v25 }
 0xa4d   : > { %v4146_v38 = vpop.f32.mrb[185].mxu0  ;;  %4685 = vmatmul.mubr.bf16.gmra.mrb[24].mxu0 %v4536_v55  ;;  %v4452_v56 = vmul.f32 %v9324_v61, %v4144_v7  ;;  %v9337_v61 = vld [vmem:[%s14388_s3 + $0x138] sm:$0xff] }
 0xa4e   : > { %v4148_v23 = vpop.f32.mrb[186].mxu0  ;;  %v4453_v1 = vmul.f32 %v9326_v12, %v4146_v38  ;;  %v9336_v38 = vld [vmem:[%s14388_s3 + $0x120] sm:$0xff] }
 0xa4f   : > { %v4455_v19 = vmul.f32 %v9325_v45, %v4148_v23  ;;  %v4150_v10 = vpop.f32.mrb[187].mxu0  ;;  %v9339_v12 = vld [vmem:[%s14388_s3 + $0x140] sm:$0xff] }
 0xa50   : > { %v4456_v58 = vmul.f32 %v9327_v54, %v4150_v10 }
 0xa51   : > { %v4539_v62 = vpack.c.bf16 %v4455_v19, %v4452_v56  ;;  %v9338_v19 = vld [vmem:[%s14388_s3 + $0x128] sm:$0xff] }
 0xa52   : > { %v4540_v49 = vpack.c.bf16 %v4456_v58, %v4453_v1 }
 0xa54   : > { %v4154_v22 = vpop.f32.mrb[188].mxu0  ;;  %4694 = vmatprep.mubr.bf16.mxu0 %v4540_v49 }
 0xa55   : > { %v4156_v0 = vpop.f32.mrb[189].mxu0  ;;  %4695 = vmatmul.mubr.bf16.gmra.mrb[28].mxu0 %v4539_v62  ;;  %v4458_v48 = vmul.f32 %v9328_v40, %v4154_v22  ;;  %v9341_v40 = vld [vmem:[%s14388_s3 + $0x168] sm:$0xff] }
 0xa56   : > { %v4158_v2 = vpop.f32.mrb[190].mxu0  ;;  %v4459_v20 = vmul.f32 %v9330_v15, %v4156_v0  ;;  %v9340_v0 = vld [vmem:[%s14388_s3 + $0x150] sm:$0xff] }
 0xa57   : > { %v4461_v4 = vmul.f32 %v9329_v35, %v4158_v2  ;;  %v4160_v43 = vpop.f32.mrb[191].mxu0  ;;  %v9343_v15 = vld [vmem:[%s14388_s3 + $0x170] sm:$0xff] }
 0xa58   : > { %v4462_v31 = vmul.f32 %v9331_v60, %v4160_v43 }
 0xa59   : > { %v4542_v16 = vpack.c.bf16 %v4461_v4, %v4458_v48  ;;  %v9342_v4 = vld [vmem:[%s14388_s3 + $0x158] sm:$0xff] }
 0xa5a   : > { %v4543_v63 = vpack.c.bf16 %v4462_v31, %v4459_v20 }
 0xa5c   : > { %v4164_v29 = vpop.f32.mrb[192].mxu0  ;;  %4704 = vmatprep.mubr.bf16.mxu0 %v4543_v63 }
 0xa5d   : > { %v4166_v33 = vpop.f32.mrb[193].mxu0  ;;  %4705 = vmatmul.mubr.bf16.gmra.mrb[32].mxu0 %v4542_v16  ;;  %v4464_v5 = vmul.f32 %v9332_v41, %v4164_v29  ;;  %v9345_v41 = vld [vmem:[%s14388_s3 + $0x198] sm:$0xff] }
 0xa5e   : > { %v4168_v8 = vpop.f32.mrb[194].mxu0  ;;  %v4465_v17 = vmul.f32 %v9334_v11, %v4166_v33  ;;  %v9344_v33 = vld [vmem:[%s14388_s3 + $0x180] sm:$0xff] }
 0xa5f   : > { %v4467_v13 = vmul.f32 %v9333_v21, %v4168_v8  ;;  %v4170_v53 = vpop.f32.mrb[195].mxu0  ;;  %v9347_v11 = vld [vmem:[%s14388_s3 + $0x1a0] sm:$0xff] }
 0xa60   : > { %v4468_v28 = vmul.f32 %v9335_v51, %v4170_v53 }
 0xa61   : > { %v4545_v36 = vpack.c.bf16 %v4467_v13, %v4464_v5  ;;  %v9346_v13 = vld [vmem:[%s14388_s3 + $0x188] sm:$0xff] }
 0xa62   : > { %v4546_v18 = vpack.c.bf16 %v4468_v28, %v4465_v17 }
 0xa64   : > { %v4174_v55 = vpop.f32.mrb[196].mxu0  ;;  %4714 = vmatprep.mubr.bf16.mxu0 %v4546_v18 }
 0xa65   : > { %v4176_v25 = vpop.f32.mrb[197].mxu0  ;;  %4715 = vmatmul.mubr.bf16.gmra.mrb[36].mxu0 %v4545_v36  ;;  %v4470_v23 = vmul.f32 %v9336_v38, %v4174_v55  ;;  %v9349_v38 = vld [vmem:[%s14388_s3 + $0x1c8] sm:$0xff] }
 0xa66   : > { %v4178_v7 = vpop.f32.mrb[198].mxu0  ;;  %v4471_v10 = vmul.f32 %v9338_v19, %v4176_v25  ;;  %v9348_v25 = vld [vmem:[%s14388_s3 + $0x1b0] sm:$0xff] }
 0xa67   : > { %v4473_v56 = vmul.f32 %v9337_v61, %v4178_v7  ;;  %v4180_v45 = vpop.f32.mrb[199].mxu0  ;;  %v9351_v19 = vld [vmem:[%s14388_s3 + $0x1d0] sm:$0xff] }
 0xa68   : > { %v4474_v1 = vmul.f32 %v9339_v12, %v4180_v45 }
 0xa69   : > { %v4548_v54 = vpack.c.bf16 %v4473_v56, %v4470_v23  ;;  %v9350_v56 = vld [vmem:[%s14388_s3 + $0x1b8] sm:$0xff] }
 0xa6a   : > { %v4549_v58 = vpack.c.bf16 %v4474_v1, %v4471_v10 }
 0xa6c   : > { %v4184_v62 = vpop.f32.mrb[200].mxu0  ;;  %4724 = vmatprep.mubr.bf16.mxu0 %v4549_v58 }
 0xa6d   : > { %v4186_v49 = vpop.f32.mrb[201].mxu0  ;;  %4725 = vmatmul.mubr.bf16.gmra.mrb[40].mxu0 %v4548_v54  ;;  %v4476_v2 = vmul.f32 %v9340_v0, %v4184_v62  ;;  %v9353_v0 = vld [vmem:[%s14388_s3 + $0x1f8] sm:$0xff] }
 0xa6e   : > { %v4188_v22 = vpop.f32.mrb[202].mxu0  ;;  %v4477_v43 = vmul.f32 %v9342_v4, %v4186_v49  ;;  %v9352_v49 = vld [vmem:[%s14388_s3 + $0x1e0] sm:$0xff] }
 0xa6f   : > { %v4479_v48 = vmul.f32 %v9341_v40, %v4188_v22  ;;  %v4190_v35 = vpop.f32.mrb[203].mxu0  ;;  %v9355_v4 = vld [vmem:[%s14388_s3 + $0x200] sm:$0xff] }
 0xa70   : > { %v4480_v20 = vmul.f32 %v9343_v15, %v4190_v35 }
 0xa71   : > { %v4551_v60 = vpack.c.bf16 %v4479_v48, %v4476_v2  ;;  %v9354_v48 = vld [vmem:[%s14388_s3 + $0x1e8] sm:$0xff] }
 0xa72   : > { %v4552_v31 = vpack.c.bf16 %v4480_v20, %v4477_v43 }
 0xa74   : > { %v4194_v16 = vpop.f32.mrb[204].mxu0  ;;  %4734 = vmatprep.mubr.bf16.mxu0 %v4552_v31 }
 0xa75   : > { %v4196_v63 = vpop.f32.mrb[205].mxu0  ;;  %4735 = vmatmul.mubr.bf16.gmra.mrb[44].mxu0 %v4551_v60  ;;  %v4482_v8 = vmul.f32 %v9344_v33, %v4194_v16  ;;  %v9357_v33 = vld [vmem:[%s14388_s3 + $0x228] sm:$0xff] }
 0xa76   : > { %v4198_v29 = vpop.f32.mrb[206].mxu0  ;;  %v4483_v53 = vmul.f32 %v9346_v13, %v4196_v63  ;;  %v9356_v63 = vld [vmem:[%s14388_s3 + $0x210] sm:$0xff] }
 0xa77   : > { %v4485_v5 = vmul.f32 %v9345_v41, %v4198_v29  ;;  %v4200_v21 = vpop.f32.mrb[207].mxu0  ;;  %v9359_v13 = vld [vmem:[%s14388_s3 + $0x230] sm:$0xff] }
 0xa78   : > { %v4486_v17 = vmul.f32 %v9347_v11, %v4200_v21 }
 0xa79   : > { %v4554_v51 = vpack.c.bf16 %v4485_v5, %v4482_v8  ;;  %v9358_v5 = vld [vmem:[%s14388_s3 + $0x218] sm:$0xff] }
 0xa7a   : > { %v4555_v28 = vpack.c.bf16 %v4486_v17, %v4483_v53 }
 0xa7c   : > { %v4204_v36 = vpop.f32.mrb[208].mxu0  ;;  %4744 = vmatprep.mubr.bf16.mxu0 %v4555_v28 }
 0xa7d   : > { %v4206_v18 = vpop.f32.mrb[209].mxu0  ;;  %4745 = vmatmul.mubr.bf16.gmra.mrb[48].mxu0 %v4554_v51  ;;  %v4488_v7 = vmul.f32 %v9348_v25, %v4204_v36  ;;  %v9361_v25 = vld [vmem:[%s14388_s3 + $0x258] sm:$0xff] }
 0xa7e   : > { %v4208_v55 = vpop.f32.mrb[210].mxu0  ;;  %v4489_v45 = vmul.f32 %v9350_v56, %v4206_v18  ;;  %v9360_v18 = vld [vmem:[%s14388_s3 + $0x240] sm:$0xff] }
 0xa7f   : > { %v4491_v23 = vmul.f32 %v9349_v38, %v4208_v55  ;;  %v4210_v61 = vpop.f32.mrb[211].mxu0  ;;  %v9363_v56 = vld [vmem:[%s14388_s3 + $0x260] sm:$0xff] }
 0xa80   : > { %v4492_v10 = vmul.f32 %v9351_v19, %v4210_v61 }
 0xa81   : > { %v4557_v12 = vpack.c.bf16 %v4491_v23, %v4488_v7  ;;  %v9362_v23 = vld [vmem:[%s14388_s3 + $0x248] sm:$0xff] }
 0xa82   : > { %v4558_v1 = vpack.c.bf16 %v4492_v10, %v4489_v45 }
 0xa84   : > { %v4214_v54 = vpop.f32.mrb[212].mxu0  ;;  %4754 = vmatprep.mubr.bf16.mxu0 %v4558_v1 }
 0xa85   : > { %v4216_v58 = vpop.f32.mrb[213].mxu0  ;;  %4755 = vmatmul.mubr.bf16.gmra.mrb[52].mxu0 %v4557_v12  ;;  %v4494_v22 = vmul.f32 %v9352_v49, %v4214_v54  ;;  %v9365_v49 = vld [vmem:[%s14388_s3 + $0x288] sm:$0xff] }
 0xa86   : > { %v4218_v62 = vpop.f32.mrb[214].mxu0  ;;  %v4495_v35 = vmul.f32 %v9354_v48, %v4216_v58  ;;  %v9364_v58 = vld [vmem:[%s14388_s3 + $0x270] sm:$0xff] }
 0xa87   : > { %v4497_v2 = vmul.f32 %v9353_v0, %v4218_v62  ;;  %v4220_v40 = vpop.f32.mrb[215].mxu0  ;;  %v9367_v48 = vld [vmem:[%s14388_s3 + $0x290] sm:$0xff] }
 0xa88   : > { %v4498_v43 = vmul.f32 %v9355_v4, %v4220_v40 }
 0xa89   : > { %v4560_v15 = vpack.c.bf16 %v4497_v2, %v4494_v22  ;;  %v9366_v2 = vld [vmem:[%s14388_s3 + $0x278] sm:$0xff] }
 0xa8a   : > { %v4561_v20 = vpack.c.bf16 %v4498_v43, %v4495_v35 }
 0xa8c   : > { %v4224_v60 = vpop.f32.mrb[216].mxu0  ;;  %4764 = vmatprep.mubr.bf16.mxu0 %v4561_v20 }
 0xa8d   : > { %v4226_v31 = vpop.f32.mrb[217].mxu0  ;;  %4765 = vmatmul.mubr.bf16.gmra.mrb[56].mxu0 %v4560_v15  ;;  %v4500_v29 = vmul.f32 %v9356_v63, %v4224_v60  ;;  %v9369_v63 = vld [vmem:[%s14388_s3 + $0x2b8] sm:$0xff] }
 0xa8e   : > { %v4228_v16 = vpop.f32.mrb[218].mxu0  ;;  %v4501_v21 = vmul.f32 %v9358_v5, %v4226_v31  ;;  %v9368_v31 = vld [vmem:[%s14388_s3 + $0x2a0] sm:$0xff] }
 0xa8f   : > { %v4503_v8 = vmul.f32 %v9357_v33, %v4228_v16  ;;  %v4230_v41 = vpop.f32.mrb[219].mxu0  ;;  %v9371_v5 = vld [vmem:[%s14388_s3 + $0x2c0] sm:$0xff] }
 0xa90   : > { %v4504_v53 = vmul.f32 %v9359_v13, %v4230_v41 }
 0xa91   : > { %v4563_v11 = vpack.c.bf16 %v4503_v8, %v4500_v29  ;;  %v9370_v8 = vld [vmem:[%s14388_s3 + $0x2a8] sm:$0xff] }
 0xa92   : > { %v4564_v17 = vpack.c.bf16 %v4504_v53, %v4501_v21 }
 0xa94   : > { %v4234_v51 = vpop.f32.mrb[220].mxu0  ;;  %4774 = vmatprep.mubr.bf16.mxu0 %v4564_v17 }
 0xa95   : > { %v4236_v28 = vpop.f32.mrb[221].mxu0  ;;  %4775 = vmatmul.mubr.bf16.gmra.mrb[60].mxu0 %v4563_v11  ;;  %v4506_v55 = vmul.f32 %v9360_v18, %v4234_v51  ;;  %v9373_v18 = vld [vmem:[%s14388_s3 + $0x2e8] sm:$0xff] }
 0xa96   : > { %v4238_v36 = vpop.f32.mrb[222].mxu0  ;;  %v4507_v61 = vmul.f32 %v9362_v23, %v4236_v28  ;;  %v9372_v28 = vld [vmem:[%s14388_s3 + $0x2d0] sm:$0xff] }
 0xa97   : > { %v4509_v7 = vmul.f32 %v9361_v25, %v4238_v36  ;;  %v4240_v38 = vpop.f32.mrb[223].mxu0  ;;  %v9375_v23 = vld [vmem:[%s14388_s3 + $0x2f0] sm:$0xff] }
 0xa98   : > { %v4510_v45 = vmul.f32 %v9363_v56, %v4240_v38 }
 0xa99   : > { %v4566_v19 = vpack.c.bf16 %v4509_v7, %v4506_v55  ;;  %v9374_v7 = vld [vmem:[%s14388_s3 + $0x2d8] sm:$0xff] }
 0xa9a   : > { %v4567_v10 = vpack.c.bf16 %v4510_v45, %v4507_v61 }
 0xa9c   : > { %v4244_v12 = vpop.f32.mrb[224].mxu0  ;;  %4784 = vmatprep.mubr.bf16.mxu0 %v4567_v10 }
 0xa9d   : > { %v4246_v1 = vpop.f32.mrb[225].mxu0  ;;  %4785 = vmatmul.mubr.bf16.gmra.mrb[64].mxu0 %v4566_v19  ;;  %v4512_v62 = vmul.f32 %v9364_v58, %v4244_v12  ;;  %v9377_v58 = vld [vmem:[%s14388_s3 + $0x58] sm:$0xff] }
 0xa9e   : > { %v4248_v54 = vpop.f32.mrb[226].mxu0  ;;  %v4513_v40 = vmul.f32 %v9366_v2, %v4246_v1  ;;  %v9376_v1 = vld [vmem:[%s14388_s3 + $0x40] sm:$0xff]  ;;  %v9379_v2 = vld [vmem:[%s14388_s3 + $0x28] sm:$0xff] }
 0xa9f   : > { %v4515_v22 = vmul.f32 %v9365_v49, %v4248_v54  ;;  %v4250_v0 = vpop.f32.mrb[227].mxu0 }
 0xaa0   : > { %v4516_v35 = vmul.f32 %v9367_v48, %v4250_v0 }
 0xaa1   : > { %v4569_v4 = vpack.c.bf16 %v4515_v22, %v4512_v62  ;;  %v9378_v22 = vld [vmem:[%s14388_s3 + $0x10] sm:$0xff] }
 0xaa2   : > { %v4570_v43 = vpack.c.bf16 %v4516_v35, %v4513_v40 }
 0xaa4   : > { %v4254_v15 = vpop.f32.mrb[228].mxu0  ;;  %4794 = vmatprep.mubr.bf16.mxu0 %v4570_v43 }
 0xaa5   : > { %v4256_v20 = vpop.f32.mrb[229].mxu0  ;;  %4795 = vmatmul.mubr.bf16.gmra.mrb[68].mxu0 %v4569_v4  ;;  %v4518_v16 = vmul.f32 %v9368_v31, %v4254_v15  ;;  %v9381_v31 = vld [vmem:[%s14388_s3 + $0xb8] sm:$0xff] }
 0xaa6   : > { %v4258_v60 = vpop.f32.mrb[230].mxu0  ;;  %v4519_v41 = vmul.f32 %v9370_v8, %v4256_v20  ;;  %v9380_v20 = vld [vmem:[%s14388_s3 + $0xa0] sm:$0xff]  ;;  %v9383_v8 = vld [vmem:[%s14388_s3 + $0x88] sm:$0xff] }
 0xaa7   : > { %v4521_v29 = vmul.f32 %v9369_v63, %v4258_v60  ;;  %v4260_v33 = vpop.f32.mrb[231].mxu0 }
 0xaa8   : > { %v4522_v21 = vmul.f32 %v9371_v5, %v4260_v33 }
 0xaa9   : > { %v4572_v13 = vpack.c.bf16 %v4521_v29, %v4518_v16  ;;  %v9382_v29 = vld [vmem:[%s14388_s3 + $0x70] sm:$0xff] }
 0xaaa   : > { %v4573_v53 = vpack.c.bf16 %v4522_v21, %v4519_v41 }
 0xaac   : > { %v4264_v11 = vpop.f32.mrb[232].mxu0  ;;  %4804 = vmatprep.mubr.bf16.mxu0 %v4573_v53 }
 0xaad   : > { %v4266_v17 = vpop.f32.mrb[233].mxu0  ;;  %4805 = vmatmul.mubr.bf16.gmra.mrb[72].mxu0 %v4572_v13  ;;  %v4524_v36 = vmul.f32 %v9372_v28, %v4264_v11  ;;  %v9385_v28 = vld [vmem:[%s14388_s3 + $0x118] sm:$0xff] }
 0xaae   : > { %v4268_v51 = vpop.f32.mrb[234].mxu0  ;;  %v4525_v38 = vmul.f32 %v9374_v7, %v4266_v17  ;;  %v9384_v17 = vld [vmem:[%s14388_s3 + $0x100] sm:$0xff]  ;;  %v9387_v7 = vld [vmem:[%s14388_s3 + $0xe8] sm:$0xff] }
 0xaaf   : > { %v4527_v55 = vmul.f32 %v9373_v18, %v4268_v51  ;;  %v4270_v25 = vpop.f32.mrb[235].mxu0 }
 0xab0   : > { %v4528_v61 = vmul.f32 %v9375_v23, %v4270_v25 }
 0xab1   : > { %v4575_v56 = vpack.c.bf16 %v4527_v55, %v4524_v36  ;;  %v9386_v55 = vld [vmem:[%s14388_s3 + $0xd0] sm:$0xff] }
 0xab2   : > { %v4576_v45 = vpack.c.bf16 %v4528_v61, %v4525_v38 }
 0xab4   : > { %v7718_v19 = vpop.f32.mrb[236].mxu0  ;;  %4814 = vmatprep.mubr.bf16.mxu0 %v4576_v45 }
 0xab5   : > { %v4307_v10 = vpop.f32.mrb[237].mxu0  ;;  %4815 = vmatmul.mubr.bf16.gmra.mrb[76].mxu0 %v4575_v56  ;;  %v4442_v54 = vmul.f32 %v9376_v1, %v7718_v19  ;;  %v9389_v1 = vld [vmem:[%s14388_s3 + $0x178] sm:$0xff] }
 0xab6   : > { %v7719_v12 = vpop.f32.mrb[238].mxu0  ;;  %4857 = vmatprep.mubr.bf16.mxu0 %v14883_v32  ;;  %v4436_v0 = vmul.f32 %v9378_v22, %v4307_v10  ;;  %v9388_v10 = vld [vmem:[%s14388_s3 + $0x160] sm:$0xff]  ;;  %v9391_v22 = vld [vmem:[%s14388_s3 + $0x148] sm:$0xff] }
 0xab7   : > { %v4445_v62 = vmul.f32 %v9377_v58, %v7719_v12  ;;  %v4310_v49 = vpop.f32.mrb[239].mxu0 }
 0xab8   : > { %v4439_v40 = vmul.f32 %v9379_v2, %v4310_v49 }
 0xab9   : > { %v4535_v48 = vpack.c.bf16 %v4445_v62, %v4442_v54  ;;  %v9390_v62 = vld [vmem:[%s14388_s3 + $0x130] sm:$0xff] }
 0xaba   : > { %v4532_v35 = vpack.c.bf16 %v4439_v40, %v4436_v0 }
 0xabc   : > { %v7722_v4 = vpop.f32.mrb[240].mxu0 }
 0xabd   : > { %v4323_v43 = vpop.f32.mrb[241].mxu0  ;;  %7505 = vmatmul.mubr.msk.bf16.vlgmr.msra.gmra.mrb[16].mxu0 %vm687_vm3, %v4532_v35  ;;  %v4454_v60 = vmul.f32 %v9380_v20, %v7722_v4  ;;  %v9393_v20 = vld [vmem:[%s14388_s3 + $0x1d8] sm:$0xff] }
 0xabe   : > { %v7723_v15 = vpop.f32.mrb[242].mxu0  ;;  %4867 = vmatprep.mubr.bf16.mxu0 %v14883_v32  ;;  %v4448_v33 = vmul.f32 %v9382_v29, %v4323_v43  ;;  %v9392_v43 = vld [vmem:[%s14388_s3 + $0x1c0] sm:$0xff]  ;;  %v9395_v29 = vld [vmem:[%s14388_s3 + $0x1a8] sm:$0xff] }
 0xabf   : > { %v4457_v16 = vmul.f32 %v9381_v31, %v7723_v15  ;;  %v4326_v63 = vpop.f32.mrb[243].mxu0 }
 0xac0   : > { %v4451_v41 = vmul.f32 %v9383_v8, %v4326_v63 }
 0xac1   : > { %v4541_v5 = vpack.c.bf16 %v4457_v16, %v4454_v60  ;;  %v9394_v16 = vld [vmem:[%s14388_s3 + $0x190] sm:$0xff] }
 0xac2   : > { %v4538_v21 = vpack.c.bf16 %v4451_v41, %v4448_v33 }
 0xac4   : > { %v7726_v13 = vpop.f32.mrb[244].mxu0 }
 0xac5   : > { %v4339_v53 = vpop.f32.mrb[245].mxu0  ;;  %7506 = vmatmul.mubr.msk.bf16.gmra.mrb[20].mxu0 %vm687_vm3, %v4535_v48  ;;  %v4466_v51 = vmul.f32 %v9384_v17, %v7726_v13  ;;  %v9397_v17 = vld [vmem:[%s14388_s3 + $0x238] sm:$0xff] }
 0xac6   : > { %v7727_v11 = vpop.f32.mrb[246].mxu0  ;;  %4877 = vmatprep.mubr.bf16.mxu0 %v14883_v32  ;;  %v4460_v25 = vmul.f32 %v9386_v55, %v4339_v53  ;;  %v9396_v53 = vld [vmem:[%s14388_s3 + $0x220] sm:$0xff]  ;;  %v9399_v55 = vld [vmem:[%s14388_s3 + $0x208] sm:$0xff] }
 0xac7   : > { %v4469_v36 = vmul.f32 %v9385_v28, %v7727_v11  ;;  %v4342_v18 = vpop.f32.mrb[247].mxu0 }
 0xac8   : > { %v4463_v38 = vmul.f32 %v9387_v7, %v4342_v18 }
 0xac9   : > { %v4547_v23 = vpack.c.bf16 %v4469_v36, %v4466_v51  ;;  %v9398_v36 = vld [vmem:[%s14388_s3 + $0x1f0] sm:$0xff] }
 0xaca   : > { %v4544_v61 = vpack.c.bf16 %v4463_v38, %v4460_v25 }
 0xacc   : > { %v7730_v56 = vpop.f32.mrb[248].mxu0 }
 0xacd   : > { %v4355_v45 = vpop.f32.mrb[249].mxu0  ;;  %7507 = vmatmul.mubr.msk.bf16.gmra.mrb[24].mxu0 %vm687_vm3, %v4538_v21  ;;  %v12659_v12 = vmul.f32 %v9388_v10, %v7730_v56 }
 0xace   : > { %v7731_v19 = vpop.f32.mrb[250].mxu0  ;;  %4887 = vmatprep.mubr.bf16.mxu0 %v14883_v32  ;;  %v4472_v49 = vmul.f32 %v9390_v62, %v4355_v45 }
 0xacf   : > { %v12664_v54 = vmul.f32 %v9389_v1, %v7731_v19  ;;  %v4358_v58 = vpop.f32.mrb[251].mxu0  ;;  %v9400_v19 = vld [vmem:[%s14388_s3 + $0x280] sm:$0xff]  ;;  %v9401_v1 = vld [vmem:[%s14388_s3 + $0x298] sm:$0xff] }
 0xad0   : > { %v4475_v0 = vmul.f32 %v9391_v22, %v4358_v58 }
 0xad1   : > { %v4553_v2 = vpack.c.bf16 %v12664_v54, %v12659_v12  ;;  %v14887_v12 = vld [vmem:[#allocation30_spill] sm:$0xff] }
 0xad2   : > { %v4550_v40 = vpack.c.bf16 %v4475_v0, %v4472_v49  ;;  %v9402_v49 = vld [vmem:[%s14388_s3 + $0x250] sm:$0xff]  ;;  %v7074_v54 = vrot.slane %v14887_v12, 4 }
 0xad4   : > { %v7734_v48 = vpop.f32.mrb[252].mxu0 }
 0xad5   : > { %v4371_v35 = vpop.f32.mrb[253].mxu0  ;;  %7508 = vmatmul.mubr.msk.bf16.gmra.mrb[28].mxu0 %vm687_vm3, %v4541_v5  ;;  %v12679_v15 = vmul.f32 %v9392_v43, %v7734_v48 }
 0xad6   : > { %v7735_v4 = vpop.f32.mrb[254].mxu0  ;;  %4897 = vmatprep.mubr.bf16.mxu0 %v14883_v32  ;;  %v4484_v63 = vmul.f32 %v9394_v16, %v4371_v35 }
 0xad7   : > { %v4493_v60 = vmul.f32 %v9393_v20, %v7735_v4  ;;  %v4374_v31 = vpop.f32.mrb[255].mxu0  ;;  %v9404_v20 = vld [vmem:[%s14388_s3 + $0x2e0] sm:$0xff] }
 0xad8   : > { %v4487_v33 = vmul.f32 %v9395_v29, %v4374_v31  ;;  %v9405_v31 = vld [vmem:[%s14388_s3 + $0x2f8] sm:$0xff]  ;;  %v9406_v29 = vld [vmem:[%s14388_s3 + $0x2b0] sm:$0xff] }
 0xad9   : > { %v4559_v8 = vpack.c.bf16 %v4493_v60, %v12679_v15 }
 0xada   : > { %v4556_v41 = vpack.c.bf16 %v4487_v33, %v4484_v63 }
 0xadc   : > { %v7738_v5 = vpop.f32.mrb[0].mxu0 }
 0xadd   : > { %v4387_v21 = vpop.f32.mrb[1].mxu0  ;;  %7509 = vmatmul.mubr.msk.bf16.gmra.mrb[32].mxu0 %vm687_vm3, %v4544_v61  ;;  %v4502_v11 = vmul.f32 %v9396_v53, %v7738_v5 }
 0xade   : > { %v7739_v13 = vpop.f32.mrb[2].mxu0  ;;  %4907 = vmatprep.mubr.bf16.mxu0 %v14883_v32  ;;  %v4496_v18 = vmul.f32 %v9398_v36, %v4387_v21 }
 0xadf   : > { %v4505_v51 = vmul.f32 %v9397_v17, %v7739_v13  ;;  %v4390_v28 = vpop.f32.mrb[3].mxu0 }
 0xae0   : > { %v4499_v25 = vmul.f32 %v9399_v55, %v4390_v28 }
 0xae1   : > { %v4565_v7 = vpack.c.bf16 %v4505_v51, %v4502_v11 }
 0xae2   : > { %v4562_v38 = vpack.c.bf16 %v4499_v25, %v4496_v18 }
 0xae4   : > { %v7742_v61 = vpop.f32.mrb[4].mxu0 }
 0xae5   : > { %v4403_v56 = vpop.f32.mrb[5].mxu0  ;;  %7510 = vmatmul.mubr.msk.bf16.gmra.mrb[36].mxu0 %vm687_vm3, %v4547_v23  ;;  %v4514_v10 = vmul.f32 %v9400_v19, %v7742_v61  ;;  %v9403_v23 = vld [vmem:[%s14388_s3 + $0x268] sm:$0xff] }
 0xae6   : > { %v7743_v45 = vpop.f32.mrb[6].mxu0  ;;  %4917 = vmatprep.mubr.bf16.mxu0 %v14883_v32  ;;  %v4508_v22 = vmul.f32 %v9402_v49, %v4403_v56 }
 0xae7   : > { %v4517_v58 = vmul.f32 %v9401_v1, %v7743_v45  ;;  %v4406_v62 = vpop.f32.mrb[7].mxu0 }
 0xae8   : > { %v4511_v0 = vmul.f32 %v9403_v23, %v4406_v62 }
 0xae9   : > { %v4571_v48 = vpack.c.bf16 %v4517_v58, %v4514_v10 }
 0xaea   : > { %v4568_v35 = vpack.c.bf16 %v4511_v0, %v4508_v22 }
 0xaec   : > { %v7746_v4 = vpop.f32.mrb[12].mxu0 }
 0xaed   : > { %v4419_v43 = vpop.f32.mrb[13].mxu0  ;;  %7511 = vmatmul.mubr.msk.bf16.gmra.mrb[40].mxu0 %vm687_vm3, %v4550_v40  ;;  %v4526_v60 = vmul.f32 %v9404_v20, %v7746_v4  ;;  %v9407_v40 = vld [vmem:[%s14388_s3 + $0x2c8] sm:$0xff] }
 0xaee   : > { %v7747_v15 = vpop.f32.mrb[14].mxu0  ;;  %4927 = vmatprep.mubr.bf16.mxu0 %v14883_v32  ;;  %v4520_v33 = vmul.f32 %v9406_v29, %v4419_v43 }
 0xaef   : > { %v4529_v16 = vmul.f32 %v9405_v31, %v7747_v15  ;;  %v4422_v63 = vpop.f32.mrb[15].mxu0 }
 0xaf0   : > { %v4523_v5 = vmul.f32 %v9407_v40, %v4422_v63 }
 0xaf1   : > { %v4577_v21 = vpack.c.bf16 %v4529_v16, %v4526_v60 }
 0xaf2   : > { %v4574_v13 = vpack.c.bf16 %v4523_v5, %v4520_v33 }
 0xaf5   : > { %7512 = vmatmul.mubr.msk.bf16.gmra.mrb[44].mxu0 %vm687_vm3, %v4553_v2 }
 0xaf6   : > { %4937 = vmatprep.mubr.bf16.mxu0 %v14883_v32 }
 0xafd   : > { %7513 = vmatmul.mubr.msk.bf16.gmra.mrb[48].mxu0 %vm687_vm3, %v4556_v41 }
 0xafe   : > { %4947 = vmatprep.mubr.bf16.mxu0 %v14883_v32 }
 0xb05   : > { %7514 = vmatmul.mubr.msk.bf16.gmra.mrb[52].mxu0 %vm687_vm3, %v4559_v8 }
 0xb06   : > { %4957 = vmatprep.mubr.bf16.mxu0 %v14883_v32 }
 0xb0d   : > { %7515 = vmatmul.mubr.msk.bf16.gmra.mrb[56].mxu0 %vm687_vm3, %v4562_v38 }
 0xb0e   : > { %4967 = vmatprep.mubr.bf16.mxu0 %v14883_v32 }
 0xb15   : > { %7516 = vmatmul.mubr.msk.bf16.gmra.mrb[60].mxu0 %vm687_vm3, %v4565_v7 }
 0xb16   : > { %4977 = vmatprep.mubr.bf16.mxu0 %v14883_v32 }
 0xb1d   : > { %7517 = vmatmul.mubr.msk.bf16.gmra.mrb[64].mxu0 %vm687_vm3, %v4568_v35 }
 0xb1e   : > { %4987 = vmatprep.mubr.bf16.mxu0 %v14883_v32 }
 0xb25   : > { %7518 = vmatmul.mubr.msk.bf16.gmra.mrb[68].mxu0 %vm687_vm3, %v4571_v48 }
 0xb26   : > { %4997 = vmatprep.mubr.bf16.mxu0 %v14883_v32 }
 0xb2d   : > { %7519 = vmatmul.mubr.msk.bf16.gmra.mrb[72].mxu0 %vm687_vm3, %v4574_v13 }
 0xb2e   : > { %5007 = vmatprep.mubr.bf16.mxu0 %v14883_v32 }
 0xb35   : > { %7520 = vmatmul.mubr.msk.bf16.gmra.mrb[76].mxu0 %vm687_vm3, %v4577_v21 }
 0xb36   : > { %7141 = vmatprep.mubr.f32.mxu0 %v7074_v54 }
 0xb90   : > { %v12754_v2 = vpop.f32.mrb[16].mxu0 }
 0xb91   : > { %v12756_v8 = vpop.f32.mrb[17].mxu0 }
 0xb92   : > { %v5018_v41 = vmax.f32 %v12754_v2, %v12756_v8  ;;  %v12760_v53 = vpop.f32.mrb[18].mxu0 }
 0xb93   : > { %v12762_v11 = vpop.f32.mrb[19].mxu0 }
 0xb94   : > { %v5021_v17 = vmax.f32 %v12760_v53, %v12762_v11  ;;  %5019 = vmax.xlane.f32.xlu1 %v5018_v41 }
 0xb96   : > { %5022 = vmax.xlane.f32.xlu0 %v5021_v17 }
 0xb98   : > { %v12766_v51 = vpop.f32.mrb[20].mxu0 }
 0xb99   : > { %v12768_v28 = vpop.f32.mrb[21].mxu0 }
 0xb9a   : > { %v5024_v36 = vmax.f32 %v12766_v51, %v12768_v28  ;;  %v12772_v18 = vpop.f32.mrb[22].mxu0 }
 0xb9b   : > { %v12774_v55 = vpop.f32.mrb[23].mxu0 }
 0xb9c   : > { %v5027_v25 = vmax.f32 %v12772_v18, %v12774_v55  ;;  %5025 = vmax.xlane.f32.xlu0 %v5024_v36 }
 0xb9e   : > { %5028 = vmax.xlane.f32.xlu1 %v5027_v25 }
 0xba0   : > { %v12778_v7 = vpop.f32.mrb[24].mxu0 }
 0xba1   : > { %v12780_v38 = vpop.f32.mrb[25].mxu0 }
 0xba2   : > { %v5030_v61 = vmax.f32 %v12778_v7, %v12780_v38  ;;  %v12784_v56 = vpop.f32.mrb[26].mxu0 }
 0xba3   : > { %v12786_v45 = vpop.f32.mrb[27].mxu0 }
 0xba4   : > { %v5033_v19 = vmax.f32 %v12784_v56, %v12786_v45  ;;  %5031 = vmax.xlane.f32.xlu0 %v5030_v61 }
 0xba6   : > { %5034 = vmax.xlane.f32.xlu1 %v5033_v19 }
 0xba8   : > { %v12790_v10 = vpop.f32.mrb[28].mxu0 }
 0xba9   : > { %v12792_v1 = vpop.f32.mrb[29].mxu0 }
 0xbaa   : > { %v5036_v58 = vmax.f32 %v12790_v10, %v12792_v1  ;;  %v12796_v62 = vpop.f32.mrb[30].mxu0 }
 0xbab   : > { %v12798_v49 = vpop.f32.mrb[31].mxu0 }
 0xbac   : > { %v5039_v22 = vmax.f32 %v12796_v62, %v12798_v49  ;;  %5037 = vmax.xlane.f32.xlu0 %v5036_v58 }
 0xbae   : > { %5040 = vmax.xlane.f32.xlu1 %v5039_v22 }
 0xbb0   : > { %v12802_v23 = vpop.f32.mrb[32].mxu0 }
 0xbb1   : > { %v12804_v0 = vpop.f32.mrb[33].mxu0 }
 0xbb2   : > { %v5042_v48 = vmax.f32 %v12802_v23, %v12804_v0  ;;  %v12808_v35 = vpop.f32.mrb[34].mxu0 }
 0xbb3   : > { %v12810_v4 = vpop.f32.mrb[35].mxu0 }
 0xbb4   : > { %v5045_v43 = vmax.f32 %v12808_v35, %v12810_v4  ;;  %5043 = vmax.xlane.f32.xlu0 %v5042_v48 }
 0xbb6   : > { %5046 = vmax.xlane.f32.xlu1 %v5045_v43 }
 0xbb8   : > { %v12814_v15 = vpop.f32.mrb[36].mxu0 }
 0xbb9   : > { %v12816_v20 = vpop.f32.mrb[37].mxu0 }
 0xbba   : > { %v5048_v60 = vmax.f32 %v12814_v15, %v12816_v20  ;;  %v12820_v31 = vpop.f32.mrb[38].mxu0 }
 0xbbb   : > { %v12822_v16 = vpop.f32.mrb[39].mxu0 }
 0xbbc   : > { %v5051_v63 = vmax.f32 %v12820_v31, %v12822_v16  ;;  %5049 = vmax.xlane.f32.xlu0 %v5048_v60 }
 0xbbe   : > { %5052 = vmax.xlane.f32.xlu1 %v5051_v63 }
 0xbc0   : > { %v12826_v29 = vpop.f32.mrb[40].mxu0 }
 0xbc1   : > { %v12828_v33 = vpop.f32.mrb[41].mxu0 }
 0xbc2   : > { %v5054_v40 = vmax.f32 %v12826_v29, %v12828_v33  ;;  %v12832_v5 = vpop.f32.mrb[42].mxu0 }
 0xbc3   : > { %v12834_v21 = vpop.f32.mrb[43].mxu0 }
 0xbc4   : > { %v5057_v13 = vmax.f32 %v12832_v5, %v12834_v21  ;;  %5055 = vmax.xlane.f32.xlu0 %v5054_v40 }
 0xbc6   : > { %5058 = vmax.xlane.f32.xlu1 %v5057_v13 }
 0xbc8   : > { %v12838_v12 = vpop.f32.mrb[44].mxu0 }
 0xbc9   : > { %v12840_v54 = vpop.f32.mrb[45].mxu0 }
 0xbca   : > { %v5060_v41 = vmax.f32 %v12838_v12, %v12840_v54  ;;  %v12844_v17 = vpop.f32.mrb[46].mxu0 }
 0xbcb   : > { %v12846_v36 = vpop.f32.mrb[47].mxu0 }
 0xbcc   : > { %v5063_v25 = vmax.f32 %v12844_v17, %v12846_v36  ;;  %5061 = vmax.xlane.f32.xlu0 %v5060_v41 }
 0xbce   : > { %5064 = vmax.xlane.f32.xlu1 %v5063_v25 }
 0xbd0   : > { %v12850_v61 = vpop.f32.mrb[48].mxu0 }
 0xbd1   : > { %v12852_v19 = vpop.f32.mrb[49].mxu0 }
 0xbd2   : > { %v5066_v58 = vmax.f32 %v12850_v61, %v12852_v19  ;;  %v12856_v22 = vpop.f32.mrb[50].mxu0 }
 0xbd3   : > { %v12858_v48 = vpop.f32.mrb[51].mxu0 }
 0xbd4   : > { %14888 = vst [vmem:[#allocation39_spill] sm:$0xff] %v12858_v48  ;;  %v5069_v43 = vmax.f32 %v12856_v22, %v12858_v48  ;;  %5067 = vmax.xlane.f32.xlu0 %v5066_v58 }
 0xbd6   : > { %5070 = vmax.xlane.f32.xlu1 %v5069_v43 }
 0xbd8   : > { %v12862_v60 = vpop.f32.mrb[52].mxu0 }
 0xbd9   : > { %14889 = vst [vmem:[#allocation60_spill] sm:$0xff] %v12862_v60  ;;  %v12864_v63 = vpop.f32.mrb[53].mxu0 }
 0xbda   : > { %14890 = vst [vmem:[#allocation59_spill] sm:$0xff] %v12864_v63  ;;  %v5072_v40 = vmax.f32 %v12862_v60, %v12864_v63  ;;  %v12868_v13 = vpop.f32.mrb[54].mxu0 }
 0xbdb   : > { %14891 = vst [vmem:[#allocation13_spill] sm:$0xff] %v12868_v13  ;;  %v12870_v41 = vpop.f32.mrb[55].mxu0 }
 0xbdc   : > { %14892 = vst [vmem:[#allocation14_spill] sm:$0xff] %v12870_v41  ;;  %v5075_v25 = vmax.f32 %v12868_v13, %v12870_v41  ;;  %5073 = vmax.xlane.f32.xlu0 %v5072_v40 }
 0xbde   : > { %5076 = vmax.xlane.f32.xlu1 %v5075_v25 }
 0xbe0   : > { %v12874_v14 = vpop.f32.mrb[56].mxu0 }
 0xbe1   : > { %14893 = vst [vmem:[#allocation58_spill] sm:$0xff] %v12874_v14  ;;  %v12876_v58 = vpop.f32.mrb[57].mxu0 }
 0xbe2   : > { %14894 = vst [vmem:[#allocation57_spill] sm:$0xff] %v12876_v58  ;;  %v5078_v43 = vmax.f32 %v12874_v14, %v12876_v58  ;;  %v12880_v32 = vpop.f32.mrb[58].mxu0 }
 0xbe3   : > { %14895 = vst [vmem:[#allocation64_spill] sm:$0xff] %v12880_v32  ;;  %v12882_v3 = vpop.f32.mrb[59].mxu0 }
 0xbe4   : > { %14896 = vst [vmem:[#allocation63_spill] sm:$0xff] %v12882_v3  ;;  %v5081_v44 = vmax.f32 %v12880_v32, %v12882_v3  ;;  %5079 = vmax.xlane.f32.xlu0 %v5078_v43 }
 0xbe6   : > { %5082 = vmax.xlane.f32.xlu1 %v5081_v44 }
 0xbe8   : > { %v12886_v30 = vpop.f32.mrb[60].mxu0 }
 0xbe9   : > { %14897 = vst [vmem:[#allocation62_spill] sm:$0xff] %v12886_v30  ;;  %v12888_v40 = vpop.f32.mrb[61].mxu0 }
 0xbea   : > { %14898 = vst [vmem:[#allocation61_spill] sm:$0xff] %v12888_v40  ;;  %v5084_v25 = vmax.f32 %v12886_v30, %v12888_v40  ;;  %v12892_v39 = vpop.f32.mrb[62].mxu0 }
 0xbeb   : > { %14899 = vst [vmem:[#allocation68_spill] sm:$0xff] %v12892_v39  ;;  %v12894_v52 = vpop.f32.mrb[63].mxu0 }
 0xbec   : > { %14900 = vst [vmem:[#allocation67_spill] sm:$0xff] %v12894_v52  ;;  %v5087_v26 = vmax.f32 %v12892_v39, %v12894_v52  ;;  %5085 = vmax.xlane.f32.xlu0 %v5084_v25 }
 0xbee   : > { %5088 = vmax.xlane.f32.xlu1 %v5087_v26 }
 0xbf0   : > { %v12898_v47 = vpop.f32.mrb[64].mxu0 }
 0xbf1   : > { %v12900_v43 = vpop.f32.mrb[65].mxu0 }
 0xbf2   : > { %v12904_v37 = vpop.f32.mrb[66].mxu0 }
 0xbf3   : > { %v12906_v42 = vpop.f32.mrb[67].mxu0 }
 0xbf8   : > { %v12910_v24 = vpop.f32.mrb[68].mxu0 }
 0xbf9   : > { %v12912_v59 = vpop.f32.mrb[69].mxu0 }
 0xbfa   : > { %v12916_v25 = vpop.f32.mrb[70].mxu0 }
 0xbfb   : > { %v12918_v6 = vpop.f32.mrb[71].mxu0 }
 0xc00   : > { %v12922_v50 = vpop.f32.mrb[72].mxu0 }
 0xc01   : > { %v12924_v57 = vpop.f32.mrb[73].mxu0 }
 0xc02   : > { %v12928_v46 = vpop.f32.mrb[74].mxu0 }
 0xc03   : > { %v12930_v27 = vpop.f32.mrb[75].mxu0 }
 0xc08   : > { %v12934_v9 = vpop.f32.mrb[76].mxu0 }
 0xc09   : > { %v12936_v52 = vpop.f32.mrb[77].mxu0 }
 0xc0a   : > { %v12940_v39 = vpop.f32.mrb[78].mxu0 }
 0xc0b   : > { %v12942_v40 = vpop.f32.mrb[79].mxu0 }
 0xc21   : > { %v5020_v30 = vpop.xlane.xlu1 %5019 }
 0xc22   : > { %v5114_v3 = vsub.f32 %v12754_v2, %v5020_v30  ;;  %v5115_v32 = vsub.f32 %v12756_v8, %v5020_v30 }
 0xc23   : > { %v5023_v26 = vpop.xlane.xlu0 %5022 }
 0xc24   : > { %v5178_v58 = vmul.f32 1.442695, %v5114_v3  ;;  %v5180_v14 = vmul.f32 1.442695, %v5115_v32  ;;  %v5116_v41 = vsub.f32 %v12760_v53, %v5023_v26  ;;  %v5117_v13 = vsub.f32 %v12762_v11, %v5023_v26 }
 0xc26   : > { %8766 = vpow2.f32 %v5178_v58  ;;  %v5182_v44 = vmul.f32 1.442695, %v5116_v41  ;;  %v5184_v63 = vmul.f32 1.442695, %v5117_v13 }
 0xc27   : > { %8768 = vpow2.f32 %v5180_v14 }
 0xc28   : > { %8770 = vpow2.f32 %v5182_v44 }
 0xc29   : > { %8772 = vpow2.f32 %v5184_v63  ;;  %v5026_v60 = vpop.xlane.xlu0 %5025 }
 0xc2a   : > { %v5118_v34 = vsub.f32 %v12766_v51, %v5026_v60  ;;  %v5119_v2 = vsub.f32 %v12768_v28, %v5026_v60 }
 0xc2b   : > { %v5029_v48 = vpop.xlane.xlu1 %5028 }
 0xc2c   : > { %v5186_v30 = vmul.f32 1.442695, %v5118_v34  ;;  %v5188_v8 = vmul.f32 1.442695, %v5119_v2  ;;  %v5120_v3 = vsub.f32 %v12772_v18, %v5029_v48  ;;  %v5121_v32 = vsub.f32 %v12774_v55, %v5029_v48 }
 0xc2e   : > { %8774 = vpow2.f32 %v5186_v30  ;;  %v5190_v53 = vmul.f32 1.442695, %v5120_v3  ;;  %v5192_v11 = vmul.f32 1.442695, %v5121_v32  ;;  %v14901_v30 = vmax.f32 %v12898_v47, %v12900_v43 }
 0xc2f   : > { %8776 = vpow2.f32 %v5188_v8 }
 0xc30   : > { %v12954_v13 = vpop.eup %8766  ;;  %8778 = vpow2.f32 %v5190_v53 }
 0xc31   : > { %v12956_v14 = vpop.eup %8768  ;;  %8780 = vpow2.f32 %v5192_v11  ;;  %v5032_v51 = vpop.xlane.xlu0 %5031 }
 0xc32   : > { %v12958_v63 = vpop.eup %8770  ;;  %v5122_v34 = vsub.f32 %v12778_v7, %v5032_v51  ;;  %v5123_v28 = vsub.f32 %v12780_v38, %v5032_v51  ;;  %v5306_v18 = vadd.f32 %v12956_v14, %v12954_v13  ;;  %v14902_v51 = vmax.f32 %v12904_v37, %v12906_v42 }
 0xc33   : > { %v12964_v55 = vpop.eup %8772  ;;  %v5035_v48 = vpop.xlane.xlu1 %5034 }
 0xc34   : > { %v5194_v60 = vmul.f32 1.442695, %v5122_v34  ;;  %v5196_v41 = vmul.f32 1.442695, %v5123_v28  ;;  %v5124_v58 = vsub.f32 %v12784_v56, %v5035_v48  ;;  %v5125_v44 = vsub.f32 %v12786_v45, %v5035_v48  ;;  %5307 = vadd.xlane.f32.xlu0 %v5306_v18 }
 0xc35   : > { %v5309_v26 = vadd.f32 %v12964_v55, %v12958_v63 }
 0xc36   : > { %8782 = vpow2.f32 %v5194_v60  ;;  %v5198_v7 = vmul.f32 1.442695, %v5124_v58  ;;  %v5200_v2 = vmul.f32 1.442695, %v5125_v44  ;;  %v14903_v44 = vmax.f32 %v12910_v24, %v12912_v59 }
 0xc37   : > { %8784 = vpow2.f32 %v5196_v41  ;;  %5310 = vadd.xlane.f32.xlu1 %v5309_v26 }
 0xc38   : > { %v12970_v38 = vpop.eup %8774  ;;  %8786 = vpow2.f32 %v5198_v7  ;;  %5091 = vmax.xlane.f32.xlu0 %v14901_v30 }
 0xc39   : > { %v12975_v8 = vpop.eup %8776  ;;  %8788 = vpow2.f32 %v5200_v2  ;;  %v5038_v56 = vpop.xlane.xlu0 %5037 }
 0xc3a   : > { %v12977_v45 = vpop.eup %8778  ;;  %v5126_v3 = vsub.f32 %v12790_v10, %v5038_v56  ;;  %v5127_v32 = vsub.f32 %v12792_v1, %v5038_v56  ;;  %v5312_v53 = vadd.f32 %v12975_v8, %v12970_v38 }
 0xc3b   : > { %v12983_v11 = vpop.eup %8780  ;;  %5094 = vmax.xlane.f32.xlu1 %v14902_v51  ;;  %v5041_v34 = vpop.xlane.xlu1 %5040 }
 0xc3c   : > { %v5202_v28 = vmul.f32 1.442695, %v5126_v3  ;;  %v5204_v18 = vmul.f32 1.442695, %v5127_v32  ;;  %v5128_v48 = vsub.f32 %v12796_v62, %v5041_v34  ;;  %v5129_v60 = vsub.f32 %v12798_v49, %v5041_v34  ;;  %5313 = vadd.xlane.f32.xlu0 %v5312_v53 }
 0xc3d   : > { %v5315_v10 = vadd.f32 %v12983_v11, %v12977_v45  ;;  %v14904_v3 = vmax.f32 %v12916_v25, %v12918_v6 }
 0xc3e   : > { %8790 = vpow2.f32 %v5202_v28  ;;  %v5206_v1 = vmul.f32 1.442695, %v5128_v48  ;;  %v5208_v41 = vmul.f32 1.442695, %v5129_v60  ;;  %v14905_v60 = vmax.f32 %v12922_v50, %v12924_v57 }
 0xc3f   : > { %8792 = vpow2.f32 %v5204_v18  ;;  %5316 = vadd.xlane.f32.xlu1 %v5315_v10 }
 0xc40   : > { %v12992_v58 = vpop.eup %8782  ;;  %8794 = vpow2.f32 %v5206_v1  ;;  %5097 = vmax.xlane.f32.xlu0 %v14903_v44 }
 0xc41   : > { %v12997_v26 = vpop.eup %8784  ;;  %8796 = vpow2.f32 %v5208_v41  ;;  %v5044_v62 = vpop.xlane.xlu0 %5043 }
 0xc42   : > { %v12999_v49 = vpop.eup %8786  ;;  %v5130_v7 = vsub.f32 %v12802_v23, %v5044_v62  ;;  %v5131_v2 = vsub.f32 %v12804_v0, %v5044_v62  ;;  %v5318_v30 = vadd.f32 %v12997_v26, %v12992_v58 }
 0xc43   : > { %v13005_v56 = vpop.eup %8788  ;;  %5100 = vmax.xlane.f32.xlu1 %v14904_v3  ;;  %v5047_v32 = vpop.xlane.xlu1 %5046 }
 0xc44   : > { %v5210_v53 = vmul.f32 1.442695, %v5130_v7  ;;  %v5212_v51 = vmul.f32 1.442695, %v5131_v2  ;;  %v5132_v34 = vsub.f32 %v12808_v35, %v5047_v32  ;;  %v5133_v28 = vsub.f32 %v12810_v4, %v5047_v32  ;;  %5319 = vadd.xlane.f32.xlu0 %v5318_v30 }
 0xc45   : > { %v5321_v23 = vadd.f32 %v13005_v56, %v12999_v49  ;;  %v14906_v7 = vmax.f32 %v12928_v46, %v12930_v27 }
 0xc46   : > { %8798 = vpow2.f32 %v5210_v53  ;;  %v5214_v0 = vmul.f32 1.442695, %v5132_v34  ;;  %v5216_v18 = vmul.f32 1.442695, %v5133_v28  ;;  %v14907_v28 = vmax.f32 %v12934_v9, %v12936_v52 }
 0xc47   : > { %8800 = vpow2.f32 %v5212_v51  ;;  %5322 = vadd.xlane.f32.xlu1 %v5321_v23 }
 0xc48   : > { %v13014_v48 = vpop.eup %8790  ;;  %8802 = vpow2.f32 %v5214_v0  ;;  %5103 = vmax.xlane.f32.xlu0 %v14905_v60 }
 0xc49   : > { %v13019_v10 = vpop.eup %8792  ;;  %8804 = vpow2.f32 %v5216_v18  ;;  %v5050_v35 = vpop.xlane.xlu0 %5049 }
 0xc4a   : > { %v13021_v4 = vpop.eup %8794  ;;  %v5134_v1 = vsub.f32 %v12814_v15, %v5050_v35  ;;  %v5135_v41 = vsub.f32 %v12816_v20, %v5050_v35  ;;  %v5324_v44 = vadd.f32 %v13019_v10, %v13014_v48 }
 0xc4b   : > { %v13027_v62 = vpop.eup %8796  ;;  %5106 = vmax.xlane.f32.xlu1 %v14906_v7  ;;  %v5053_v2 = vpop.xlane.xlu1 %5052 }
 0xc4c   : > { %v5218_v30 = vmul.f32 1.442695, %v5134_v1  ;;  %v5220_v3 = vmul.f32 1.442695, %v5135_v41  ;;  %v5136_v32 = vsub.f32 %v12820_v31, %v5053_v2  ;;  %v5137_v53 = vsub.f32 %v12822_v16, %v5053_v2  ;;  %5325 = vadd.xlane.f32.xlu0 %v5324_v44 }
 0xc4d   : > { %v5327_v15 = vadd.f32 %v13027_v62, %v13021_v4  ;;  %v14908_v1 = vmax.f32 %v12940_v39, %v12942_v40 }
 0xc4e   : > { %8806 = vpow2.f32 %v5218_v30  ;;  %v5222_v20 = vmul.f32 1.442695, %v5136_v32  ;;  %v5224_v51 = vmul.f32 1.442695, %v5137_v53 }
 0xc4f   : > { %8808 = vpow2.f32 %v5220_v3  ;;  %5328 = vadd.xlane.f32.xlu1 %v5327_v15 }
 0xc50   : > { %v13036_v34 = vpop.eup %8798  ;;  %8810 = vpow2.f32 %v5222_v20  ;;  %5109 = vmax.xlane.f32.xlu0 %v14907_v28 }
 0xc51   : > { %v13041_v23 = vpop.eup %8800  ;;  %8812 = vpow2.f32 %v5224_v51  ;;  %v5056_v31 = vpop.xlane.xlu0 %5055 }
 0xc52   : > { %v13043_v16 = vpop.eup %8802  ;;  %v5138_v0 = vsub.f32 %v12826_v29, %v5056_v31  ;;  %v5139_v18 = vsub.f32 %v12828_v33, %v5056_v31  ;;  %v5330_v60 = vadd.f32 %v13041_v23, %v13036_v34 }
 0xc53   : > { %v13049_v35 = vpop.eup %8804  ;;  %5112 = vmax.xlane.f32.xlu1 %v14908_v1  ;;  %v5059_v41 = vpop.xlane.xlu1 %5058 }
 0xc54   : > { %v5226_v44 = vmul.f32 1.442695, %v5138_v0  ;;  %v5228_v7 = vmul.f32 1.442695, %v5139_v18  ;;  %v5140_v2 = vsub.f32 %v12832_v5, %v5059_v41  ;;  %v5141_v30 = vsub.f32 %v12834_v21, %v5059_v41  ;;  %5331 = vadd.xlane.f32.xlu0 %v5330_v60 }
 0xc55   : > { %v5333_v29 = vadd.f32 %v13049_v35, %v13043_v16 }
 0xc56   : > { %8814 = vpow2.f32 %v5226_v44  ;;  %v5230_v33 = vmul.f32 1.442695, %v5140_v2  ;;  %v5232_v3 = vmul.f32 1.442695, %v5141_v30 }
 0xc57   : > { %8816 = vpow2.f32 %v5228_v7  ;;  %5334 = vadd.xlane.f32.xlu1 %v5333_v29 }
 0xc58   : > { %v13058_v32 = vpop.eup %8806  ;;  %8818 = vpow2.f32 %v5230_v33 }
 0xc59   : > { %v13060_v53 = vpop.eup %8808  ;;  %8820 = vpow2.f32 %v5232_v3  ;;  %v5062_v15 = vpop.xlane.xlu0 %5061 }
 0xc5a   : > { %v13062_v20 = vpop.eup %8810  ;;  %v5142_v5 = vsub.f32 %v12838_v12, %v5062_v15  ;;  %v5143_v21 = vsub.f32 %v12840_v54, %v5062_v15  ;;  %v5336_v51 = vadd.f32 %v13060_v53, %v13058_v32 }
 0xc5b   : > { %v13068_v28 = vpop.eup %8812  ;;  %v5065_v31 = vpop.xlane.xlu1 %5064 }
 0xc5c   : > { %v5234_v0 = vmul.f32 1.442695, %v5142_v5  ;;  %v5236_v18 = vmul.f32 1.442695, %v5143_v21  ;;  %v5144_v60 = vsub.f32 %v12844_v17, %v5065_v31  ;;  %v5145_v1 = vsub.f32 %v12846_v36, %v5065_v31  ;;  %5337 = vadd.xlane.f32.xlu0 %v5336_v51  ;;  %v14909_v51 = vld [vmem:[#allocation39_spill] sm:$0xff] }
 0xc5d   : > { %v5339_v41 = vadd.f32 %v13068_v28, %v13062_v20 }
 0xc5e   : > { %8822 = vpow2.f32 %v5234_v0  ;;  %v5238_v12 = vmul.f32 1.442695, %v5144_v60  ;;  %v5240_v44 = vmul.f32 1.442695, %v5145_v1 }
 0xc5f   : > { %8824 = vpow2.f32 %v5236_v18  ;;  %5340 = vadd.xlane.f32.xlu1 %v5339_v41 }
 0xc60   : > { %v13074_v54 = vpop.eup %8814  ;;  %8826 = vpow2.f32 %v5238_v12 }
 0xc61   : > { %v13076_v7 = vpop.eup %8816  ;;  %8828 = vpow2.f32 %v5240_v44  ;;  %v5068_v2 = vpop.xlane.xlu0 %5067  ;;  %v14913_v44 = vld [vmem:[#allocation59_spill] sm:$0xff] }
 0xc62   : > { %v13078_v30 = vpop.eup %8818  ;;  %v5146_v17 = vsub.f32 %v12850_v61, %v5068_v2  ;;  %v5147_v36 = vsub.f32 %v12852_v19, %v5068_v2  ;;  %v5342_v29 = vadd.f32 %v13076_v7, %v13074_v54 }
 0xc63   : > { %v13084_v33 = vpop.eup %8820  ;;  %v5071_v3 = vpop.xlane.xlu1 %5070 }
 0xc64   : > { %v5242_v15 = vmul.f32 1.442695, %v5146_v17  ;;  %v5244_v5 = vmul.f32 1.442695, %v5147_v36  ;;  %v5148_v21 = vsub.f32 %v12856_v22, %v5071_v3  ;;  %v5149_v31 = vsub.f32 %v14909_v51, %v5071_v3  ;;  %5343 = vadd.xlane.f32.xlu0 %v5342_v29  ;;  %v14912_v22 = vld [vmem:[#allocation60_spill] sm:$0xff]  ;;  %v14916_v51 = vld [vmem:[#allocation14_spill] sm:$0xff] }
 0xc65   : > { %v5345_v0 = vadd.f32 %v13084_v33, %v13078_v30 }
 0xc66   : > { %8830 = vpow2.f32 %v5242_v15  ;;  %v5246_v61 = vmul.f32 1.442695, %v5148_v21  ;;  %v5248_v18 = vmul.f32 1.442695, %v5149_v31 }
 0xc67   : > { %8832 = vpow2.f32 %v5244_v5  ;;  %5346 = vadd.xlane.f32.xlu1 %v5345_v0  ;;  %v14915_v5 = vld [vmem:[#allocation13_spill] sm:$0xff] }
 0xc68   : > { %v13090_v19 = vpop.eup %8822  ;;  %8834 = vpow2.f32 %v5246_v61 }
 0xc69   : > { %14910 = vst [vmem:[#allocation66_spill] sm:$0xff] %v13090_v19  ;;  %v13092_v60 = vpop.eup %8824  ;;  %8836 = vpow2.f32 %v5248_v18  ;;  %v5074_v1 = vpop.xlane.xlu0 %5073 }
 0xc6a   : > { %v13094_v41 = vpop.eup %8826  ;;  %v5150_v12 = vsub.f32 %v14912_v22, %v5074_v1  ;;  %v5151_v2 = vsub.f32 %v14913_v44, %v5074_v1  ;;  %v5348_v17 = vadd.f32 %v13092_v60, %v13090_v19  ;;  %v14924_v19 = vld [vmem:[#allocation63_spill] sm:$0xff] }
 0xc6b   : > { %14911 = vst [vmem:[#allocation65_spill] sm:$0xff] %v13094_v41  ;;  %v13100_v36 = vpop.eup %8828  ;;  %v5077_v29 = vpop.xlane.xlu1 %5076 }
 0xc6c   : > { %14914 = vst [vmem:[#allocation72_spill] sm:$0xff] %v13100_v36  ;;  %v5250_v3 = vmul.f32 1.442695, %v5150_v12  ;;  %v5252_v15 = vmul.f32 1.442695, %v5151_v2  ;;  %v5152_v21 = vsub.f32 %v14915_v5, %v5077_v29  ;;  %v5153_v31 = vsub.f32 %v14916_v51, %v5077_v29  ;;  %5349 = vadd.xlane.f32.xlu0 %v5348_v17  ;;  %v14920_v2 = vld [vmem:[#allocation58_spill] sm:$0xff] }
 0xc6d   : > { %v5351_v0 = vadd.f32 %v13100_v36, %v13094_v41  ;;  %v14921_v17 = vld [vmem:[#allocation57_spill] sm:$0xff] }
 0xc6e   : > { %8838 = vpow2.f32 %v5250_v3  ;;  %v5254_v61 = vmul.f32 1.442695, %v5152_v21  ;;  %v5256_v18 = vmul.f32 1.442695, %v5153_v31 }
 0xc6f   : > { %8840 = vpow2.f32 %v5252_v15  ;;  %5352 = vadd.xlane.f32.xlu1 %v5351_v0  ;;  %v14923_v0 = vld [vmem:[#allocation64_spill] sm:$0xff] }
 0xc70   : > { %v13106_v1 = vpop.eup %8830  ;;  %8842 = vpow2.f32 %v5254_v61 }
 0xc71   : > { %14917 = vst [vmem:[#allocation71_spill] sm:$0xff] %v13106_v1  ;;  %v13108_v22 = vpop.eup %8832  ;;  %8844 = vpow2.f32 %v5256_v18  ;;  %v5080_v12 = vpop.xlane.xlu0 %5079 }
 0xc72   : > { %14918 = vst [vmem:[#allocation70_spill] sm:$0xff] %v13108_v22  ;;  %v13110_v44 = vpop.eup %8834  ;;  %v5154_v29 = vsub.f32 %v14920_v2, %v5080_v12  ;;  %v5155_v5 = vsub.f32 %v14921_v17, %v5080_v12  ;;  %v5354_v3 = vadd.f32 %v13108_v22, %v13106_v1  ;;  %v14927_v1 = vld [vmem:[#allocation68_spill] sm:$0xff] }
 0xc73   : > { %14919 = vst [vmem:[#allocation69_spill] sm:$0xff] %v13110_v44  ;;  %v13116_v21 = vpop.eup %8836  ;;  %v5083_v15 = vpop.xlane.xlu1 %5082 }
 0xc74   : > { %14922 = vst [vmem:[#allocation76_spill] sm:$0xff] %v13116_v21  ;;  %v5258_v51 = vmul.f32 1.442695, %v5154_v29  ;;  %v5260_v31 = vmul.f32 1.442695, %v5155_v5  ;;  %v5156_v61 = vsub.f32 %v14923_v0, %v5083_v15  ;;  %v5157_v41 = vsub.f32 %v14924_v19, %v5083_v15  ;;  %5355 = vadd.xlane.f32.xlu0 %v5354_v3  ;;  %v14925_v0 = vld [vmem:[#allocation62_spill] sm:$0xff] }
 0xc75   : > { %v5357_v18 = vadd.f32 %v13116_v21, %v13110_v44  ;;  %v14926_v3 = vld [vmem:[#allocation61_spill] sm:$0xff]  ;;  %v14928_v44 = vld [vmem:[#allocation67_spill] sm:$0xff] }
 0xc76   : > { %8846 = vpow2.f32 %v5258_v51  ;;  %v5262_v2 = vmul.f32 1.442695, %v5156_v61  ;;  %v5264_v36 = vmul.f32 1.442695, %v5157_v41 }
 0xc77   : > { %8848 = vpow2.f32 %v5260_v31  ;;  %5358 = vadd.xlane.f32.xlu1 %v5357_v18 }
 0xc78   : > { %v13122_v12 = vpop.eup %8838  ;;  %8850 = vpow2.f32 %v5262_v2 }
 0xc79   : > { %v13124_v17 = vpop.eup %8840  ;;  %8852 = vpow2.f32 %v5264_v36  ;;  %v5086_v29 = vpop.xlane.xlu0 %5085 }
 0xc7a   : > { %v13126_v5 = vpop.eup %8842  ;;  %v5158_v19 = vsub.f32 %v14925_v0, %v5086_v29  ;;  %v5159_v15 = vsub.f32 %v14926_v3, %v5086_v29  ;;  %v5360_v51 = vadd.f32 %v13124_v17, %v13122_v12 }
 0xc7b   : > { %v13132_v61 = vpop.eup %8844  ;;  %v5089_v41 = vpop.xlane.xlu1 %5088 }
 0xc7c   : > { %v5266_v31 = vmul.f32 1.442695, %v5158_v19  ;;  %v5268_v18 = vmul.f32 1.442695, %v5159_v15  ;;  %v5160_v2 = vsub.f32 %v14927_v1, %v5089_v41  ;;  %v5161_v21 = vsub.f32 %v14928_v44, %v5089_v41  ;;  %5361 = vadd.xlane.f32.xlu0 %v5360_v51 }
 0xc7d   : > { %v5363_v36 = vadd.f32 %v13132_v61, %v13126_v5 }
 0xc7e   : > { %8854 = vpow2.f32 %v5266_v31  ;;  %v5270_v0 = vmul.f32 1.442695, %v5160_v2  ;;  %v5272_v22 = vmul.f32 1.442695, %v5161_v21 }
 0xc7f   : > { %8856 = vpow2.f32 %v5268_v18  ;;  %5364 = vadd.xlane.f32.xlu1 %v5363_v36 }
 0xc80   : > { %v13138_v29 = vpop.eup %8846  ;;  %8858 = vpow2.f32 %v5270_v0 }
 0xc81   : > { %14929 = vst [vmem:[#allocation75_spill] sm:$0xff] %v13138_v29  ;;  %v13140_v3 = vpop.eup %8848  ;;  %8860 = vpow2.f32 %v5272_v22 }
 0xc82   : > { %v13142_v19 = vpop.eup %8850  ;;  %v5366_v1 = vadd.f32 %v13140_v3, %v13138_v29 }
 0xc83   : > { %14930 = vst [vmem:[#allocation74_spill] sm:$0xff] %v13142_v19  ;;  %v13146_v44 = vpop.eup %8852 }
 0xc84   : > { %14931 = vst [vmem:[#allocation73_spill] sm:$0xff] %v13146_v44  ;;  %5367 = vadd.xlane.f32.xlu0 %v5366_v1  ;;  %v5369_v15 = vadd.f32 %v13146_v44, %v13142_v19 }
 0xc86   : > { %5370 = vadd.xlane.f32.xlu1 %v5369_v15 }
 0xc88   : > { %v13150_v21 = vpop.eup %8854 }
 0xc89   : > { %14932 = vst [vmem:[#allocation80_spill] sm:$0xff] %v13150_v21  ;;  %v13152_v51 = vpop.eup %8856 }
 0xc8a   : > { %14933 = vst [vmem:[#allocation79_spill] sm:$0xff] %v13152_v51  ;;  %v13154_v41 = vpop.eup %8858  ;;  %v5372_v22 = vadd.f32 %v13152_v51, %v13150_v21 }
 0xc8b   : > { %14934 = vst [vmem:[#allocation78_spill] sm:$0xff] %v13154_v41  ;;  %v13158_v31 = vpop.eup %8860 }
 0xc8c   : > { %14935 = vst [vmem:[#allocation77_spill] sm:$0xff] %v13158_v31  ;;  %5373 = vadd.xlane.f32.xlu0 %v5372_v22  ;;  %v5375_v18 = vadd.f32 %v13158_v31, %v13154_v41 }
 0xc8e   : > { %5376 = vadd.xlane.f32.xlu1 %v5375_v18 }
 0xcc1   : > { %v5308_v2 = vpop.xlane.xlu0 %5307 }
 0xcc2   : > { %8862 = vrcp.f32 %v5308_v2 }
 0xcc4   : > { %v5311_v36 = vpop.xlane.xlu1 %5310 }
 0xcc5   : > { %8864 = vrcp.f32 %v5311_v36  ;;  %v5092_v0 = vpop.xlane.xlu0 %5091 }
 0xcc6   : > { %v5162_v1 = vsub.f32 %v12898_v47, %v5092_v0  ;;  %v5163_v15 = vsub.f32 %v12900_v43, %v5092_v0 }
 0xcc8   : > { %v5274_v29 = vmul.f32 1.442695, %v5162_v1  ;;  %v5276_v19 = vmul.f32 1.442695, %v5163_v15  ;;  %v5095_v44 = vpop.xlane.xlu1 %5094 }
 0xcc9   : > { %v5164_v21 = vsub.f32 %v12904_v37, %v5095_v44  ;;  %v5165_v22 = vsub.f32 %v12906_v42, %v5095_v44  ;;  %v5314_v51 = vpop.xlane.xlu0 %5313 }
 0xcca   : > { %8866 = vpow2.f32 %v5274_v29 }
 0xccb   : > { %8868 = vpow2.f32 %v5276_v19  ;;  %v5278_v18 = vmul.f32 1.442695, %v5164_v21  ;;  %v5280_v41 = vmul.f32 1.442695, %v5165_v22 }
 0xccc   : > { %v8863_v2 = vpop.eup %8862  ;;  %8870 = vrcp.f32 %v5314_v51  ;;  %v5317_v36 = vpop.xlane.xlu1 %5316 }
 0xccd   : > { %8872 = vpow2.f32 %v5278_v18  ;;  %v5098_v31 = vpop.xlane.xlu0 %5097  ;;  %v5435_v37 = vmul.f32 %v8863_v2, %v12956_v14  ;;  %v5434_v42 = vmul.f32 %v8863_v2, %v12954_v13 }
 0xcce   : > { %8874 = vpow2.f32 %v5280_v41  ;;  %v5166_v47 = vsub.f32 %v12910_v24, %v5098_v31  ;;  %v5167_v43 = vsub.f32 %v12912_v59, %v5098_v31 }
 0xccf   : > { %v8865_v0 = vpop.eup %8864  ;;  %8876 = vrcp.f32 %v5317_v36 }
 0xcd0   : > { %v5282_v29 = vmul.f32 1.442695, %v5166_v47  ;;  %v5284_v19 = vmul.f32 1.442695, %v5167_v43  ;;  %v5101_v44 = vpop.xlane.xlu1 %5100  ;;  %v5437_v21 = vmul.f32 %v8865_v0, %v12964_v55  ;;  %v5436_v51 = vmul.f32 %v8865_v0, %v12958_v63 }
 0xcd1   : > { %v5168_v1 = vsub.f32 %v12916_v25, %v5101_v44  ;;  %v5169_v41 = vsub.f32 %v12918_v6, %v5101_v44  ;;  %v5320_v24 = vpop.xlane.xlu0 %5319 }
 0xcd2   : > { %8878 = vpow2.f32 %v5282_v29  ;;  %v7918_v59 = vpack.c.bf16 %v5437_v21, %v5435_v37  ;;  %v7920_v31 = vpack.c.bf16 %v5436_v51, %v5434_v42 }
 0xcd3   : > { %8880 = vpow2.f32 %v5284_v19  ;;  %v5286_v15 = vmul.f32 1.442695, %v5168_v1  ;;  %v5288_v14 = vmul.f32 1.442695, %v5169_v41 }
 0xcd4   : > { %v13174_v22 = vpop.eup %8866  ;;  %8882 = vrcp.f32 %v5320_v24  ;;  %7919 = vmatprep.subr.bf16.mxu1 %v7918_v59  ;;  %v5323_v13 = vpop.xlane.xlu1 %5322 }
 0xcd5   : > { %v13176_v18 = vpop.eup %8868  ;;  %8884 = vpow2.f32 %v5286_v15  ;;  %7921 = vmatpush1.bf16.xpose.msra.mxu1 %v7920_v31  ;;  %v5104_v63 = vpop.xlane.xlu0 %5103 }
 0xcd6   : > { %v8871_v25 = vpop.eup %8870  ;;  %8886 = vpow2.f32 %v5288_v14  ;;  %v5170_v6 = vsub.f32 %v12922_v50, %v5104_v63  ;;  %v5171_v55 = vsub.f32 %v12924_v57, %v5104_v63  ;;  %v5378_v2 = vadd.f32 %v13176_v18, %v13174_v22 }
 0xcd7   : > { %v13182_v36 = vpop.eup %8872  ;;  %8888 = vrcp.f32 %v5323_v13  ;;  %v5439_v44 = vmul.f32 %v8871_v25, %v12975_v8  ;;  %v5438_v51 = vmul.f32 %v8871_v25, %v12970_v38 }
 0xcd8   : > { %v13184_v47 = vpop.eup %8874  ;;  %v5290_v43 = vmul.f32 1.442695, %v5170_v6  ;;  %v5292_v0 = vmul.f32 1.442695, %v5171_v55  ;;  %v5107_v37 = vpop.xlane.xlu1 %5106  ;;  %5379 = vadd.xlane.f32.xlu0 %v5378_v2 }
 0xcd9   : > { %v8877_v42 = vpop.eup %8876  ;;  %v5172_v29 = vsub.f32 %v12928_v46, %v5107_v37  ;;  %v5173_v19 = vsub.f32 %v12930_v27, %v5107_v37  ;;  %v5326_v50 = vpop.xlane.xlu0 %5325  ;;  %v5381_v57 = vadd.f32 %v13184_v47, %v13182_v36 }
 0xcda   : > { %8890 = vpow2.f32 %v5290_v43  ;;  %v5441_v21 = vmul.f32 %v8877_v42, %v12983_v11  ;;  %v5440_v1 = vmul.f32 %v8877_v42, %v12977_v45 }
 0xcdb   : > { %8892 = vpow2.f32 %v5292_v0  ;;  %v5294_v41 = vmul.f32 1.442695, %v5172_v29  ;;  %v5296_v24 = vmul.f32 1.442695, %v5173_v19  ;;  %5382 = vadd.xlane.f32.xlu1 %v5381_v57 }
 0xcdc   : > { %v13194_v46 = vpop.eup %8878  ;;  %8894 = vrcp.f32 %v5326_v50  ;;  %v7922_v27 = vpack.c.bf16 %v5441_v21, %v5439_v44  ;;  %v5329_v59 = vpop.xlane.xlu1 %5328  ;;  %v7924_v31 = vpack.c.bf16 %v5440_v1, %v5438_v51 }
 0xcdd   : > { %v13196_v15 = vpop.eup %8880  ;;  %8896 = vpow2.f32 %v5294_v41  ;;  %v5110_v8 = vpop.xlane.xlu0 %5109 }
 0xcde   : > { %v8883_v14 = vpop.eup %8882  ;;  %8898 = vpow2.f32 %v5296_v24  ;;  %7923 = vmatprep.subr.bf16.mxu1 %v7922_v27  ;;  %v5174_v38 = vsub.f32 %v12934_v9, %v5110_v8  ;;  %v5175_v45 = vsub.f32 %v12936_v52, %v5110_v8  ;;  %v5384_v11 = vadd.f32 %v13196_v15, %v13194_v46 }
 0xcdf   : > { %v13202_v13 = vpop.eup %8884  ;;  %8900 = vrcp.f32 %v5329_v59  ;;  %7925 = vmatpush1.bf16.xpose.msra.mxu1 %v7924_v31  ;;  %v5443_v37 = vmul.f32 %v8883_v14, %v12997_v26  ;;  %v5442_v29 = vmul.f32 %v8883_v14, %v12992_v58 }
 0xce0   : > { %v13204_v63 = vpop.eup %8886  ;;  %v5298_v25 = vmul.f32 1.442695, %v5174_v38  ;;  %v5300_v6 = vmul.f32 1.442695, %v5175_v45  ;;  %5385 = vadd.xlane.f32.xlu0 %v5384_v11  ;;  %v5113_v55 = vpop.xlane.xlu1 %5112 }
 0xce1   : > { %v8889_v2 = vpop.eup %8888  ;;  %v5176_v43 = vsub.f32 %v12940_v39, %v5113_v55  ;;  %v5177_v9 = vsub.f32 %v12942_v40, %v5113_v55  ;;  %v5332_v0 = vpop.xlane.xlu0 %5331  ;;  %v5387_v52 = vadd.f32 %v13204_v63, %v13202_v13 }
 0xce2   : > { %8902 = vpow2.f32 %v5298_v25  ;;  %v5445_v42 = vmul.f32 %v8889_v2, %v13005_v56  ;;  %v5444_v19 = vmul.f32 %v8889_v2, %v12999_v49 }
 0xce3   : > { %8904 = vpow2.f32 %v5300_v6  ;;  %v5302_v50 = vmul.f32 1.442695, %v5176_v43  ;;  %v5304_v57 = vmul.f32 1.442695, %v5177_v9  ;;  %5388 = vadd.xlane.f32.xlu1 %v5387_v52 }
 0xce4   : > { %v13214_v39 = vpop.eup %8890  ;;  %8906 = vrcp.f32 %v5332_v0  ;;  %v7926_v40 = vpack.c.bf16 %v5445_v42, %v5443_v37  ;;  %v5335_v44 = vpop.xlane.xlu1 %5334  ;;  %v7928_v21 = vpack.c.bf16 %v5444_v19, %v5442_v29 }
 0xce5   : > { %v13216_v51 = vpop.eup %8892  ;;  %8908 = vpow2.f32 %v5302_v50 }
 0xce6   : > { %v8895_v26 = vpop.eup %8894  ;;  %8910 = vpow2.f32 %v5304_v57  ;;  %7927 = vmatprep.subr.bf16.mxu1 %v7926_v40  ;;  %v5390_v58 = vadd.f32 %v13216_v51, %v13214_v39 }
 0xce7   : > { %v13220_v49 = vpop.eup %8896  ;;  %8912 = vrcp.f32 %v5335_v44  ;;  %7929 = vmatpush1.bf16.xpose.msra.mxu1 %v7928_v21  ;;  %v5447_v27 = vmul.f32 %v8895_v26, %v13019_v10  ;;  %v5446_v31 = vmul.f32 %v8895_v26, %v13014_v48 }
 0xce8   : > { %v13222_v56 = vpop.eup %8898  ;;  %5391 = vadd.xlane.f32.xlu0 %v5390_v58 }
 0xce9   : > { %v8901_v1 = vpop.eup %8900  ;;  %v5338_v41 = vpop.xlane.xlu0 %5337  ;;  %v5393_v24 = vadd.f32 %v13222_v56, %v13220_v49 }
 0xcea   : > { %v5449_v59 = vmul.f32 %v8901_v1, %v13027_v62  ;;  %v5448_v8 = vmul.f32 %v8901_v1, %v13021_v4  ;;  %8914 = vrcp.f32 %v5338_v41 }
 0xceb   : > { %5394 = vadd.xlane.f32.xlu1 %v5393_v24 }
 0xcec   : > { %v13230_v14 = vpop.eup %8902  ;;  %v7930_v38 = vpack.c.bf16 %v5449_v59, %v5447_v27  ;;  %v5341_v45 = vpop.xlane.xlu1 %5340  ;;  %v7932_v11 = vpack.c.bf16 %v5448_v8, %v5446_v31  ;;  %v14936_v27 = vld [vmem:[#allocation7_spill] sm:$0xff]  ;;  %v14939_v8 = vld [vmem:[#allocation72_spill] sm:$0xff] }
 0xced   : > { %v13232_v25 = vpop.eup %8904  ;;  %8916 = vrcp.f32 %v5341_v45  ;;  %v14940_v45 = vld [vmem:[#allocation65_spill] sm:$0xff] }
 0xcee   : > { %v8907_v6 = vpop.eup %8906  ;;  %7931 = vmatprep.subr.bf16.mxu1 %v7930_v38  ;;  %v5396_v10 = vadd.f32 %v13232_v25, %v13230_v14 }
 0xcef   : > { %v13236_v62 = vpop.eup %8908  ;;  %7933 = vmatpush1.bf16.xpose.msra.mxu1 %v7932_v11  ;;  %v5451_v43 = vmul.f32 %v8907_v6, %v13041_v23  ;;  %v5450_v0 = vmul.f32 %v8907_v6, %v13036_v34 }
 0xcf0   : > { %v13238_v48 = vpop.eup %8910  ;;  %5397 = vadd.xlane.f32.xlu0 %v5396_v10  ;;  %v14941_v10 = vld [vmem:[#allocation66_spill] sm:$0xff] }
 0xcf1   : > { %v8913_v4 = vpop.eup %8912  ;;  %v5344_v55 = vpop.xlane.xlu0 %5343  ;;  %v5399_v2 = vadd.f32 %v13238_v48, %v13236_v62 }
 0xcf2   : > { %v5453_v9 = vmul.f32 %v8913_v4, %v13049_v35  ;;  %v5452_v52 = vmul.f32 %v8913_v4, %v13043_v16  ;;  %8918 = vrcp.f32 %v5344_v55  ;;  %v14942_v55 = vld [vmem:[#allocation9_spill] sm:$0xff] }
 0xcf3   : > { %5400 = vadd.xlane.f32.xlu1 %v5399_v2 }
 0xcf4   : > { %v7934_v37 = vpack.c.bf16 %v5453_v9, %v5451_v43  ;;  %v5347_v42 = vpop.xlane.xlu1 %5346  ;;  %v7936_v29 = vpack.c.bf16 %v5452_v52, %v5450_v0  ;;  %v8915_v19 = vpop.eup %8914  ;;  %v14943_v9 = vld [vmem:[#allocation10_spill] sm:$0xff] }
 0xcf5   : > { %8920 = vrcp.f32 %v5347_v42  ;;  %v5455_v57 = vmul.f32 %v8915_v19, %v13060_v53  ;;  %v5454_v34 = vmul.f32 %v8915_v19, %v13058_v32  ;;  %v14945_v42 = vld [vmem:[#allocation12_spill] sm:$0xff] }
 0xcf6   : > { %7935 = vmatprep.subr.bf16.mxu1 %v7934_v37 }
 0xcf7   : > { %v8917_v50 = vpop.eup %8916  ;;  %7937 = vmatpush1.bf16.xpose.msra.mxu1 %v7936_v29  ;;  %v14946_v29 = vld [vmem:[#allocation70_spill] sm:$0xff] }
 0xcf8   : > { %v5457_v23 = vmul.f32 %v8917_v50, %v13068_v28  ;;  %v5456_v35 = vmul.f32 %v8917_v50, %v13062_v20  ;;  %v14947_v50 = vld [vmem:[#allocation76_spill] sm:$0xff] }
 0xcf9   : > { %v5350_v40 = vpop.xlane.xlu0 %5349 }
 0xcfa   : > { %v7938_v16 = vpack.c.bf16 %v5457_v23, %v5455_v57  ;;  %8922 = vrcp.f32 %v5350_v40  ;;  %v7940_v44 = vpack.c.bf16 %v5456_v35, %v5454_v34  ;;  %v14948_v23 = vld [vmem:[#allocation69_spill] sm:$0xff]  ;;  %v14949_v34 = vld [vmem:[#allocation71_spill] sm:$0xff] }
 0xcfc   : > { %7939 = vmatprep.subr.bf16.mxu1 %v7938_v16  ;;  %v5353_v21 = vpop.xlane.xlu1 %5352  ;;  %v8919_v26 = vpop.eup %8918 }
 0xcfd   : > { %8924 = vrcp.f32 %v5353_v21  ;;  %v5459_v1 = vmul.f32 %v8919_v26, %v13076_v7  ;;  %v5458_v20 = vmul.f32 %v8919_v26, %v13074_v54  ;;  %v14937_v7 = vld [vmem:[#allocation6_spill] sm:$0xff] }
 0xcff   : > { %v8921_v58 = vpop.eup %8920  ;;  %7941 = vmatpush1.bf16.xpose.msra.mxu1 %v7940_v44  ;;  %v14950_v44 = vld [vmem:[#allocation21_spill] sm:$0xff] }
 0xd00   : > { %v5461_v53 = vmul.f32 %v8921_v58, %v13084_v33  ;;  %v5460_v28 = vmul.f32 %v8921_v58, %v13078_v30  ;;  %v14938_v30 = vld [vmem:[#allocation8_spill] sm:$0xff] }
 0xd01   : > { %v5356_v41 = vpop.xlane.xlu0 %5355 }
 0xd02   : > { %v7942_v24 = vpack.c.bf16 %v5461_v53, %v5459_v1  ;;  %8926 = vrcp.f32 %v5356_v41  ;;  %v7944_v32 = vpack.c.bf16 %v5460_v28, %v5458_v20  ;;  %v14951_v1 = vld [vmem:[#allocation19_spill] sm:$0xff]  ;;  %v14953_v20 = vld [vmem:[#allocation24_spill] sm:$0xff] }
 0xd03   : > { %v14952_v28 = vld [vmem:[#allocation23_spill] sm:$0xff] }
 0xd04   : > { %5575 = vrot.lane.b32.xlu1 %v14936_v27, %s9549_s22  ;;  %7943 = vmatprep.subr.bf16.mxu1 %v7942_v24  ;;  %v5359_v59 = vpop.xlane.xlu1 %5358  ;;  %v8923_v31 = vpop.eup %8922 }
 0xd05   : > { %8928 = vrcp.f32 %v5359_v59  ;;  %v5463_v54 = vmul.f32 %v8923_v31, %v13092_v60  ;;  %v5462_v4 = vmul.f32 %v8923_v31, %v14941_v10  ;;  %v14944_v60 = vld [vmem:[#allocation11_spill] sm:$0xff]  ;;  %v14959_v10 = vld [vmem:[#allocation28_spill] sm:$0xff] }
 0xd06   : > { %5573 = vrot.lane.b32.xlu0 %v14937_v7, %s9549_s22  ;;  %v14954_v7 = vld [vmem:[#allocation25_spill] sm:$0xff] }
 0xd07   : > { %v8925_v33 = vpop.eup %8924  ;;  %7945 = vmatpush1.bf16.xpose.msra.mxu1 %v7944_v32 }
 0xd08   : > { %5577 = vrot.lane.b32.xlu1 %v14938_v30, %s9549_s22  ;;  %v5465_v38 = vmul.f32 %v8925_v33, %v14939_v8  ;;  %v5464_v11 = vmul.f32 %v8925_v33, %v14940_v45 }
 0xd09   : > { %v5362_v6 = vpop.xlane.xlu0 %5361 }
 0xd0a   : > { %5579 = vrot.lane.b32.xlu0 %v14942_v55, %s9549_s22  ;;  %v7946_v2 = vpack.c.bf16 %v5465_v38, %v5463_v54  ;;  %8930 = vrcp.f32 %v5362_v6  ;;  %v7948_v43 = vpack.c.bf16 %v5464_v11, %v5462_v4  ;;  %v14955_v38 = vld [vmem:[#allocation26_spill] sm:$0xff]  ;;  %v14960_v55 = vld [vmem:[#allocation75_spill] sm:$0xff] }
 0xd0b   : > { %v14958_v11 = vld [vmem:[#allocation74_spill] sm:$0xff] }
 0xd0c   : > { %5581 = vrot.lane.b32.xlu1 %v14943_v9, %s9549_s22  ;;  %7947 = vmatprep.subr.bf16.mxu1 %v7946_v2  ;;  %v5365_v0 = vpop.xlane.xlu1 %5364  ;;  %v8927_v52 = vpop.eup %8926 }
 0xd0d   : > { %8932 = vrcp.f32 %v5365_v0  ;;  %v5467_v19 = vmul.f32 %v8927_v52, %v14946_v29  ;;  %v5466_v16 = vmul.f32 %v8927_v52, %v14949_v34  ;;  %v14964_v29 = vld [vmem:[#allocation78_spill] sm:$0xff] }
 0xd0e   : > { %5583 = vrot.lane.b32.xlu0 %v14944_v60, %s9549_s22  ;;  %v14962_v60 = vld [vmem:[#allocation79_spill] sm:$0xff] }
 0xd0f   : > { %v8929_v37 = vpop.eup %8928  ;;  %7949 = vmatpush1.bf16.xpose.msra.mxu1 %v7948_v43  ;;  %v14961_v43 = vld [vmem:[#allocation31_spill] sm:$0xff] }
 0xd10   : > { %5585 = vrot.lane.b32.xlu1 %v14945_v42, %s9549_s22  ;;  %v5469_v57 = vmul.f32 %v8929_v37, %v14947_v50  ;;  %v5468_v35 = vmul.f32 %v8929_v37, %v14948_v23  ;;  %v14963_v37 = vld [vmem:[#allocation77_spill] sm:$0xff] }
 0xd11   : > { %v5368_v40 = vpop.xlane.xlu0 %5367 }
 0xd12   : > { %5587 = vrot.lane.b32.xlu0 %v14950_v44, %s9549_s22  ;;  %8934 = vrcp.f32 %v5368_v40  ;;  %v7950_v21 = vpack.c.bf16 %v5469_v57, %v5467_v19  ;;  %v7952_v58 = vpack.c.bf16 %v5468_v35, %v5466_v16  ;;  %v14965_v57 = vld [vmem:[#allocation80_spill] sm:$0xff] }
 0xd13   : > { %v5371_v26 = vpop.xlane.xlu1 %5370 }
 0xd14   : > { %5589 = vrot.lane.b32.xlu1 %v14951_v1, %s9549_s22  ;;  %7951 = vmatprep.subr.bf16.mxu1 %v7950_v21  ;;  %8936 = vrcp.f32 %v5371_v26  ;;  %v8931_v53 = vpop.eup %8930 }
 0xd15   : > { %v5471_v24 = vmul.f32 %v8931_v53, %v13124_v17  ;;  %v5470_v31 = vmul.f32 %v8931_v53, %v13122_v12 }
 0xd16   : > { %5591 = vrot.lane.b32.xlu0 %v14952_v28, %s9549_s22 }
 0xd17   : > { %v8933_v41 = vpop.eup %8932  ;;  %7953 = vmatpush1.bf16.xpose.msra.mxu1 %v7952_v58 }
 0xd18   : > { %5593 = vrot.lane.b32.xlu1 %v14953_v20, %s9549_s22  ;;  %v5473_v32 = vmul.f32 %v8933_v41, %v13132_v61  ;;  %v5472_v27 = vmul.f32 %v8933_v41, %v13126_v5  ;;  %v14956_v61 = vld [vmem:[#allocation27_spill] sm:$0xff]  ;;  %v14957_v5 = vld [vmem:[#allocation73_spill] sm:$0xff] }
 0xd19   : > { %v5374_v59 = vpop.xlane.xlu0 %5373 }
 0xd1a   : > { %5595 = vrot.lane.b32.xlu0 %v14954_v7, %s9549_s22  ;;  %8938 = vrcp.f32 %v5374_v59  ;;  %v7954_v33 = vpack.c.bf16 %v5473_v32, %v5471_v24  ;;  %v7956_v54 = vpack.c.bf16 %v5472_v27, %v5470_v31 }
 0xd1b   : > { %v5377_v30 = vpop.xlane.xlu1 %5376 }
 0xd1c   : > { %v8935_v8 = vpop.eup %8934  ;;  %5597 = vrot.lane.b32.xlu1 %v14955_v38, %s9549_s22  ;;  %7955 = vmatprep.subr.bf16.mxu1 %v7954_v33  ;;  %8940 = vrcp.f32 %v5377_v30 }
 0xd1d   : > { %v5475_v12 = vmul.f32 %v8935_v8, %v13140_v3  ;;  %v5474_v2 = vmul.f32 %v8935_v8, %v14960_v55 }
 0xd1e   : > { %v8937_v17 = vpop.eup %8936  ;;  %5599 = vrot.lane.b32.xlu0 %v14956_v61, %s9549_s22 }
 0xd1f   : > { %7957 = vmatpush1.bf16.xpose.msra.mxu1 %v7956_v54  ;;  %v5477_v45 = vmul.f32 %v8937_v17, %v14957_v5  ;;  %v5476_v6 = vmul.f32 %v8937_v17, %v14958_v11 }
 0xd20   : > { %5601 = vrot.lane.b32.xlu1 %v14959_v10, %s9549_s22  ;;  %v14968_v10 = vld [vmem:[#allocation4_spill] sm:$0xff] }
 0xd21   : > { %v7958_v4 = vpack.c.bf16 %v5477_v45, %v5475_v12  ;;  %v7960_v9 = vpack.c.bf16 %v5476_v6, %v5474_v2 }
 0xd22   : > { %5603 = vrot.lane.b32.xlu0 %v14961_v43, %s9549_s22 }
 0xd23   : > { %7959 = vmatprep.subr.bf16.mxu1 %v7958_v4  ;;  %v14969_v4 = vmov 0  }
 0xd24   : > { %v8939_v0 = vpop.eup %8938 }
 0xd25   : > { %v5479_v3 = vmul.f32 %v8939_v0, %v14962_v60  ;;  %v5478_v23 = vmul.f32 %v8939_v0, %v14965_v57 }
 0xd26   : > { %v8941_v52 = vpop.eup %8940 }
 0xd27   : > { %7961 = vmatpush1.bf16.xpose.msra.mxu1 %v7960_v9  ;;  %v5481_v42 = vmul.f32 %v8941_v52, %v14963_v37  ;;  %v5480_v19 = vmul.f32 %v8941_v52, %v14964_v29 }
 0xd29   : > { %v7962_v50 = vpack.c.bf16 %v5481_v42, %v5479_v3  ;;  %v7964_v35 = vpack.c.bf16 %v5480_v19, %v5478_v23 }
 0xd2b   : > { %7963 = vmatprep.subr.bf16.mxu1 %v7962_v50 }
 0xd2f   : > { %7965 = vmatpush1.bf16.xpose.msra.mxu1 %v7964_v35  ;;  %v9410_v35 = vld [vmem:[%s14389_s4] ss:$8 sps:$4 sm:$0xff]  }
 0xd65   : > { %v5380_v40 = vpop.xlane.xlu0 %5379 }
 0xd66   : > { %8942 = vrcp.f32 %v5380_v40  ;;  %v9411_v40 = vld [vmem:[%s14389_s4 + $0x14] ss:$8 sps:$4 sm:$0xff]  }
 0xd68   : > { %v5383_v34 = vpop.xlane.xlu1 %5382 }
 0xd69   : > { %8944 = vrcp.f32 %v5383_v34  ;;  %v9412_v34 = vld [vmem:[%s14389_s4 + $0x10] ss:$8 sps:$4 sm:$0xff]  }
 0xd6d   : > { %v5386_v16 = vpop.xlane.xlu0 %5385 }
 0xd6e   : > { %8946 = vrcp.f32 %v5386_v16  ;;  %v9413_v16 = vld [vmem:[%s14389_s4 + $0x24] ss:$8 sps:$4 sm:$0xff]  }
 0xd70   : > { %v5389_v44 = vpop.xlane.xlu1 %5388  ;;  %v8943_v21 = vpop.eup %8942 }
 0xd71   : > { %8948 = vrcp.f32 %v5389_v44  ;;  %v5483_v58 = vmul.f32 %v8943_v21, %v13176_v18  ;;  %v5482_v53 = vmul.f32 %v8943_v21, %v13174_v22  ;;  %v9414_v44 = vld [vmem:[%s14389_s4 + $0x20] ss:$8 sps:$4 sm:$0xff]   ;;  %v9415_v21 = vld [vmem:[%s14389_s4 + $0x34] ss:$8 sps:$4 sm:$0xff]  }
 0xd73   : > { %v8945_v26 = vpop.eup %8944 }
 0xd74   : > { %v5485_v1 = vmul.f32 %v8945_v26, %v13184_v47  ;;  %v5484_v28 = vmul.f32 %v8945_v26, %v13182_v36  ;;  %v9416_v26 = vld [vmem:[%s14389_s4 + $0x30] ss:$8 sps:$4 sm:$0xff]  }
 0xd75   : > { %v5392_v41 = vpop.xlane.xlu0 %5391 }
 0xd76   : > { %v7966_v20 = vpack.c.bf16 %v5485_v1, %v5483_v58  ;;  %v7968_v24 = vpack.c.bf16 %v5484_v28, %v5482_v53  ;;  %8950 = vrcp.f32 %v5392_v41  ;;  %v9417_v58 = vld [vmem:[%s14389_s4 + $0x44] ss:$8 sps:$4 sm:$0xff]   ;;  %v9418_v1 = vld [vmem:[%s14389_s4 + $0x40] ss:$8 sps:$4 sm:$0xff]   ;;  %v9419_v53 = vld [vmem:[%s14389_s4 + $0x54] ss:$8 sps:$4 sm:$0xff]  }
 0xd77   : > { %v9420_v28 = vld [vmem:[%s14389_s4 + $0x50] ss:$8 sps:$4 sm:$0xff]   ;;  %v9421_v41 = vld [vmem:[%s14389_s4 + $0x64] ss:$8 sps:$4 sm:$0xff]  }
 0xd78   : > { %7967 = vmatprep.subr.bf16.mxu1 %v7966_v20  ;;  %v5395_v32 = vpop.xlane.xlu1 %5394  ;;  %v8947_v27 = vpop.eup %8946  ;;  %v9422_v20 = vld [vmem:[%s14389_s4 + $0x60] ss:$8 sps:$4 sm:$0xff]  }
 0xd79   : > { %8952 = vrcp.f32 %v5395_v32  ;;  %7969 = vmatpush1.bf16.xpose.msra.mxu1 %v7968_v24  ;;  %v5487_v31 = vmul.f32 %v8947_v27, %v13196_v15  ;;  %v5486_v47 = vmul.f32 %v8947_v27, %v13194_v46  ;;  %v9423_v24 = vld [vmem:[%s14389_s4 + $0x74] ss:$8 sps:$4 sm:$0xff]   ;;  %v9424_v32 = vld [vmem:[%s14389_s4 + $0x70] ss:$8 sps:$4 sm:$0xff]   ;;  %v9425_v27 = vld [vmem:[%s14389_s4 + $0x84] ss:$8 sps:$4 sm:$0xff]  }
 0xd7b   : > { %v8949_v59 = vpop.eup %8948 }
 0xd7c   : > { %v5489_v18 = vmul.f32 %v8949_v59, %v13204_v63  ;;  %v5488_v22 = vmul.f32 %v8949_v59, %v13202_v13  ;;  %v9426_v59 = vld [vmem:[%s14389_s4 + $0x80] ss:$8 sps:$4 sm:$0xff]  }
 0xd7d   : > { %v5398_v7 = vpop.xlane.xlu0 %5397 }
 0xd7e   : > { %v7970_v36 = vpack.c.bf16 %v5489_v18, %v5487_v31  ;;  %v7972_v33 = vpack.c.bf16 %v5488_v22, %v5486_v47  ;;  %8954 = vrcp.f32 %v5398_v7  ;;  %v9427_v31 = vld [vmem:[%s14389_s4 + $0x94] ss:$8 sps:$4 sm:$0xff]   ;;  %v9428_v18 = vld [vmem:[%s14389_s4 + $0x90] ss:$8 sps:$4 sm:$0xff]   ;;  %v9429_v47 = vld [vmem:[%s14389_s4 + $0xa4] ss:$8 sps:$4 sm:$0xff]  }
 0xd7f   : > { %v9430_v22 = vld [vmem:[%s14389_s4 + $0xa0] ss:$8 sps:$4 sm:$0xff]   ;;  %v9431_v7 = vld [vmem:[%s14389_s4 + $0xb4] ss:$8 sps:$4 sm:$0xff]  }
 0xd80   : > { %7971 = vmatprep.subr.bf16.mxu1 %v7970_v36  ;;  %v5401_v30 = vpop.xlane.xlu1 %5400  ;;  %v8951_v54 = vpop.eup %8950  ;;  %v9432_v36 = vld [vmem:[%s14389_s4 + $0xb0] ss:$8 sps:$4 sm:$0xff]  }
 0xd81   : > { %8956 = vrcp.f32 %v5401_v30  ;;  %7973 = vmatpush1.bf16.xpose.msra.mxu1 %v7972_v33  ;;  %v5491_v38 = vmul.f32 %v8951_v54, %v13216_v51  ;;  %v5490_v63 = vmul.f32 %v8951_v54, %v13214_v39  ;;  %v14966_v39 = vld [vmem:[#allocation3_spill] sm:$0xff]  ;;  %v9433_v33 = vld [vmem:[%s14389_s4 + $0xc4] ss:$8 sps:$4 sm:$0xff]   ;;  %v9434_v30 = vld [vmem:[%s14389_s4 + $0xc0] ss:$8 sps:$4 sm:$0xff]  }
 0xd82   : > { %v9435_v54 = vld [vmem:[%s14389_s4 + $0xd4] ss:$8 sps:$4 sm:$0xff]  }
 0xd83   : > { %v8953_v8 = vpop.eup %8952 }
 0xd84   : > { %v5493_v15 = vmul.f32 %v8953_v8, %v13222_v56  ;;  %v5492_v46 = vmul.f32 %v8953_v8, %v13220_v49  ;;  %v14967_v49 = vld [vmem:[#allocation29_spill] sm:$0xff]  ;;  %v5576_v55 = vpop.permute.xlu1 %5575  ;;  %v9436_v8 = vld [vmem:[%s14389_s4 + $0xd0] ss:$8 sps:$4 sm:$0xff]  }
 0xd86   : > { %v7974_v17 = vpack.c.bf16 %v5493_v15, %v5491_v38  ;;  %v7976_v13 = vpack.c.bf16 %v5492_v46, %v5490_v63  ;;  %v9437_v38 = vld [vmem:[%s14389_s4 + $0xe4] ss:$8 sps:$4 sm:$0xff]   ;;  %v9438_v15 = vld [vmem:[%s14389_s4 + $0xe0] ss:$8 sps:$4 sm:$0xff]   ;;  %v9439_v63 = vld [vmem:[%s14389_s4 + $0xf4] ss:$8 sps:$4 sm:$0xff]  }
 0xd87   : > { %v14971_v46 = vld [vmem:[#allocation18_spill] sm:$0xff] }
 0xd88   : > { %7975 = vmatprep.subr.bf16.mxu1 %v7974_v17  ;;  %v8955_v61 = vpop.eup %8954  ;;  %v5578_v2 = vpop.permute.xlu1 %5577  ;;  %v5572_v17 = vpack.c.bf16 %v14971_v46, %v14971_v46 }
 0xd89   : > { %7977 = vmatpush1.bf16.xpose.msra.mxu1 %v7976_v13  ;;  %v5495_v5 = vmul.f32 %v8955_v61, %v13232_v25  ;;  %v5494_v11 = vmul.f32 %v8955_v61, %v13230_v14  ;;  %v9408_v25 = vld [vmem:[%s14387_s2 + $0x8] ss:$0 sps:$4 sm:$0xff]   ;;  %v5574_v14 = vpop.permute.xlu0 %5573  ;;  %v9440_v13 = vld [vmem:[%s14389_s4 + $0xf0] ss:$8 sps:$4 sm:$0xff]  }
 0xd8b   : > { %v8957_v12 = vpop.eup %8956 }
 0xd8c   : > { %v5497_v45 = vmul.f32 %v8957_v12, %v13238_v48  ;;  %v5496_v51 = vmul.f32 %v8957_v12, %v13236_v62  ;;  %v14970_v62 = vld [vmem:[#allocation5_spill] sm:$0xff]  ;;  %v5582_v9 = vpop.permute.xlu1 %5581 }
 0xd8d   : > { %v9409_v48 = vld [vmem:[%s14389_s4 + $0x4] ss:$8 sps:$4 sm:$0xff]   ;;  %v5580_v43 = vpop.permute.xlu0 %5579 }
 0xd8e   : > { %v7978_v6 = vpack.c.bf16 %v5497_v45, %v5495_v5  ;;  %v7980_v56 = vpack.c.bf16 %v5496_v51, %v5494_v11  ;;  %v9441_v51 = vld [vmem:[%s14388_s3] sm:$0xff] }
 0xd90   : > { %7979 = vmatprep.subr.bf16.mxu1 %v7978_v6  ;;  %v5586_v52 = vpop.permute.xlu1 %5585 }
 0xd91   : > { %7981 = vmatpush1.bf16.xpose.msra.mxu1 %v7980_v56  ;;  %v5584_v0 = vpop.permute.xlu0 %5583  ;;  %v9442_v56 = vld [vmem:[%s14388_s3 + $0x18] sm:$0xff] }
 0xd92   : > { %7521 = vmatprep.subr.msk.bf16.mxu1 %vm736_vm2, %v14966_v39 }
 0xd94   : > { %v5590_v3 = vpop.permute.xlu1 %5589 }
 0xd95   : > { %v5588_v60 = vpop.permute.xlu0 %5587 }
 0xd98   : > { %5563 = vmatmul.mubr.f32.vlgmr.msra.gmra.mrb[176].mxu1 %v14967_v49  ;;  %v5594_v42 = vpop.permute.xlu1 %5593 }
 0xd99   : > { %5654 = vmatpush1.bf16.msra.mxu1 %v14968_v10  ;;  %5685 = vmatprep.mubr.bf16.mxu1 %v14969_v4  ;;  %v5592_v37 = vpop.permute.xlu0 %5591 }
 0xd9a   : > { %8315 = vmatprep.subr.msk.bf16.mxu1 %vm736_vm2, %v9408_v25  ;;  %v9443_v25 = vld [vmem:[%s14388_s3 + $0x8] sm:$0xff] }
 0xd9c   : > { %7522 = vmatmul.mubr.msk.bf16.vlgmr.msra.gmra.mrb[180].mxu1 %vm687_vm3, %v5574_v14  ;;  %v13362_v19 = vpop.permute.xlu1 %5597 }
 0xd9d   : > { %7749 = vmatpush3.bf16.msra.mxu1 %v14970_v62  ;;  %5695 = vmatprep.mubr.bf16.mxu1 %v14969_v4  ;;  %v13357_v29 = vpop.permute.xlu0 %5595  ;;  %v9444_v62 = vld [vmem:[%s14388_s3 + $0x20] sm:$0xff] }
 0xd9e   : > { %6205 = vmatprep.subr.bf16.mxu1 %v9409_v48 }
 0xda0   : > { %v13372_v57 = vpop.permute.xlu1 %5601 }
 0xda1   : > { %v13367_v50 = vpop.permute.xlu0 %5599 }
 0xda4   : > { %7523 = vmatmul.mubr.msk.bf16.gmra.mrb[184].mxu1 %vm687_vm3, %v5576_v55 }
 0xda5   : > { %5705 = vmatprep.mubr.bf16.mxu1 %v14969_v4  ;;  %v13377_v23 = vpop.permute.xlu0 %5603 }
 0xdac   : > { %7524 = vmatmul.mubr.msk.bf16.gmra.mrb[188].mxu1 %vm687_vm3, %v5578_v2 }
 0xdad   : > { %5715 = vmatprep.mubr.bf16.mxu1 %v14969_v4 }
 0xdb4   : > { %7525 = vmatmul.mubr.msk.bf16.gmra.mrb[192].mxu1 %vm687_vm3, %v5580_v43 }
 0xdb5   : > { %5725 = vmatprep.mubr.bf16.mxu1 %v14969_v4 }
 0xdbc   : > { %7526 = vmatmul.mubr.msk.bf16.gmra.mrb[196].mxu1 %vm687_vm3, %v5582_v9 }
 0xdbd   : > { %5735 = vmatprep.mubr.bf16.mxu1 %v14969_v4 }
 0xdc4   : > { %7527 = vmatmul.mubr.msk.bf16.gmra.mrb[200].mxu1 %vm687_vm3, %v5584_v0 }
 0xdc5   : > { %5745 = vmatprep.mubr.bf16.mxu1 %v14969_v4 }
 0xdcc   : > { %7528 = vmatmul.mubr.msk.bf16.gmra.mrb[204].mxu1 %vm687_vm3, %v5586_v52 }
 0xdcd   : > { %5755 = vmatprep.mubr.bf16.mxu1 %v14969_v4 }
 0xdd4   : > { %7529 = vmatmul.mubr.msk.bf16.gmra.mrb[208].mxu1 %vm687_vm3, %v5588_v60 }
 0xdd5   : > { %5765 = vmatprep.mubr.bf16.mxu1 %v14969_v4 }
 0xddc   : > { %7530 = vmatmul.mubr.msk.bf16.gmra.mrb[212].mxu1 %vm687_vm3, %v5590_v3 }
 0xddd   : > { %5775 = vmatprep.mubr.bf16.mxu1 %v14969_v4 }
 0xde4   : > { %7531 = vmatmul.mubr.msk.bf16.gmra.mrb[216].mxu1 %vm687_vm3, %v5592_v37 }
 0xde5   : > { %5785 = vmatprep.mubr.bf16.mxu1 %v14969_v4 }
 0xdec   : > { %7532 = vmatmul.mubr.msk.bf16.gmra.mrb[220].mxu1 %vm687_vm3, %v5594_v42 }
 0xded   : > { %5795 = vmatprep.mubr.bf16.mxu1 %v14969_v4 }
 0xdf4   : > { %7533 = vmatmul.mubr.msk.bf16.gmra.mrb[224].mxu1 %vm687_vm3, %v13357_v29 }
 0xdf5   : > { %5805 = vmatprep.mubr.bf16.mxu1 %v14969_v4 }
 0xdfc   : > { %7534 = vmatmul.mubr.msk.bf16.gmra.mrb[228].mxu1 %vm687_vm3, %v13362_v19 }
 0xdfd   : > { %5815 = vmatprep.mubr.bf16.mxu1 %v14969_v4 }
 0xe04   : > { %7535 = vmatmul.mubr.msk.bf16.gmra.mrb[232].mxu1 %vm687_vm3, %v13367_v50 }
 0xe05   : > { %5825 = vmatprep.mubr.bf16.mxu1 %v14969_v4 }
 0xe0c   : > { %7536 = vmatmul.mubr.msk.bf16.gmra.mrb[236].mxu1 %vm687_vm3, %v13372_v57 }
 0xe0d   : > { %5835 = vmatprep.mubr.bf16.mxu1 %v14969_v4 }
 0xe14   : > { %7537 = vmatmul.mubr.msk.bf16.gmra.mrb[240].mxu1 %vm687_vm3, %v13377_v23 }
 0xe15   : > { %7750 = vmatprep.mubr.msk.bf16.mxu1 %vm687_vm3, %v5574_v14 }
 0xe1c   : > { %7751 = vmatmul.mubr.msk.bf16.vlgmr.msra.gmra.mrb[244].mxu1 %vm687_vm3, %v5576_v55  ;;  %v14972_v55 = vld [vmem:[#allocation17_spill] sm:$0xff] }
 0xe1d   : > { %6206 = vmatpush1.bf16.msra.mxu1 %v9410_v35  ;;  %7754 = vmatprep.mubr.msk.bf16.mxu1 %vm687_vm3, %v5578_v2  ;;  %v5571_v2 = vpack.c.bf16 %v14972_v55, %v14972_v55  ;;  %v9448_v35 = vld [vmem:[%s14388_s3 + $0x50] sm:$0xff] }
 0xe1e   : > { %6207 = vmatprep.subr.bf16.mxu1 %v9411_v40 }
 0xe21   : > { %6208 = vmatpush1.bf16.msra.mxu1 %v9412_v34 }
 0xe22   : > { %6209 = vmatprep.subr.bf16.mxu1 %v9413_v16 }
 0xe24   : > { %7755 = vmatmul.mubr.msk.bf16.gmra.mrb[248].mxu1 %vm687_vm3, %v5580_v43 }
 0xe25   : > { %6210 = vmatpush1.bf16.msra.mxu1 %v9414_v44  ;;  %7758 = vmatprep.mubr.msk.bf16.mxu1 %vm687_vm3, %v5582_v9 }
 0xe26   : > { %6211 = vmatprep.subr.bf16.mxu1 %v9415_v21 }
 0xe29   : > { %6212 = vmatpush1.bf16.msra.mxu1 %v9416_v26 }
 0xe2a   : > { %6213 = vmatprep.subr.bf16.mxu1 %v9417_v58  ;;  %v9449_v58 = vld [vmem:[%s14388_s3 + $0x60] sm:$0xff] }
 0xe2c   : > { %7759 = vmatmul.mubr.msk.bf16.gmra.mrb[252].mxu1 %vm687_vm3, %v5584_v0 }
 0xe2d   : > { %6214 = vmatpush1.bf16.msra.mxu1 %v9418_v1  ;;  %7762 = vmatprep.mubr.msk.bf16.mxu1 %vm687_vm3, %v5586_v52 }
 0xe2e   : > { %6215 = vmatprep.subr.bf16.mxu1 %v9419_v53  ;;  %v9450_v53 = vld [vmem:[%s14388_s3 + $0x78] sm:$0xff] }
 0xe31   : > { %6216 = vmatpush1.bf16.msra.mxu1 %v9420_v28 }
 0xe32   : > { %6217 = vmatprep.subr.bf16.mxu1 %v9421_v41 }
 0xe34   : > { %7763 = vmatmul.mubr.msk.bf16.gmra.mrb[0].mxu1 %vm687_vm3, %v5588_v60  ;;  %v6200_v60 = vsel %vm736_vm2, %v5571_v2, 0 }
 0xe35   : > { %6218 = vmatpush1.bf16.msra.mxu1 %v9422_v20  ;;  %7766 = vmatprep.mubr.msk.bf16.mxu1 %vm687_vm3, %v5590_v3  ;;  %v9451_v20 = vld [vmem:[%s14388_s3 + $0x68] sm:$0xff] }
 0xe36   : > { %6219 = vmatprep.subr.bf16.mxu1 %v9423_v24 }
 0xe39   : > { %6220 = vmatpush1.bf16.msra.mxu1 %v9424_v32  ;;  %v9452_v32 = vld [vmem:[%s14388_s3 + $0x80] sm:$0xff] }
 0xe3a   : > { %6221 = vmatprep.subr.bf16.mxu1 %v9425_v27 }
 0xe3c   : > { %7767 = vmatmul.mubr.msk.bf16.gmra.mrb[4].mxu1 %vm687_vm3, %v5592_v37  ;;  %v9445_v37 = vld [vmem:[%s14388_s3 + $0x30] sm:$0xff] }
 0xe3d   : > { %6222 = vmatpush1.bf16.msra.mxu1 %v9426_v59  ;;  %7770 = vmatprep.mubr.msk.bf16.mxu1 %vm687_vm3, %v5594_v42 }
 0xe3e   : > { %6223 = vmatprep.subr.bf16.mxu1 %v9427_v31 }
 0xe41   : > { %6224 = vmatpush1.bf16.msra.mxu1 %v9428_v18 }
 0xe42   : > { %6225 = vmatprep.subr.bf16.mxu1 %v9429_v47 }
 0xe44   : > { %7771 = vmatmul.mubr.msk.bf16.gmra.mrb[8].mxu1 %vm687_vm3, %v13357_v29  ;;  %v9446_v29 = vld [vmem:[%s14388_s3 + $0x48] sm:$0xff] }
 0xe45   : > { %6226 = vmatpush1.bf16.msra.mxu1 %v9430_v22  ;;  %7774 = vmatprep.mubr.msk.bf16.mxu1 %vm687_vm3, %v13362_v19 }
 0xe46   : > { %6227 = vmatprep.subr.bf16.mxu1 %v9431_v7  ;;  %v9453_v7 = vld [vmem:[%s14388_s3 + $0x90] sm:$0xff] }
 0xe49   : > { %6228 = vmatpush1.bf16.msra.mxu1 %v9432_v36 }
 0xe4a   : > { %6229 = vmatprep.subr.bf16.mxu1 %v9433_v33  ;;  %v9454_v33 = vld [vmem:[%s14388_s3 + $0xa8] sm:$0xff] }
 0xe4c   : > { %7775 = vmatmul.mubr.msk.bf16.gmra.mrb[16].mxu1 %vm687_vm3, %v13367_v50 }
 0xe4d   : > { %6230 = vmatpush1.bf16.msra.mxu1 %v9434_v30  ;;  %7778 = vmatprep.mubr.msk.bf16.mxu1 %vm687_vm3, %v13372_v57  ;;  %v9447_v57 = vld [vmem:[%s14388_s3 + $0x38] sm:$0xff] }
 0xe4e   : > { %6231 = vmatprep.subr.bf16.mxu1 %v9435_v54 }
 0xe51   : > { %6232 = vmatpush1.bf16.msra.mxu1 %v9436_v8  ;;  %v9455_v8 = vld [vmem:[%s14388_s3 + $0x98] sm:$0xff] }
 0xe52   : > { %6233 = vmatprep.subr.bf16.mxu1 %v9437_v38 }
 0xe54   : > { %7779 = vmatmul.mubr.msk.bf16.gmra.mrb[20].mxu1 %vm687_vm3, %v13377_v23 }
 0xe55   : > { %6234 = vmatpush1.bf16.msra.mxu1 %v9438_v15  ;;  %v9456_v15 = vld [vmem:[%s14388_s3 + $0xb0] sm:$0xff] }
 0xe56   : > { %6235 = vmatprep.subr.bf16.mxu1 %v9439_v63 }
 0xe59   : > { %6236 = vmatpush1.bf16.msra.mxu1 %v9440_v13 }
 0xe5a   : > { %7554 = vmatprep.subr.msk.bf16.mxu1 %vm736_vm2, %v5572_v17 }
 0xe6b   : > { %v5564_v61 = vpop.f32.mrb[176].mxu1 }
 0xe6c   : > { %5569 = vst [vmem:[#allocation2 + $0x10] sm:$0xf] %v5564_v61  ;;  %v5566_v12 = vpop.f32.mrb[177].mxu1 }
 0xe6d   : > { %5570 = vst [vmem:[#allocation2 + $0x18] sm:$0xf] %v5566_v12 }
 0xe6f   : > { %v5687_v5 = vpop.f32.mrb[180].mxu1 }
 0xe70   : > { %v5689_v45 = vpop.f32.mrb[181].mxu1  ;;  %v6007_v6 = vmul.f32 %v9441_v51, %v5687_v5  ;;  %v9457_v5 = vld [vmem:[%s14388_s3 + $0xc0] sm:$0xff] }
 0xe71   : > { %v5691_v11 = vpop.f32.mrb[182].mxu1  ;;  %v6008_v14 = vmul.f32 %v9443_v25, %v5689_v45 }
 0xe72   : > { %v6010_v39 = vmul.f32 %v9442_v56, %v5691_v11  ;;  %v5693_v10 = vpop.f32.mrb[183].mxu1  ;;  %v9458_v11 = vld [vmem:[%s14388_s3 + $0xd8] sm:$0xff]  ;;  %v9459_v56 = vld [vmem:[%s14388_s3 + $0xc8] sm:$0xff] }
 0xe73   : > { %v6011_v48 = vmul.f32 %v9444_v62, %v5693_v10  ;;  %v9460_v10 = vld [vmem:[%s14388_s3 + $0xe0] sm:$0xff] }
 0xe74   : > { %v6103_v43 = vpack.c.bf16 %v6010_v39, %v6007_v6 }
 0xe75   : > { %v6104_v9 = vpack.c.bf16 %v6011_v48, %v6008_v14 }
 0xe77   : > { %v5697_v0 = vpop.f32.mrb[184].mxu1  ;;  %6237 = vmatprep.mubr.bf16.mxu1 %v6104_v9 }
 0xe78   : > { %v5699_v52 = vpop.f32.mrb[185].mxu1  ;;  %6238 = vmatmul.mubr.bf16.vlgmr.msra.gmra.mrb[24].mxu1 %v6103_v43  ;;  %v6013_v42 = vmul.f32 %v9445_v37, %v5697_v0  ;;  %v9461_v43 = vld [vmem:[%s14388_s3 + $0xf0] sm:$0xff]  ;;  %v9462_v0 = vld [vmem:[%s14388_s3 + $0x108] sm:$0xff] }
 0xe79   : > { %6399 = vmatpush1.bf16.msra.mxu1 %v6200_v60  ;;  %v5701_v3 = vpop.f32.mrb[186].mxu1  ;;  %v6014_v23 = vmul.f32 %v9447_v57, %v5699_v52 }
 0xe7a   : > { %v6016_v19 = vmul.f32 %v9446_v29, %v5701_v3  ;;  %v5703_v50 = vpop.f32.mrb[187].mxu1  ;;  %v9463_v3 = vld [vmem:[%s14388_s3 + $0xf8] sm:$0xff] }
 0xe7b   : > { %v6017_v40 = vmul.f32 %v9448_v35, %v5703_v50 }
 0xe7c   : > { %v6106_v34 = vpack.c.bf16 %v6016_v19, %v6013_v42  ;;  %v9464_v42 = vld [vmem:[%s14388_s3 + $0x110] sm:$0xff] }
 0xe7d   : > { %v6107_v16 = vpack.c.bf16 %v6017_v40, %v6014_v23  ;;  %v9465_v40 = vld [vmem:[%s14388_s3 + $0x120] sm:$0xff] }
 0xe7f   : > { %v5707_v44 = vpop.f32.mrb[188].mxu1  ;;  %6247 = vmatprep.mubr.bf16.mxu1 %v6107_v16  ;;  %v9466_v16 = vld [vmem:[%s14388_s3 + $0x138] sm:$0xff] }
 0xe80   : > { %v5709_v21 = vpop.f32.mrb[189].mxu1  ;;  %6248 = vmatmul.mubr.bf16.gmra.mrb[28].mxu1 %v6106_v34  ;;  %v6019_v1 = vmul.f32 %v9449_v58, %v5707_v44 }
 0xe81   : > { %v5711_v26 = vpop.f32.mrb[190].mxu1  ;;  %v6020_v24 = vmul.f32 %v9451_v20, %v5709_v21 }
 0xe82   : > { %v6022_v28 = vmul.f32 %v9450_v53, %v5711_v26  ;;  %v5713_v41 = vpop.f32.mrb[191].mxu1  ;;  %v9467_v26 = vld [vmem:[%s14388_s3 + $0x128] sm:$0xff] }
 0xe83   : > { %v6023_v27 = vmul.f32 %v9452_v32, %v5713_v41 }
 0xe84   : > { %v6109_v59 = vpack.c.bf16 %v6022_v28, %v6019_v1  ;;  %v9468_v1 = vld [vmem:[%s14388_s3 + $0x140] sm:$0xff] }
 0xe85   : > { %v6110_v31 = vpack.c.bf16 %v6023_v27, %v6020_v24  ;;  %v9469_v27 = vld [vmem:[%s14388_s3 + $0x150] sm:$0xff] }
 0xe87   : > { %v5717_v18 = vpop.f32.mrb[192].mxu1  ;;  %6257 = vmatprep.mubr.bf16.mxu1 %v6110_v31  ;;  %v9470_v31 = vld [vmem:[%s14388_s3 + $0x168] sm:$0xff] }
 0xe88   : > { %v5719_v47 = vpop.f32.mrb[193].mxu1  ;;  %6258 = vmatmul.mubr.bf16.gmra.mrb[32].mxu1 %v6109_v59  ;;  %v6025_v36 = vmul.f32 %v9453_v7, %v5717_v18 }
 0xe89   : > { %v5721_v22 = vpop.f32.mrb[194].mxu1  ;;  %v6026_v38 = vmul.f32 %v9455_v8, %v5719_v47 }
 0xe8a   : > { %v6028_v30 = vmul.f32 %v9454_v33, %v5721_v22  ;;  %v5723_v54 = vpop.f32.mrb[195].mxu1  ;;  %v9471_v22 = vld [vmem:[%s14388_s3 + $0x158] sm:$0xff] }
 0xe8b   : > { %v6029_v63 = vmul.f32 %v9456_v15, %v5723_v54 }
 0xe8c   : > { %v6112_v46 = vpack.c.bf16 %v6028_v30, %v6025_v36  ;;  %v9472_v36 = vld [vmem:[%s14388_s3 + $0x170] sm:$0xff] }
 0xe8d   : > { %v6113_v17 = vpack.c.bf16 %v6029_v63, %v6026_v38  ;;  %v9473_v63 = vld [vmem:[%s14388_s3 + $0x180] sm:$0xff] }
 0xe8f   : > { %v5727_v13 = vpop.f32.mrb[196].mxu1  ;;  %6267 = vmatprep.mubr.bf16.mxu1 %v6113_v17  ;;  %v9474_v17 = vld [vmem:[%s14388_s3 + $0x198] sm:$0xff] }
 0xe90   : > { %v5729_v61 = vpop.f32.mrb[197].mxu1  ;;  %6268 = vmatmul.mubr.bf16.gmra.mrb[36].mxu1 %v6112_v46  ;;  %v6031_v45 = vmul.f32 %v9457_v5, %v5727_v13 }
 0xe91   : > { %v5731_v12 = vpop.f32.mrb[198].mxu1  ;;  %v6032_v39 = vmul.f32 %v9459_v56, %v5729_v61 }
 0xe92   : > { %v6034_v51 = vmul.f32 %v9458_v11, %v5731_v12  ;;  %v5733_v6 = vpop.f32.mrb[199].mxu1  ;;  %v9475_v12 = vld [vmem:[%s14388_s3 + $0x188] sm:$0xff] }
 0xe93   : > { %v6035_v25 = vmul.f32 %v9460_v10, %v5733_v6 }
 0xe94   : > { %v6115_v14 = vpack.c.bf16 %v6034_v51, %v6031_v45  ;;  %v9476_v45 = vld [vmem:[%s14388_s3 + $0x1a0] sm:$0xff] }
 0xe95   : > { %v6116_v62 = vpack.c.bf16 %v6035_v25, %v6032_v39  ;;  %v9477_v25 = vld [vmem:[%s14388_s3 + $0x1b0] sm:$0xff] }
 0xe97   : > { %v5737_v48 = vpop.f32.mrb[200].mxu1  ;;  %6277 = vmatprep.mubr.bf16.mxu1 %v6116_v62  ;;  %v9478_v62 = vld [vmem:[%s14388_s3 + $0x1c8] sm:$0xff] }
 0xe98   : > { %v5739_v55 = vpop.f32.mrb[201].mxu1  ;;  %6278 = vmatmul.mubr.bf16.gmra.mrb[40].mxu1 %v6115_v14  ;;  %v6037_v9 = vmul.f32 %v9461_v43, %v5737_v48 }
 0xe99   : > { %v5741_v2 = vpop.f32.mrb[202].mxu1  ;;  %v6038_v37 = vmul.f32 %v9463_v3, %v5739_v55 }
 0xe9a   : > { %v6040_v52 = vmul.f32 %v9462_v0, %v5741_v2  ;;  %v5743_v60 = vpop.f32.mrb[203].mxu1  ;;  %v9479_v2 = vld [vmem:[%s14388_s3 + $0x1b8] sm:$0xff] }
 0xe9b   : > { %v6041_v29 = vmul.f32 %v9464_v42, %v5743_v60 }
 0xe9c   : > { %v6118_v19 = vpack.c.bf16 %v6040_v52, %v6037_v9  ;;  %v9480_v9 = vld [vmem:[%s14388_s3 + $0x1d0] sm:$0xff] }
 0xe9d   : > { %v6119_v50 = vpack.c.bf16 %v6041_v29, %v6038_v37  ;;  %v9481_v29 = vld [vmem:[%s14388_s3 + $0x1e0] sm:$0xff] }
 0xe9f   : > { %v5747_v57 = vpop.f32.mrb[204].mxu1  ;;  %6287 = vmatprep.mubr.bf16.mxu1 %v6119_v50  ;;  %v9482_v50 = vld [vmem:[%s14388_s3 + $0x1f8] sm:$0xff] }
 0xea0   : > { %v5749_v23 = vpop.f32.mrb[205].mxu1  ;;  %6288 = vmatmul.mubr.bf16.gmra.mrb[44].mxu1 %v6118_v19  ;;  %v6043_v34 = vmul.f32 %v9465_v40, %v5747_v57 }
 0xea1   : > { %v5751_v35 = vpop.f32.mrb[206].mxu1  ;;  %v6044_v58 = vmul.f32 %v9467_v26, %v5749_v23 }
 0xea2   : > { %v6046_v44 = vmul.f32 %v9466_v16, %v5751_v35  ;;  %v5753_v21 = vpop.f32.mrb[207].mxu1  ;;  %v9483_v35 = vld [vmem:[%s14388_s3 + $0x1e8] sm:$0xff] }
 0xea3   : > { %v6047_v53 = vmul.f32 %v9468_v1, %v5753_v21 }
 0xea4   : > { %v6121_v28 = vpack.c.bf16 %v6046_v44, %v6043_v34  ;;  %v9484_v34 = vld [vmem:[%s14388_s3 + $0x200] sm:$0xff] }
 0xea5   : > { %v6122_v41 = vpack.c.bf16 %v6047_v53, %v6044_v58  ;;  %v9485_v53 = vld [vmem:[%s14388_s3 + $0x210] sm:$0xff] }
 0xea7   : > { %v5757_v20 = vpop.f32.mrb[208].mxu1  ;;  %6297 = vmatprep.mubr.bf16.mxu1 %v6122_v41  ;;  %v9486_v41 = vld [vmem:[%s14388_s3 + $0x228] sm:$0xff] }
 0xea8   : > { %v5759_v24 = vpop.f32.mrb[209].mxu1  ;;  %6298 = vmatmul.mubr.bf16.gmra.mrb[48].mxu1 %v6121_v28  ;;  %v6049_v59 = vmul.f32 %v9469_v27, %v5757_v20 }
 0xea9   : > { %v5761_v32 = vpop.f32.mrb[210].mxu1  ;;  %v6050_v7 = vmul.f32 %v9471_v22, %v5759_v24 }
 0xeaa   : > { %v6052_v18 = vmul.f32 %v9470_v31, %v5761_v32  ;;  %v5763_v47 = vpop.f32.mrb[211].mxu1  ;;  %v9487_v32 = vld [vmem:[%s14388_s3 + $0x218] sm:$0xff] }
 0xeab   : > { %v6053_v33 = vmul.f32 %v9472_v36, %v5763_v47 }
 0xeac   : > { %v6124_v30 = vpack.c.bf16 %v6052_v18, %v6049_v59  ;;  %v9488_v59 = vld [vmem:[%s14388_s3 + $0x230] sm:$0xff] }
 0xead   : > { %v6125_v54 = vpack.c.bf16 %v6053_v33, %v6050_v7  ;;  %v9489_v33 = vld [vmem:[%s14388_s3 + $0x240] sm:$0xff] }
 0xeaf   : > { %v5767_v8 = vpop.f32.mrb[212].mxu1  ;;  %6307 = vmatprep.mubr.bf16.mxu1 %v6125_v54  ;;  %v9490_v54 = vld [vmem:[%s14388_s3 + $0x258] sm:$0xff] }
 0xeb0   : > { %v5769_v38 = vpop.f32.mrb[213].mxu1  ;;  %6308 = vmatmul.mubr.bf16.gmra.mrb[52].mxu1 %v6124_v30  ;;  %v6055_v46 = vmul.f32 %v9473_v63, %v5767_v8 }
 0xeb1   : > { %v5771_v15 = vpop.f32.mrb[214].mxu1  ;;  %v6056_v5 = vmul.f32 %v9475_v12, %v5769_v38 }
 0xeb2   : > { %v6058_v13 = vmul.f32 %v9474_v17, %v5771_v15  ;;  %v5773_v61 = vpop.f32.mrb[215].mxu1  ;;  %v9491_v15 = vld [vmem:[%s14388_s3 + $0x248] sm:$0xff] }
 0xeb3   : > { %v6059_v11 = vmul.f32 %v9476_v45, %v5773_v61 }
 0xeb4   : > { %v6127_v51 = vpack.c.bf16 %v6058_v13, %v6055_v46  ;;  %v9492_v46 = vld [vmem:[%s14388_s3 + $0x260] sm:$0xff] }
 0xeb5   : > { %v6128_v6 = vpack.c.bf16 %v6059_v11, %v6056_v5  ;;  %v9493_v11 = vld [vmem:[%s14388_s3 + $0x270] sm:$0xff] }
 0xeb7   : > { %v5777_v56 = vpop.f32.mrb[216].mxu1  ;;  %6317 = vmatprep.mubr.bf16.mxu1 %v6128_v6  ;;  %v9494_v6 = vld [vmem:[%s14388_s3 + $0x288] sm:$0xff] }
 0xeb8   : > { %v5779_v39 = vpop.f32.mrb[217].mxu1  ;;  %6318 = vmatmul.mubr.bf16.gmra.mrb[56].mxu1 %v6127_v51  ;;  %v6061_v14 = vmul.f32 %v9477_v25, %v5777_v56 }
 0xeb9   : > { %v5781_v10 = vpop.f32.mrb[218].mxu1  ;;  %v6062_v43 = vmul.f32 %v9479_v2, %v5779_v39 }
 0xeba   : > { %v6064_v48 = vmul.f32 %v9478_v62, %v5781_v10  ;;  %v5783_v55 = vpop.f32.mrb[219].mxu1  ;;  %v9495_v10 = vld [vmem:[%s14388_s3 + $0x278] sm:$0xff] }
 0xebb   : > { %v6065_v0 = vmul.f32 %v9480_v9, %v5783_v55 }
 0xebc   : > { %v6130_v52 = vpack.c.bf16 %v6064_v48, %v6061_v14  ;;  %v9496_v14 = vld [vmem:[%s14388_s3 + $0x290] sm:$0xff] }
 0xebd   : > { %v6131_v60 = vpack.c.bf16 %v6065_v0, %v6062_v43  ;;  %v9497_v0 = vld [vmem:[%s14388_s3 + $0x2a0] sm:$0xff] }
 0xebf   : > { %v5787_v3 = vpop.f32.mrb[220].mxu1  ;;  %6327 = vmatprep.mubr.bf16.mxu1 %v6131_v60  ;;  %v9498_v60 = vld [vmem:[%s14388_s3 + $0x2b8] sm:$0xff] }
 0xec0   : > { %v5789_v37 = vpop.f32.mrb[221].mxu1  ;;  %6328 = vmatmul.mubr.bf16.gmra.mrb[60].mxu1 %v6130_v52  ;;  %v6067_v19 = vmul.f32 %v9481_v29, %v5787_v3 }
 0xec1   : > { %v5791_v42 = vpop.f32.mrb[222].mxu1  ;;  %v6068_v40 = vmul.f32 %v9483_v35, %v5789_v37 }
 0xec2   : > { %v6070_v57 = vmul.f32 %v9482_v50, %v5791_v42  ;;  %v5793_v23 = vpop.f32.mrb[223].mxu1  ;;  %v9499_v42 = vld [vmem:[%s14388_s3 + $0x2a8] sm:$0xff] }
 0xec3   : > { %v6071_v16 = vmul.f32 %v9484_v34, %v5793_v23 }
 0xec4   : > { %v6133_v44 = vpack.c.bf16 %v6070_v57, %v6067_v19  ;;  %v9500_v19 = vld [vmem:[%s14388_s3 + $0x2c0] sm:$0xff] }
 0xec5   : > { %v6134_v21 = vpack.c.bf16 %v6071_v16, %v6068_v40  ;;  %v9501_v16 = vld [vmem:[%s14388_s3 + $0x2d0] sm:$0xff] }
 0xec7   : > { %v5797_v26 = vpop.f32.mrb[224].mxu1  ;;  %6337 = vmatprep.mubr.bf16.mxu1 %v6134_v21  ;;  %v9502_v21 = vld [vmem:[%s14388_s3 + $0x2e8] sm:$0xff] }
 0xec8   : > { %v5799_v58 = vpop.f32.mrb[225].mxu1  ;;  %6338 = vmatmul.mubr.bf16.gmra.mrb[64].mxu1 %v6133_v44  ;;  %v6073_v28 = vmul.f32 %v9485_v53, %v5797_v26 }
 0xec9   : > { %v5801_v1 = vpop.f32.mrb[226].mxu1  ;;  %v6074_v27 = vmul.f32 %v9487_v32, %v5799_v58 }
 0xeca   : > { %v6076_v20 = vmul.f32 %v9486_v41, %v5801_v1  ;;  %v5803_v24 = vpop.f32.mrb[227].mxu1  ;;  %v9503_v1 = vld [vmem:[%s14388_s3 + $0x2d8] sm:$0xff] }
 0xecb   : > { %v6077_v31 = vmul.f32 %v9488_v59, %v5803_v24 }
 0xecc   : > { %v6136_v18 = vpack.c.bf16 %v6076_v20, %v6073_v28  ;;  %v9504_v28 = vld [vmem:[%s14388_s3 + $0x2f0] sm:$0xff] }
 0xecd   : > { %v6137_v47 = vpack.c.bf16 %v6077_v31, %v6074_v27  ;;  %v9505_v31 = vld [vmem:[%s14388_s3 + $0x40] sm:$0xff] }
 0xecf   : > { %v5807_v22 = vpop.f32.mrb[228].mxu1  ;;  %6347 = vmatprep.mubr.bf16.mxu1 %v6137_v47  ;;  %v9506_v47 = vld [vmem:[%s14388_s3 + $0x58] sm:$0xff] }
 0xed0   : > { %v5809_v7 = vpop.f32.mrb[229].mxu1  ;;  %6348 = vmatmul.mubr.bf16.gmra.mrb[68].mxu1 %v6136_v18  ;;  %v6079_v30 = vmul.f32 %v9489_v33, %v5807_v22 }
 0xed1   : > { %v5811_v36 = vpop.f32.mrb[230].mxu1  ;;  %v6080_v63 = vmul.f32 %v9491_v15, %v5809_v7 }
 0xed2   : > { %v6082_v8 = vmul.f32 %v9490_v54, %v5811_v36  ;;  %v5813_v38 = vpop.f32.mrb[231].mxu1  ;;  %v9507_v36 = vld [vmem:[%s14388_s3 + $0x10] sm:$0xff] }
 0xed3   : > { %v6083_v17 = vmul.f32 %v9492_v46, %v5813_v38 }
 0xed4   : > { %v6139_v13 = vpack.c.bf16 %v6082_v8, %v6079_v30  ;;  %v9508_v30 = vld [vmem:[%s14388_s3 + $0x28] sm:$0xff] }
 0xed5   : > { %v6140_v61 = vpack.c.bf16 %v6083_v17, %v6080_v63  ;;  %v9509_v17 = vld [vmem:[%s14388_s3 + $0xa0] sm:$0xff] }
 0xed7   : > { %v5817_v12 = vpop.f32.mrb[232].mxu1  ;;  %6357 = vmatprep.mubr.bf16.mxu1 %v6140_v61  ;;  %v9510_v61 = vld [vmem:[%s14388_s3 + $0xb8] sm:$0xff] }
 0xed8   : > { %v5819_v5 = vpop.f32.mrb[233].mxu1  ;;  %6358 = vmatmul.mubr.bf16.gmra.mrb[72].mxu1 %v6139_v13  ;;  %v6085_v51 = vmul.f32 %v9493_v11, %v5817_v12 }
 0xed9   : > { %v5821_v45 = vpop.f32.mrb[234].mxu1  ;;  %v6086_v25 = vmul.f32 %v9495_v10, %v5819_v5 }
 0xeda   : > { %v6088_v56 = vmul.f32 %v9494_v6, %v5821_v45  ;;  %v5823_v39 = vpop.f32.mrb[235].mxu1  ;;  %v9511_v45 = vld [vmem:[%s14388_s3 + $0x70] sm:$0xff] }
 0xedb   : > { %v6089_v62 = vmul.f32 %v9496_v14, %v5823_v39 }
 0xedc   : > { %v6142_v48 = vpack.c.bf16 %v6088_v56, %v6085_v51  ;;  %v9512_v51 = vld [vmem:[%s14388_s3 + $0x88] sm:$0xff] }
 0xedd   : > { %v6143_v55 = vpack.c.bf16 %v6089_v62, %v6086_v25  ;;  %v9513_v62 = vld [vmem:[%s14388_s3 + $0x100] sm:$0xff] }
 0xedf   : > { %v5827_v2 = vpop.f32.mrb[236].mxu1  ;;  %6367 = vmatprep.mubr.bf16.mxu1 %v6143_v55  ;;  %v9514_v55 = vld [vmem:[%s14388_s3 + $0x118] sm:$0xff] }
 0xee0   : > { %v5829_v43 = vpop.f32.mrb[237].mxu1  ;;  %6368 = vmatmul.mubr.bf16.gmra.mrb[76].mxu1 %v6142_v48  ;;  %v6091_v52 = vmul.f32 %v9497_v0, %v5827_v2 }
 0xee1   : > { %v5831_v9 = vpop.f32.mrb[238].mxu1  ;;  %v6092_v29 = vmul.f32 %v9499_v42, %v5829_v43 }
 0xee2   : > { %v6094_v3 = vmul.f32 %v9498_v60, %v5831_v9  ;;  %v5833_v37 = vpop.f32.mrb[239].mxu1  ;;  %v9515_v9 = vld [vmem:[%s14388_s3 + $0xd0] sm:$0xff] }
 0xee3   : > { %v6095_v50 = vmul.f32 %v9500_v19, %v5833_v37 }
 0xee4   : > { %v6145_v57 = vpack.c.bf16 %v6094_v3, %v6091_v52  ;;  %v9516_v52 = vld [vmem:[%s14388_s3 + $0xe8] sm:$0xff] }
 0xee5   : > { %v6146_v23 = vpack.c.bf16 %v6095_v50, %v6092_v29  ;;  %v9517_v50 = vld [vmem:[%s14388_s3 + $0x160] sm:$0xff] }
 0xee7   : > { %v5837_v35 = vpop.f32.mrb[240].mxu1  ;;  %6377 = vmatprep.mubr.bf16.mxu1 %v6146_v23  ;;  %v9518_v23 = vld [vmem:[%s14388_s3 + $0x178] sm:$0xff] }
 0xee8   : > { %v5839_v40 = vpop.f32.mrb[241].mxu1  ;;  %6378 = vmatmul.mubr.bf16.gmra.mrb[12].mxu1 %v6145_v57  ;;  %v6097_v44 = vmul.f32 %v9501_v16, %v5837_v35 }
 0xee9   : > { %v5841_v34 = vpop.f32.mrb[242].mxu1  ;;  %v6098_v53 = vmul.f32 %v9503_v1, %v5839_v40 }
 0xeea   : > { %v6100_v26 = vmul.f32 %v9502_v21, %v5841_v34  ;;  %v5843_v58 = vpop.f32.mrb[243].mxu1  ;;  %v9519_v34 = vld [vmem:[%s14388_s3 + $0x130] sm:$0xff] }
 0xeeb   : > { %v6101_v41 = vmul.f32 %v9504_v28, %v5843_v58 }
 0xeec   : > { %v6148_v20 = vpack.c.bf16 %v6100_v26, %v6097_v44  ;;  %v9520_v44 = vld [vmem:[%s14388_s3 + $0x148] sm:$0xff] }
 0xeed   : > { %v6149_v24 = vpack.c.bf16 %v6101_v41, %v6098_v53  ;;  %v9521_v41 = vld [vmem:[%s14388_s3 + $0x1c0] sm:$0xff] }
 0xeef   : > { %v7752_v32 = vpop.f32.mrb[244].mxu1  ;;  %6387 = vmatprep.mubr.bf16.mxu1 %v6149_v24  ;;  %v9522_v24 = vld [vmem:[%s14388_s3 + $0x1d8] sm:$0xff] }
 0xef0   : > { %v5880_v27 = vpop.f32.mrb[245].mxu1  ;;  %6388 = vmatmul.mubr.bf16.gmra.mrb[80].mxu1 %v6148_v20  ;;  %v6015_v18 = vmul.f32 %v9505_v31, %v7752_v32 }
 0xef1   : > { %v7753_v59 = vpop.f32.mrb[246].mxu1  ;;  %6430 = vmatprep.mubr.bf16.mxu1 %v14969_v4  ;;  %v6009_v33 = vmul.f32 %v9507_v36, %v5880_v27 }
 0xef2   : > { %v6018_v22 = vmul.f32 %v9506_v47, %v7753_v59  ;;  %v5883_v7 = vpop.f32.mrb[247].mxu1  ;;  %v9523_v59 = vld [vmem:[%s14388_s3 + $0x190] sm:$0xff] }
 0xef3   : > { %v6012_v54 = vmul.f32 %v9508_v30, %v5883_v7 }
 0xef4   : > { %v6108_v8 = vpack.c.bf16 %v6018_v22, %v6015_v18  ;;  %v9524_v18 = vld [vmem:[%s14388_s3 + $0x1a8] sm:$0xff] }
 0xef5   : > { %v6105_v38 = vpack.c.bf16 %v6012_v54, %v6009_v33  ;;  %v9525_v54 = vld [vmem:[%s14388_s3 + $0x220] sm:$0xff] }
 0xef7   : > { %v7756_v15 = vpop.f32.mrb[248].mxu1 }
 0xef8   : > { %v5896_v63 = vpop.f32.mrb[249].mxu1  ;;  %7555 = vmatmul.mubr.msk.bf16.vlgmr.msra.gmra.mrb[24].mxu1 %vm687_vm3, %v6105_v38  ;;  %v6027_v13 = vmul.f32 %v9509_v17, %v7756_v15  ;;  %v9526_v38 = vld [vmem:[%s14388_s3 + $0x238] sm:$0xff] }
 0xef9   : > { %v7757_v46 = vpop.f32.mrb[250].mxu1  ;;  %6440 = vmatprep.mubr.bf16.mxu1 %v14969_v4  ;;  %v6021_v11 = vmul.f32 %v9511_v45, %v5896_v63 }
 0xefa   : > { %v6030_v12 = vmul.f32 %v9510_v61, %v7757_v46  ;;  %v5899_v5 = vpop.f32.mrb[251].mxu1  ;;  %v9527_v46 = vld [vmem:[%s14388_s3 + $0x1f0] sm:$0xff] }
 0xefb   : > { %v6024_v6 = vmul.f32 %v9512_v51, %v5899_v5 }
 0xefc   : > { %v6114_v56 = vpack.c.bf16 %v6030_v12, %v6027_v13  ;;  %v9528_v13 = vld [vmem:[%s14388_s3 + $0x208] sm:$0xff] }
 0xefd   : > { %v6111_v39 = vpack.c.bf16 %v6024_v6, %v6021_v11  ;;  %v9529_v6 = vld [vmem:[%s14388_s3 + $0x280] sm:$0xff] }
 0xeff   : > { %v7760_v10 = vpop.f32.mrb[252].mxu1 }
 0xf00   : > { %v5912_v25 = vpop.f32.mrb[253].mxu1  ;;  %7556 = vmatmul.mubr.msk.bf16.gmra.mrb[28].mxu1 %vm687_vm3, %v6108_v8  ;;  %v6039_v48 = vmul.f32 %v9513_v62, %v7760_v10 }
 0xf01   : > { %v7761_v14 = vpop.f32.mrb[254].mxu1  ;;  %6450 = vmatprep.mubr.bf16.mxu1 %v14969_v4  ;;  %v6033_v0 = vmul.f32 %v9515_v9, %v5912_v25 }
 0xf02   : > { %v6042_v2 = vmul.f32 %v9514_v55, %v7761_v14  ;;  %v5915_v43 = vpop.f32.mrb[255].mxu1  ;;  %v9531_v14 = vld [vmem:[%s14388_s3 + $0x250] sm:$0xff] }
 0xf03   : > { %v6036_v60 = vmul.f32 %v9516_v52, %v5915_v43 }
 0xf04   : > { %v6120_v3 = vpack.c.bf16 %v6042_v2, %v6039_v48  ;;  %v9532_v48 = vld [vmem:[%s14388_s3 + $0x268] sm:$0xff] }
 0xf05   : > { %v6117_v37 = vpack.c.bf16 %v6036_v60, %v6033_v0  ;;  %v9533_v60 = vld [vmem:[%s14388_s3 + $0x2e0] sm:$0xff] }
 0xf07   : > { %v7764_v42 = vpop.f32.mrb[0].mxu1 }
 0xf08   : > { %v5928_v29 = vpop.f32.mrb[1].mxu1  ;;  %7557 = vmatmul.mubr.msk.bf16.gmra.mrb[32].mxu1 %vm687_vm3, %v6111_v39  ;;  %v13739_v57 = vmul.f32 %v9517_v50, %v7764_v42  ;;  %v9530_v39 = vld [vmem:[%s14388_s3 + $0x298] sm:$0xff] }
 0xf09   : > { %v7765_v19 = vpop.f32.mrb[2].mxu1  ;;  %6460 = vmatprep.mubr.bf16.mxu1 %v14969_v4  ;;  %v6045_v16 = vmul.f32 %v9519_v34, %v5928_v29 }
 0xf0a   : > { %v13744_v35 = vmul.f32 %v9518_v23, %v7765_v19  ;;  %v5931_v40 = vpop.f32.mrb[3].mxu1  ;;  %v9535_v19 = vld [vmem:[%s14388_s3 + $0x2b0] sm:$0xff]  ;;  %v9536_v23 = vld [vmem:[%s14388_s3 + $0x2c8] sm:$0xff] }
 0xf0b   : > { %v6048_v21 = vmul.f32 %v9520_v44, %v5931_v40 }
 0xf0c   : > { %v6126_v26 = vpack.c.bf16 %v13744_v35, %v13739_v57 }
 0xf0d   : > { %v6123_v58 = vpack.c.bf16 %v6048_v21, %v6045_v16 }
 0xf0f   : > { %v7768_v1 = vpop.f32.mrb[4].mxu1 }
 0xf10   : > { %v5944_v53 = vpop.f32.mrb[5].mxu1  ;;  %7558 = vmatmul.mubr.msk.bf16.gmra.mrb[36].mxu1 %vm687_vm3, %v6114_v56  ;;  %v13759_v20 = vmul.f32 %v9521_v41, %v7768_v1 }
 0xf11   : > { %v7769_v28 = vpop.f32.mrb[6].mxu1  ;;  %6470 = vmatprep.mubr.bf16.mxu1 %v14969_v4  ;;  %v6057_v31 = vmul.f32 %v9523_v59, %v5944_v53 }
 0xf12   : > { %v6066_v32 = vmul.f32 %v9522_v24, %v7769_v28  ;;  %v5947_v27 = vpop.f32.mrb[7].mxu1 }
 0xf13   : > { %v6060_v47 = vmul.f32 %v9524_v18, %v5947_v27 }
 0xf14   : > { %v6132_v22 = vpack.c.bf16 %v6066_v32, %v13759_v20 }
 0xf15   : > { %v6129_v7 = vpack.c.bf16 %v6060_v47, %v6057_v31 }
 0xf17   : > { %v7772_v36 = vpop.f32.mrb[8].mxu1 }
 0xf18   : > { %v5960_v33 = vpop.f32.mrb[9].mxu1  ;;  %7559 = vmatmul.mubr.msk.bf16.gmra.mrb[40].mxu1 %vm687_vm3, %v6117_v37  ;;  %v6075_v8 = vmul.f32 %v9525_v54, %v7772_v36  ;;  %v9534_v37 = vld [vmem:[%s14388_s3 + $0x2f8] sm:$0xff] }
 0xf19   : > { %v7773_v30 = vpop.f32.mrb[10].mxu1  ;;  %6480 = vmatprep.mubr.bf16.mxu1 %v14969_v4  ;;  %v6069_v17 = vmul.f32 %v9527_v46, %v5960_v33 }
 0xf1a   : > { %v6078_v15 = vmul.f32 %v9526_v38, %v7773_v30  ;;  %v5963_v63 = vpop.f32.mrb[11].mxu1 }
 0xf1b   : > { %v6072_v61 = vmul.f32 %v9528_v13, %v5963_v63 }
 0xf1c   : > { %v6138_v12 = vpack.c.bf16 %v6078_v15, %v6075_v8 }
 0xf1d   : > { %v6135_v5 = vpack.c.bf16 %v6072_v61, %v6069_v17 }
 0xf1f   : > { %v7776_v45 = vpop.f32.mrb[16].mxu1 }
 0xf20   : > { %v5976_v11 = vpop.f32.mrb[17].mxu1  ;;  %7560 = vmatmul.mubr.msk.bf16.gmra.mrb[44].mxu1 %vm687_vm3, %v6120_v3  ;;  %v6087_v56 = vmul.f32 %v9529_v6, %v7776_v45 }
 0xf21   : > { %v7777_v51 = vpop.f32.mrb[18].mxu1  ;;  %6490 = vmatprep.mubr.bf16.mxu1 %v14969_v4  ;;  %v6081_v62 = vmul.f32 %v9531_v14, %v5976_v11 }
 0xf22   : > { %v6090_v10 = vmul.f32 %v9530_v39, %v7777_v51  ;;  %v5979_v25 = vpop.f32.mrb[19].mxu1 }
 0xf23   : > { %v6084_v55 = vmul.f32 %v9532_v48, %v5979_v25 }
 0xf24   : > { %v6144_v2 = vpack.c.bf16 %v6090_v10, %v6087_v56 }
 0xf25   : > { %v6141_v43 = vpack.c.bf16 %v6084_v55, %v6081_v62 }
 0xf27   : > { %v7780_v9 = vpop.f32.mrb[20].mxu1 }
 0xf28   : > { %v5992_v0 = vpop.f32.mrb[21].mxu1  ;;  %7561 = vmatmul.mubr.msk.bf16.gmra.mrb[48].mxu1 %vm687_vm3, %v6123_v58  ;;  %v6099_v3 = vmul.f32 %v9533_v60, %v7780_v9 }
 0xf29   : > { %v7781_v52 = vpop.f32.mrb[22].mxu1  ;;  %6500 = vmatprep.mubr.bf16.mxu1 %v14969_v4  ;;  %v6093_v50 = vmul.f32 %v9535_v19, %v5992_v0 }
 0xf2a   : > { %v6102_v42 = vmul.f32 %v9534_v37, %v7781_v52  ;;  %v5995_v29 = vpop.f32.mrb[23].mxu1 }
 0xf2b   : > { %v6096_v40 = vmul.f32 %v9536_v23, %v5995_v29 }
 0xf2c   : > { %v6150_v34 = vpack.c.bf16 %v6102_v42, %v6099_v3 }
 0xf2d   : > { %v6147_v16 = vpack.c.bf16 %v6096_v40, %v6093_v50 }
 0xf30   : > { %7562 = vmatmul.mubr.msk.bf16.gmra.mrb[52].mxu1 %vm687_vm3, %v6126_v26 }
 0xf31   : > { %6510 = vmatprep.mubr.bf16.mxu1 %v14969_v4 }
 0xf38   : > { %7563 = vmatmul.mubr.msk.bf16.gmra.mrb[56].mxu1 %vm687_vm3, %v6129_v7 }
 0xf39   : > { %6520 = vmatprep.mubr.bf16.mxu1 %v14969_v4 }
 0xf40   : > { %7564 = vmatmul.mubr.msk.bf16.gmra.mrb[60].mxu1 %vm687_vm3, %v6132_v22 }
 0xf41   : > { %6530 = vmatprep.mubr.bf16.mxu1 %v14969_v4 }
 0xf48   : > { %7565 = vmatmul.mubr.msk.bf16.gmra.mrb[64].mxu1 %vm687_vm3, %v6135_v5 }
 0xf49   : > { %6540 = vmatprep.mubr.bf16.mxu1 %v14969_v4 }
 0xf50   : > { %7566 = vmatmul.mubr.msk.bf16.gmra.mrb[68].mxu1 %vm687_vm3, %v6138_v12 }
 0xf51   : > { %6550 = vmatprep.mubr.bf16.mxu1 %v14969_v4 }
 0xf58   : > { %7567 = vmatmul.mubr.msk.bf16.gmra.mrb[72].mxu1 %vm687_vm3, %v6141_v43 }
 0xf59   : > { %6560 = vmatprep.mubr.bf16.mxu1 %v14969_v4 }
 0xf60   : > { %7568 = vmatmul.mubr.msk.bf16.gmra.mrb[76].mxu1 %vm687_vm3, %v6144_v2 }
 0xf61   : > { %6570 = vmatprep.mubr.bf16.mxu1 %v14969_v4 }
 0xf68   : > { %7569 = vmatmul.mubr.msk.bf16.gmra.mrb[12].mxu1 %vm687_vm3, %v6147_v16 }
 0xf69   : > { %6580 = vmatprep.mubr.bf16.mxu1 %v14969_v4 }
 0xf70   : > { %7570 = vmatmul.mubr.msk.bf16.gmra.mrb[80].mxu1 %vm687_vm3, %v6150_v34 }
 0xfcb   : > { %v13833_v57 = vpop.f32.mrb[24].mxu1 }
 0xfcc   : > { %v13835_v35 = vpop.f32.mrb[25].mxu1 }
 0xfcd   : > { %v6591_v44 = vmax.f32 %v13833_v57, %v13835_v35  ;;  %v13839_v21 = vpop.f32.mrb[26].mxu1 }
 0xfce   : > { %v13841_v26 = vpop.f32.mrb[27].mxu1 }
 0xfcf   : > { %v6594_v58 = vmax.f32 %v13839_v21, %v13841_v26  ;;  %6592 = vmax.xlane.f32.xlu1 %v6591_v44 }
 0xfd1   : > { %6595 = vmax.xlane.f32.xlu0 %v6594_v58 }
 0xfd3   : > { %v13845_v1 = vpop.f32.mrb[28].mxu1 }
 0xfd4   : > { %v13847_v4 = vpop.f32.mrb[29].mxu1 }
 0xfd5   : > { %v6597_v53 = vmax.f32 %v13845_v1, %v13847_v4  ;;  %v13851_v28 = vpop.f32.mrb[30].mxu1 }
 0xfd6   : > { %v13853_v41 = vpop.f32.mrb[31].mxu1 }
 0xfd7   : > { %v6600_v20 = vmax.f32 %v13851_v28, %v13853_v41  ;;  %6598 = vmax.xlane.f32.xlu0 %v6597_v53 }
 0xfd9   : > { %6601 = vmax.xlane.f32.xlu1 %v6600_v20 }
 0xfdb   : > { %v13857_v24 = vpop.f32.mrb[32].mxu1 }
 0xfdc   : > { %v13859_v32 = vpop.f32.mrb[33].mxu1 }
 0xfdd   : > { %v6603_v27 = vmax.f32 %v13857_v24, %v13859_v32  ;;  %v13863_v59 = vpop.f32.mrb[34].mxu1 }
 0xfde   : > { %v13865_v31 = vpop.f32.mrb[35].mxu1 }
 0xfdf   : > { %v6606_v18 = vmax.f32 %v13863_v59, %v13865_v31  ;;  %6604 = vmax.xlane.f32.xlu0 %v6603_v27 }
 0xfe1   : > { %6607 = vmax.xlane.f32.xlu1 %v6606_v18 }
 0xfe3   : > { %v13869_v47 = vpop.f32.mrb[36].mxu1 }
 0xfe4   : > { %v13871_v22 = vpop.f32.mrb[37].mxu1 }
 0xfe5   : > { %v6609_v7 = vmax.f32 %v13869_v47, %v13871_v22  ;;  %v13875_v36 = vpop.f32.mrb[38].mxu1 }
 0xfe6   : > { %v13877_v33 = vpop.f32.mrb[39].mxu1 }
 0xfe7   : > { %v6612_v30 = vmax.f32 %v13875_v36, %v13877_v33  ;;  %6610 = vmax.xlane.f32.xlu0 %v6609_v7 }
 0xfe9   : > { %6613 = vmax.xlane.f32.xlu1 %v6612_v30 }
 0xfeb   : > { %v13881_v54 = vpop.f32.mrb[40].mxu1 }
 0xfec   : > { %v13883_v8 = vpop.f32.mrb[41].mxu1 }
 0xfed   : > { %v6615_v38 = vmax.f32 %v13881_v54, %v13883_v8  ;;  %v13887_v15 = vpop.f32.mrb[42].mxu1 }
 0xfee   : > { %v13889_v63 = vpop.f32.mrb[43].mxu1 }
 0xfef   : > { %v6618_v46 = vmax.f32 %v13887_v15, %v13889_v63  ;;  %6616 = vmax.xlane.f32.xlu0 %v6615_v38 }
 0xff1   : > { %6619 = vmax.xlane.f32.xlu1 %v6618_v46 }
 0xff3   : > { %v13893_v17 = vpop.f32.mrb[44].mxu1 }
 0xff4   : > { %v13895_v13 = vpop.f32.mrb[45].mxu1 }
 0xff5   : > { %v6621_v61 = vmax.f32 %v13893_v17, %v13895_v13  ;;  %v13899_v12 = vpop.f32.mrb[46].mxu1 }
 0xff6   : > { %v13901_v5 = vpop.f32.mrb[47].mxu1 }
 0xff7   : > { %v6624_v45 = vmax.f32 %v13899_v12, %v13901_v5  ;;  %6622 = vmax.xlane.f32.xlu0 %v6621_v61 }
 0xff9   : > { %6625 = vmax.xlane.f32.xlu1 %v6624_v45 }
 0xffb   : > { %v13905_v11 = vpop.f32.mrb[48].mxu1 }
 0xffc   : > { %v13907_v51 = vpop.f32.mrb[49].mxu1 }
 0xffd   : > { %v6627_v6 = vmax.f32 %v13905_v11, %v13907_v51  ;;  %v13911_v56 = vpop.f32.mrb[50].mxu1 }
 0xffe   : > { %v13913_v39 = vpop.f32.mrb[51].mxu1 }
 0xfff   : > { %v6630_v10 = vmax.f32 %v13911_v56, %v13913_v39  ;;  %6628 = vmax.xlane.f32.xlu0 %v6627_v6 }
0x1001   : > { %6631 = vmax.xlane.f32.xlu1 %v6630_v10 }
0x1003   : > { %v13917_v25 = vpop.f32.mrb[52].mxu1 }
0x1004   : > { %v13919_v14 = vpop.f32.mrb[53].mxu1 }
0x1005   : > { %v6633_v62 = vmax.f32 %v13917_v25, %v13919_v14  ;;  %v13923_v48 = vpop.f32.mrb[54].mxu1 }
0x1006   : > { %v13925_v55 = vpop.f32.mrb[55].mxu1 }
0x1007   : > { %v6636_v2 = vmax.f32 %v13923_v48, %v13925_v55  ;;  %6634 = vmax.xlane.f32.xlu0 %v6633_v62 }
0x1009   : > { %6637 = vmax.xlane.f32.xlu1 %v6636_v2 }
0x100b   : > { %v13929_v43 = vpop.f32.mrb[56].mxu1 }
0x100c   : > { %v13931_v9 = vpop.f32.mrb[57].mxu1 }
0x100d   : > { %v6639_v0 = vmax.f32 %v13929_v43, %v13931_v9  ;;  %v13935_v52 = vpop.f32.mrb[58].mxu1 }
0x100e   : > { %v13937_v60 = vpop.f32.mrb[59].mxu1 }
0x100f   : > { %14973 = vst [vmem:[#allocation84_spill] sm:$0xff] %v13937_v60  ;;  %v6642_v3 = vmax.f32 %v13935_v52, %v13937_v60  ;;  %6640 = vmax.xlane.f32.xlu0 %v6639_v0 }
0x1011   : > { %6643 = vmax.xlane.f32.xlu1 %v6642_v3 }
0x1013   : > { %v13941_v37 = vpop.f32.mrb[60].mxu1 }
0x1014   : > { %14974 = vst [vmem:[#allocation83_spill] sm:$0xff] %v13941_v37  ;;  %v13943_v42 = vpop.f32.mrb[61].mxu1 }
0x1015   : > { %14975 = vst [vmem:[#allocation82_spill] sm:$0xff] %v13943_v42  ;;  %v6645_v29 = vmax.f32 %v13941_v37, %v13943_v42  ;;  %v13947_v19 = vpop.f32.mrb[62].mxu1 }
0x1016   : > { %14976 = vst [vmem:[#allocation81_spill] sm:$0xff] %v13947_v19  ;;  %v13949_v50 = vpop.f32.mrb[63].mxu1 }
0x1017   : > { %14977 = vst [vmem:[#allocation88_spill] sm:$0xff] %v13949_v50  ;;  %v6648_v23 = vmax.f32 %v13947_v19, %v13949_v50  ;;  %6646 = vmax.xlane.f32.xlu0 %v6645_v29 }
0x1019   : > { %6649 = vmax.xlane.f32.xlu1 %v6648_v23 }
0x101b   : > { %v13953_v40 = vpop.f32.mrb[64].mxu1 }
0x101c   : > { %14978 = vst [vmem:[#allocation87_spill] sm:$0xff] %v13953_v40  ;;  %v13955_v34 = vpop.f32.mrb[65].mxu1 }
0x101d   : > { %14979 = vst [vmem:[#allocation86_spill] sm:$0xff] %v13955_v34  ;;  %v6651_v16 = vmax.f32 %v13953_v40, %v13955_v34  ;;  %v13959_v44 = vpop.f32.mrb[66].mxu1 }
0x101e   : > { %14980 = vst [vmem:[#allocation85_spill] sm:$0xff] %v13959_v44  ;;  %v13961_v58 = vpop.f32.mrb[67].mxu1 }
0x101f   : > { %14981 = vst [vmem:[#allocation46_spill] sm:$0xff] %v13961_v58  ;;  %v6654_v53 = vmax.f32 %v13959_v44, %v13961_v58  ;;  %6652 = vmax.xlane.f32.xlu0 %v6651_v16 }
0x1021   : > { %6655 = vmax.xlane.f32.xlu1 %v6654_v53 }
0x1023   : > { %v13965_v20 = vpop.f32.mrb[68].mxu1 }
0x1024   : > { %14982 = vst [vmem:[#allocation49_spill] sm:$0xff] %v13965_v20  ;;  %v13967_v27 = vpop.f32.mrb[69].mxu1 }
0x1025   : > { %14983 = vst [vmem:[#allocation50_spill] sm:$0xff] %v13967_v27  ;;  %v6657_v18 = vmax.f32 %v13965_v20, %v13967_v27  ;;  %v13971_v7 = vpop.f32.mrb[70].mxu1 }
0x1026   : > { %14984 = vst [vmem:[#allocation53_spill] sm:$0xff] %v13971_v7  ;;  %v13973_v30 = vpop.f32.mrb[71].mxu1 }
0x1027   : > { %14985 = vst [vmem:[#allocation54_spill] sm:$0xff] %v13973_v30  ;;  %v6660_v38 = vmax.f32 %v13971_v7, %v13973_v30  ;;  %6658 = vmax.xlane.f32.xlu0 %v6657_v18 }
0x1029   : > { %6661 = vmax.xlane.f32.xlu1 %v6660_v38 }
0x102b   : > { %v13977_v46 = vpop.f32.mrb[72].mxu1 }
0x102c   : > { %v13979_v61 = vpop.f32.mrb[73].mxu1 }
0x102d   : > { %v13983_v6 = vpop.f32.mrb[74].mxu1 }
0x102e   : > { %v13985_v10 = vpop.f32.mrb[75].mxu1 }
0x1033   : > { %v13989_v2 = vpop.f32.mrb[76].mxu1 }
0x1034   : > { %v13991_v0 = vpop.f32.mrb[77].mxu1 }
0x1035   : > { %v13995_v29 = vpop.f32.mrb[78].mxu1 }
0x1036   : > { %v13997_v23 = vpop.f32.mrb[79].mxu1 }
0x103b   : > { %v14001_v53 = vpop.f32.mrb[12].mxu1 }
0x103c   : > { %v14003_v18 = vpop.f32.mrb[13].mxu1 }
0x103d   : > { %v14007_v62 = vpop.f32.mrb[14].mxu1 }
0x103e   : > { %v14009_v45 = vpop.f32.mrb[15].mxu1 }
0x1043   : > { %v14013_v49 = vpop.f32.mrb[80].mxu1 }
0x1044   : > { %v14015_v30 = vpop.f32.mrb[81].mxu1 }
0x1045   : > { %v14019_v7 = vpop.f32.mrb[82].mxu1 }
0x1046   : > { %v14021_v27 = vpop.f32.mrb[83].mxu1 }
0x105c   : > { %v6593_v20 = vpop.xlane.xlu1 %6592 }
0x105d   : > { %v6687_v58 = vsub.f32 %v13833_v57, %v6593_v20  ;;  %v6688_v44 = vsub.f32 %v13835_v35, %v6593_v20 }
0x105e   : > { %v6596_v3 = vpop.xlane.xlu0 %6595 }
0x105f   : > { %v6751_v34 = vmul.f32 1.442695, %v6687_v58  ;;  %v6753_v40 = vmul.f32 1.442695, %v6688_v44  ;;  %v6689_v50 = vsub.f32 %v13839_v21, %v6596_v3  ;;  %v6690_v19 = vsub.f32 %v13841_v26, %v6596_v3 }
0x1061   : > { %8958 = vpow2.f32 %v6751_v34  ;;  %v6755_v16 = vmul.f32 1.442695, %v6689_v50  ;;  %v6757_v42 = vmul.f32 1.442695, %v6690_v19 }
0x1062   : > { %8960 = vpow2.f32 %v6753_v40 }
0x1063   : > { %8962 = vpow2.f32 %v6755_v16 }
0x1064   : > { %8964 = vpow2.f32 %v6757_v42  ;;  %v6599_v37 = vpop.xlane.xlu0 %6598 }
0x1065   : > { %v6691_v38 = vsub.f32 %v13845_v1, %v6599_v37  ;;  %v6692_v57 = vsub.f32 %v13847_v4, %v6599_v37 }
0x1066   : > { %v6602_v60 = vpop.xlane.xlu1 %6601 }
0x1067   : > { %v6759_v35 = vmul.f32 1.442695, %v6691_v38  ;;  %v6761_v20 = vmul.f32 1.442695, %v6692_v57  ;;  %v6693_v44 = vsub.f32 %v13851_v28, %v6602_v60  ;;  %v6694_v21 = vsub.f32 %v13853_v41, %v6602_v60 }
0x1069   : > { %8966 = vpow2.f32 %v6759_v35  ;;  %v6763_v26 = vmul.f32 1.442695, %v6693_v44  ;;  %v6765_v34 = vmul.f32 1.442695, %v6694_v21  ;;  %v14986_v35 = vmax.f32 %v13977_v46, %v13979_v61 }
0x106a   : > { %8968 = vpow2.f32 %v6761_v20 }
0x106b   : > { %v14033_v19 = vpop.eup %8958  ;;  %8970 = vpow2.f32 %v6763_v26 }
0x106c   : > { %v14035_v42 = vpop.eup %8960  ;;  %8972 = vpow2.f32 %v6765_v34  ;;  %v6605_v1 = vpop.xlane.xlu0 %6604 }
0x106d   : > { %v14037_v50 = vpop.eup %8962  ;;  %v6695_v4 = vsub.f32 %v13857_v24, %v6605_v1  ;;  %v6696_v37 = vsub.f32 %v13859_v32, %v6605_v1  ;;  %v6879_v28 = vadd.f32 %v14035_v42, %v14033_v19  ;;  %v14987_v1 = vmax.f32 %v13983_v6, %v13985_v10 }
0x106e   : > { %v14043_v41 = vpop.eup %8964  ;;  %v6608_v60 = vpop.xlane.xlu1 %6607 }
0x106f   : > { %v6767_v40 = vmul.f32 1.442695, %v6695_v4  ;;  %v6769_v58 = vmul.f32 1.442695, %v6696_v37  ;;  %v6697_v3 = vsub.f32 %v13863_v59, %v6608_v60  ;;  %v6698_v16 = vsub.f32 %v13865_v31, %v6608_v60  ;;  %6880 = vadd.xlane.f32.xlu0 %v6879_v28 }
0x1070   : > { %v6882_v38 = vadd.f32 %v14043_v41, %v14037_v50 }
0x1071   : > { %8974 = vpow2.f32 %v6767_v40  ;;  %v6771_v24 = vmul.f32 1.442695, %v6697_v3  ;;  %v6773_v57 = vmul.f32 1.442695, %v6698_v16  ;;  %v14988_v16 = vmax.f32 %v13989_v2, %v13991_v0 }
0x1072   : > { %8976 = vpow2.f32 %v6769_v58  ;;  %6883 = vadd.xlane.f32.xlu1 %v6882_v38 }
0x1073   : > { %v14049_v32 = vpop.eup %8966  ;;  %8978 = vpow2.f32 %v6771_v24  ;;  %6664 = vmax.xlane.f32.xlu0 %v14986_v35 }
0x1074   : > { %v14054_v20 = vpop.eup %8968  ;;  %8980 = vpow2.f32 %v6773_v57  ;;  %v6611_v59 = vpop.xlane.xlu0 %6610 }
0x1075   : > { %v14056_v31 = vpop.eup %8970  ;;  %v6699_v44 = vsub.f32 %v13869_v47, %v6611_v59  ;;  %v6700_v21 = vsub.f32 %v13871_v22, %v6611_v59  ;;  %v6885_v26 = vadd.f32 %v14054_v20, %v14049_v32 }
0x1076   : > { %v14062_v34 = vpop.eup %8972  ;;  %6667 = vmax.xlane.f32.xlu1 %v14987_v1  ;;  %v6614_v4 = vpop.xlane.xlu1 %6613 }
0x1077   : > { %v6775_v37 = vmul.f32 1.442695, %v6699_v44  ;;  %v6777_v28 = vmul.f32 1.442695, %v6700_v21  ;;  %v6701_v60 = vsub.f32 %v13875_v36, %v6614_v4  ;;  %v6702_v40 = vsub.f32 %v13877_v33, %v6614_v4  ;;  %6886 = vadd.xlane.f32.xlu0 %v6885_v26 }
0x1078   : > { %v6888_v47 = vadd.f32 %v14062_v34, %v14056_v31  ;;  %v14989_v44 = vmax.f32 %v13995_v29, %v13997_v23 }
0x1079   : > { %8982 = vpow2.f32 %v6775_v37  ;;  %v6779_v22 = vmul.f32 1.442695, %v6701_v60  ;;  %v6781_v58 = vmul.f32 1.442695, %v6702_v40  ;;  %v14990_v40 = vmax.f32 %v14001_v53, %v14003_v18 }
0x107a   : > { %8984 = vpow2.f32 %v6777_v28  ;;  %6889 = vadd.xlane.f32.xlu1 %v6888_v47 }
0x107b   : > { %v14071_v3 = vpop.eup %8974  ;;  %8986 = vpow2.f32 %v6779_v22  ;;  %6670 = vmax.xlane.f32.xlu0 %v14988_v16 }
0x107c   : > { %v14076_v38 = vpop.eup %8976  ;;  %8988 = vpow2.f32 %v6781_v58  ;;  %v6617_v36 = vpop.xlane.xlu0 %6616 }
0x107d   : > { %v14078_v33 = vpop.eup %8978  ;;  %v6703_v24 = vsub.f32 %v13881_v54, %v6617_v36  ;;  %v6704_v57 = vsub.f32 %v13883_v8, %v6617_v36  ;;  %v6891_v35 = vadd.f32 %v14076_v38, %v14071_v3 }
0x107e   : > { %v14084_v59 = vpop.eup %8980  ;;  %6673 = vmax.xlane.f32.xlu1 %v14989_v44  ;;  %v6620_v21 = vpop.xlane.xlu1 %6619 }
0x107f   : > { %v6783_v26 = vmul.f32 1.442695, %v6703_v24  ;;  %v6785_v1 = vmul.f32 1.442695, %v6704_v57  ;;  %v6705_v4 = vsub.f32 %v13887_v15, %v6620_v21  ;;  %v6706_v37 = vsub.f32 %v13889_v63, %v6620_v21  ;;  %6892 = vadd.xlane.f32.xlu0 %v6891_v35 }
0x1080   : > { %v6894_v54 = vadd.f32 %v14084_v59, %v14078_v33  ;;  %v14991_v24 = vmax.f32 %v14007_v62, %v14009_v45 }
0x1081   : > { %8990 = vpow2.f32 %v6783_v26  ;;  %v6787_v8 = vmul.f32 1.442695, %v6705_v4  ;;  %v6789_v28 = vmul.f32 1.442695, %v6706_v37  ;;  %v14992_v37 = vmax.f32 %v14013_v49, %v14015_v30 }
0x1082   : > { %8992 = vpow2.f32 %v6785_v1  ;;  %6895 = vadd.xlane.f32.xlu1 %v6894_v54 }
0x1083   : > { %v14093_v60 = vpop.eup %8982  ;;  %8994 = vpow2.f32 %v6787_v8  ;;  %6676 = vmax.xlane.f32.xlu0 %v14990_v40 }
0x1084   : > { %v14098_v47 = vpop.eup %8984  ;;  %8996 = vpow2.f32 %v6789_v28  ;;  %v6623_v15 = vpop.xlane.xlu0 %6622 }
0x1085   : > { %v14100_v63 = vpop.eup %8986  ;;  %v6707_v22 = vsub.f32 %v13893_v17, %v6623_v15  ;;  %v6708_v58 = vsub.f32 %v13895_v13, %v6623_v15  ;;  %v6897_v16 = vadd.f32 %v14098_v47, %v14093_v60 }
0x1086   : > { %v14106_v36 = vpop.eup %8988  ;;  %6679 = vmax.xlane.f32.xlu1 %v14991_v24  ;;  %v6626_v57 = vpop.xlane.xlu1 %6625 }
0x1087   : > { %v6791_v35 = vmul.f32 1.442695, %v6707_v22  ;;  %v6793_v44 = vmul.f32 1.442695, %v6708_v58  ;;  %v6709_v21 = vsub.f32 %v13899_v12, %v6626_v57  ;;  %v6710_v26 = vsub.f32 %v13901_v5, %v6626_v57  ;;  %6898 = vadd.xlane.f32.xlu0 %v6897_v16 }
0x1088   : > { %v6900_v17 = vadd.f32 %v14106_v36, %v14100_v63  ;;  %v14993_v22 = vmax.f32 %v14019_v7, %v14021_v27 }
0x1089   : > { %8998 = vpow2.f32 %v6791_v35  ;;  %v6795_v13 = vmul.f32 1.442695, %v6709_v21  ;;  %v6797_v1 = vmul.f32 1.442695, %v6710_v26 }
0x108a   : > { %9000 = vpow2.f32 %v6793_v44  ;;  %6901 = vadd.xlane.f32.xlu1 %v6900_v17 }
0x108b   : > { %v14115_v4 = vpop.eup %8990  ;;  %9002 = vpow2.f32 %v6795_v13  ;;  %6682 = vmax.xlane.f32.xlu0 %v14992_v37 }
0x108c   : > { %v14120_v54 = vpop.eup %8992  ;;  %9004 = vpow2.f32 %v6797_v1  ;;  %v6629_v12 = vpop.xlane.xlu0 %6628 }
0x108d   : > { %v14122_v5 = vpop.eup %8994  ;;  %v6711_v8 = vsub.f32 %v13905_v11, %v6629_v12  ;;  %v6712_v28 = vsub.f32 %v13907_v51, %v6629_v12  ;;  %v6903_v40 = vadd.f32 %v14120_v54, %v14115_v4 }
0x108e   : > { %v14128_v15 = vpop.eup %8996  ;;  %6685 = vmax.xlane.f32.xlu1 %v14993_v22  ;;  %v6632_v58 = vpop.xlane.xlu1 %6631 }
0x108f   : > { %v6799_v16 = vmul.f32 1.442695, %v6711_v8  ;;  %v6801_v24 = vmul.f32 1.442695, %v6712_v28  ;;  %v6713_v57 = vsub.f32 %v13911_v56, %v6632_v58  ;;  %v6714_v35 = vsub.f32 %v13913_v39, %v6632_v58  ;;  %6904 = vadd.xlane.f32.xlu0 %v6903_v40 }
0x1090   : > { %v6906_v11 = vadd.f32 %v14128_v15, %v14122_v5 }
0x1091   : > { %9006 = vpow2.f32 %v6799_v16  ;;  %v6803_v51 = vmul.f32 1.442695, %v6713_v57  ;;  %v6805_v44 = vmul.f32 1.442695, %v6714_v35 }
0x1092   : > { %9008 = vpow2.f32 %v6801_v24  ;;  %6907 = vadd.xlane.f32.xlu1 %v6906_v11 }
0x1093   : > { %v14137_v21 = vpop.eup %8998  ;;  %9010 = vpow2.f32 %v6803_v51 }
0x1094   : > { %v14139_v26 = vpop.eup %9000  ;;  %9012 = vpow2.f32 %v6805_v44  ;;  %v6635_v17 = vpop.xlane.xlu0 %6634 }
0x1095   : > { %v14141_v13 = vpop.eup %9002  ;;  %v6715_v56 = vsub.f32 %v13917_v25, %v6635_v17  ;;  %v6716_v39 = vsub.f32 %v13919_v14, %v6635_v17  ;;  %v6909_v1 = vadd.f32 %v14139_v26, %v14137_v21 }
0x1096   : > { %v14147_v37 = vpop.eup %9004  ;;  %v6638_v12 = vpop.xlane.xlu1 %6637 }
0x1097   : > { %v6807_v8 = vmul.f32 1.442695, %v6715_v56  ;;  %v6809_v28 = vmul.f32 1.442695, %v6716_v39  ;;  %v6717_v40 = vsub.f32 %v13923_v48, %v6638_v12  ;;  %v6718_v22 = vsub.f32 %v13925_v55, %v6638_v12  ;;  %6910 = vadd.xlane.f32.xlu0 %v6909_v1  ;;  %v14994_v1 = vld [vmem:[#allocation84_spill] sm:$0xff] }
0x1098   : > { %v6912_v58 = vadd.f32 %v14147_v37, %v14141_v13 }
0x1099   : > { %9014 = vpow2.f32 %v6807_v8  ;;  %v6811_v25 = vmul.f32 1.442695, %v6717_v40  ;;  %v6813_v16 = vmul.f32 1.442695, %v6718_v22 }
0x109a   : > { %9016 = vpow2.f32 %v6809_v28  ;;  %6913 = vadd.xlane.f32.xlu1 %v6912_v58 }
0x109b   : > { %v14153_v14 = vpop.eup %9006  ;;  %9018 = vpow2.f32 %v6811_v25 }
0x109c   : > { %v14155_v24 = vpop.eup %9008  ;;  %9020 = vpow2.f32 %v6813_v16  ;;  %v6641_v57 = vpop.xlane.xlu0 %6640  ;;  %v14998_v16 = vld [vmem:[#allocation82_spill] sm:$0xff] }
0x109d   : > { %v14157_v35 = vpop.eup %9010  ;;  %v6719_v48 = vsub.f32 %v13929_v43, %v6641_v57  ;;  %v6720_v55 = vsub.f32 %v13931_v9, %v6641_v57  ;;  %v6915_v11 = vadd.f32 %v14155_v24, %v14153_v14 }
0x109e   : > { %v14163_v51 = vpop.eup %9012  ;;  %v6644_v44 = vpop.xlane.xlu1 %6643 }
0x109f   : > { %v6815_v17 = vmul.f32 1.442695, %v6719_v48  ;;  %v6817_v56 = vmul.f32 1.442695, %v6720_v55  ;;  %v6721_v39 = vsub.f32 %v13935_v52, %v6644_v44  ;;  %v6722_v12 = vsub.f32 %v14994_v1, %v6644_v44  ;;  %6916 = vadd.xlane.f32.xlu0 %v6915_v11  ;;  %v14997_v52 = vld [vmem:[#allocation83_spill] sm:$0xff]  ;;  %v15001_v1 = vld [vmem:[#allocation88_spill] sm:$0xff] }
0x10a0   : > { %v6918_v8 = vadd.f32 %v14163_v51, %v14157_v35 }
0x10a1   : > { %9022 = vpow2.f32 %v6815_v17  ;;  %v6819_v43 = vmul.f32 1.442695, %v6721_v39  ;;  %v6821_v28 = vmul.f32 1.442695, %v6722_v12 }
0x10a2   : > { %9024 = vpow2.f32 %v6817_v56  ;;  %6919 = vadd.xlane.f32.xlu1 %v6918_v8  ;;  %v15000_v56 = vld [vmem:[#allocation81_spill] sm:$0xff] }
0x10a3   : > { %v14169_v9 = vpop.eup %9014  ;;  %9026 = vpow2.f32 %v6819_v43 }
0x10a4   : > { %14995 = vst [vmem:[#allocation55_spill] sm:$0xff] %v14169_v9  ;;  %v14171_v40 = vpop.eup %9016  ;;  %9028 = vpow2.f32 %v6821_v28  ;;  %v6647_v22 = vpop.xlane.xlu0 %6646 }
0x10a5   : > { %v14173_v58 = vpop.eup %9018  ;;  %v6723_v25 = vsub.f32 %v14997_v52, %v6647_v22  ;;  %v6724_v57 = vsub.f32 %v14998_v16, %v6647_v22  ;;  %v6921_v48 = vadd.f32 %v14171_v40, %v14169_v9  ;;  %v15009_v9 = vld [vmem:[#allocation46_spill] sm:$0xff] }
0x10a6   : > { %14996 = vst [vmem:[#allocation56_spill] sm:$0xff] %v14173_v58  ;;  %v14179_v55 = vpop.eup %9020  ;;  %v6650_v11 = vpop.xlane.xlu1 %6649 }
0x10a7   : > { %14999 = vst [vmem:[#allocation90_spill] sm:$0xff] %v14179_v55  ;;  %v6823_v44 = vmul.f32 1.442695, %v6723_v25  ;;  %v6825_v17 = vmul.f32 1.442695, %v6724_v57  ;;  %v6725_v39 = vsub.f32 %v15000_v56, %v6650_v11  ;;  %v6726_v12 = vsub.f32 %v15001_v1, %v6650_v11  ;;  %6922 = vadd.xlane.f32.xlu0 %v6921_v48  ;;  %v15005_v57 = vld [vmem:[#allocation87_spill] sm:$0xff] }
0x10a8   : > { %v6924_v8 = vadd.f32 %v14179_v55, %v14173_v58  ;;  %v15006_v48 = vld [vmem:[#allocation86_spill] sm:$0xff] }
0x10a9   : > { %9030 = vpow2.f32 %v6823_v44  ;;  %v6827_v43 = vmul.f32 1.442695, %v6725_v39  ;;  %v6829_v28 = vmul.f32 1.442695, %v6726_v12 }
0x10aa   : > { %9032 = vpow2.f32 %v6825_v17  ;;  %6925 = vadd.xlane.f32.xlu1 %v6924_v8  ;;  %v15008_v8 = vld [vmem:[#allocation85_spill] sm:$0xff] }
0x10ab   : > { %v14185_v22 = vpop.eup %9022  ;;  %9034 = vpow2.f32 %v6827_v43 }
0x10ac   : > { %15002 = vst [vmem:[#allocation89_spill] sm:$0xff] %v14185_v22  ;;  %v14187_v52 = vpop.eup %9024  ;;  %9036 = vpow2.f32 %v6829_v28  ;;  %v6653_v25 = vpop.xlane.xlu0 %6652 }
0x10ad   : > { %15003 = vst [vmem:[#allocation51_spill] sm:$0xff] %v14187_v52  ;;  %v14189_v16 = vpop.eup %9026  ;;  %v6727_v11 = vsub.f32 %v15005_v57, %v6653_v25  ;;  %v6728_v56 = vsub.f32 %v15006_v48, %v6653_v25  ;;  %v6927_v44 = vadd.f32 %v14187_v52, %v14185_v22  ;;  %v15012_v22 = vld [vmem:[#allocation53_spill] sm:$0xff] }
0x10ae   : > { %15004 = vst [vmem:[#allocation47_spill] sm:$0xff] %v14189_v16  ;;  %v14195_v39 = vpop.eup %9028  ;;  %v6656_v17 = vpop.xlane.xlu1 %6655 }
0x10af   : > { %15007 = vst [vmem:[#allocation40_spill] sm:$0xff] %v14195_v39  ;;  %v6831_v1 = vmul.f32 1.442695, %v6727_v11  ;;  %v6833_v12 = vmul.f32 1.442695, %v6728_v56  ;;  %v6729_v43 = vsub.f32 %v15008_v8, %v6656_v17  ;;  %v6730_v58 = vsub.f32 %v15009_v9, %v6656_v17  ;;  %6928 = vadd.xlane.f32.xlu0 %v6927_v44  ;;  %v15010_v8 = vld [vmem:[#allocation49_spill] sm:$0xff] }
0x10b0   : > { %v6930_v28 = vadd.f32 %v14195_v39, %v14189_v16  ;;  %v15011_v44 = vld [vmem:[#allocation50_spill] sm:$0xff] }
0x10b1   : > { %9038 = vpow2.f32 %v6831_v1  ;;  %v6835_v57 = vmul.f32 1.442695, %v6729_v43  ;;  %v6837_v55 = vmul.f32 1.442695, %v6730_v58  ;;  %v15013_v16 = vld [vmem:[#allocation54_spill] sm:$0xff] }
0x10b2   : > { %9040 = vpow2.f32 %v6833_v12  ;;  %6931 = vadd.xlane.f32.xlu1 %v6930_v28 }
0x10b3   : > { %v14201_v25 = vpop.eup %9030  ;;  %9042 = vpow2.f32 %v6835_v57 }
0x10b4   : > { %v14203_v48 = vpop.eup %9032  ;;  %9044 = vpow2.f32 %v6837_v55  ;;  %v6659_v11 = vpop.xlane.xlu0 %6658 }
0x10b5   : > { %v14205_v56 = vpop.eup %9034  ;;  %v6731_v9 = vsub.f32 %v15010_v8, %v6659_v11  ;;  %v6732_v17 = vsub.f32 %v15011_v44, %v6659_v11  ;;  %v6933_v1 = vadd.f32 %v14203_v48, %v14201_v25 }
0x10b6   : > { %v14211_v43 = vpop.eup %9036  ;;  %v6662_v58 = vpop.xlane.xlu1 %6661 }
0x10b7   : > { %v6839_v12 = vmul.f32 1.442695, %v6731_v9  ;;  %v6841_v28 = vmul.f32 1.442695, %v6732_v17  ;;  %v6733_v57 = vsub.f32 %v15012_v22, %v6662_v58  ;;  %v6734_v39 = vsub.f32 %v15013_v16, %v6662_v58  ;;  %6934 = vadd.xlane.f32.xlu0 %v6933_v1 }
0x10b8   : > { %v6936_v55 = vadd.f32 %v14211_v43, %v14205_v56 }
0x10b9   : > { %9046 = vpow2.f32 %v6839_v12  ;;  %v6843_v8 = vmul.f32 1.442695, %v6733_v57  ;;  %v6845_v52 = vmul.f32 1.442695, %v6734_v39 }
0x10ba   : > { %9048 = vpow2.f32 %v6841_v28  ;;  %6937 = vadd.xlane.f32.xlu1 %v6936_v55 }
0x10bb   : > { %v14217_v11 = vpop.eup %9038  ;;  %9050 = vpow2.f32 %v6843_v8 }
0x10bc   : > { %15014 = vst [vmem:[#allocation43_spill] sm:$0xff] %v14217_v11  ;;  %v14219_v44 = vpop.eup %9040  ;;  %9052 = vpow2.f32 %v6845_v52 }
0x10bd   : > { %v14221_v9 = vpop.eup %9042  ;;  %v6939_v22 = vadd.f32 %v14219_v44, %v14217_v11 }
0x10be   : > { %15015 = vst [vmem:[#allocation42_spill] sm:$0xff] %v14221_v9  ;;  %v14225_v16 = vpop.eup %9044 }
0x10bf   : > { %15016 = vst [vmem:[#allocation48_spill] sm:$0xff] %v14225_v16  ;;  %6940 = vadd.xlane.f32.xlu0 %v6939_v22  ;;  %v6942_v17 = vadd.f32 %v14225_v16, %v14221_v9 }
0x10c1   : > { %6943 = vadd.xlane.f32.xlu1 %v6942_v17 }
0x10c3   : > { %v14229_v39 = vpop.eup %9046 }
0x10c4   : > { %15017 = vst [vmem:[#allocation44_spill] sm:$0xff] %v14229_v39  ;;  %v14231_v1 = vpop.eup %9048 }
0x10c5   : > { %15018 = vst [vmem:[#allocation52_spill] sm:$0xff] %v14231_v1  ;;  %v14233_v58 = vpop.eup %9050  ;;  %v6945_v52 = vadd.f32 %v14231_v1, %v14229_v39 }
0x10c6   : > { %15019 = vst [vmem:[#allocation45_spill] sm:$0xff] %v14233_v58  ;;  %v14237_v12 = vpop.eup %9052 }
0x10c7   : > { %15020 = vst [vmem:[#allocation41_spill] sm:$0xff] %v14237_v12  ;;  %6946 = vadd.xlane.f32.xlu0 %v6945_v52  ;;  %v6948_v28 = vadd.f32 %v14237_v12, %v14233_v58 }
0x10c9   : > { %6949 = vadd.xlane.f32.xlu1 %v6948_v28 }
0x10fc   : > { %v6881_v57 = vpop.xlane.xlu0 %6880 }
0x10fd   : > { %9054 = vrcp.f32 %v6881_v57 }
0x10ff   : > { %v6884_v55 = vpop.xlane.xlu1 %6883 }
0x1100   : > { %9056 = vrcp.f32 %v6884_v55  ;;  %v6665_v8 = vpop.xlane.xlu0 %6664 }
0x1101   : > { %v6735_v22 = vsub.f32 %v13977_v46, %v6665_v8  ;;  %v6736_v17 = vsub.f32 %v13979_v61, %v6665_v8 }
0x1103   : > { %v6847_v11 = vmul.f32 1.442695, %v6735_v22  ;;  %v6849_v9 = vmul.f32 1.442695, %v6736_v17  ;;  %v6668_v16 = vpop.xlane.xlu1 %6667 }
0x1104   : > { %v6737_v39 = vsub.f32 %v13983_v6, %v6668_v16  ;;  %v6738_v52 = vsub.f32 %v13985_v10, %v6668_v16  ;;  %v6887_v1 = vpop.xlane.xlu0 %6886 }
0x1105   : > { %9058 = vpow2.f32 %v6847_v11 }
0x1106   : > { %9060 = vpow2.f32 %v6849_v9  ;;  %v6851_v28 = vmul.f32 1.442695, %v6737_v39  ;;  %v6853_v58 = vmul.f32 1.442695, %v6738_v52 }
0x1107   : > { %v9055_v57 = vpop.eup %9054  ;;  %9062 = vrcp.f32 %v6887_v1  ;;  %v6890_v55 = vpop.xlane.xlu1 %6889 }
0x1108   : > { %9064 = vpow2.f32 %v6851_v28  ;;  %v6671_v12 = vpop.xlane.xlu0 %6670  ;;  %v7008_v6 = vmul.f32 %v9055_v57, %v14035_v42  ;;  %v7007_v10 = vmul.f32 %v9055_v57, %v14033_v19 }
0x1109   : > { %9066 = vpow2.f32 %v6853_v58  ;;  %v6739_v46 = vsub.f32 %v13989_v2, %v6671_v12  ;;  %v6740_v61 = vsub.f32 %v13991_v0, %v6671_v12 }
0x110a   : > { %v9057_v8 = vpop.eup %9056  ;;  %9068 = vrcp.f32 %v6890_v55 }
0x110b   : > { %v6855_v11 = vmul.f32 1.442695, %v6739_v46  ;;  %v6857_v9 = vmul.f32 1.442695, %v6740_v61  ;;  %v6674_v16 = vpop.xlane.xlu1 %6673  ;;  %v7010_v39 = vmul.f32 %v9057_v8, %v14043_v41  ;;  %v7009_v1 = vmul.f32 %v9057_v8, %v14037_v50 }
0x110c   : > { %v6741_v22 = vsub.f32 %v13995_v29, %v6674_v16  ;;  %v6742_v58 = vsub.f32 %v13997_v23, %v6674_v16  ;;  %v6893_v2 = vpop.xlane.xlu0 %6892 }
0x110d   : > { %9070 = vpow2.f32 %v6855_v11  ;;  %v7982_v0 = vpack.c.bf16 %v7010_v39, %v7008_v6  ;;  %v7984_v12 = vpack.c.bf16 %v7009_v1, %v7007_v10 }
0x110e   : > { %9072 = vpow2.f32 %v6857_v9  ;;  %v6859_v17 = vmul.f32 1.442695, %v6741_v22  ;;  %v6861_v42 = vmul.f32 1.442695, %v6742_v58 }
0x110f   : > { %v14253_v52 = vpop.eup %9058  ;;  %9074 = vrcp.f32 %v6893_v2  ;;  %7983 = vmatprep.subr.bf16.mxu0 %v7982_v0  ;;  %v6896_v19 = vpop.xlane.xlu1 %6895 }
0x1110   : > { %v14255_v28 = vpop.eup %9060  ;;  %9076 = vpow2.f32 %v6859_v17  ;;  %7985 = vmatpush1.bf16.xpose.msra.mxu0 %v7984_v12  ;;  %v6677_v50 = vpop.xlane.xlu0 %6676 }
0x1111   : > { %v9063_v29 = vpop.eup %9062  ;;  %9078 = vpow2.f32 %v6861_v42  ;;  %v6743_v23 = vsub.f32 %v14001_v53, %v6677_v50  ;;  %v6744_v41 = vsub.f32 %v14003_v18, %v6677_v50  ;;  %v6951_v57 = vadd.f32 %v14255_v28, %v14253_v52 }
0x1112   : > { %v14261_v55 = vpop.eup %9064  ;;  %9080 = vrcp.f32 %v6896_v19  ;;  %v7012_v16 = vmul.f32 %v9063_v29, %v14054_v20  ;;  %v7011_v1 = vmul.f32 %v9063_v29, %v14049_v32 }
0x1113   : > { %v14263_v46 = vpop.eup %9066  ;;  %v6863_v61 = vmul.f32 1.442695, %v6743_v23  ;;  %v6865_v8 = vmul.f32 1.442695, %v6744_v41  ;;  %v6680_v6 = vpop.xlane.xlu1 %6679  ;;  %6952 = vadd.xlane.f32.xlu0 %v6951_v57 }
0x1114   : > { %v9069_v10 = vpop.eup %9068  ;;  %v6745_v11 = vsub.f32 %v14007_v62, %v6680_v6  ;;  %v6746_v9 = vsub.f32 %v14009_v45, %v6680_v6  ;;  %v6899_v53 = vpop.xlane.xlu0 %6898  ;;  %v6954_v18 = vadd.f32 %v14263_v46, %v14261_v55 }
0x1115   : > { %9082 = vpow2.f32 %v6863_v61  ;;  %v7014_v39 = vmul.f32 %v9069_v10, %v14062_v34  ;;  %v7013_v22 = vmul.f32 %v9069_v10, %v14056_v31 }
0x1116   : > { %9084 = vpow2.f32 %v6865_v8  ;;  %v6867_v58 = vmul.f32 1.442695, %v6745_v11  ;;  %v6869_v2 = vmul.f32 1.442695, %v6746_v9  ;;  %6955 = vadd.xlane.f32.xlu1 %v6954_v18 }
0x1117   : > { %v14273_v62 = vpop.eup %9070  ;;  %9086 = vrcp.f32 %v6899_v53  ;;  %v7986_v45 = vpack.c.bf16 %v7014_v39, %v7012_v16  ;;  %v6902_v0 = vpop.xlane.xlu1 %6901  ;;  %v7988_v12 = vpack.c.bf16 %v7013_v22, %v7011_v1 }
0x1118   : > { %v14275_v17 = vpop.eup %9072  ;;  %9088 = vpow2.f32 %v6867_v58  ;;  %v6683_v20 = vpop.xlane.xlu0 %6682 }
0x1119   : > { %v9075_v42 = vpop.eup %9074  ;;  %9090 = vpow2.f32 %v6869_v2  ;;  %7987 = vmatprep.subr.bf16.mxu0 %v7986_v45  ;;  %v6747_v32 = vsub.f32 %v14013_v49, %v6683_v20  ;;  %v6748_v31 = vsub.f32 %v14015_v30, %v6683_v20  ;;  %v6957_v34 = vadd.f32 %v14275_v17, %v14273_v62 }
0x111a   : > { %v14281_v19 = vpop.eup %9076  ;;  %9092 = vrcp.f32 %v6902_v0  ;;  %7989 = vmatpush1.bf16.xpose.msra.mxu0 %v7988_v12  ;;  %v7016_v6 = vmul.f32 %v9075_v42, %v14076_v38  ;;  %v7015_v11 = vmul.f32 %v9075_v42, %v14071_v3 }
0x111b   : > { %v14283_v50 = vpop.eup %9078  ;;  %v6871_v29 = vmul.f32 1.442695, %v6747_v32  ;;  %v6873_v23 = vmul.f32 1.442695, %v6748_v31  ;;  %6958 = vadd.xlane.f32.xlu0 %v6957_v34  ;;  %v6686_v41 = vpop.xlane.xlu1 %6685 }
0x111c   : > { %v9081_v57 = vpop.eup %9080  ;;  %v6749_v61 = vsub.f32 %v14019_v7, %v6686_v41  ;;  %v6750_v49 = vsub.f32 %v14021_v27, %v6686_v41  ;;  %v6905_v8 = vpop.xlane.xlu0 %6904  ;;  %v6960_v30 = vadd.f32 %v14283_v50, %v14281_v19 }
0x111d   : > { %9094 = vpow2.f32 %v6871_v29  ;;  %v7018_v10 = vmul.f32 %v9081_v57, %v14084_v59  ;;  %v7017_v9 = vmul.f32 %v9081_v57, %v14078_v33 }
0x111e   : > { %9096 = vpow2.f32 %v6873_v23  ;;  %v6875_v53 = vmul.f32 1.442695, %v6749_v61  ;;  %v6877_v18 = vmul.f32 1.442695, %v6750_v49  ;;  %6961 = vadd.xlane.f32.xlu1 %v6960_v30 }
0x111f   : > { %v14293_v7 = vpop.eup %9082  ;;  %9098 = vrcp.f32 %v6905_v8  ;;  %v7990_v27 = vpack.c.bf16 %v7018_v10, %v7016_v6  ;;  %v6908_v16 = vpop.xlane.xlu1 %6907  ;;  %v7992_v39 = vpack.c.bf16 %v7017_v9, %v7015_v11 }
0x1120   : > { %v14295_v1 = vpop.eup %9084  ;;  %9100 = vpow2.f32 %v6875_v53 }
0x1121   : > { %v9087_v38 = vpop.eup %9086  ;;  %9102 = vpow2.f32 %v6877_v18  ;;  %7991 = vmatprep.subr.bf16.mxu0 %v7990_v27  ;;  %v6963_v3 = vadd.f32 %v14295_v1, %v14293_v7 }
0x1122   : > { %v14299_v33 = vpop.eup %9088  ;;  %9104 = vrcp.f32 %v6908_v16  ;;  %7993 = vmatpush1.bf16.xpose.msra.mxu0 %v7992_v39  ;;  %v7020_v45 = vmul.f32 %v9087_v38, %v14098_v47  ;;  %v7019_v12 = vmul.f32 %v9087_v38, %v14093_v60 }
0x1123   : > { %v14301_v59 = vpop.eup %9090  ;;  %6964 = vadd.xlane.f32.xlu0 %v6963_v3 }
0x1124   : > { %v9093_v22 = vpop.eup %9092  ;;  %v6911_v58 = vpop.xlane.xlu0 %6910  ;;  %v6966_v2 = vadd.f32 %v14301_v59, %v14299_v33 }
0x1125   : > { %v7022_v0 = vmul.f32 %v9093_v22, %v14106_v36  ;;  %v7021_v20 = vmul.f32 %v9093_v22, %v14100_v63  ;;  %9106 = vrcp.f32 %v6911_v58 }
0x1126   : > { %6967 = vadd.xlane.f32.xlu1 %v6966_v2 }
0x1127   : > { %v14309_v42 = vpop.eup %9094  ;;  %v7994_v32 = vpack.c.bf16 %v7022_v0, %v7020_v45  ;;  %v6914_v31 = vpop.xlane.xlu1 %6913  ;;  %v7996_v34 = vpack.c.bf16 %v7021_v20, %v7019_v12 }
0x1128   : > { %v14311_v29 = vpop.eup %9096  ;;  %9108 = vrcp.f32 %v6914_v31  ;;  %v15022_v31 = vld [vmem:[#allocation56_spill] sm:$0xff] }
0x1129   : > { %v9099_v23 = vpop.eup %9098  ;;  %7995 = vmatprep.subr.bf16.mxu0 %v7994_v32  ;;  %v6969_v47 = vadd.f32 %v14311_v29, %v14309_v42  ;;  %v15021_v32 = vld [vmem:[#allocation90_spill] sm:$0xff] }
0x112a   : > { %v14315_v36 = vpop.eup %9100  ;;  %7997 = vmatpush1.bf16.xpose.msra.mxu0 %v7996_v34  ;;  %v7024_v61 = vmul.f32 %v9099_v23, %v14120_v54  ;;  %v7023_v8 = vmul.f32 %v9099_v23, %v14115_v4 }
0x112b   : > { %v14317_v60 = vpop.eup %9102  ;;  %6970 = vadd.xlane.f32.xlu0 %v6969_v47 }
0x112c   : > { %v9105_v63 = vpop.eup %9104  ;;  %v6917_v41 = vpop.xlane.xlu0 %6916  ;;  %v6972_v57 = vadd.f32 %v14317_v60, %v14315_v36 }
0x112d   : > { %v7026_v49 = vmul.f32 %v9105_v63, %v14128_v15  ;;  %v7025_v30 = vmul.f32 %v9105_v63, %v14122_v5  ;;  %9110 = vrcp.f32 %v6917_v41 }
0x112e   : > { %6973 = vadd.xlane.f32.xlu1 %v6972_v57 }
0x112f   : > { %v7998_v6 = vpack.c.bf16 %v7026_v49, %v7024_v61  ;;  %v6920_v10 = vpop.xlane.xlu1 %6919  ;;  %v8000_v11 = vpack.c.bf16 %v7025_v30, %v7023_v8  ;;  %v9107_v9 = vpop.eup %9106  ;;  %v15024_v61 = vld [vmem:[#allocation51_spill] sm:$0xff]  ;;  %v15025_v8 = vld [vmem:[#allocation40_spill] sm:$0xff] }
0x1130   : > { %9112 = vrcp.f32 %v6920_v10  ;;  %v7028_v18 = vmul.f32 %v9107_v9, %v14139_v26  ;;  %v7027_v4 = vmul.f32 %v9107_v9, %v14137_v21  ;;  %v15026_v30 = vld [vmem:[#allocation47_spill] sm:$0xff] }
0x1131   : > { %7999 = vmatprep.subr.bf16.mxu0 %v7998_v6 }
0x1132   : > { %v9109_v53 = vpop.eup %9108  ;;  %8001 = vmatpush1.bf16.xpose.msra.mxu0 %v8000_v11  ;;  %v15027_v11 = vld [vmem:[#allocation89_spill] sm:$0xff] }
0x1133   : > { %v7030_v54 = vmul.f32 %v9109_v53, %v14147_v37  ;;  %v7029_v15 = vmul.f32 %v9109_v53, %v14141_v13 }
0x1134   : > { %v6923_v27 = vpop.xlane.xlu0 %6922 }
0x1135   : > { %v8002_v5 = vpack.c.bf16 %v7030_v54, %v7028_v18  ;;  %9114 = vrcp.f32 %v6923_v27  ;;  %v8004_v16 = vpack.c.bf16 %v7029_v15, %v7027_v4 }
0x1137   : > { %8003 = vmatprep.subr.bf16.mxu0 %v8002_v5  ;;  %v6926_v39 = vpop.xlane.xlu1 %6925  ;;  %v9111_v38 = vpop.eup %9110 }
0x1138   : > { %9116 = vrcp.f32 %v6926_v39  ;;  %v7032_v22 = vmul.f32 %v9111_v38, %v14155_v24  ;;  %v7031_v13 = vmul.f32 %v9111_v38, %v14153_v14 }
0x113a   : > { %v9113_v3 = vpop.eup %9112  ;;  %8005 = vmatpush1.bf16.xpose.msra.mxu0 %v8004_v16 }
0x113b   : > { %v7034_v26 = vmul.f32 %v9113_v3, %v14163_v51  ;;  %v7033_v37 = vmul.f32 %v9113_v3, %v14157_v35  ;;  %v15023_v35 = vld [vmem:[#allocation55_spill] sm:$0xff] }
0x113c   : > { %v6929_v58 = vpop.xlane.xlu0 %6928 }
0x113d   : > { %v8006_v2 = vpack.c.bf16 %v7034_v26, %v7032_v22  ;;  %9118 = vrcp.f32 %v6929_v58  ;;  %v8008_v21 = vpack.c.bf16 %v7033_v37, %v7031_v13 }
0x113f   : > { %8007 = vmatprep.subr.bf16.mxu0 %v8006_v2  ;;  %v6932_v45 = vpop.xlane.xlu1 %6931  ;;  %v9115_v0 = vpop.eup %9114  ;;  %v15028_v2 = vld [vmem:[#allocation48_spill] sm:$0xff] }
0x1140   : > { %9120 = vrcp.f32 %v6932_v45  ;;  %v7036_v20 = vmul.f32 %v9115_v0, %v14171_v40  ;;  %v7035_v23 = vmul.f32 %v9115_v0, %v15023_v35 }
0x1142   : > { %v9117_v12 = vpop.eup %9116  ;;  %8009 = vmatpush1.bf16.xpose.msra.mxu0 %v8008_v21  ;;  %v15029_v21 = vld [vmem:[#allocation42_spill] sm:$0xff] }
0x1143   : > { %v7038_v24 = vmul.f32 %v9117_v12, %v15021_v32  ;;  %v7037_v51 = vmul.f32 %v9117_v12, %v15022_v31  ;;  %v15031_v32 = vld [vmem:[#allocation52_spill] sm:$0xff]  ;;  %v15032_v31 = vld [vmem:[#allocation41_spill] sm:$0xff] }
0x1144   : > { %v6935_v34 = vpop.xlane.xlu0 %6934 }
0x1145   : > { %v8010_v47 = vpack.c.bf16 %v7038_v24, %v7036_v20  ;;  %9122 = vrcp.f32 %v6935_v34  ;;  %v8012_v14 = vpack.c.bf16 %v7037_v51, %v7035_v23  ;;  %v15033_v34 = vld [vmem:[#allocation45_spill] sm:$0xff] }
0x1147   : > { %8011 = vmatprep.subr.bf16.mxu0 %v8010_v47  ;;  %v6938_v63 = vpop.xlane.xlu1 %6937  ;;  %v9119_v41 = vpop.eup %9118 }
0x1148   : > { %9124 = vrcp.f32 %v6938_v63  ;;  %v7040_v49 = vmul.f32 %v9119_v41, %v15024_v61  ;;  %v7039_v9 = vmul.f32 %v9119_v41, %v15027_v11 }
0x114a   : > { %v9121_v57 = vpop.eup %9120  ;;  %8013 = vmatpush1.bf16.xpose.msra.mxu0 %v8012_v14 }
0x114b   : > { %v7042_v40 = vmul.f32 %v9121_v57, %v15025_v8  ;;  %v7041_v6 = vmul.f32 %v9121_v57, %v15026_v30 }
0x114c   : > { %v6941_v10 = vpop.xlane.xlu0 %6940 }
0x114d   : > { %9126 = vrcp.f32 %v6941_v10  ;;  %v8014_v53 = vpack.c.bf16 %v7042_v40, %v7040_v49  ;;  %v8016_v54 = vpack.c.bf16 %v7041_v6, %v7039_v9 }
0x114e   : > { %v6944_v18 = vpop.xlane.xlu1 %6943 }
0x114f   : > { %8015 = vmatprep.subr.bf16.mxu0 %v8014_v53  ;;  %9128 = vrcp.f32 %v6944_v18  ;;  %v9123_v15 = vpop.eup %9122 }
0x1150   : > { %v7044_v4 = vmul.f32 %v9123_v15, %v14203_v48  ;;  %v7043_v38 = vmul.f32 %v9123_v15, %v14201_v25 }
0x1152   : > { %v9125_v27 = vpop.eup %9124  ;;  %8017 = vmatpush1.bf16.xpose.msra.mxu0 %v8016_v54 }
0x1153   : > { %v7046_v5 = vmul.f32 %v9125_v27, %v14211_v43  ;;  %v7045_v16 = vmul.f32 %v9125_v27, %v14205_v56  ;;  %v15030_v56 = vld [vmem:[#allocation43_spill] sm:$0xff] }
0x1154   : > { %v6947_v39 = vpop.xlane.xlu0 %6946 }
0x1155   : > { %9130 = vrcp.f32 %v6947_v39  ;;  %v8018_v3 = vpack.c.bf16 %v7046_v5, %v7044_v4  ;;  %v8020_v26 = vpack.c.bf16 %v7045_v16, %v7043_v38 }
0x1156   : > { %v6950_v22 = vpop.xlane.xlu1 %6949 }
0x1157   : > { %v9127_v37 = vpop.eup %9126  ;;  %8019 = vmatprep.subr.bf16.mxu0 %v8018_v3  ;;  %9132 = vrcp.f32 %v6950_v22 }
0x1158   : > { %v7048_v13 = vmul.f32 %v9127_v37, %v14219_v44  ;;  %v7047_v0 = vmul.f32 %v9127_v37, %v15030_v56  ;;  %v15034_v44 = vld [vmem:[#allocation44_spill] sm:$0xff] }
0x1159   : > { %v9129_v58 = vpop.eup %9128 }
0x115a   : > { %8021 = vmatpush1.bf16.xpose.msra.mxu0 %v8020_v26  ;;  %v7050_v48 = vmul.f32 %v9129_v58, %v15028_v2  ;;  %v7049_v43 = vmul.f32 %v9129_v58, %v15029_v21  ;;  %v15036_v21 = vmov 0.0  }
0x115c   : > { %v8022_v45 = vpack.c.bf16 %v7050_v48, %v7048_v13  ;;  %v8024_v25 = vpack.c.bf16 %v7049_v43, %v7047_v0  ;;  %v654_v43 = vlaneseq }
0x115e   : > { %8023 = vmatprep.subr.bf16.mxu0 %v8022_v45  ;;  %vm656_vm4 = vcmp.lt.s32.totalorder %v654_v43, 256  ;;  %v9550_v45 = vmov 1.0  }
0x115f   : > { %v9131_v12 = vpop.eup %9130  ;;  %659 = vst.msk [vmem:[#allocation2 + $0x20] ss:$8 sm:$0x3] %vm656_vm4, %v9550_v45 }
0x1160   : > { %v7052_v24 = vmul.f32 %v9131_v12, %v15031_v32  ;;  %v7051_v47 = vmul.f32 %v9131_v12, %v15034_v44 }
0x1161   : > { %v9133_v20 = vpop.eup %9132 }
0x1162   : > { %8025 = vmatpush1.bf16.xpose.msra.mxu0 %v8024_v25  ;;  %v7054_v51 = vmul.f32 %v9133_v20, %v15032_v31  ;;  %v7053_v35 = vmul.f32 %v9133_v20, %v15033_v34  ;;  %v7158_v20 = vld [vmem:[#allocation2] sm:$0xff]  ;;  %v7157_v34 = vld [vmem:[%s14390_s5 + $0x8] sm:$0xff] }
0x1164   : > { %v8026_v23 = vpack.c.bf16 %v7054_v51, %v7052_v24  ;;  %v8028_v14 = vpack.c.bf16 %v7053_v35, %v7051_v47  ;;  %v7156_v51 = vld [vmem:[%s14390_s5] sm:$0xff] }
0x1166   : > { %8027 = vmatprep.subr.bf16.mxu0 %v8026_v23  ;;  %v7163_v24 = vld [vmem:[#allocation2 + $0x28] sm:$0x1]  ;;  %v7162_v31 = vld [vmem:[#allocation2 + $0x20] sm:$0x1] }
0x116a   : > { %8029 = vmatpush1.bf16.xpose.msra.mxu0 %v8028_v14 }
0x11a0   : > { %v6953_v63 = vpop.xlane.xlu0 %6952 }
0x11a1   : > { %9134 = vrcp.f32 %v6953_v63 }
0x11a3   : > { %v6956_v41 = vpop.xlane.xlu1 %6955 }
0x11a4   : > { %9136 = vrcp.f32 %v6956_v41 }
0x11a8   : > { %v6959_v57 = vpop.xlane.xlu0 %6958 }
0x11a9   : > { %9138 = vrcp.f32 %v6959_v57 }
0x11ab   : > { %v6962_v61 = vpop.xlane.xlu1 %6961  ;;  %v9135_v49 = vpop.eup %9134 }
0x11ac   : > { %9140 = vrcp.f32 %v6962_v61  ;;  %v7056_v40 = vmul.f32 %v9135_v49, %v14255_v28  ;;  %v7055_v6 = vmul.f32 %v9135_v49, %v14253_v52 }
0x11ae   : > { %v9137_v8 = vpop.eup %9136 }
0x11af   : > { %v7058_v30 = vmul.f32 %v9137_v8, %v14263_v46  ;;  %v7057_v10 = vmul.f32 %v9137_v8, %v14261_v55 }
0x11b0   : > { %v6965_v11 = vpop.xlane.xlu0 %6964 }
0x11b1   : > { %v8030_v9 = vpack.c.bf16 %v7058_v30, %v7056_v40  ;;  %v8032_v53 = vpack.c.bf16 %v7057_v10, %v7055_v6  ;;  %9142 = vrcp.f32 %v6965_v11 }
0x11b3   : > { %8031 = vmatprep.subr.bf16.mxu0 %v8030_v9  ;;  %v6968_v18 = vpop.xlane.xlu1 %6967  ;;  %v9139_v54 = vpop.eup %9138 }
0x11b4   : > { %9144 = vrcp.f32 %v6968_v18  ;;  %8033 = vmatpush1.bf16.xpose.msra.mxu0 %v8032_v53  ;;  %v7060_v27 = vmul.f32 %v9139_v54, %v14275_v17  ;;  %v7059_v46 = vmul.f32 %v9139_v54, %v14273_v62 }
0x11b6   : > { %v9141_v15 = vpop.eup %9140 }
0x11b7   : > { %v7062_v28 = vmul.f32 %v9141_v15, %v14283_v50  ;;  %v7061_v52 = vmul.f32 %v9141_v15, %v14281_v19 }
0x11b8   : > { %v6971_v4 = vpop.xlane.xlu0 %6970 }
0x11b9   : > { %v8034_v55 = vpack.c.bf16 %v7062_v28, %v7060_v27  ;;  %v8036_v5 = vpack.c.bf16 %v7061_v52, %v7059_v46  ;;  %9146 = vrcp.f32 %v6971_v4 }
0x11bb   : > { %8035 = vmatprep.subr.bf16.mxu0 %v8034_v55  ;;  %v6974_v16 = vpop.xlane.xlu1 %6973  ;;  %v9143_v39 = vpop.eup %9142 }
0x11bc   : > { %9148 = vrcp.f32 %v6974_v16  ;;  %8037 = vmatpush1.bf16.xpose.msra.mxu0 %v8036_v5  ;;  %v7064_v3 = vmul.f32 %v9143_v39, %v14295_v1  ;;  %v7063_v50 = vmul.f32 %v9143_v39, %v14293_v7  ;;  %v15035_v7 = vld [vmem:[#allocation29_spill] sm:$0xff] }
0x11be   : > { %v9145_v38 = vpop.eup %9144 }
0x11bf   : > { %v7066_v17 = vmul.f32 %v9145_v38, %v14301_v59  ;;  %v7065_v62 = vmul.f32 %v9145_v38, %v14299_v33  ;;  %v7073_v33 = vrot.slane %v15035_v7, 4 }
0x11c1   : > { %v8038_v22 = vpack.c.bf16 %v7066_v17, %v7064_v3  ;;  %v8040_v19 = vpack.c.bf16 %v7065_v62, %v7063_v50 }
0x11c3   : > { %8039 = vmatprep.subr.bf16.mxu0 %v8038_v22  ;;  %v9147_v26 = vpop.eup %9146 }
0x11c4   : > { %8041 = vmatpush1.bf16.xpose.msra.mxu0 %v8040_v19  ;;  %v7068_v58 = vmul.f32 %v9147_v26, %v14311_v29  ;;  %v7067_v2 = vmul.f32 %v9147_v26, %v14309_v42 }
0x11c6   : > { %v9149_v37 = vpop.eup %9148 }
0x11c7   : > { %v7070_v13 = vmul.f32 %v9149_v37, %v14317_v60  ;;  %v7069_v1 = vmul.f32 %v9149_v37, %v14315_v36  ;;  %v7159_v36 = vld [vmem:[#allocation2 + $0x8] sm:$0xff] }
0x11c9   : > { %v8042_v48 = vpack.c.bf16 %v7070_v13, %v7068_v58  ;;  %v8044_v59 = vpack.c.bf16 %v7069_v1, %v7067_v2 }
0x11cb   : > { %8043 = vmatprep.subr.bf16.mxu0 %v8042_v48 }
0x11cc   : > { %8045 = vmatpush1.bf16.xpose.msra.mxu0 %v8044_v59 }
0x11d3   : > { %7142 = vmatmul.mubr.f32.vlgmr.msra.gmra.mrb[8].mxu0 %v7073_v33 }
0x11d4   : > { %7242 = vmatprep.mubr.f32.mxu0 %v15036_v21 }
0x12a6   : > { %v7143_v29 = vpop.f32.mrb[8].mxu0 }
0x12a7   : > { %v7150_v56 = vrot.slane %v7143_v29, 4  ;;  %v7145_v60 = vpop.f32.mrb[9].mxu0 }
0x12a8   : > { %v7151_v0 = vrot.slane %v7145_v60, 4 }
0x12a9   : > { %7154 = vst [vmem:[#allocation2 + $0x10] sm:$0xf0] %v7150_v56 }
0x12aa   : > { %7155 = vst [vmem:[#allocation2 + $0x18] sm:$0xf0] %v7151_v0 }
0x12b0   : > { %v7160_v42 = vld [vmem:[#allocation2 + $0x10] sm:$0xff] }
0x12b1   : > { %v7161_v25 = vld [vmem:[#allocation2 + $0x18] sm:$0xff]  ;;  %v8048_v32 = vpack.c.bf16 %v7160_v42, %v7158_v20 }
0x12b2   : > { %v8046_v12 = vpack.c.bf16 %v7161_v25, %v7159_v36 }
0x12b4   : > { %8047 = vmatprep.subr.bf16.mxu0 %v8046_v12 }
0x12b5   : > { %8049 = vmatpush1.bf16.msra.mxu0 %v8048_v32 }
0x12b6   : > { %7571 = vmatprep.subr.msk.mxu0 %vm7171_vm5, %v7163_v24 }
0x12b9   : > { %7572 = vmatpush1.msk.msra.mxu0 %vm7171_vm5, %v7162_v31 }
0x12ba   : > { %7573 = vmatmul.mubr.msk.f32.vlgmr.msra.gmra.mrb[80].mxu0 %vm7164_vm6, %v7156_v51 }
0x12bb   : > { %7248 = vmatprep.mubr.f32.mxu0 %v15036_v21 }
0x12be   : > { %7574 = vmatmul.mubr.msk.f32.gmra.mrb[82].mxu0 %vm7164_vm6, %v7157_v34 }
0x138d   : > { %v7244_v35 = vpop.f32.mrb[80].mxu0 }
0x138e   : > { %7255 = vst [vmem:[%s9671_s8 + $0x20] sm:$0xff] %v7244_v35  ;;  %v7246_v23 = vpop.f32.mrb[81].mxu0 }
0x138f   : > { %7256 = vst [vmem:[%s9671_s8 + $0x28] sm:$0xff] %v7246_v23 }
0x1391   : > { %v7250_v44 = vpop.f32.mrb[82].mxu0 }
0x1392   : > { %7257 = vst [vmem:[%s9671_s8 + $0x30] sm:$0xff] %v7250_v44  ;;  %v7252_v47 = vpop.f32.mrb[83].mxu0 }
0x1393   : > { %7258 = vst [vmem:[%s9671_s8 + $0x38] sm:$0xff] %v7252_v47 }
0x1394 PF: > { %s16_s21 = sadd.s32 1, %s9543_s21  }
0x1395   : > { %p13_p4 = scmp.ge.s32.totalorder %s16_s21, 4  }
0x1397   :  { %15 = sbr.rel (!%p13_p4) target bundleno = 1 (0x1), region = 75 }

</bundles_post_ra>
